<compile_context>
chip_gen: v6e
topology: v6e:2x2x1
jax: 0.10.0
libtpu: 0.0.40
codegen_flags: <defaults>
</compile_context>

<pallas_src>
import math

import jax
import jax.numpy as jnp
from jax.experimental import pallas as pl
from jax.experimental.pallas import tpu as pltpu

LANE = 128                       # TPU lane width
VMEM_LIMIT = 48 * 1024 * 1024    # safe under v7x's 64 MiB physical VMEM


def _round_up(v, m):
    return ((v + m - 1) // m) * m


# ----------------------------------------------------------------------------
# Kernel A: conv_first (1x1) + LReLU, fused global avg-pool, dx-packed output.
# Output layout: xfp[b, 1+h, w, dx*nf + c] = xf[b, h, w+dx-1, c]  (0 outside),
# so downstream 3x3 convs only ever slice along H (contiguous slabs).
# ----------------------------------------------------------------------------
def conv_first_pack_pallas(x, w_first_rep, *, nf):
    B, H, W, CP = x.shape
    HW = H * W

    def kernel(x_ref, wf_ref, xfp_ref, pool_ref, xws):
        acc = jnp.dot(x_ref[0].reshape(HW, CP), wf_ref[...],
                      preferred_element_type=jnp.float32)
        acc = jnp.maximum(acc, 0.2 * acc)                        # LeakyReLU(0.2)
        pool_ref[0] = jnp.mean(acc, axis=0, keepdims=True)       # fused avg-pool
        # Stage into a zero-bordered (H+2, W+2, CP) scratch; read the three
        # W-shifted windows once and select them into the dx lane groups.
        # (conv_first's output columns are already replicated x3 in the weight,
        #  so every lane group holds xf and the select just picks the shift.)
        xws[...] = jnp.zeros(xws.shape, xws.dtype)
        xws[pl.ds(1, H), pl.ds(1, W), :] = acc.reshape(H, W, CP).astype(xws.dtype)
        lane = jax.lax.broadcasted_iota(jnp.int32, (H + 2, W, CP), 2)
        packed = jnp.where(
            lane < nf, xws[:, pl.ds(0, W), :],
            jnp.where(lane < 2 * nf, xws[:, pl.ds(1, W), :],
                      xws[:, pl.ds(2, W), :]))
        xfp_ref[0] = packed

    return pl.pallas_call(
        kernel,
        grid=(B,),
        in_specs=[
            pl.BlockSpec((1, H, W, CP), lambda b: (b, 0, 0, 0)),
            pl.BlockSpec((CP, CP), lambda b: (0, 0)),
        ],
        out_specs=(
            pl.BlockSpec((1, H + 2, W, CP), lambda b: (b, 0, 0, 0)),
            pl.BlockSpec((1, 1, CP), lambda b: (b, 0, 0)),
        ),
        out_shape=(
            jax.ShapeDtypeStruct((B, H + 2, W, CP), x.dtype),
            jax.ShapeDtypeStruct((B, 1, CP), jnp.float32),
        ),
        scratch_shapes=[pltpu.VMEM((H + 2, W + 2, CP), x.dtype)],
        compiler_params=pltpu.CompilerParams(
            dimension_semantics=("parallel",),
            vmem_limit_bytes=VMEM_LIMIT),
    )(x, w_first_rep)


# ----------------------------------------------------------------------------
# Kernel B: whole remainder of the AAB block, fused.
#   k1(3x3)->LReLU->k2(1x1)+bias->sigmoid gate; k3(3x3)*gate->k4(3x3);
#   non-attention 3x3; mix with ADM weights; LReLU; conv_last(1x1); +residual.
# ----------------------------------------------------------------------------
def aab_body_pallas(ax, xfp, x, p, *, nf):
    B, H, W, CP = x.shape
    HW = H * W
    cdt = x.dtype

    def kernel(ax_ref, xfp_ref, x_ref, wk1_ref, wk2_ref, bk2_ref, wk3_ref,
               wk4_ref, wna_ref, wlast_ref, o_ref, tws):
        b = pl.program_id(0)
        a0 = ax_ref[b, 0]                                        # SMEM scalars
        a1 = ax_ref[b, 1]

        def xf_slab(dy):                                         # contiguous slab
            return xfp_ref[0, pl.ds(dy, H), :, :].reshape(HW, CP)

        def conv3(slab_fn, w_ref):                               # 3 dense-K matmuls
            acc = jnp.zeros((HW, CP), jnp.float32)
            for dy in range(3):
                acc = acc + jnp.dot(slab_fn(dy), w_ref[dy],
                                    preferred_element_type=jnp.float32)
            return acc

        # ---- attention branch -------------------------------------------
        y = conv3(xf_slab, wk1_ref)                              # k1 (3x3)
        y = jnp.maximum(y, 0.2 * y).astype(cdt)                  # LeakyReLU(0.2)
        # k2 output columns are replicated x3 in the weight; padded lanes
        # >= 3*nf hold sigmoid(0)=0.5 but are multiplied by exactly-zero k3
        # output lanes below, so they never leak.
        gate = jax.nn.sigmoid(
            jnp.dot(y, wk2_ref[...], preferred_element_type=jnp.float32)
            + bk2_ref[...])                                      # k2 (1x1) + bias
        t3 = (conv3(xf_slab, wk3_ref) * gate).astype(cdt)        # k3 (3x3) * gate

        # Re-pack t3 (dx lane groups + 1-pixel halo) for k4, in VMEM.
        tws[...] = jnp.zeros(tws.shape, tws.dtype)
        tws[pl.ds(1, H), pl.ds(1, W), :] = t3.reshape(H, W, CP)
        lane = jax.lax.broadcasted_iota(jnp.int32, (H + 2, W, CP), 2)
        t3p = jnp.where(
            lane < nf, tws[:, pl.ds(0, W), :],
            jnp.where(lane < 2 * nf, tws[:, pl.ds(1, W), :],
                      tws[:, pl.ds(2, W), :]))

        def t3_slab(dy):
            return t3p[dy:dy + H].reshape(HW, CP)

        att = conv3(t3_slab, wk4_ref)                            # k4 (3x3)
        natt = conv3(xf_slab, wna_ref)                           # non-attention

        # ---- ADM-weighted mix + conv_last + residual ----------------------
        m = att * a0 + natt * a1
        m = jnp.maximum(m, 0.2 * m).astype(cdt)                  # LeakyReLU(0.2)
        out = jnp.dot(m, wlast_ref[...], preferred_element_type=jnp.float32)
        out = out + x_ref[0].reshape(HW, CP).astype(jnp.float32) # residual add
        o_ref[0] = out.reshape(H, W, CP).astype(o_ref.dtype)

    return pl.pallas_call(
        kernel,
        grid=(B,),
        in_specs=[
            pl.BlockSpec(memory_space=pltpu.MemorySpace.SMEM),        # ax (B,2) f32
            pl.BlockSpec((1, H + 2, W, CP), lambda b: (b, 0, 0, 0)),  # packed xf
            pl.BlockSpec((1, H, W, CP), lambda b: (b, 0, 0, 0)),      # residual
            pl.BlockSpec((3, CP, CP), lambda b: (0, 0, 0)),           # wp_k1
            pl.BlockSpec((CP, CP), lambda b: (0, 0)),                 # w_k2_rep
            pl.BlockSpec((1, CP), lambda b: (0, 0)),                  # b_k2_rep
            pl.BlockSpec((3, CP, CP), lambda b: (0, 0, 0)),           # wp_k3_rep
            pl.BlockSpec((3, CP, CP), lambda b: (0, 0, 0)),           # wp_k4
            pl.BlockSpec((3, CP, CP), lambda b: (0, 0, 0)),           # wp_na
            pl.BlockSpec((CP, CP), lambda b: (0, 0)),                 # w_last
        ],
        out_specs=pl.BlockSpec((1, H, W, CP), lambda b: (b, 0, 0, 0)),
        out_shape=jax.ShapeDtypeStruct((B, H, W, CP), cdt),
        scratch_shapes=[pltpu.VMEM((H + 2, W + 2, CP), cdt)],
        compiler_params=pltpu.CompilerParams(
            dimension_semantics=("parallel",),
            vmem_limit_bytes=VMEM_LIMIT),
    )(ax, xfp, x, p["wp_k1"], p["w_k2_rep"], p["b_k2_rep"],
      p["wp_k3_rep"], p["wp_k4"], p["wp_na"], p["w_last"])


# ----------------------------------------------------------------------------
# AAB block / AABModule forward (channel-padded NHWC, bf16 activations).
# ----------------------------------------------------------------------------
def aab_forward(x, p, *, nf, t=30.0):
    xfp, pooled = conv_first_pack_pallas(x, p["w_first_rep"], nf=nf)
    # ADM routing head: two tiny (B, nf) matmuls + exact f32 softmax in plain
    # XLA (a separate pallas_call here was pure launch overhead).
    pooled_r = pooled[:, 0, :nf]
    h = jax.nn.relu(pooled_r @ p["adm_w1"])
    ax = jax.nn.softmax((h @ p["adm_w2"]) / t, axis=-1)[:, :2].astype(jnp.float32)
    return aab_body_pallas(ax, xfp, x, p, nf=nf)


def aab_module_forward(x_nchw, params_list, *, compute_dtype=jnp.bfloat16, t=30.0):
    """AABModule.forward. x_nchw: (B, nf, H, W)."""
    B, nf, H, W = x_nchw.shape
    cp = _round_up(3 * nf, LANE)
    # NCHW -> NHWC once; pad channels so 3*nf dx-packed copies fit the lanes.
    x = jnp.transpose(x_nchw, (0, 2, 3, 1))
    x = jnp.pad(x, ((0, 0), (0, 0), (0, 0), (0, cp - nf))).astype(compute_dtype)
    for p in params_list:
        x = aab_forward(x, p, nf=nf, t=t)
    out = x[..., :nf].astype(x_nchw.dtype)
    return jnp.transpose(out, (0, 3, 1, 2))                      # back to NCHW once


# ----------------------------------------------------------------------------
# Raw (f32) parameter init + packing into the kernel layout.
# ----------------------------------------------------------------------------
def init_aab_raw(key, nf, hidden, n_experts=3):
    ks = jax.random.split(key, 10)
    c3 = lambda k: jax.random.normal(k, (3, 3, nf, nf), jnp.float32) / math.sqrt(9 * nf)
    c1 = lambda k: jax.random.normal(k, (nf, nf), jnp.float32) / math.sqrt(nf)
    return dict(
        w_first=c1(ks[0]), w_k1=c3(ks[1]), w_k2=c1(ks[2]),
        b_k2=jax.random.normal(ks[3], (nf,), jnp.float32) * 0.1,
        w_k3=c3(ks[4]), w_k4=c3(ks[5]), w_na=c3(ks[6]), w_last=c1(ks[7]),
        adm_w1=jax.random.normal(ks[8], (nf, hidden), jnp.float32) / math.sqrt(nf),
        adm_w2=jax.random.normal(ks[9], (hidden, n_experts), jnp.float32)
        / math.sqrt(hidden),
    )


def pack_aab_params(raw, nf, cp, dtype=jnp.bfloat16):
    """Pack raw f32 weights into the kernel layout.
       3x3 convs -> (3, cp, cp): rows are dx-packed input lanes (dx*nf + cin),
       dy is the leading axis.  conv_first / k2 output columns are replicated
       into the three dx lane groups so their outputs come out pre-replicated."""
    def rep_cols(w):                       # (nf, nf) -> (cp, cp), cols x3
        wr = jnp.concatenate([w, w, w], axis=1)
        return jnp.pad(wr, ((0, cp - nf), (0, cp - 3 * nf))).astype(dtype)

    def pad2(w):                           # (nf, nf) -> (cp, cp)
        return jnp.pad(w, ((0, cp - nf), (0, cp - nf))).astype(dtype)

    def pack3(w, rep=False):               # (3,3,nf,nf) HWIO -> (3, cp, cp)
        wp = w.reshape(3, 3 * nf, nf)      # rows: dx*nf + cin
        if rep:
            wp = jnp.concatenate([wp, wp, wp], axis=2)
        return jnp.pad(wp, ((0, 0), (0, cp - wp.shape[1]),
                            (0, cp - wp.shape[2]))).astype(dtype)

    b_rep = jnp.concatenate([raw["b_k2"]] * 3)
    b_rep = jnp.pad(b_rep, (0, cp - 3 * nf)).reshape(1, cp).astype(jnp.float32)
    return dict(
        w_first_rep=rep_cols(raw["w_first"]),
        wp_k1=pack3(raw["w_k1"]),
        w_k2_rep=rep_cols(raw["w_k2"]),
        b_k2_rep=b_rep,
        wp_k3_rep=pack3(raw["w_k3"], rep=True),
        wp_k4=pack3(raw["w_k4"]),
        wp_na=pack3(raw["w_na"]),
        w_last=pad2(raw["w_last"]),
        adm_w1=raw["adm_w1"],
        adm_w2=raw["adm_w2"],
    )


# ----------------------------------------------------------------------------
# Pure-jnp f32 reference (validation only).
# ----------------------------------------------------------------------------
def _lrelu(x):
    return jnp.where(x >= 0, x, 0.2 * x)


def _conv3_ref(x, w):
    return jax.lax.conv_general_dilated(
        x, w, window_strides=(1, 1), padding="SAME",
        dimension_numbers=("NHWC", "HWIO", "NHWC"),
        precision=jax.lax.Precision.HIGHEST)


def _conv1_ref(x, w):
    return jnp.einsum("bhwc,cd->bhwd", x, w, precision=jax.lax.Precision.HIGHEST)


def aab_module_ref(x_nchw, raw_list, *, t=30.0):
    x = jnp.transpose(x_nchw, (0, 2, 3, 1)).astype(jnp.float32)
    for p in raw_list:
        res = x
        xf = _lrelu(_conv1_ref(x, p["w_first"]))
        pooled = jnp.mean(xf, axis=(1, 2))
        h = jax.nn.relu(pooled @ p["adm_w1"])
        ax = jax.nn.softmax((h @ p["adm_w2"]) / t, axis=1)
        y = _lrelu(_conv3_ref(xf, p["w_k1"]))
        gate = jax.nn.sigmoid(_conv1_ref(y, p["w_k2"]) + p["b_k2"])
        att = _conv3_ref(xf, p["w_k3"]) * gate
        att = _conv3_ref(att, p["w_k4"])
        natt = _conv3_ref(xf, p["w_na"])
        m = _lrelu(att * ax[:, 0][:, None, None, None]
                   + natt * ax[:, 1][:, None, None, None])
        x = _conv1_ref(m, p["w_last"]) + res
    return jnp.transpose(x, (0, 3, 1, 2))


# ----------------------------------------------------------------------------
if __name__ == "__main__":
    key = jax.random.PRNGKey(0)
    B, nf, H, W, nb = 2, 32, 16, 16, 2
    reduction = 4
    hidden = nf // reduction
    cp = _round_up(3 * nf, LANE)

    kx, kp = jax.random.split(key)
    x = jax.random.normal(kx, (B, nf, H, W), jnp.float32)
    # Quantize the input to bf16 once so the bf16 kernel path and the f32
    # reference start from identical data.
    x = x.astype(jnp.bfloat16).astype(jnp.float32)

    raw_params = [init_aab_raw(k, nf, hidden) for k in jax.random.split(kp, nb)]
    kernel_params = [pack_aab_params(r, nf, cp) for r in raw_params]

    fwd = jax.jit(aab_module_forward)
    out = jax.block_until_ready(fwd(x, kernel_params))

    ref = aab_module_ref(x, raw_params)
    assert out.shape == x.shape and out.dtype == x.dtype
    max_err = float(jnp.max(jnp.abs(out.astype(jnp.float32) - ref)))
    # bf16-stored activations/weights through ~8 matmul stages -> loose tol.
    assert max_err < 0.25, f"max abs error vs f32 reference: {max_err}"
    print("KERNEL_OK")
</pallas_src>

<mosaic_0001>
module attributes {stable_mosaic.version = 11 : i64} {
  func.func @kernel(%arg0: i32, %arg1: memref<1x16x16x128xbf16, #tpu.memory_space<vmem>>, %arg2: memref<128x128xbf16, #tpu.memory_space<vmem>>, %arg3: memref<1x18x16x128xbf16, #tpu.memory_space<vmem>>, %arg4: memref<1x1x128xf32, #tpu.memory_space<vmem>>, %arg5: memref<18x18x128xbf16, #tpu.memory_space<vmem>>) attributes {dimension_semantics = [#tpu.dimension_semantics<parallel>], iteration_bounds = array<i64: 2>, scalar_prefetch = 0 : i64, scratch_operands = 1 : i64, tpu.core_type = #tpu.core_type<tc>, window_params = [{transform_indices = @transform_0, window_bounds = array<i64: 1, 16, 16, 128>}, {pipeline_mode = #tpu.pipeline_mode<synchronous>, transform_indices = @transform_1, window_bounds = array<i64: 128, 128>}, {transform_indices = @transform_2, window_bounds = array<i64: 1, 18, 16, 128>}, {transform_indices = @transform_3, window_bounds = array<i64: 1, 1, 128>}]} {
    %c0 = arith.constant 0 : index
    %c0_0 = arith.constant 0 : index
    %c0_1 = arith.constant 0 : index
    %c0_2 = arith.constant 0 : index
    %0 = vector.load %arg1[%c0, %c0_0, %c0_1, %c0_2] : memref<1x16x16x128xbf16, #tpu.memory_space<vmem>>, vector<1x16x16x128xbf16>
    %1 = vector.shape_cast %0 : vector<1x16x16x128xbf16> to vector<16x16x128xbf16>
    %2 = vector.shape_cast %1 : vector<16x16x128xbf16> to vector<256x128xbf16>
    %c0_3 = arith.constant 0 : index
    %c0_4 = arith.constant 0 : index
    %3 = vector.load %arg2[%c0_3, %c0_4] : memref<128x128xbf16, #tpu.memory_space<vmem>>, vector<128x128xbf16>
    %cst = arith.constant dense<0.000000e+00> : vector<256x128xf32>
    %4 = tpu.matmul %2, %3, %cst {dimension_numbers = #tpu.dot_dimension_numbers<[1], [0], [0], [1], [0, 0, 1, 1], [], []>} : vector<256x128xbf16>, vector<128x128xbf16>, vector<256x128xf32> -> vector<256x128xf32>
    %cst_5 = arith.constant 2.000000e-01 : f32
    %5 = vector.broadcast %cst_5 : f32 to vector<256x128xf32>
    %6 = arith.mulf %5, %4 : vector<256x128xf32>
    %7 = arith.maximumf %4, %6 : vector<256x128xf32>
    %cst_6 = arith.constant dense<0.000000e+00> : vector<128xf32>
    %8 = vector.multi_reduction <add>, %7, %cst_6 [0] : vector<256x128xf32> to vector<128xf32>
    %9 = vector.shape_cast %8 : vector<128xf32> to vector<1x128xf32>
    %cst_7 = arith.constant 2.560000e+02 : f32
    %10 = vector.broadcast %cst_7 : f32 to vector<1x128xf32>
    %11 = arith.divf %9, %10 : vector<1x128xf32>
    %c0_8 = arith.constant 0 : index
    %c0_9 = arith.constant 0 : index
    %c0_10 = arith.constant 0 : index
    %12 = vector.load %arg4[%c0_8, %c0_9, %c0_10] : memref<1x1x128xf32, #tpu.memory_space<vmem>>, vector<1x1x128xf32>
    %13 = vector.shape_cast %12 : vector<1x1x128xf32> to vector<1x128xf32>
    %14 = vector.shape_cast %11 : vector<1x128xf32> to vector<1x1x128xf32>
    tpu.vector_store %arg4[%c0_8, %c0_9, %c0_10], %14 {strides = array<i32>} : memref<1x1x128xf32, #tpu.memory_space<vmem>>, vector<1x1x128xf32>,
    %cst_11 = arith.constant 0.000000e+00 : bf16
    %15 = vector.broadcast %cst_11 : bf16 to vector<18x18x128xbf16>
    %c0_12 = arith.constant 0 : index
    %c0_13 = arith.constant 0 : index
    %c0_14 = arith.constant 0 : index
    %16 = vector.load %arg5[%c0_12, %c0_13, %c0_14] : memref<18x18x128xbf16, #tpu.memory_space<vmem>>, vector<18x18x128xbf16>
    tpu.vector_store %arg5[%c0_12, %c0_13, %c0_14], %15 {strides = array<i32>} : memref<18x18x128xbf16, #tpu.memory_space<vmem>>, vector<18x18x128xbf16>,
    %17 = vector.shape_cast %7 : vector<256x128xf32> to vector<16x16x128xf32>
    %18 = arith.truncf %17 : vector<16x16x128xf32> to vector<16x16x128xbf16>
    %c1 = arith.constant 1 : index
    %c1_15 = arith.constant 1 : index
    %c0_16 = arith.constant 0 : index
    %19 = vector.load %arg5[%c1, %c1_15, %c0_16] : memref<18x18x128xbf16, #tpu.memory_space<vmem>>, vector<16x16x128xbf16>
    tpu.vector_store %arg5[%c1, %c1_15, %c0_16], %18 {strides = array<i32>} : memref<18x18x128xbf16, #tpu.memory_space<vmem>>, vector<16x16x128xbf16>,
    %20 = tpu.iota {dimensions = array<i32: 2>} : vector<18x16x128xi32>
    %c32_i32 = arith.constant 32 : i32
    %21 = vector.broadcast %c32_i32 : i32 to vector<18x16x128xi32>
    %22 = arith.cmpi slt, %20, %21 : vector<18x16x128xi32>
    %c0_17 = arith.constant 0 : index
    %c0_18 = arith.constant 0 : index
    %c0_19 = arith.constant 0 : index
    %23 = vector.load %arg5[%c0_17, %c0_18, %c0_19] : memref<18x18x128xbf16, #tpu.memory_space<vmem>>, vector<18x16x128xbf16>
    %c64_i32 = arith.constant 64 : i32
    %24 = vector.broadcast %c64_i32 : i32 to vector<18x16x128xi32>
    %25 = arith.cmpi slt, %20, %24 : vector<18x16x128xi32>
    %c0_20 = arith.constant 0 : index
    %c1_21 = arith.constant 1 : index
    %c0_22 = arith.constant 0 : index
    %26 = vector.load %arg5[%c0_20, %c1_21, %c0_22] : memref<18x18x128xbf16, #tpu.memory_space<vmem>>, vector<18x16x128xbf16>
    %c0_23 = arith.constant 0 : index
    %c2 = arith.constant 2 : index
    %c0_24 = arith.constant 0 : index
    %27 = vector.load %arg5[%c0_23, %c2, %c0_24] : memref<18x18x128xbf16, #tpu.memory_space<vmem>>, vector<18x16x128xbf16>
    %28 = arith.select %25, %26, %27 : vector<18x16x128xi1>, vector<18x16x128xbf16>
    %29 = arith.select %22, %23, %28 : vector<18x16x128xi1>, vector<18x16x128xbf16>
    %c0_25 = arith.constant 0 : index
    %c0_26 = arith.constant 0 : index
    %c0_27 = arith.constant 0 : index
    %c0_28 = arith.constant 0 : index
    %30 = vector.load %arg3[%c0_25, %c0_26, %c0_27, %c0_28] : memref<1x18x16x128xbf16, #tpu.memory_space<vmem>>, vector<1x18x16x128xbf16>
    %31 = vector.shape_cast %30 : vector<1x18x16x128xbf16> to vector<18x16x128xbf16>
    %32 = vector.shape_cast %29 : vector<18x16x128xbf16> to vector<1x18x16x128xbf16>
    tpu.vector_store %arg3[%c0_25, %c0_26, %c0_27, %c0_28], %32 {strides = array<i32>} : memref<1x18x16x128xbf16, #tpu.memory_space<vmem>>, vector<1x18x16x128xbf16>,
    return
  }
  func.func @transform_0(%arg0: i32) -> (i32, i32, i32, i32) {
    %c0_i32 = arith.constant 0 : i32
    %c0_i32_0 = arith.constant 0 : i32
    %c0_i32_1 = arith.constant 0 : i32
    %c0_i32_2 = arith.constant 0 : i32
    return %arg0, %c0_i32, %c0_i32_0, %c0_i32_1 : i32, i32, i32, i32
  }
  func.func @transform_1(%arg0: i32) -> (i32, i32) {
    %c0_i32 = arith.constant 0 : i32
    %c0_i32_0 = arith.constant 0 : i32
    %c0_i32_1 = arith.constant 0 : i32
    return %c0_i32, %c0_i32_0 : i32, i32
  }
  func.func @transform_2(%arg0: i32) -> (i32, i32, i32, i32) {
    %c0_i32 = arith.constant 0 : i32
    %c0_i32_0 = arith.constant 0 : i32
    %c0_i32_1 = arith.constant 0 : i32
    %c0_i32_2 = arith.constant 0 : i32
    return %arg0, %c0_i32, %c0_i32_0, %c0_i32_1 : i32, i32, i32, i32
  }
  func.func @transform_3(%arg0: i32) -> (i32, i32, i32) {
    %c0_i32 = arith.constant 0 : i32
    %c0_i32_0 = arith.constant 0 : i32
    %c0_i32_1 = arith.constant 0 : i32
    return %arg0, %c0_i32, %c0_i32_0 : i32, i32, i32
  }
}

module attributes {stable_mosaic.version = 11 : i64} {
  func.func @kernel(%arg0: i32, %arg1: memref<2x2xf32, #tpu.memory_space<smem>>, %arg2: memref<1x18x16x128xbf16, #tpu.memory_space<vmem>>, %arg3: memref<1x16x16x128xbf16, #tpu.memory_space<vmem>>, %arg4: memref<3x128x128xbf16, #tpu.memory_space<vmem>>, %arg5: memref<128x128xbf16, #tpu.memory_space<vmem>>, %arg6: memref<1x128xf32, #tpu.memory_space<vmem>>, %arg7: memref<3x128x128xbf16, #tpu.memory_space<vmem>>, %arg8: memref<3x128x128xbf16, #tpu.memory_space<vmem>>, %arg9: memref<3x128x128xbf16, #tpu.memory_space<vmem>>, %arg10: memref<128x128xbf16, #tpu.memory_space<vmem>>, %arg11: memref<1x16x16x128xbf16, #tpu.memory_space<vmem>>, %arg12: memref<18x18x128xbf16, #tpu.memory_space<vmem>>) attributes {dimension_semantics = [#tpu.dimension_semantics<parallel>], iteration_bounds = array<i64: 2>, scalar_prefetch = 0 : i64, scratch_operands = 1 : i64, tpu.core_type = #tpu.core_type<tc>, window_params = [{transform_indices = @transform_0, window_bounds = array<i64: 2, 2>}, {transform_indices = @transform_1, window_bounds = array<i64: 1, 18, 16, 128>}, {transform_indices = @transform_2, window_bounds = array<i64: 1, 16, 16, 128>}, {pipeline_mode = #tpu.pipeline_mode<synchronous>, transform_indices = @transform_3, window_bounds = array<i64: 3, 128, 128>}, {pipeline_mode = #tpu.pipeline_mode<synchronous>, transform_indices = @transform_4, window_bounds = array<i64: 128, 128>}, {pipeline_mode = #tpu.pipeline_mode<synchronous>, transform_indices = @transform_5, window_bounds = array<i64: 1, 128>}, {pipeline_mode = #tpu.pipeline_mode<synchronous>, transform_indices = @transform_6, window_bounds = array<i64: 3, 128, 128>}, {pipeline_mode = #tpu.pipeline_mode<synchronous>, transform_indices = @transform_7, window_bounds = array<i64: 3, 128, 128>}, {pipeline_mode = #tpu.pipeline_mode<synchronous>, transform_indices = @transform_8, window_bounds = array<i64: 3, 128, 128>}, {pipeline_mode = #tpu.pipeline_mode<synchronous>, transform_indices = @transform_9, window_bounds = array<i64: 128, 128>}, {transform_indices = @transform_10, window_bounds = array<i64: 1, 16, 16, 128>}]} {
    %0 = arith.index_cast %arg0 : i32 to index
    %c0 = arith.constant 0 : index
    %1 = memref.load %arg1[%0, %c0] : memref<2x2xf32, #tpu.memory_space<smem>>
    %2 = arith.index_cast %arg0 : i32 to index
    %c1 = arith.constant 1 : index
    %3 = memref.load %arg1[%2, %c1] : memref<2x2xf32, #tpu.memory_space<smem>>
    %cst = arith.constant 0.000000e+00 : f32
    %4 = vector.broadcast %cst : f32 to vector<256x128xf32>
    %c0_0 = arith.constant 0 : index
    %c0_1 = arith.constant 0 : index
    %c0_2 = arith.constant 0 : index
    %c0_3 = arith.constant 0 : index
    %5 = vector.load %arg2[%c0_0, %c0_1, %c0_2, %c0_3] : memref<1x18x16x128xbf16, #tpu.memory_space<vmem>>, vector<1x16x16x128xbf16>
    %6 = vector.shape_cast %5 : vector<1x16x16x128xbf16> to vector<16x16x128xbf16>
    %7 = vector.shape_cast %6 : vector<16x16x128xbf16> to vector<256x128xbf16>
    %c0_4 = arith.constant 0 : index
    %c0_5 = arith.constant 0 : index
    %c0_6 = arith.constant 0 : index
    %8 = vector.load %arg4[%c0_4, %c0_5, %c0_6] : memref<3x128x128xbf16, #tpu.memory_space<vmem>>, vector<1x128x128xbf16>
    %9 = vector.shape_cast %8 : vector<1x128x128xbf16> to vector<128x128xbf16>
    %cst_7 = arith.constant dense<0.000000e+00> : vector<256x128xf32>
    %10 = tpu.matmul %7, %9, %cst_7 {dimension_numbers = #tpu.dot_dimension_numbers<[1], [0], [0], [1], [0, 0, 1, 1], [], []>} : vector<256x128xbf16>, vector<128x128xbf16>, vector<256x128xf32> -> vector<256x128xf32>
    %11 = arith.addf %4, %10 : vector<256x128xf32>
    %c0_8 = arith.constant 0 : index
    %c1_9 = arith.constant 1 : index
    %c0_10 = arith.constant 0 : index
    %c0_11 = arith.constant 0 : index
    %12 = vector.load %arg2[%c0_8, %c1_9, %c0_10, %c0_11] : memref<1x18x16x128xbf16, #tpu.memory_space<vmem>>, vector<1x16x16x128xbf16>
    %13 = vector.shape_cast %12 : vector<1x16x16x128xbf16> to vector<16x16x128xbf16>
    %14 = vector.shape_cast %13 : vector<16x16x128xbf16> to vector<256x128xbf16>
    %c1_12 = arith.constant 1 : index
    %c0_13 = arith.constant 0 : index
    %c0_14 = arith.constant 0 : index
    %15 = vector.load %arg4[%c1_12, %c0_13, %c0_14] : memref<3x128x128xbf16, #tpu.memory_space<vmem>>, vector<1x128x128xbf16>
    %16 = vector.shape_cast %15 : vector<1x128x128xbf16> to vector<128x128xbf16>
    %cst_15 = arith.constant dense<0.000000e+00> : vector<256x128xf32>
    %17 = tpu.matmul %14, %16, %cst_15 {dimension_numbers = #tpu.dot_dimension_numbers<[1], [0], [0], [1], [0, 0, 1, 1], [], []>} : vector<256x128xbf16>, vector<128x128xbf16>, vector<256x128xf32> -> vector<256x128xf32>
    %18 = arith.addf %11, %17 : vector<256x128xf32>
    %c0_16 = arith.constant 0 : index
    %c2 = arith.constant 2 : index
    %c0_17 = arith.constant 0 : index
    %c0_18 = arith.constant 0 : index
    %19 = vector.load %arg2[%c0_16, %c2, %c0_17, %c0_18] : memref<1x18x16x128xbf16, #tpu.memory_space<vmem>>, vector<1x16x16x128xbf16>
    %20 = vector.shape_cast %19 : vector<1x16x16x128xbf16> to vector<16x16x128xbf16>
    %21 = vector.shape_cast %20 : vector<16x16x128xbf16> to vector<256x128xbf16>
    %c2_19 = arith.constant 2 : index
    %c0_20 = arith.constant 0 : index
    %c0_21 = arith.constant 0 : index
    %22 = vector.load %arg4[%c2_19, %c0_20, %c0_21] : memref<3x128x128xbf16, #tpu.memory_space<vmem>>, vector<1x128x128xbf16>
    %23 = vector.shape_cast %22 : vector<1x128x128xbf16> to vector<128x128xbf16>
    %cst_22 = arith.constant dense<0.000000e+00> : vector<256x128xf32>
    %24 = tpu.matmul %21, %23, %cst_22 {dimension_numbers = #tpu.dot_dimension_numbers<[1], [0], [0], [1], [0, 0, 1, 1], [], []>} : vector<256x128xbf16>, vector<128x128xbf16>, vector<256x128xf32> -> vector<256x128xf32>
    %25 = arith.addf %18, %24 : vector<256x128xf32>
    %cst_23 = arith.constant 2.000000e-01 : f32
    %26 = vector.broadcast %cst_23 : f32 to vector<256x128xf32>
    %27 = arith.mulf %26, %25 : vector<256x128xf32>
    %28 = arith.maximumf %25, %27 : vector<256x128xf32>
    %29 = arith.truncf %28 : vector<256x128xf32> to vector<256x128xbf16>
    %c0_24 = arith.constant 0 : index
    %c0_25 = arith.constant 0 : index
    %30 = vector.load %arg5[%c0_24, %c0_25] : memref<128x128xbf16, #tpu.memory_space<vmem>>, vector<128x128xbf16>
    %cst_26 = arith.constant dense<0.000000e+00> : vector<256x128xf32>
    %31 = tpu.matmul %29, %30, %cst_26 {dimension_numbers = #tpu.dot_dimension_numbers<[1], [0], [0], [1], [0, 0, 1, 1], [], []>} : vector<256x128xbf16>, vector<128x128xbf16>, vector<256x128xf32> -> vector<256x128xf32>
    %c0_27 = arith.constant 0 : index
    %c0_28 = arith.constant 0 : index
    %32 = vector.load %arg6[%c0_27, %c0_28] : memref<1x128xf32, #tpu.memory_space<vmem>>, vector<1x128xf32>
    %33 = vector.broadcast %32 : vector<1x128xf32> to vector<256x128xf32>
    %34 = arith.addf %31, %33 : vector<256x128xf32>
    %35 = arith.negf %34 : vector<256x128xf32>
    %36 = math.exp %35 : vector<256x128xf32>
    %cst_29 = arith.constant 1.000000e+00 : f32
    %37 = vector.broadcast %cst_29 : f32 to vector<256x128xf32>
    %38 = arith.addf %37, %36 : vector<256x128xf32>
    %39 = arith.divf %37, %38 : vector<256x128xf32>
    %cst_30 = arith.constant 0.000000e+00 : f32
    %40 = vector.broadcast %cst_30 : f32 to vector<256x128xf32>
    %c0_31 = arith.constant 0 : index
    %c0_32 = arith.constant 0 : index
    %c0_33 = arith.constant 0 : index
    %c0_34 = arith.constant 0 : index
    %41 = vector.load %arg2[%c0_31, %c0_32, %c0_33, %c0_34] : memref<1x18x16x128xbf16, #tpu.memory_space<vmem>>, vector<1x16x16x128xbf16>
    %42 = vector.shape_cast %41 : vector<1x16x16x128xbf16> to vector<16x16x128xbf16>
    %43 = vector.shape_cast %42 : vector<16x16x128xbf16> to vector<256x128xbf16>
    %c0_35 = arith.constant 0 : index
    %c0_36 = arith.constant 0 : index
    %c0_37 = arith.constant 0 : index
    %44 = vector.load %arg7[%c0_35, %c0_36, %c0_37] : memref<3x128x128xbf16, #tpu.memory_space<vmem>>, vector<1x128x128xbf16>
    %45 = vector.shape_cast %44 : vector<1x128x128xbf16> to vector<128x128xbf16>
    %cst_38 = arith.constant dense<0.000000e+00> : vector<256x128xf32>
    %46 = tpu.matmul %43, %45, %cst_38 {dimension_numbers = #tpu.dot_dimension_numbers<[1], [0], [0], [1], [0, 0, 1, 1], [], []>} : vector<256x128xbf16>, vector<128x128xbf16>, vector<256x128xf32> -> vector<256x128xf32>
    %47 = arith.addf %40, %46 : vector<256x128xf32>
    %c0_39 = arith.constant 0 : index
    %c1_40 = arith.constant 1 : index
    %c0_41 = arith.constant 0 : index
    %c0_42 = arith.constant 0 : index
    %48 = vector.load %arg2[%c0_39, %c1_40, %c0_41, %c0_42] : memref<1x18x16x128xbf16, #tpu.memory_space<vmem>>, vector<1x16x16x128xbf16>
    %49 = vector.shape_cast %48 : vector<1x16x16x128xbf16> to vector<16x16x128xbf16>
    %50 = vector.shape_cast %49 : vector<16x16x128xbf16> to vector<256x128xbf16>
    %c1_43 = arith.constant 1 : index
    %c0_44 = arith.constant 0 : index
    %c0_45 = arith.constant 0 : index
    %51 = vector.load %arg7[%c1_43, %c0_44, %c0_45] : memref<3x128x128xbf16, #tpu.memory_space<vmem>>, vector<1x128x128xbf16>
    %52 = vector.shape_cast %51 : vector<1x128x128xbf16> to vector<128x128xbf16>
    %cst_46 = arith.constant dense<0.000000e+00> : vector<256x128xf32>
    %53 = tpu.matmul %50, %52, %cst_46 {dimension_numbers = #tpu.dot_dimension_numbers<[1], [0], [0], [1], [0, 0, 1, 1], [], []>} : vector<256x128xbf16>, vector<128x128xbf16>, vector<256x128xf32> -> vector<256x128xf32>
    %54 = arith.addf %47, %53 : vector<256x128xf32>
    %c0_47 = arith.constant 0 : index
    %c2_48 = arith.constant 2 : index
    %c0_49 = arith.constant 0 : index
    %c0_50 = arith.constant 0 : index
    %55 = vector.load %arg2[%c0_47, %c2_48, %c0_49, %c0_50] : memref<1x18x16x128xbf16, #tpu.memory_space<vmem>>, vector<1x16x16x128xbf16>
    %56 = vector.shape_cast %55 : vector<1x16x16x128xbf16> to vector<16x16x128xbf16>
    %57 = vector.shape_cast %56 : vector<16x16x128xbf16> to vector<256x128xbf16>
    %c2_51 = arith.constant 2 : index
    %c0_52 = arith.constant 0 : index
    %c0_53 = arith.constant 0 : index
    %58 = vector.load %arg7[%c2_51, %c0_52, %c0_53] : memref<3x128x128xbf16, #tpu.memory_space<vmem>>, vector<1x128x128xbf16>
    %59 = vector.shape_cast %58 : vector<1x128x128xbf16> to vector<128x128xbf16>
    %cst_54 = arith.constant dense<0.000000e+00> : vector<256x128xf32>
    %60 = tpu.matmul %57, %59, %cst_54 {dimension_numbers = #tpu.dot_dimension_numbers<[1], [0], [0], [1], [0, 0, 1, 1], [], []>} : vector<256x128xbf16>, vector<128x128xbf16>, vector<256x128xf32> -> vector<256x128xf32>
    %61 = arith.addf %54, %60 : vector<256x128xf32>
    %62 = arith.mulf %61, %39 : vector<256x128xf32>
    %63 = arith.truncf %62 : vector<256x128xf32> to vector<256x128xbf16>
    %cst_55 = arith.constant 0.000000e+00 : bf16
    %64 = vector.broadcast %cst_55 : bf16 to vector<18x18x128xbf16>
    %c0_56 = arith.constant 0 : index
    %c0_57 = arith.constant 0 : index
    %c0_58 = arith.constant 0 : index
    %65 = vector.load %arg12[%c0_56, %c0_57, %c0_58] : memref<18x18x128xbf16, #tpu.memory_space<vmem>>, vector<18x18x128xbf16>
    tpu.vector_store %arg12[%c0_56, %c0_57, %c0_58], %64 {strides = array<i32>} : memref<18x18x128xbf16, #tpu.memory_space<vmem>>, vector<18x18x128xbf16>,
    %66 = vector.shape_cast %63 : vector<256x128xbf16> to vector<16x16x128xbf16>
    %c1_59 = arith.constant 1 : index
    %c1_60 = arith.constant 1 : index
    %c0_61 = arith.constant 0 : index
    %67 = vector.load %arg12[%c1_59, %c1_60, %c0_61] : memref<18x18x128xbf16, #tpu.memory_space<vmem>>, vector<16x16x128xbf16>
    tpu.vector_store %arg12[%c1_59, %c1_60, %c0_61], %66 {strides = array<i32>} : memref<18x18x128xbf16, #tpu.memory_space<vmem>>, vector<16x16x128xbf16>,
    %68 = tpu.iota {dimensions = array<i32: 2>} : vector<18x16x128xi32>
    %c32_i32 = arith.constant 32 : i32
    %69 = vector.broadcast %c32_i32 : i32 to vector<18x16x128xi32>
    %70 = arith.cmpi slt, %68, %69 : vector<18x16x128xi32>
    %c0_62 = arith.constant 0 : index
    %c0_63 = arith.constant 0 : index
    %c0_64 = arith.constant 0 : index
    %71 = vector.load %arg12[%c0_62, %c0_63, %c0_64] : memref<18x18x128xbf16, #tpu.memory_space<vmem>>, vector<18x16x128xbf16>
    %c64_i32 = arith.constant 64 : i32
    %72 = vector.broadcast %c64_i32 : i32 to vector<18x16x128xi32>
    %73 = arith.cmpi slt, %68, %72 : vector<18x16x128xi32>
    %c0_65 = arith.constant 0 : index
    %c1_66 = arith.constant 1 : index
    %c0_67 = arith.constant 0 : index
    %74 = vector.load %arg12[%c0_65, %c1_66, %c0_67] : memref<18x18x128xbf16, #tpu.memory_space<vmem>>, vector<18x16x128xbf16>
    %c0_68 = arith.constant 0 : index
    %c2_69 = arith.constant 2 : index
    %c0_70 = arith.constant 0 : index
    %75 = vector.load %arg12[%c0_68, %c2_69, %c0_70] : memref<18x18x128xbf16, #tpu.memory_space<vmem>>, vector<18x16x128xbf16>
    %76 = arith.select %73, %74, %75 : vector<18x16x128xi1>, vector<18x16x128xbf16>
    %77 = arith.select %70, %71, %76 : vector<18x16x128xi1>, vector<18x16x128xbf16>
    %cst_71 = arith.constant 0.000000e+00 : f32
    %78 = vector.broadcast %cst_71 : f32 to vector<256x128xf32>
    %79 = vector.extract_strided_slice %77 {offsets = [0, 0, 0], sizes = [16, 16, 128], strides = [1, 1, 1]} : vector<18x16x128xbf16> to vector<16x16x128xbf16>
    %80 = vector.shape_cast %79 : vector<16x16x128xbf16> to vector<256x128xbf16>
    %c0_72 = arith.constant 0 : index
    %c0_73 = arith.constant 0 : index
    %c0_74 = arith.constant 0 : index
    %81 = vector.load %arg8[%c0_72, %c0_73, %c0_74] : memref<3x128x128xbf16, #tpu.memory_space<vmem>>, vector<1x128x128xbf16>
    %82 = vector.shape_cast %81 : vector<1x128x128xbf16> to vector<128x128xbf16>
    %cst_75 = arith.constant dense<0.000000e+00> : vector<256x128xf32>
    %83 = tpu.matmul %80, %82, %cst_75 {dimension_numbers = #tpu.dot_dimension_numbers<[1], [0], [0], [1], [0, 0, 1, 1], [], []>} : vector<256x128xbf16>, vector<128x128xbf16>, vector<256x128xf32> -> vector<256x128xf32>
    %84 = arith.addf %78, %83 : vector<256x128xf32>
    %85 = vector.extract_strided_slice %77 {offsets = [1, 0, 0], sizes = [16, 16, 128], strides = [1, 1, 1]} : vector<18x16x128xbf16> to vector<16x16x128xbf16>
    %86 = vector.shape_cast %85 : vector<16x16x128xbf16> to vector<256x128xbf16>
    %c1_76 = arith.constant 1 : index
    %c0_77 = arith.constant 0 : index
    %c0_78 = arith.constant 0 : index
    %87 = vector.load %arg8[%c1_76, %c0_77, %c0_78] : memref<3x128x128xbf16, #tpu.memory_space<vmem>>, vector<1x128x128xbf16>
    %88 = vector.shape_cast %87 : vector<1x128x128xbf16> to vector<128x128xbf16>
    %cst_79 = arith.constant dense<0.000000e+00> : vector<256x128xf32>
    %89 = tpu.matmul %86, %88, %cst_79 {dimension_numbers = #tpu.dot_dimension_numbers<[1], [0], [0], [1], [0, 0, 1, 1], [], []>} : vector<256x128xbf16>, vector<128x128xbf16>, vector<256x128xf32> -> vector<256x128xf32>
    %90 = arith.addf %84, %89 : vector<256x128xf32>
    %91 = vector.extract_strided_slice %77 {offsets = [2, 0, 0], sizes = [16, 16, 128], strides = [1, 1, 1]} : vector<18x16x128xbf16> to vector<16x16x128xbf16>
    %92 = vector.shape_cast %91 : vector<16x16x128xbf16> to vector<256x128xbf16>
    %c2_80 = arith.constant 2 : index
    %c0_81 = arith.constant 0 : index
    %c0_82 = arith.constant 0 : index
    %93 = vector.load %arg8[%c2_80, %c0_81, %c0_82] : memref<3x128x128xbf16, #tpu.memory_space<vmem>>, vector<1x128x128xbf16>
    %94 = vector.shape_cast %93 : vector<1x128x128xbf16> to vector<128x128xbf16>
    %cst_83 = arith.constant dense<0.000000e+00> : vector<256x128xf32>
    %95 = tpu.matmul %92, %94, %cst_83 {dimension_numbers = #tpu.dot_dimension_numbers<[1], [0], [0], [1], [0, 0, 1, 1], [], []>} : vector<256x128xbf16>, vector<128x128xbf16>, vector<256x128xf32> -> vector<256x128xf32>
    %96 = arith.addf %90, %95 : vector<256x128xf32>
    %cst_84 = arith.constant 0.000000e+00 : f32
    %97 = vector.broadcast %cst_84 : f32 to vector<256x128xf32>
    %c0_85 = arith.constant 0 : index
    %c0_86 = arith.constant 0 : index
    %c0_87 = arith.constant 0 : index
    %c0_88 = arith.constant 0 : index
    %98 = vector.load %arg2[%c0_85, %c0_86, %c0_87, %c0_88] : memref<1x18x16x128xbf16, #tpu.memory_space<vmem>>, vector<1x16x16x128xbf16>
    %99 = vector.shape_cast %98 : vector<1x16x16x128xbf16> to vector<16x16x128xbf16>
    %100 = vector.shape_cast %99 : vector<16x16x128xbf16> to vector<256x128xbf16>
    %c0_89 = arith.constant 0 : index
    %c0_90 = arith.constant 0 : index
    %c0_91 = arith.constant 0 : index
    %101 = vector.load %arg9[%c0_89, %c0_90, %c0_91] : memref<3x128x128xbf16, #tpu.memory_space<vmem>>, vector<1x128x128xbf16>
    %102 = vector.shape_cast %101 : vector<1x128x128xbf16> to vector<128x128xbf16>
    %cst_92 = arith.constant dense<0.000000e+00> : vector<256x128xf32>
    %103 = tpu.matmul %100, %102, %cst_92 {dimension_numbers = #tpu.dot_dimension_numbers<[1], [0], [0], [1], [0, 0, 1, 1], [], []>} : vector<256x128xbf16>, vector<128x128xbf16>, vector<256x128xf32> -> vector<256x128xf32>
    %104 = arith.addf %97, %103 : vector<256x128xf32>
    %c0_93 = arith.constant 0 : index
    %c1_94 = arith.constant 1 : index
    %c0_95 = arith.constant 0 : index
    %c0_96 = arith.constant 0 : index
    %105 = vector.load %arg2[%c0_93, %c1_94, %c0_95, %c0_96] : memref<1x18x16x128xbf16, #tpu.memory_space<vmem>>, vector<1x16x16x128xbf16>
    %106 = vector.shape_cast %105 : vector<1x16x16x128xbf16> to vector<16x16x128xbf16>
    %107 = vector.shape_cast %106 : vector<16x16x128xbf16> to vector<256x128xbf16>
    %c1_97 = arith.constant 1 : index
    %c0_98 = arith.constant 0 : index
    %c0_99 = arith.constant 0 : index
    %108 = vector.load %arg9[%c1_97, %c0_98, %c0_99] : memref<3x128x128xbf16, #tpu.memory_space<vmem>>, vector<1x128x128xbf16>
    %109 = vector.shape_cast %108 : vector<1x128x128xbf16> to vector<128x128xbf16>
    %cst_100 = arith.constant dense<0.000000e+00> : vector<256x128xf32>
    %110 = tpu.matmul %107, %109, %cst_100 {dimension_numbers = #tpu.dot_dimension_numbers<[1], [0], [0], [1], [0, 0, 1, 1], [], []>} : vector<256x128xbf16>, vector<128x128xbf16>, vector<256x128xf32> -> vector<256x128xf32>
    %111 = arith.addf %104, %110 : vector<256x128xf32>
    %c0_101 = arith.constant 0 : index
    %c2_102 = arith.constant 2 : index
    %c0_103 = arith.constant 0 : index
    %c0_104 = arith.constant 0 : index
    %112 = vector.load %arg2[%c0_101, %c2_102, %c0_103, %c0_104] : memref<1x18x16x128xbf16, #tpu.memory_space<vmem>>, vector<1x16x16x128xbf16>
    %113 = vector.shape_cast %112 : vector<1x16x16x128xbf16> to vector<16x16x128xbf16>
    %114 = vector.shape_cast %113 : vector<16x16x128xbf16> to vector<256x128xbf16>
    %c2_105 = arith.constant 2 : index
    %c0_106 = arith.constant 0 : index
    %c0_107 = arith.constant 0 : index
    %115 = vector.load %arg9[%c2_105, %c0_106, %c0_107] : memref<3x128x128xbf16, #tpu.memory_space<vmem>>, vector<1x128x128xbf16>
    %116 = vector.shape_cast %115 : vector<1x128x128xbf16> to vector<128x128xbf16>
    %cst_108 = arith.constant dense<0.000000e+00> : vector<256x128xf32>
    %117 = tpu.matmul %114, %116, %cst_108 {dimension_numbers = #tpu.dot_dimension_numbers<[1], [0], [0], [1], [0, 0, 1, 1], [], []>} : vector<256x128xbf16>, vector<128x128xbf16>, vector<256x128xf32> -> vector<256x128xf32>
    %118 = arith.addf %111, %117 : vector<256x128xf32>
    %119 = vector.broadcast %1 : f32 to vector<256x128xf32>
    %120 = arith.mulf %96, %119 : vector<256x128xf32>
    %121 = vector.broadcast %3 : f32 to vector<256x128xf32>
    %122 = arith.mulf %118, %121 : vector<256x128xf32>
    %123 = arith.addf %120, %122 : vector<256x128xf32>
    %cst_109 = arith.constant 2.000000e-01 : f32
    %124 = vector.broadcast %cst_109 : f32 to vector<256x128xf32>
    %125 = arith.mulf %124, %123 : vector<256x128xf32>
    %126 = arith.maximumf %123, %125 : vector<256x128xf32>
    %127 = arith.truncf %126 : vector<256x128xf32> to vector<256x128xbf16>
    %c0_110 = arith.constant 0 : index
    %c0_111 = arith.constant 0 : index
    %128 = vector.load %arg10[%c0_110, %c0_111] : memref<128x128xbf16, #tpu.memory_space<vmem>>, vector<128x128xbf16>
    %cst_112 = arith.constant dense<0.000000e+00> : vector<256x128xf32>
    %129 = tpu.matmul %127, %128, %cst_112 {dimension_numbers = #tpu.dot_dimension_numbers<[1], [0], [0], [1], [0, 0, 1, 1], [], []>} : vector<256x128xbf16>, vector<128x128xbf16>, vector<256x128xf32> -> vector<256x128xf32>
    %c0_113 = arith.constant 0 : index
    %c0_114 = arith.constant 0 : index
    %c0_115 = arith.constant 0 : index
    %c0_116 = arith.constant 0 : index
    %130 = vector.load %arg3[%c0_113, %c0_114, %c0_115, %c0_116] : memref<1x16x16x128xbf16, #tpu.memory_space<vmem>>, vector<1x16x16x128xbf16>
    %131 = vector.shape_cast %130 : vector<1x16x16x128xbf16> to vector<16x16x128xbf16>
    %132 = vector.shape_cast %131 : vector<16x16x128xbf16> to vector<256x128xbf16>
    %133 = arith.extf %132 : vector<256x128xbf16> to vector<256x128xf32>
    %134 = arith.addf %129, %133 : vector<256x128xf32>
    %135 = vector.shape_cast %134 : vector<256x128xf32> to vector<16x16x128xf32>
    %136 = arith.truncf %135 : vector<16x16x128xf32> to vector<16x16x128xbf16>
    %c0_117 = arith.constant 0 : index
    %c0_118 = arith.constant 0 : index
    %c0_119 = arith.constant 0 : index
    %c0_120 = arith.constant 0 : index
    %137 = vector.load %arg11[%c0_117, %c0_118, %c0_119, %c0_120] : memref<1x16x16x128xbf16, #tpu.memory_space<vmem>>, vector<1x16x16x128xbf16>
    %138 = vector.shape_cast %137 : vector<1x16x16x128xbf16> to vector<16x16x128xbf16>
    %139 = vector.shape_cast %136 : vector<16x16x128xbf16> to vector<1x16x16x128xbf16>
    tpu.vector_store %arg11[%c0_117, %c0_118, %c0_119, %c0_120], %139 {strides = array<i32>} : memref<1x16x16x128xbf16, #tpu.memory_space<vmem>>, vector<1x16x16x128xbf16>,
    return
  }
  func.func @transform_0(%arg0: i32) -> (i32, i32) {
    %c0_i32 = arith.constant 0 : i32
    %c0_i32_0 = arith.constant 0 : i32
    %c0_i32_1 = arith.constant 0 : i32
    return %c0_i32, %c0_i32_0 : i32, i32
  }
  func.func @transform_1(%arg0: i32) -> (i32, i32, i32, i32) {
    %c0_i32 = arith.constant 0 : i32
    %c0_i32_0 = arith.constant 0 : i32
    %c0_i32_1 = arith.constant 0 : i32
    %c0_i32_2 = arith.constant 0 : i32
    return %arg0, %c0_i32, %c0_i32_0, %c0_i32_1 : i32, i32, i32, i32
  }
  func.func @transform_2(%arg0: i32) -> (i32, i32, i32, i32) {
    %c0_i32 = arith.constant 0 : i32
    %c0_i32_0 = arith.constant 0 : i32
    %c0_i32_1 = arith.constant 0 : i32
    %c0_i32_2 = arith.constant 0 : i32
    return %arg0, %c0_i32, %c0_i32_0, %c0_i32_1 : i32, i32, i32, i32
  }
  func.func @transform_3(%arg0: i32) -> (i32, i32, i32) {
    %c0_i32 = arith.constant 0 : i32
    %c0_i32_0 = arith.constant 0 : i32
    %c0_i32_1 = arith.constant 0 : i32
    %c0_i32_2 = arith.constant 0 : i32
    return %c0_i32, %c0_i32_0, %c0_i32_1 : i32, i32, i32
  }
  func.func @transform_4(%arg0: i32) -> (i32, i32) {
    %c0_i32 = arith.constant 0 : i32
    %c0_i32_0 = arith.constant 0 : i32
    %c0_i32_1 = arith.constant 0 : i32
    return %c0_i32, %c0_i32_0 : i32, i32
  }
  func.func @transform_5(%arg0: i32) -> (i32, i32) {
    %c0_i32 = arith.constant 0 : i32
    %c0_i32_0 = arith.constant 0 : i32
    %c0_i32_1 = arith.constant 0 : i32
    return %c0_i32, %c0_i32_0 : i32, i32
  }
  func.func @transform_6(%arg0: i32) -> (i32, i32, i32) {
    %c0_i32 = arith.constant 0 : i32
    %c0_i32_0 = arith.constant 0 : i32
    %c0_i32_1 = arith.constant 0 : i32
    %c0_i32_2 = arith.constant 0 : i32
    return %c0_i32, %c0_i32_0, %c0_i32_1 : i32, i32, i32
  }
  func.func @transform_7(%arg0: i32) -> (i32, i32, i32) {
    %c0_i32 = arith.constant 0 : i32
    %c0_i32_0 = arith.constant 0 : i32
    %c0_i32_1 = arith.constant 0 : i32
    %c0_i32_2 = arith.constant 0 : i32
    return %c0_i32, %c0_i32_0, %c0_i32_1 : i32, i32, i32
  }
  func.func @transform_8(%arg0: i32) -> (i32, i32, i32) {
    %c0_i32 = arith.constant 0 : i32
    %c0_i32_0 = arith.constant 0 : i32
    %c0_i32_1 = arith.constant 0 : i32
    %c0_i32_2 = arith.constant 0 : i32
    return %c0_i32, %c0_i32_0, %c0_i32_1 : i32, i32, i32
  }
  func.func @transform_9(%arg0: i32) -> (i32, i32) {
    %c0_i32 = arith.constant 0 : i32
    %c0_i32_0 = arith.constant 0 : i32
    %c0_i32_1 = arith.constant 0 : i32
    return %c0_i32, %c0_i32_0 : i32, i32
  }
  func.func @transform_10(%arg0: i32) -> (i32, i32, i32, i32) {
    %c0_i32 = arith.constant 0 : i32
    %c0_i32_0 = arith.constant 0 : i32
    %c0_i32_1 = arith.constant 0 : i32
    %c0_i32_2 = arith.constant 0 : i32
    return %arg0, %c0_i32, %c0_i32_0, %c0_i32_1 : i32, i32, i32, i32
  }
}

</mosaic_0001>

<bundles_post_ra>
// kernel: aab_module_forward.4
= control target key start
LH: loop header
LB: loop body
LE: loop exit
PB: predicated region body
PF: predicated region fallthrough
CT: control target
= control target key end

     0   :  { %s2810_s12 = smov 0   ;;  %s3901_s0 = inlined_call_operand.vmem [shape: bf16[2,16,16,128], index: 0, kind: input, shape index: {}]   ;;  %s3902_s1 = inlined_call_operand.vmem [shape: bf16[128,128], index: 1, kind: input, shape index: {}]   ;;  %s3903_s2 = inlined_call_operand.vmem [shape: bf16[2,18,16,128], index: 2, kind: output, shape index: {0}]   ;;  %s3904_s3 = inlined_call_operand.vmem [shape: f32[2,1,128], index: 3, kind: output, shape index: {1}]  }
   0x1 LB: > { %s2542_s13 = sadd.s32 4294967295, %s2787_s12   ;;  %p2546_p0 = scmp.ge.s32.totalorder %s2787_s12, 1  ;;  %s2787_s12 = sphi %s2810_s12, %s14_s12  }
   0x2   : > { %p140_p1 = scmp.lt.s32.totalorder %s2787_s12, 3 }
   0x4   : > { %p141_p2 = pnand %p2546_p0, %p140_p1 }
   0x5   : > { %p167_p3 = scmp.lt.s32.totalorder (!%p141_p2), %s2542_s13, 1 }
   0x6   : > { %144 = sbr.rel (%p141_p2) target bundleno = 505 (0x1f9), region = 28 }
   0xb   : > { %v2757_v0 = vld [vmem:[%s3902_s1 + $0x38] sm:$0xff]   ;;  %v2758_v1 = vld [vmem:[%s3902_s1 + $0x30] sm:$0xff]   ;;  %s3920_s13 = smov (!%p167_p3, %s2542_s13), 1  ;;  %v2759_v2 = vld [vmem:[%s3902_s1 + $0x28] sm:$0xff]   ;;  %v2789_v24 = vmov 0   ;;  %vm1112_vm0 = vcmask 1043456   ;;  %v1229_v42 = vlaneseq }
   0xc   : > { %2683 = vmatprep.subr.bf16.mxu0 %v2757_v0  ;;  %2731 = vmatprep.subr.bf16.mxu1 %v2757_v0  ;;  %s2626_s20 = sshll.u32 %s3920_s13, 7  ;;  %v2760_v3 = vld [vmem:[%s3902_s1 + $0x20] sm:$0xff]   ;;  %v2761_v6 = vld [vmem:[%s3902_s1 + $0x18] sm:$0xff]   ;;  %v2762_v7 = vld [vmem:[%s3902_s1 + $0x10] sm:$0xff]   ;;  %644 = vst [vmem:[#allocation2 + $0x18] sm:$0xf] %v2789_v24  ;;  %s179_s15 = scalar_lea.vmem %s3904_s3, %s3920_s13 }
   0xd   : > { %2684 = vmatpush3.bf16.msra.mxu0 %v2757_v0  ;;  %2739 = vmatpush3.bf16.msra.mxu1 %v2757_v0  ;;  %s2833_s23 = scalar_lea.vmem %s3901_s0, %s2626_s20  ;;  %v2763_v8 = vld [vmem:[%s3902_s1 + $0x8] sm:$0xff]   ;;  %v2764_v9 = vld [vmem:[%s3902_s1] sm:$0xff]   ;;  %638 = vst [vmem:[#allocation2] sm:$0xf] %v2789_v24  ;;  %639 = vst [vmem:[#allocation2 + $0x4] sm:$0xf] %v2789_v24 }
   0xe   : > { %2685 = vmatprep.subr.bf16.mxu0 %v2758_v1  ;;  %2732 = vmatprep.subr.bf16.mxu1 %v2758_v1  ;;  %v2765_v4 = vld [vmem:[%s2833_s23] sm:$0xff]   ;;  %v2767_v10 = vld [vmem:[%s2833_s23 + $0x8] sm:$0xff]   ;;  %v2769_v12 = vld [vmem:[%s2833_s23 + $0x10] sm:$0xff]   ;;  %640 = vst [vmem:[#allocation2 + $0x8] sm:$0x1] %v2789_v24  ;;  %vm1119_vm4 = vcmask 1040384  }
   0xf   : > { %v2766_v5 = vld [vmem:[%s2833_s23 + $0x40] sm:$0xff]   ;;  %2699 = vmatprep.mubr.bf16.mxu0 %v2765_v4  ;;  %v2768_v11 = vld [vmem:[%s2833_s23 + $0x48] sm:$0xff]   ;;  %v2770_v13 = vld [vmem:[%s2833_s23 + $0x50] sm:$0xff]   ;;  %641 = vst [vmem:[#allocation2 + $0xc] sm:$0xf] %v2789_v24  ;;  %v2892_v0 = vand.u32 127, %v1229_v42 }
  0x10   : > { %2715 = vmatprep.mubr.bf16.mxu1 %v2766_v5  ;;  %v2771_v14 = vld [vmem:[%s2833_s23 + $0x18] sm:$0xff]   ;;  %v2773_v16 = vld [vmem:[%s2833_s23 + $0x20] sm:$0xff]   ;;  %v2775_v18 = vld [vmem:[%s2833_s23 + $0x28] sm:$0xff]   ;;  %642 = vst [vmem:[#allocation2 + $0x10] sm:$0xf] %v2789_v24  ;;  %s2747_s7 = smul.u32 144, %s3920_s13 }
  0x11   : > { %2686 = vmatpush3.bf16.msra.mxu0 %v2758_v1  ;;  %2740 = vmatpush3.bf16.msra.mxu1 %v2758_v1  ;;  %v2772_v15 = vld [vmem:[%s2833_s23 + $0x58] sm:$0xff]   ;;  %v2774_v17 = vld [vmem:[%s2833_s23 + $0x60] sm:$0xff]   ;;  %v2776_v19 = vld [vmem:[%s2833_s23 + $0x68] sm:$0xff]   ;;  %643 = vst [vmem:[#allocation2 + $0x14] sm:$0x1] %v2789_v24  ;;  %vm1268_vm8 = vcmp.lt.s32.totalorder %v2892_v0, 64 }
  0x12   : > { %2687 = vmatprep.subr.bf16.mxu0 %v2759_v2  ;;  %2733 = vmatprep.subr.bf16.mxu1 %v2759_v2  ;;  %v2777_v20 = vld [vmem:[%s2833_s23 + $0x30] sm:$0xff]   ;;  %v2779_v22 = vld [vmem:[%s2833_s23 + $0x38] sm:$0xff]   ;;  %645 = vst [vmem:[#allocation2 + $0x1c] sm:$0xf] %v2789_v24  ;;  %646 = vst [vmem:[#allocation2 + $0x20] sm:$0x1] %v2789_v24  ;;  %s3035_s10 = scalar_lea.vmem %s3903_s2, %s2747_s7 }
  0x13   : > { %v2778_v21 = vld [vmem:[%s2833_s23 + $0x70] sm:$0xff]   ;;  %v2780_v23 = vld [vmem:[%s2833_s23 + $0x78] sm:$0xff]   ;;  %647 = vst [vmem:[#allocation2 + $0x24] sm:$0xf] %v2789_v24  ;;  %648 = vst [vmem:[#allocation2 + $0x28] sm:$0xf] %v2789_v24 }
  0x14   : > { %649 = vst [vmem:[#allocation2 + $0x2c] sm:$0x1] %v2789_v24  ;;  %650 = vst [vmem:[#allocation2 + $0x30] sm:$0xf] %v2789_v24  ;;  %vm1113_vm1 = vsmask.f32 7938 }
  0x15   : > { %2688 = vmatpush3.bf16.msra.mxu0 %v2759_v2  ;;  %2741 = vmatpush3.bf16.msra.mxu1 %v2759_v2  ;;  %651 = vst [vmem:[#allocation2 + $0x34] sm:$0xf] %v2789_v24  ;;  %652 = vst [vmem:[#allocation2 + $0x38] sm:$0x1] %v2789_v24  ;;  %vm788_vm2 = vsmask.f32 256 }
  0x16   : > { %2689 = vmatprep.subr.bf16.mxu0 %v2760_v3  ;;  %2734 = vmatprep.subr.bf16.mxu1 %v2760_v3  ;;  %653 = vst [vmem:[#allocation2 + $0x3c] sm:$0xf] %v2789_v24  ;;  %654 = vst [vmem:[#allocation2 + $0x40] sm:$0xf] %v2789_v24  ;;  %vm789_vm3 = vsmask.f32 4368 }
  0x17   : > { %655 = vst [vmem:[#allocation2 + $0x44] sm:$0x1] %v2789_v24  ;;  %656 = vst [vmem:[#allocation2 + $0x48] sm:$0xf] %v2789_v24  ;;  %v1124_v50 = vld [vmem:[#allocation2 + $0x18] sm:$0xf] }
  0x18   : > { %657 = vst [vmem:[#allocation2 + $0x4c] sm:$0xf] %v2789_v24  ;;  %658 = vst [vmem:[#allocation2 + $0x50] sm:$0x1] %v2789_v24  ;;  %vm1306_vm9 = vsmask.f32 3328 }
  0x19   : > { %2690 = vmatpush3.bf16.msra.mxu0 %v2760_v3  ;;  %2742 = vmatpush3.bf16.msra.mxu1 %v2760_v3  ;;  %659 = vst [vmem:[#allocation2 + $0x54] sm:$0xf] %v2789_v24  ;;  %660 = vst [vmem:[#allocation2 + $0x58] sm:$0xf] %v2789_v24  ;;  %vm1307_vm10 = vsmask.f32 7440 }
  0x1a   : > { %2691 = vmatprep.subr.bf16.mxu0 %v2761_v6  ;;  %2735 = vmatprep.subr.bf16.mxu1 %v2761_v6  ;;  %661 = vst [vmem:[#allocation2 + $0x5c] sm:$0x1] %v2789_v24  ;;  %662 = vst [vmem:[#allocation2 + $0x60] sm:$0xf] %v2789_v24  ;;  %vm1231_vm12 = vcmp.lt.s32.totalorder %v2892_v0, 32 }
  0x1b   : > { %663 = vst [vmem:[#allocation2 + $0x64] sm:$0xf] %v2789_v24  ;;  %664 = vst [vmem:[#allocation2 + $0x68] sm:$0x1] %v2789_v24 }
  0x1c   : > { %665 = vst [vmem:[#allocation2 + $0x6c] sm:$0xf] %v2789_v24  ;;  %666 = vst [vmem:[#allocation2 + $0x70] sm:$0xf] %v2789_v24 }
  0x1d   : > { %2692 = vmatpush3.bf16.msra.mxu0 %v2761_v6  ;;  %2743 = vmatpush3.bf16.msra.mxu1 %v2761_v6  ;;  %667 = vst [vmem:[#allocation2 + $0x74] sm:$0x1] %v2789_v24  ;;  %668 = vst [vmem:[#allocation2 + $0x78] sm:$0xf] %v2789_v24 }
  0x1e   : > { %2693 = vmatprep.subr.bf16.mxu0 %v2762_v7  ;;  %2736 = vmatprep.subr.bf16.mxu1 %v2762_v7  ;;  %669 = vst [vmem:[#allocation2 + $0x7c] sm:$0xf] %v2789_v24  ;;  %670 = vst [vmem:[#allocation2 + $0x80] sm:$0x1] %v2789_v24 }
  0x1f   : > { %671 = vst [vmem:[#allocation2 + $0x84] sm:$0xf] %v2789_v24  ;;  %672 = vst [vmem:[#allocation2 + $0x88] sm:$0xf] %v2789_v24 }
  0x20   : > { %673 = vst [vmem:[#allocation2 + $0x8c] sm:$0x1] %v2789_v24  ;;  %674 = vst [vmem:[#allocation2 + $0x90] sm:$0xf] %v2789_v24 }
  0x21   : > { %2694 = vmatpush3.bf16.msra.mxu0 %v2762_v7  ;;  %2744 = vmatpush3.bf16.msra.mxu1 %v2762_v7  ;;  %675 = vst [vmem:[#allocation2 + $0x94] sm:$0xf] %v2789_v24  ;;  %676 = vst [vmem:[#allocation2 + $0x98] sm:$0x1] %v2789_v24 }
  0x22   : > { %2695 = vmatprep.subr.bf16.mxu0 %v2763_v8  ;;  %2737 = vmatprep.subr.bf16.mxu1 %v2763_v8  ;;  %677 = vst [vmem:[#allocation2 + $0x9c] sm:$0xf] %v2789_v24  ;;  %678 = vst [vmem:[#allocation2 + $0xa0] sm:$0xf] %v2789_v24 }
  0x23   : > { %679 = vst [vmem:[#allocation2 + $0xa4] sm:$0x1] %v2789_v24  ;;  %680 = vst [vmem:[#allocation2 + $0xa8] sm:$0xf] %v2789_v24 }
  0x24   : > { %681 = vst [vmem:[#allocation2 + $0xac] sm:$0xf] %v2789_v24  ;;  %682 = vst [vmem:[#allocation2 + $0xb0] sm:$0x1] %v2789_v24  ;;  %v1180_v60 = vld [vmem:[#allocation2 + $0x78] sm:$0xf] }
  0x25   : > { %2696 = vmatpush3.bf16.msra.mxu0 %v2763_v8  ;;  %2745 = vmatpush3.bf16.msra.mxu1 %v2763_v8  ;;  %683 = vst [vmem:[#allocation2 + $0xb4] sm:$0xf] %v2789_v24  ;;  %684 = vst [vmem:[#allocation2 + $0xb8] sm:$0xf] %v2789_v24 }
  0x26   : > { %2697 = vmatprep.subr.bf16.mxu0 %v2764_v9  ;;  %2738 = vmatprep.subr.bf16.mxu1 %v2764_v9  ;;  %685 = vst [vmem:[#allocation2 + $0xbc] sm:$0x1] %v2789_v24  ;;  %686 = vst [vmem:[#allocation2 + $0xc0] sm:$0xf] %v2789_v24 }
  0x27   : > { %687 = vst [vmem:[#allocation2 + $0xc4] sm:$0xf] %v2789_v24  ;;  %688 = vst [vmem:[#allocation2 + $0xc8] sm:$0x1] %v2789_v24 }
  0x28   : > { %689 = vst [vmem:[#allocation2 + $0xcc] sm:$0xf] %v2789_v24  ;;  %690 = vst [vmem:[#allocation2 + $0xd0] sm:$0xf] %v2789_v24 }
  0x29   : > { %2698 = vmatpush3.bf16.msra.mxu0 %v2764_v9  ;;  %2746 = vmatpush3.bf16.msra.mxu1 %v2764_v9  ;;  %691 = vst [vmem:[#allocation2 + $0xd4] sm:$0x1] %v2789_v24  ;;  %vm2888_vm5 = vmand %vm1112_vm0, %vm1113_vm1 }
  0x2a   : > { %vm2921_vm6 = vmor %vm788_vm2, %vm789_vm3 }
  0x2b   : > { %vm2930_vm7 = vmand %vm1119_vm4, %vm788_vm2 }
  0x2c   : > { %2700 = vmatmul.mubr.bf16.vlgmr.msra.gmra.mxu0 %v2767_v10  ;;  %2716 = vmatmul.mubr.bf16.vlgmr.msra.gmra.mxu1 %v2768_v11  ;;  %v1115_v11 = vld [vmem:[#allocation2 + $0xc] sm:$0xf]  ;;  %vm2975_vm11 = vmpackc.low %vm1268_vm8, %vm1268_vm8 }
  0x2d   : > { %2703 = vmatprep.mubr.bf16.mxu0 %v2769_v12  ;;  %2719 = vmatprep.mubr.bf16.mxu1 %v2770_v13  ;;  %v1173_v12 = vld [vmem:[#allocation2 + $0x6c] sm:$0xf]  ;;  %vm2986_vm13 = vmor %vm1306_vm9, %vm1307_vm10 }
  0x2e   : > { %vm3028_vm14 = vmpackc.low %vm1231_vm12, %vm1231_vm12 }
  0x34   : > { %2704 = vmatmul.mubr.bf16.gmra.mxu0 %v2771_v14  ;;  %2720 = vmatmul.mubr.bf16.gmra.mxu1 %v2772_v15 }
  0x35   : > { %2707 = vmatprep.mubr.bf16.mxu0 %v2773_v16  ;;  %2723 = vmatprep.mubr.bf16.mxu1 %v2774_v17 }
  0x3c   : > { %2708 = vmatmul.mubr.bf16.gmra.mxu0 %v2775_v18  ;;  %2724 = vmatmul.mubr.bf16.gmra.mxu1 %v2776_v19 }
  0x3d   : > { %2711 = vmatprep.mubr.bf16.mxu0 %v2777_v20  ;;  %2727 = vmatprep.mubr.bf16.mxu1 %v2778_v21 }
  0x44   : > { %2712 = vmatmul.mubr.bf16.gmra.mxu0 %v2779_v22  ;;  %2728 = vmatmul.mubr.bf16.gmra.mxu1 %v2780_v23 }
  0xec   : > { %v2701_v25 = vpop.f32.mrf.mxu0  ;;  %v2717_v26 = vpop.f32.mrf.mxu1 }
  0xed   : > { %v536_v27 = vmul.f32 0.2, %v2701_v25  ;;  %v552_v28 = vmul.f32 0.2, %v2717_v26 }
  0xee   : > { %v407_v29 = vpop.f32.mrf.mxu0  ;;  %v471_v30 = vpop.f32.mrf.mxu1 }
  0xef   : > { %v2866_v31 = vmax.f32 %v2701_v25, %v536_v27  ;;  %v2868_v32 = vmax.f32 %v2717_v26, %v552_v28  ;;  %v534_v33 = vmul.f32 0.2, %v407_v29  ;;  %v550_v34 = vmul.f32 0.2, %v471_v30 }
  0xf0   : > { %v2702_v35 = vpop.f32.mrf.mxu0  ;;  %v2718_v36 = vpop.f32.mrf.mxu1 }
  0xf1   : > { %v2629_v37 = vpack.c.bf16 %v2866_v31, %v2866_v31  ;;  %v2645_v38 = vpack.c.bf16 %v2868_v32, %v2868_v32  ;;  %v566_v39 = vmax.f32 %v407_v29, %v534_v33  ;;  %v2874_v40 = vmax.f32 %v471_v30, %v550_v34  ;;  %v1128_v30 = vld [vmem:[#allocation2 + $0x20] sm:$0x1] }
  0xf2   : > { %v537_v41 = vmul.f32 0.2, %v2702_v35  ;;  %v553_v43 = vmul.f32 0.2, %v2718_v36  ;;  %v410_v44 = vpop.f32.mrf.mxu0  ;;  %v474_v45 = vpop.f32.mrf.mxu1 }
  0xf3   : > { %v809_v46 = vshrl.u32 %v2629_v37, 16  ;;  %v812_v47 = vshll.u32 %v2629_v37, 16  ;;  %v945_v48 = vshrl.u32 %v2645_v38, 16  ;;  %v948_v49 = vshll.u32 %v2645_v38, 16  ;;  %v1184_v38 = vld [vmem:[#allocation2 + $0x80] sm:$0x1] }
  0xf4   : > { %v2627_v51 = vpack.c.bf16 %v566_v39, %v566_v39  ;;  %v2643_v52 = vpack.c.bf16 %v2874_v40, %v2874_v40  ;;  %v2878_v53 = vmax.f32 %v2702_v35, %v537_v41  ;;  %v2880_v54 = vmax.f32 %v2718_v36, %v553_v43  ;;  %v2705_v19 = vpop.f32.mrf.mxu0  ;;  %v3736_v37 = vld [vmem:[#allocation2 + $0xd4] sm:$0x1] }
  0xf5   : > { %v2882_v55 = vrot.slane %v809_v46, 7  ;;  %v2884_v56 = vrot.slane %v945_v48, 7  ;;  %v535_v57 = vmul.f32 0.2, %v410_v44  ;;  %v551_v58 = vmul.f32 0.2, %v474_v45 }
  0xf6   : > { %v792_v61 = vshrl.u32 %v2627_v51, 16  ;;  %v928_v62 = vshrl.u32 %v2643_v52, 16  ;;  %v931_v63 = vshll.u32 %v2643_v52, 16  ;;  %v795_v4 = vshll.u32 %v2627_v51, 16 }
  0xf7   : > { %v814_v1 = vor.u32 %v812_v47, %v2882_v55  ;;  %v815_v2 = vrot.slane %v2882_v55, 4  ;;  %v950_v3 = vor.u32 %v948_v49, %v2884_v56  ;;  %v2630_v7 = vpack.c.bf16 %v2878_v53, %v2878_v53 }
  0xf8   : > { %v2897_v5 = vrot.slane %v792_v61, 7  ;;  %v2899_v6 = vrot.slane %v928_v62, 7  ;;  %v2646_v8 = vpack.c.bf16 %v2880_v54, %v2880_v54  ;;  %v567_v13 = vmax.f32 %v410_v44, %v535_v57  ;;  %v1121_v57 = vld [vmem:[#allocation2 + $0x14] sm:$0x1] }
  0xf9   : > { %v1125_v9 = vsel %vm2888_vm5, %v814_v1, %v1124_v50  ;;  %v1181_v10 = vsel %vm2888_vm5, %v950_v3, %v1180_v60  ;;  %v2909_v14 = vmax.f32 %v474_v45, %v551_v58  ;;  %v951_v15 = vrot.slane %v2884_v56, 4 }
  0xfa   : > { %1126 = vst [vmem:[#allocation2 + $0x18] sm:$0xf] %v1125_v9  ;;  %1182 = vst [vmem:[#allocation2 + $0x78] sm:$0xf] %v1181_v10  ;;  %v797_v16 = vor.u32 %v795_v4, %v2897_v5  ;;  %v798_v17 = vrot.slane %v2897_v5, 4  ;;  %v933_v18 = vor.u32 %v931_v63, %v2899_v6  ;;  %v817_v20 = vshrl.u32 %v2630_v7, 16  ;;  %v2952_v5 = vpop.f32.mrf.mxu1 }
  0xfb   : > { %v820_v21 = vshll.u32 %v2630_v7, 16  ;;  %v953_v22 = vshrl.u32 %v2646_v8, 16  ;;  %v956_v23 = vshll.u32 %v2646_v8, 16  ;;  %v598_v26 = vadd.f32 %v567_v13, %v566_v39 }
  0xfc   : > { %v1116_v24 = vsel %vm2888_vm5, %v797_v16, %v1115_v11  ;;  %v1174_v25 = vsel %vm2888_vm5, %v933_v18, %v1173_v12  ;;  %v2628_v27 = vpack.c.bf16 %v567_v13, %v567_v13  ;;  %v819_v29 = vrot.slane %v817_v20, 7  ;;  %v1177_v16 = vld [vmem:[#allocation2 + $0x74] sm:$0x1] }
  0xfd   : > { %1117 = vst [vmem:[#allocation2 + $0xc] sm:$0xf] %v1116_v24  ;;  %1175 = vst [vmem:[#allocation2 + $0x6c] sm:$0xf] %v1174_v25  ;;  %v955_v33 = vrot.slane %v953_v22, 7  ;;  %v2644_v34 = vpack.c.bf16 %v2909_v14, %v2909_v14  ;;  %v934_v36 = vrot.slane %v2899_v6, 4  ;;  %v2935_v39 = vadd.f32 %v598_v26, %v2866_v31 }
  0xfe   : > { %v540_v35 = vmul.f32 0.2, %v2705_v19  ;;  %v800_v41 = vshrl.u32 %v2628_v27, 16  ;;  %v803_v42 = vshll.u32 %v2628_v27, 16  ;;  %v822_v43 = vor.u32 %v820_v21, %v819_v29 }
  0xff   : > { %v824_v44 = vrot.slane %v819_v29, 4  ;;  %v958_v45 = vor.u32 %v956_v23, %v955_v33  ;;  %v960_v46 = vrot.slane %v955_v33, 4  ;;  %v936_v48 = vshrl.u32 %v2644_v34, 16 }
 0x100   : > { %v802_v47 = vrot.slane %v800_v41, 7  ;;  %v939_v49 = vshll.u32 %v2644_v34, 16  ;;  %v2938_v50 = vmax.f32 %v2705_v19, %v540_v35  ;;  %v823_v31 = vsel %vm2921_vm6, %v815_v2, %v822_v43 }
 0x101   : > { %v1289_v51 = vld [vmem:[#allocation2 + $0x18] sm:$0xe]  ;;  %v1129_v52 = vsel %vm2930_vm7, %v824_v44, %v1128_v30  ;;  %v959_v55 = vsel %vm2921_vm6, %v951_v15, %v958_v45  ;;  %v1185_v56 = vsel %vm2930_vm7, %v960_v46, %v1184_v38  ;;  %1127 = vst [vmem:[#allocation2 + $0x1c] sm:$0xf] %v823_v31  ;;  %v938_v3 = vrot.slane %v936_v48, 7 }
 0x102   : > { %v1366_v58 = vshrl.u32 %v1289_v51, 16  ;;  %v1369_v60 = vshll.u32 %v1289_v51, 16  ;;  %v1297_v61 = vld [vmem:[#allocation2 + $0x78] sm:$0xe]  ;;  %1130 = vst [vmem:[#allocation2 + $0x20] sm:$0x1] %v1129_v52  ;;  %v805_v62 = vor.u32 %v803_v42, %v802_v47  ;;  %v2950_v4 = vpack.c.bf16 %v2938_v50, %v2938_v50 }
 0x103   : > { %1183 = vst [vmem:[#allocation2 + $0x7c] sm:$0xf] %v959_v55  ;;  %1186 = vst [vmem:[#allocation2 + $0x80] sm:$0x1] %v1185_v56  ;;  %v807_v63 = vrot.slane %v802_v47, 4  ;;  %v1590_v1 = vshrl.u32 %v1297_v61, 16  ;;  %v941_v20 = vor.u32 %v939_v49, %v938_v3 }
 0x104   : > { %v1593_v2 = vshll.u32 %v1297_v61, 16  ;;  %v1368_v6 = vrot.slane %v1366_v58, 4  ;;  %v1371_v7 = vrot.slane %v1369_v60, 5  ;;  %v1288_v8 = vld [vmem:[#allocation2 + $0xc] sm:$0xe]  ;;  %v806_v9 = vsel %vm2921_vm6, %v798_v17, %v805_v62 }
 0x105   : > { %v1122_v10 = vsel %vm2930_vm7, %v807_v63, %v1121_v57  ;;  %v1592_v11 = vrot.slane %v1590_v1, 4  ;;  %v1338_v13 = vshrl.u32 %v1288_v8, 16  ;;  %v1341_v15 = vshll.u32 %v1288_v8, 16  ;;  %1118 = vst [vmem:[#allocation2 + $0x10] sm:$0xf] %v806_v9 }
 0x106   : > { %v1595_v12 = vrot.slane %v1593_v2, 5  ;;  %1123 = vst [vmem:[#allocation2 + $0x14] sm:$0x1] %v1122_v10  ;;  %v1372_v18 = vor.u32 %v1371_v7, %v1368_v6  ;;  %v1296_v19 = vld [vmem:[#allocation2 + $0x6c] sm:$0xe]  ;;  %v943_v21 = vrot.slane %v938_v3, 4  ;;  %v942_v27 = vsel %vm2921_vm6, %v934_v36, %v941_v20 }
 0x107   : > { %v2959_v22 = vmul.f32 0.2, %v2952_v5  ;;  %v1340_v24 = vrot.slane %v1338_v13, 4  ;;  %v1343_v17 = vrot.slane %v1341_v15, 5  ;;  %v1562_v25 = vshrl.u32 %v1296_v19, 16 }
 0x108   : > { %v1596_v23 = vor.u32 %v1595_v12, %v1592_v11  ;;  %v1565_v26 = vshll.u32 %v1296_v19, 16  ;;  %v1178_v29 = vsel %vm2930_vm7, %v943_v21, %v1177_v16  ;;  %v843_v30 = vshrl.u32 %v2950_v4, 16  ;;  %v2968_v38 = vld [vmem:[#allocation2 + $0x1c] sm:$0xf]  ;;  %1176 = vst [vmem:[#allocation2 + $0x70] sm:$0xf] %v942_v27 }
 0x109   : > { %v1373_v33 = vrot.slane %v1372_v18, 4  ;;  %v1344_v34 = vor.u32 %v1343_v17, %v1340_v24  ;;  %v2966_v35 = vrot.slane %v1562_v25, 4  ;;  %v1271_v41 = vld [vmem:[#allocation2 + $0x20] sm:$0x1]  ;;  %1179 = vst [vmem:[#allocation2 + $0x74] sm:$0x1] %v1178_v29 }
 0x10a   : > { %v2970_v42 = vrot.slane %v1565_v26, 5  ;;  %v1375_v43 = vshll.u32 %v2968_v38, 16  ;;  %v1379_v44 = vshrl.u32 %v2968_v38, 16  ;;  %v1385_v45 = vshll.u32 %v1271_v41, 16  ;;  %v2981_v46 = vld [vmem:[#allocation2 + $0x7c] sm:$0xf] }
 0x10b   : > { %v1597_v47 = vrot.slane %v1596_v23, 4  ;;  %v1389_v49 = vshrl.u32 %v1271_v41, 16  ;;  %v1279_v51 = vld [vmem:[#allocation2 + $0x80] sm:$0x1]  ;;  %v1599_v31 = vshll.u32 %v2981_v46, 16  ;;  %v1603_v52 = vshrl.u32 %v2981_v46, 16 }
 0x10c   : > { %v2992_v55 = vrot.slane %v1344_v34, 4  ;;  %v1568_v56 = vor.u32 %v2970_v42, %v2966_v35  ;;  %v1377_v57 = vrot.slane %v1375_v43, 5  ;;  %v1381_v58 = vrot.slane %v1379_v44, 4  ;;  %v1236_v60 = vld [vmem:[#allocation2 + $0x18] sm:$0xf] }
 0x10d   : > { %v1875_v61 = vsel %vm2975_vm11, %v1271_v41, %v1389_v49  ;;  %v1601_v62 = vrot.slane %v1599_v31, 5  ;;  %v1605_v63 = vrot.slane %v1603_v52, 4  ;;  %v1609_v1 = vshll.u32 %v1279_v51, 16  ;;  %v2998_v2 = vld [vmem:[#allocation2 + $0x78] sm:$0xf] }
 0x10e   : > { %v1378_v3 = vsel %vm2986_vm13, %v1373_v33, %v1377_v57  ;;  %v1382_v6 = vor.u32 %v1381_v58, %v1377_v57  ;;  %v1387_v7 = vrot.slane %v1385_v45, 5  ;;  %v1990_v8 = vshll.u32 %v1875_v61, 16  ;;  %v3002_v9 = vld [vmem:[#allocation2 + $0x10] sm:$0xf] }
 0x10f   : > { %v1873_v10 = vsel %vm2975_vm11, %v1236_v60, %v1378_v3  ;;  %v1602_v11 = vsel %vm2986_vm13, %v1597_v47, %v1601_v62  ;;  %v1606_v12 = vor.u32 %v1605_v63, %v1601_v62  ;;  %v1611_v13 = vrot.slane %v1609_v1, 5 }
 0x110   : > { %v1383_v15 = vrot.slane %v1382_v6, 4  ;;  %v1971_v16 = vshrl.u32 %v1873_v10, 16  ;;  %v1974_v18 = vshll.u32 %v1873_v10, 16  ;;  %v1992_v19 = vrot.slane %v1990_v8, 5 }
 0x111   : > { %v1607_v20 = vrot.slane %v1606_v12, 4  ;;  %v1613_v21 = vshrl.u32 %v1279_v51, 16  ;;  %v1897_v23 = vsel %vm2975_vm11, %v2998_v2, %v1602_v11  ;;  %v1347_v24 = vshll.u32 %v3002_v9, 16 }
 0x112   : > { %v1388_v17 = vsel %vm2986_vm13, %v1383_v15, %v1387_v7  ;;  %v1973_v25 = vrot.slane %v1971_v16, 4  ;;  %v1976_v26 = vrot.slane %v1974_v18, 5  ;;  %v2163_v27 = vshrl.u32 %v1897_v23, 16  ;;  %v1270_v7 = vld [vmem:[#allocation2 + $0x14] sm:$0x1] }
 0x113   : > { %v1874_v29 = vsel %vm2975_vm11, %v2968_v38, %v1388_v17  ;;  %v1612_v33 = vsel %vm2986_vm13, %v1607_v20, %v1611_v13  ;;  %v1899_v34 = vsel %vm2975_vm11, %v1279_v51, %v1613_v21  ;;  %v2166_v41 = vshll.u32 %v1897_v23, 16  ;;  %v3040_v13 = vld [vmem:[#allocation2 + $0x70] sm:$0xf]  ;;  %v1234_v21 = vld [vmem:[#allocation2 + $0xc] sm:$0xf] }
 0x114   : > { %v1977_v43 = vor.u32 %v1976_v26, %v1973_v25  ;;  %v1980_v44 = vshll.u32 %v1874_v29, 16  ;;  %v1984_v45 = vshrl.u32 %v1874_v29, 16  ;;  %v1898_v47 = vsel %vm2975_vm11, %v2981_v46, %v1612_v33 }
 0x115   : > { %v2165_v49 = vrot.slane %v2163_v27, 4  ;;  %v2168_v31 = vrot.slane %v2166_v41, 5  ;;  %v2172_v52 = vshll.u32 %v1898_v47, 16  ;;  %v2176_v57 = vshrl.u32 %v1898_v47, 16 }
 0x116   : > { %v1978_v51 = vrot.slane %v1977_v43, 4  ;;  %v1982_v61 = vrot.slane %v1980_v44, 5  ;;  %v1986_v62 = vrot.slane %v1984_v45, 4  ;;  %v2182_v63 = vshll.u32 %v1899_v34, 16  ;;  %v1278_v43 = vld [vmem:[#allocation2 + $0x74] sm:$0x1] }
 0x117   : > { %v2169_v1 = vor.u32 %v2168_v31, %v2165_v49  ;;  %v2174_v3 = vrot.slane %v2172_v52, 5  ;;  %v2178_v6 = vrot.slane %v2176_v57, 4  ;;  %v1349_v0 = vrot.slane %v1347_v24, 5  ;;  %v3073_v49 = vld [vmem:[#allocation2 + $0x6c] sm:$0xf] }
 0x118   : > { %v1983_v8 = vsel %vm2986_vm13, %v1978_v51, %v1982_v61  ;;  %v1987_v10 = vor.u32 %v1986_v62, %v1982_v61  ;;  %v2184_v11 = vrot.slane %v2182_v63, 5  ;;  %v1351_v12 = vshrl.u32 %v3002_v9, 16 }
 0x119   : > { %v2394_v15 = vsel %vm3028_vm14, %v1236_v60, %v1983_v8  ;;  %v2170_v16 = vrot.slane %v2169_v1, 4  ;;  %v2179_v18 = vor.u32 %v2178_v6, %v2174_v3  ;;  %v1350_v20 = vsel %vm2986_vm13, %v2992_v55, %v1349_v0 }
 0x11a   : > { %v1988_v23 = vrot.slane %v1987_v10, 4  ;;  %2430 = vst [vmem:[%s3035_s10 + $0x10] sm:$0xf] %v2394_v15  ;;  %v1353_v24 = vrot.slane %v1351_v12, 4  ;;  %v1357_v17 = vshll.u32 %v1270_v7, 16  ;;  %v1361_v25 = vshrl.u32 %v1270_v7, 16 }
 0x11b   : > { %v2175_v26 = vsel %vm2986_vm13, %v2170_v16, %v2174_v3  ;;  %v2180_v27 = vrot.slane %v2179_v18, 4  ;;  %v1870_v60 = vsel %vm2975_vm11, %v1234_v21, %v1350_v20  ;;  %v1571_v29 = vshll.u32 %v3040_v13, 16 }
 0x11c   : > { %v1569_v55 = vrot.slane %v1568_v56, 4  ;;  %v1993_v33 = vsel %vm2986_vm13, %v1988_v23, %v1992_v19  ;;  %v2410_v34 = vsel %vm3028_vm14, %v2998_v2, %v2175_v26  ;;  %v1354_v41 = vor.u32 %v1353_v24, %v1349_v0  ;;  %v423_v26 = vpop.f32.mrf.mxu0 }
 0x11d   : > { %v2395_v44 = vsel %vm3028_vm14, %v2968_v38, %v1993_v33  ;;  %v2185_v45 = vsel %vm2986_vm13, %v2180_v27, %v2184_v11  ;;  %2446 = vst [vmem:[%s3035_s10 + $0x50] sm:$0xf] %v2410_v34  ;;  %v1359_v35 = vrot.slane %v1357_v17, 5  ;;  %v1947_v42 = vshrl.u32 %v1870_v60, 16  ;;  %v487_v33 = vpop.f32.mrf.mxu1 }
 0x11e   : > { %2431 = vst [vmem:[%s3035_s10 + $0x14] sm:$0xf] %v2395_v44  ;;  %v2411_v56 = vsel %vm3028_vm14, %v2981_v46, %v2185_v45  ;;  %v1355_v19 = vrot.slane %v1354_v41, 4  ;;  %v1872_v2 = vsel %vm2975_vm11, %v1270_v7, %v1361_v25  ;;  %v1950_v47 = vshll.u32 %v1870_v60, 16  ;;  %v1138_v45 = vld [vmem:[#allocation2 + $0x30] sm:$0xf] }
 0x11f   : > { %2447 = vst [vmem:[%s3035_s10 + $0x54] sm:$0xf] %v2411_v56  ;;  %v1949_v38 = vrot.slane %v1947_v42, 4  ;;  %v1573_v31 = vrot.slane %v1571_v29, 5  ;;  %v1575_v52 = vshrl.u32 %v3040_v13, 16  ;;  %v1581_v57 = vshll.u32 %v1278_v43, 16 }
 0x120   : > { %v1360_v51 = vsel %vm2986_vm13, %v1355_v19, %v1359_v35  ;;  %v1952_v61 = vrot.slane %v1950_v47, 5  ;;  %v1585_v62 = vshrl.u32 %v1278_v43, 16  ;;  %v3081_v46 = vmax.f32 %v2952_v5, %v2959_v22  ;;  %v2706_v47 = vpop.f32.mrf.mxu0 }
 0x121   : > { %v1871_v63 = vsel %vm2975_vm11, %v3002_v9, %v1360_v51  ;;  %v1966_v1 = vshll.u32 %v1872_v2, 16  ;;  %v1574_v3 = vsel %vm2986_vm13, %v1569_v55, %v1573_v31  ;;  %v1577_v6 = vrot.slane %v1575_v52, 4  ;;  %v2722_v51 = vpop.f32.mrf.mxu1 }
 0x122   : > { %v1953_v7 = vor.u32 %v1952_v61, %v1949_v38  ;;  %v1956_v0 = vshll.u32 %v1871_v63, 16  ;;  %v1960_v8 = vshrl.u32 %v1871_v63, 16  ;;  %v1894_v10 = vsel %vm2975_vm11, %v3073_v49, %v1574_v3 }
 0x123   : > { %v1578_v11 = vor.u32 %v1577_v6, %v1573_v31  ;;  %v1583_v12 = vrot.slane %v1581_v57, 5  ;;  %v2139_v5 = vshrl.u32 %v1894_v10, 16  ;;  %v2142_v22 = vshll.u32 %v1894_v10, 16 }
 0x124   : > { %v1954_v15 = vrot.slane %v1953_v7, 4  ;;  %v1958_v16 = vrot.slane %v1956_v0, 5  ;;  %v1962_v18 = vrot.slane %v1960_v8, 4  ;;  %v1896_v20 = vsel %vm2975_vm11, %v1278_v43, %v1585_v62 }
 0x125   : > { %v1579_v23 = vrot.slane %v1578_v11, 4  ;;  %v2141_v24 = vrot.slane %v2139_v5, 4  ;;  %v2144_v17 = vrot.slane %v2142_v22, 5  ;;  %v3095_v25 = vrot.slane %v843_v30, 7  ;;  %v1194_v11 = vld [vmem:[#allocation2 + $0x90] sm:$0xf]  ;;  %v426_v5 = vpop.f32.mrf.mxu0 }
 0x126   : > { %v1959_v27 = vsel %vm2986_vm13, %v1954_v15, %v1958_v16  ;;  %v1963_v60 = vor.u32 %v1962_v18, %v1958_v16  ;;  %v1968_v29 = vrot.slane %v1966_v1, 5  ;;  %v846_v55 = vshll.u32 %v2950_v4, 16 }
 0x127   : > { %v2392_v34 = vsel %vm3028_vm14, %v1234_v21, %v1959_v27  ;;  %v1584_v41 = vsel %vm2986_vm13, %v1579_v23, %v1583_v12  ;;  %v2145_v43 = vor.u32 %v2144_v17, %v2141_v24  ;;  %v2158_v44 = vshll.u32 %v1896_v20, 16 }
 0x128   : > { %v1964_v30 = vrot.slane %v1963_v60, 4  ;;  %2428 = vst [vmem:[%s3035_s10 + $0x8] sm:$0xf] %v2392_v34  ;;  %v1895_v35 = vsel %vm2975_vm11, %v3040_v13, %v1584_v41  ;;  %v848_v42 = vor.u32 %v846_v55, %v3095_v25  ;;  %v2649_v4 = vpack.c.bf16 %v3081_v46, %v3081_v46  ;;  %v490_v55 = vpop.f32.mrf.mxu1  ;;  %v1131_v41 = vld [vmem:[#allocation2 + $0x24] sm:$0xf] }
 0x129   : > { %v2146_v56 = vrot.slane %v2145_v43, 4  ;;  %v2148_v21 = vshll.u32 %v1895_v35, 16  ;;  %v2152_v19 = vshrl.u32 %v1895_v35, 16  ;;  %v538_v2 = vmul.f32 0.2, %v423_v26 }
 0x12a   : > { %v1969_v38 = vsel %vm2986_vm13, %v1964_v30, %v1968_v29  ;;  %v1139_v31 = vsel %vm2888_vm5, %v848_v42, %v1138_v45  ;;  %v979_v52 = vshrl.u32 %v2649_v4, 16  ;;  %v982_v57 = vshll.u32 %v2649_v4, 16 }
 0x12b   : > { %v2393_v61 = vsel %vm3028_vm14, %v3002_v9, %v1969_v38  ;;  %v2150_v62 = vrot.slane %v2148_v21, 5  ;;  %v2154_v63 = vrot.slane %v2152_v19, 4  ;;  %1140 = vst [vmem:[#allocation2 + $0x30] sm:$0xf] %v1139_v31  ;;  %v570_v1 = vmax.f32 %v423_v26, %v538_v2 }
 0x12c   : > { %2429 = vst [vmem:[%s3035_s10 + $0xc] sm:$0xf] %v2393_v61  ;;  %v3119_v3 = vrot.slane %v979_v52, 7  ;;  %v600_v6 = vadd.f32 %v2935_v39, %v2878_v53  ;;  %v554_v7 = vmul.f32 0.2, %v487_v33  ;;  %v2160_v20 = vrot.slane %v2158_v44, 5 }
 0x12d   : > { %v541_v0 = vmul.f32 0.2, %v2706_v47  ;;  %v2151_v8 = vsel %vm2986_vm13, %v2146_v56, %v2150_v62  ;;  %v2155_v10 = vor.u32 %v2154_v63, %v2150_v62  ;;  %v2631_v12 = vpack.c.bf16 %v570_v1, %v570_v1 }
 0x12e   : > { %v557_v9 = vmul.f32 0.2, %v2722_v51  ;;  %v2408_v22 = vsel %vm3028_vm14, %v3073_v49, %v2151_v8  ;;  %v984_v15 = vor.u32 %v982_v57, %v3119_v3  ;;  %v601_v16 = vadd.f32 %v600_v6, %v570_v1  ;;  %v1187_v57 = vld [vmem:[#allocation2 + $0x84] sm:$0xf]  ;;  %v1142_v1 = vld [vmem:[#allocation2 + $0x38] sm:$0x1] }
 0x12f   : > { %v2156_v18 = vrot.slane %v2155_v10, 4  ;;  %2444 = vst [vmem:[%s3035_s10 + $0x48] sm:$0xf] %v2408_v22  ;;  %v826_v53 = vshrl.u32 %v2631_v12, 16  ;;  %v3130_v39 = vmax.f32 %v487_v33, %v554_v7  ;;  %v3134_v24 = vmax.f32 %v2706_v47, %v541_v0  ;;  %v1198_v22 = vld [vmem:[#allocation2 + $0x98] sm:$0x1] }
 0x130   : > { %v1195_v23 = vsel %vm2888_vm5, %v984_v15, %v1194_v11  ;;  %v3136_v17 = vmax.f32 %v2722_v51, %v557_v9  ;;  %v539_v26 = vmul.f32 0.2, %v426_v5  ;;  %v829_v60 = vshll.u32 %v2631_v12, 16 }
 0x131   : > { %v2161_v49 = vsel %vm2986_vm13, %v2156_v18, %v2160_v20  ;;  %1196 = vst [vmem:[#allocation2 + $0x90] sm:$0xf] %v1195_v23  ;;  %v3140_v27 = vrot.slane %v826_v53, 7  ;;  %v2647_v29 = vpack.c.bf16 %v3130_v39, %v3130_v39  ;;  %v2634_v43 = vpack.c.bf16 %v3134_v24, %v3134_v24  ;;  %v2709_v53 = vpop.f32.mrf.mxu0 }
 0x132   : > { %v2409_v33 = vsel %vm3028_vm14, %v3040_v13, %v2161_v49  ;;  %v1291_v34 = vld [vmem:[#allocation2 + $0x30] sm:$0xe]  ;;  %v2650_v44 = vpack.c.bf16 %v3136_v17, %v3136_v17  ;;  %v571_v45 = vmax.f32 %v426_v5, %v539_v26  ;;  %v849_v30 = vrot.slane %v3095_v25, 4 }
 0x133   : > { %2445 = vst [vmem:[%s3035_s10 + $0x4c] sm:$0xf] %v2409_v33  ;;  %v1422_v35 = vshrl.u32 %v1291_v34, 16  ;;  %v1425_v42 = vshll.u32 %v1291_v34, 16  ;;  %v831_v4 = vor.u32 %v829_v60, %v3140_v27  ;;  %v962_v56 = vshrl.u32 %v2647_v29, 16 }
 0x134   : > { %v965_v21 = vshll.u32 %v2647_v29, 16  ;;  %v851_v19 = vshrl.u32 %v2634_v43, 16  ;;  %v555_v13 = vmul.f32 0.2, %v490_v55  ;;  %v985_v2 = vrot.slane %v3119_v3, 4 }
 0x135   : > { %v1132_v47 = vsel %vm2888_vm5, %v831_v4, %v1131_v41  ;;  %v854_v38 = vshll.u32 %v2634_v43, 16  ;;  %v987_v31 = vshrl.u32 %v2650_v44, 16  ;;  %v3157_v52 = vrot.slane %v962_v56, 7  ;;  %v2725_v41 = vpop.f32.mrf.mxu1 }
 0x136   : > { %1133 = vst [vmem:[#allocation2 + $0x24] sm:$0xf] %v1132_v47  ;;  %v853_v25 = vrot.slane %v851_v19, 7  ;;  %v990_v51 = vshll.u32 %v2650_v44, 16  ;;  %v602_v61 = vadd.f32 %v601_v16, %v571_v45  ;;  %v1424_v62 = vrot.slane %v1422_v35, 4 }
 0x137   : > { %v1427_v63 = vrot.slane %v1425_v42, 5  ;;  %v989_v6 = vrot.slane %v987_v31, 7  ;;  %v2632_v7 = vpack.c.bf16 %v571_v45, %v571_v45  ;;  %v967_v3 = vor.u32 %v965_v21, %v3157_v52 }
 0x138   : > { %v1299_v0 = vld [vmem:[#allocation2 + $0x90] sm:$0xe]  ;;  %v856_v8 = vor.u32 %v854_v38, %v853_v25  ;;  %v858_v10 = vrot.slane %v853_v25, 4  ;;  %v3160_v11 = vmax.f32 %v490_v55, %v555_v13  ;;  %v603_v60 = vadd.f32 %v602_v61, %v2938_v50  ;;  %v1135_v13 = vld [vmem:[#allocation2 + $0x2c] sm:$0x1] }
 0x139   : > { %v1646_v12 = vshrl.u32 %v1299_v0, 16  ;;  %v1649_v9 = vshll.u32 %v1299_v0, 16  ;;  %v992_v5 = vor.u32 %v990_v51, %v989_v6  ;;  %v1188_v15 = vsel %vm2888_vm5, %v967_v3, %v1187_v57 }
 0x13a   : > { %v857_v16 = vsel %vm2921_vm6, %v849_v30, %v856_v8  ;;  %v1143_v18 = vsel %vm2930_vm7, %v858_v10, %v1142_v1  ;;  %v994_v20 = vrot.slane %v989_v6, 4  ;;  %1189 = vst [vmem:[#allocation2 + $0x84] sm:$0xf] %v1188_v15  ;;  %v1428_v29 = vor.u32 %v1427_v63, %v1424_v62  ;;  %v3184_v63 = vpop.f32.mrf.mxu0 }
 0x13b   : > { %v1648_v23 = vrot.slane %v1646_v12, 4  ;;  %v1651_v26 = vrot.slane %v1649_v9, 5  ;;  %1141 = vst [vmem:[#allocation2 + $0x34] sm:$0xf] %v857_v16  ;;  %1144 = vst [vmem:[#allocation2 + $0x38] sm:$0x1] %v1143_v18  ;;  %v993_v49 = vsel %vm2921_vm6, %v985_v2, %v992_v5  ;;  %v2648_v34 = vpack.c.bf16 %v3160_v11, %v3160_v11 }
 0x13c   : > { %1197 = vst [vmem:[#allocation2 + $0x94] sm:$0xf] %v993_v49  ;;  %v1199_v55 = vsel %vm2930_vm7, %v994_v20, %v1198_v22  ;;  %v834_v33 = vshrl.u32 %v2632_v7, 16  ;;  %v837_v45 = vshll.u32 %v2632_v7, 16  ;;  %v544_v30 = vmul.f32 0.2, %v2709_v53 }
 0x13d   : > { %v1652_v43 = vor.u32 %v1651_v26, %v1648_v23  ;;  %v1290_v44 = vld [vmem:[#allocation2 + $0x24] sm:$0xe]  ;;  %1200 = vst [vmem:[#allocation2 + $0x98] sm:$0x1] %v1199_v55  ;;  %v3176_v35 = vadd.f32 %v603_v60, %v3134_v24  ;;  %v970_v56 = vshrl.u32 %v2648_v34, 16  ;;  %v832_v21 = vrot.slane %v3140_v27, 4 }
 0x13e   : > { %v1394_v42 = vshrl.u32 %v1290_v44, 16  ;;  %v1397_v50 = vshll.u32 %v1290_v44, 16  ;;  %v836_v4 = vrot.slane %v834_v33, 7  ;;  %v968_v19 = vrot.slane %v3157_v52, 4 }
 0x13f   : > { %v3180_v2 = vmax.f32 %v2709_v53, %v544_v30  ;;  %v560_v47 = vmul.f32 0.2, %v2725_v41  ;;  %v1429_v51 = vrot.slane %v1428_v29, 4  ;;  %v1653_v61 = vrot.slane %v1652_v43, 4 }
 0x140   : > { %v1396_v38 = vrot.slane %v1394_v42, 4  ;;  %v1399_v31 = vrot.slane %v1397_v50, 5  ;;  %v839_v57 = vor.u32 %v837_v45, %v836_v4  ;;  %v841_v25 = vrot.slane %v836_v4, 4 }
 0x141   : > { %v3182_v24 = vrot.slane %v970_v56, 7  ;;  %v973_v62 = vshll.u32 %v2648_v34, 16  ;;  %v1298_v6 = vld [vmem:[#allocation2 + $0x84] sm:$0xe]  ;;  %v3194_v3 = vpack.c.bf16 %v3180_v2, %v3180_v2  ;;  %v3202_v18 = vmax.f32 %v2725_v41, %v560_v47  ;;  %v1240_v41 = vld [vmem:[#allocation2 + $0x30] sm:$0xf] }
 0x142   : > { %v1400_v1 = vor.u32 %v1399_v31, %v1396_v38  ;;  %v3186_v27 = vld [vmem:[#allocation2 + $0x34] sm:$0xf]  ;;  %v840_v7 = vsel %vm2921_vm6, %v832_v21, %v839_v57  ;;  %v1136_v0 = vsel %vm2930_vm7, %v841_v25, %v1135_v13  ;;  %v1618_v8 = vshrl.u32 %v1298_v6, 16  ;;  %v1273_v12 = vld [vmem:[#allocation2 + $0x38] sm:$0x1] }
 0x143   : > { %v1621_v10 = vshll.u32 %v1298_v6, 16  ;;  %v1431_v9 = vshll.u32 %v3186_v27, 16  ;;  %v1435_v5 = vshrl.u32 %v3186_v27, 16  ;;  %1134 = vst [vmem:[#allocation2 + $0x28] sm:$0xf] %v840_v7  ;;  %v1445_v15 = vshrl.u32 %v1273_v12, 16 }
 0x144   : > { %1137 = vst [vmem:[#allocation2 + $0x2c] sm:$0x1] %v1136_v0  ;;  %v3198_v22 = vrot.slane %v1400_v1, 4  ;;  %v3200_v16 = vld [vmem:[#allocation2 + $0x94] sm:$0xf]  ;;  %v3207_v53 = vrot.slane %v1618_v8, 4  ;;  %v3218_v30 = vor.u32 %v973_v62, %v3182_v24 }
 0x145   : > { %v3205_v20 = vmul.f32 0.2, %v3184_v63  ;;  %v1433_v23 = vrot.slane %v1431_v9, 5  ;;  %v1437_v26 = vrot.slane %v1435_v5, 4  ;;  %v1441_v49 = vshll.u32 %v1273_v12, 16 }
 0x146   : > { %v1281_v60 = vld [vmem:[#allocation2 + $0x98] sm:$0x1]  ;;  %v3209_v29 = vrot.slane %v1621_v10, 5  ;;  %v1881_v55 = vsel %vm2975_vm11, %v1273_v12, %v1445_v15  ;;  %v1655_v33 = vshll.u32 %v3200_v16, 16  ;;  %v1659_v34 = vshrl.u32 %v3200_v16, 16 }
 0x147   : > { %v1434_v43 = vsel %vm2986_vm13, %v1429_v51, %v1433_v23  ;;  %v1438_v44 = vor.u32 %v1437_v26, %v1433_v23  ;;  %v2038_v45 = vshll.u32 %v1881_v55, 16  ;;  %v1665_v56 = vshll.u32 %v1281_v60, 16  ;;  %v3222_v21 = vld [vmem:[#allocation2 + $0x90] sm:$0xf] }
 0x148   : > { %v1879_v42 = vsel %vm2975_vm11, %v1240_v41, %v1434_v43  ;;  %v1657_v50 = vrot.slane %v1655_v33, 5  ;;  %v1661_v4 = vrot.slane %v1659_v34, 4  ;;  %v1443_v47 = vrot.slane %v1441_v49, 5 }
 0x149   : > { %v1439_v13 = vrot.slane %v1438_v44, 4  ;;  %v2019_v38 = vshrl.u32 %v1879_v42, 16  ;;  %v2022_v31 = vshll.u32 %v1879_v42, 16  ;;  %v1624_v57 = vor.u32 %v3209_v29, %v3207_v53 }
 0x14a   : > { %v1658_v25 = vsel %vm2986_vm13, %v1653_v61, %v1657_v50  ;;  %v1662_v51 = vor.u32 %v1661_v4, %v1657_v50  ;;  %v1667_v62 = vrot.slane %v1665_v56, 5  ;;  %v3228_v1 = vld [vmem:[#allocation2 + $0x28] sm:$0xf]  ;;  %v1669_v8 = vshrl.u32 %v1281_v60, 16 }
 0x14b   : > { %v1444_v6 = vsel %vm2986_vm13, %v1439_v13, %v1443_v47  ;;  %v2021_v7 = vrot.slane %v2019_v38, 4  ;;  %v2024_v0 = vrot.slane %v2022_v31, 5  ;;  %v2040_v12 = vrot.slane %v2038_v45, 5  ;;  %v1272_v47 = vld [vmem:[#allocation2 + $0x2c] sm:$0x1] }
 0x14c   : > { %v1880_v10 = vsel %vm2975_vm11, %v3186_v27, %v1444_v6  ;;  %v1663_v9 = vrot.slane %v1662_v51, 4  ;;  %v1903_v61 = vsel %vm2975_vm11, %v3222_v21, %v1658_v25  ;;  %v1403_v26 = vshll.u32 %v3228_v1, 16 }
 0x14d   : > { %v2025_v5 = vor.u32 %v2024_v0, %v2021_v7  ;;  %v2028_v15 = vshll.u32 %v1880_v10, 16  ;;  %v2032_v23 = vshrl.u32 %v1880_v10, 16  ;;  %v1905_v55 = vsel %vm2975_vm11, %v1281_v60, %v1669_v8  ;;  %v3250_v0 = vld [vmem:[#allocation2 + $0x24] sm:$0xf] }
 0x14e   : > { %v1668_v49 = vsel %vm2986_vm13, %v1663_v9, %v1667_v62  ;;  %v2211_v33 = vshrl.u32 %v1903_v61, 16  ;;  %v2214_v34 = vshll.u32 %v1903_v61, 16  ;;  %v2230_v60 = vshll.u32 %v1905_v55, 16 }
 0x14f   : > { %v2026_v43 = vrot.slane %v2025_v5, 4  ;;  %v2030_v44 = vrot.slane %v2028_v15, 5  ;;  %v2034_v45 = vrot.slane %v2032_v23, 4  ;;  %v1904_v42 = vsel %vm2975_vm11, %v3200_v16, %v1668_v49 }
 0x150   : > { %v2213_v50 = vrot.slane %v2211_v33, 4  ;;  %v2216_v4 = vrot.slane %v2214_v34, 5  ;;  %v2220_v56 = vshll.u32 %v1904_v42, 16  ;;  %v2224_v13 = vshrl.u32 %v1904_v42, 16 }
 0x151   : > { %v2031_v38 = vsel %vm2986_vm13, %v2026_v43, %v2030_v44  ;;  %v2035_v31 = vor.u32 %v2034_v45, %v2030_v44  ;;  %v1405_v25 = vrot.slane %v1403_v26, 5  ;;  %v1407_v9 = vshrl.u32 %v3228_v1, 16 }
 0x152   : > { %v2398_v51 = vsel %vm3028_vm14, %v1240_v41, %v2031_v38  ;;  %v2217_v62 = vor.u32 %v2216_v4, %v2213_v50  ;;  %v2222_v6 = vrot.slane %v2220_v56, 5  ;;  %v2226_v7 = vrot.slane %v2224_v13, 4  ;;  %v1191_v4 = vld [vmem:[#allocation2 + $0x8c] sm:$0x1] }
 0x153   : > { %v2036_v8 = vrot.slane %v2035_v31, 4  ;;  %2434 = vst [vmem:[%s3035_s10 + $0x20] sm:$0xf] %v2398_v51  ;;  %v1406_v10 = vsel %vm2986_vm13, %v3198_v22, %v1405_v25  ;;  %v1413_v61 = vshll.u32 %v1272_v47, 16  ;;  %v1417_v23 = vshrl.u32 %v1272_v47, 16 }
 0x154   : > { %v2218_v5 = vrot.slane %v2217_v62, 4  ;;  %v2227_v15 = vor.u32 %v2226_v7, %v2222_v6  ;;  %v1876_v41 = vsel %vm2975_vm11, %v3250_v0, %v1406_v10  ;;  %v2232_v49 = vrot.slane %v2230_v60, 5 }
 0x155   : > { %v2041_v26 = vsel %vm2986_vm13, %v2036_v8, %v2040_v12  ;;  %v1409_v55 = vrot.slane %v1407_v9, 4  ;;  %v1995_v33 = vshrl.u32 %v1876_v41, 16  ;;  %v1878_v44 = vsel %vm2975_vm11, %v1272_v47, %v1417_v23  ;;  %v1152_v8 = vld [vmem:[#allocation2 + $0x48] sm:$0xf] }
 0x156   : > { %v2399_v22 = vsel %vm3028_vm14, %v3186_v27, %v2041_v26  ;;  %v2223_v34 = vsel %vm2986_vm13, %v2218_v5, %v2222_v6  ;;  %v2228_v43 = vrot.slane %v2227_v15, 4  ;;  %v1998_v50 = vshll.u32 %v1876_v41, 16 }
 0x157   : > { %2435 = vst [vmem:[%s3035_s10 + $0x24] sm:$0xf] %v2399_v22  ;;  %v2414_v45 = vsel %vm3028_vm14, %v3222_v21, %v2223_v34  ;;  %v1410_v12 = vor.u32 %v1409_v55, %v1405_v25  ;;  %v1997_v42 = vrot.slane %v1995_v33, 4  ;;  %v1415_v56 = vrot.slane %v1413_v61, 5  ;;  %v503_v25 = vpop.f32.mrf.mxu1  ;;  %v1208_v22 = vld [vmem:[#allocation2 + $0xa8] sm:$0xf] }
 0x158   : > { %v2233_v27 = vsel %vm2986_vm13, %v2228_v43, %v2232_v49  ;;  %2450 = vst [vmem:[%s3035_s10 + $0x60] sm:$0xf] %v2414_v45  ;;  %v976_v13 = vsel %vm2921_vm6, %v968_v19, %v3218_v30  ;;  %v977_v47 = vrot.slane %v3182_v24, 4  ;;  %v2000_v31 = vrot.slane %v1998_v50, 5 }
 0x159   : > { %v2415_v21 = vsel %vm3028_vm14, %v3200_v16, %v2233_v27  ;;  %v1411_v38 = vrot.slane %v1410_v12, 4  ;;  %1190 = vst [vmem:[#allocation2 + $0x88] sm:$0xf] %v976_v13  ;;  %v877_v60 = vshrl.u32 %v3194_v3, 16  ;;  %v2014_v51 = vshll.u32 %v1878_v44, 16 }
 0x15a   : > { %2451 = vst [vmem:[%s3035_s10 + $0x64] sm:$0xf] %v2415_v21  ;;  %v1192_v52 = vsel %vm2930_vm7, %v977_v47, %v1191_v4  ;;  %v880_v62 = vshll.u32 %v3194_v3, 16  ;;  %v2653_v19 = vpack.c.bf16 %v3202_v18, %v3202_v18  ;;  %v2001_v16 = vor.u32 %v2000_v31, %v1997_v42  ;;  %v1145_v13 = vld [vmem:[#allocation2 + $0x3c] sm:$0xf] }
 0x15b   : > { %v1416_v24 = vsel %vm2986_vm13, %v1411_v38, %v1415_v56  ;;  %1193 = vst [vmem:[#allocation2 + $0x8c] sm:$0x1] %v1192_v52  ;;  %v3294_v30 = vrot.slane %v877_v60, 7  ;;  %v574_v6 = vmax.f32 %v3184_v63, %v3205_v20  ;;  %v558_v9 = vmul.f32 0.2, %v503_v25 }
 0x15c   : > { %v1877_v7 = vsel %vm2975_vm11, %v3228_v1, %v1416_v24  ;;  %v1013_v10 = vshrl.u32 %v2653_v19, 16  ;;  %v1016_v3 = vshll.u32 %v2653_v19, 16  ;;  %v2002_v61 = vrot.slane %v2001_v16, 4  ;;  %v3330_v21 = vld [vmem:[#allocation2 + $0x84] sm:$0xf] }
 0x15d   : > { %v2004_v5 = vshll.u32 %v1877_v7, 16  ;;  %v2008_v15 = vshrl.u32 %v1877_v7, 16  ;;  %v882_v23 = vor.u32 %v880_v62, %v3294_v30  ;;  %v1625_v41 = vrot.slane %v1624_v57, 4 }
 0x15e   : > { %v3305_v26 = vrot.slane %v1013_v10, 7  ;;  %v3308_v63 = vadd.f32 %v3176_v35, %v574_v6  ;;  %v2635_v20 = vpack.c.bf16 %v574_v6, %v574_v6  ;;  %v3312_v34 = vmax.f32 %v503_v25, %v558_v9  ;;  %v2710_v9 = vpop.f32.mrf.mxu0 }
 0x15f   : > { %v2006_v49 = vrot.slane %v2004_v5, 5  ;;  %v2010_v55 = vrot.slane %v2008_v15, 4  ;;  %v1153_v33 = vsel %vm2888_vm5, %v882_v23, %v1152_v8  ;;  %v2016_v43 = vrot.slane %v2014_v51, 5 }
 0x160   : > { %v3314_v44 = vld [vmem:[#allocation2 + $0x88] sm:$0xf]  ;;  %1154 = vst [vmem:[#allocation2 + $0x48] sm:$0xf] %v1153_v33  ;;  %v1018_v53 = vor.u32 %v1016_v3, %v3305_v26  ;;  %v860_v29 = vshrl.u32 %v2635_v20, 16  ;;  %v863_v57 = vshll.u32 %v2635_v20, 16  ;;  %v2651_v47 = vpack.c.bf16 %v3312_v34, %v3312_v34 }
 0x161   : > { %v2007_v35 = vsel %vm2986_vm13, %v2002_v61, %v2006_v49  ;;  %v2011_v45 = vor.u32 %v2010_v55, %v2006_v49  ;;  %v1627_v12 = vshll.u32 %v3314_v44, 16  ;;  %v1631_v42 = vshrl.u32 %v3314_v44, 16 }
 0x162   : > { %v2396_v50 = vsel %vm3028_vm14, %v3250_v0, %v2007_v35  ;;  %v1280_v4 = vld [vmem:[#allocation2 + $0x8c] sm:$0x1]  ;;  %v1209_v27 = vsel %vm2888_vm5, %v1018_v53, %v1208_v22  ;;  %v3326_v56 = vrot.slane %v860_v29, 7  ;;  %v883_v51 = vrot.slane %v3294_v30, 4 }
 0x163   : > { %v2012_v38 = vrot.slane %v2011_v45, 4  ;;  %2432 = vst [vmem:[%s3035_s10 + $0x18] sm:$0xf] %v2396_v50  ;;  %v1629_v31 = vrot.slane %v1627_v12, 5  ;;  %v1633_v60 = vrot.slane %v1631_v42, 4  ;;  %v1637_v25 = vshll.u32 %v1280_v4, 16  ;;  %v2726_v42 = vpop.f32.mrf.mxu1 }
 0x164   : > { %1210 = vst [vmem:[#allocation2 + $0xa8] sm:$0xf] %v1209_v27  ;;  %v1641_v0 = vshrl.u32 %v1280_v4, 16  ;;  %v865_v52 = vor.u32 %v863_v57, %v3326_v56  ;;  %v996_v62 = vshrl.u32 %v2651_v47, 16  ;;  %v1019_v23 = vrot.slane %v3305_v26, 4 }
 0x165   : > { %v2017_v19 = vsel %vm2986_vm13, %v2012_v38, %v2016_v43  ;;  %v1630_v24 = vsel %vm2986_vm13, %v1625_v41, %v1629_v31  ;;  %v1634_v16 = vor.u32 %v1633_v60, %v1629_v31  ;;  %v1639_v6 = vrot.slane %v1637_v25, 5 }
 0x166   : > { %v2397_v7 = vsel %vm3028_vm14, %v3228_v1, %v2017_v19  ;;  %v1900_v8 = vsel %vm2975_vm11, %v3330_v21, %v1630_v24  ;;  %v1902_v10 = vsel %vm2975_vm11, %v1280_v4, %v1641_v0  ;;  %v1146_v3 = vsel %vm2888_vm5, %v865_v52, %v1145_v13 }
 0x167   : > { %2433 = vst [vmem:[%s3035_s10 + $0x1c] sm:$0xf] %v2397_v7  ;;  %v1635_v61 = vrot.slane %v1634_v16, 4  ;;  %v2187_v5 = vshrl.u32 %v1900_v8, 16  ;;  %v2190_v15 = vshll.u32 %v1900_v8, 16  ;;  %v2206_v41 = vshll.u32 %v1902_v10, 16  ;;  %v442_v10 = vpop.f32.mrf.mxu0 }
 0x168   : > { %1147 = vst [vmem:[#allocation2 + $0x3c] sm:$0xf] %v1146_v3  ;;  %v1293_v1 = vld [vmem:[#allocation2 + $0x48] sm:$0xe]  ;;  %v866_v20 = vrot.slane %v3326_v56, 4  ;;  %v3352_v49 = vrot.slane %v996_v62, 7  ;;  %v506_v3 = vpop.f32.mrf.mxu1 }
 0x169   : > { %v999_v55 = vshll.u32 %v2651_v47, 16  ;;  %v1640_v33 = vsel %vm2986_vm13, %v1635_v61, %v1639_v6  ;;  %v2189_v22 = vrot.slane %v2187_v5, 4  ;;  %v2192_v43 = vrot.slane %v2190_v15, 5  ;;  %v1201_v47 = vld [vmem:[#allocation2 + $0x9c] sm:$0xf] }
 0x16a   : > { %v545_v53 = vmul.f32 0.2, %v2710_v9  ;;  %v1901_v29 = vsel %vm2975_vm11, %v3314_v44, %v1640_v33  ;;  %v1478_v57 = vshrl.u32 %v1293_v1, 16  ;;  %v1481_v35 = vshll.u32 %v1293_v1, 16 }
 0x16b   : > { %v1301_v45 = vld [vmem:[#allocation2 + $0xa8] sm:$0xe]  ;;  %v1001_v12 = vor.u32 %v999_v55, %v3352_v49  ;;  %v2193_v50 = vor.u32 %v2192_v43, %v2189_v22  ;;  %v2196_v4 = vshll.u32 %v1901_v29, 16  ;;  %v2200_v27 = vshrl.u32 %v1901_v29, 16 }
 0x16c   : > { %v1702_v13 = vshrl.u32 %v1301_v45, 16  ;;  %v2208_v38 = vrot.slane %v2206_v41, 5  ;;  %v1480_v31 = vrot.slane %v1478_v57, 4  ;;  %v1483_v60 = vrot.slane %v1481_v35, 5 }
 0x16d   : > { %v1705_v25 = vshll.u32 %v1301_v45, 16  ;;  %v2194_v0 = vrot.slane %v2193_v50, 4  ;;  %v2198_v52 = vrot.slane %v2196_v4, 5  ;;  %v2202_v62 = vrot.slane %v2200_v27, 4  ;;  %v2713_v50 = vpop.f32.mrf.mxu0 }
 0x16e   : > { %v1704_v19 = vrot.slane %v1702_v13, 4  ;;  %v1484_v24 = vor.u32 %v1483_v60, %v1480_v31  ;;  %v1202_v7 = vsel %vm2888_vm5, %v1001_v12, %v1201_v47  ;;  %v3362_v8 = vmax.f32 %v2710_v9, %v545_v53 }
 0x16f   : > { %v1707_v16 = vrot.slane %v1705_v25, 5  ;;  %v1292_v6 = vld [vmem:[#allocation2 + $0x3c] sm:$0xe]  ;;  %v2199_v61 = vsel %vm2986_vm13, %v2194_v0, %v2198_v52  ;;  %v2203_v5 = vor.u32 %v2202_v62, %v2198_v52  ;;  %1203 = vst [vmem:[#allocation2 + $0x9c] sm:$0xf] %v1202_v7  ;;  %v1002_v33 = vrot.slane %v3352_v49, 4 }
 0x170   : > { %v1450_v15 = vshrl.u32 %v1292_v6, 16  ;;  %v1453_v41 = vshll.u32 %v1292_v6, 16  ;;  %v2412_v1 = vsel %vm3028_vm14, %v3330_v21, %v2199_v61  ;;  %v2638_v9 = vpack.c.bf16 %v3362_v8, %v3362_v8  ;;  %v2729_v21 = vpop.f32.mrf.mxu1  ;;  %v1156_v52 = vld [vmem:[#allocation2 + $0x50] sm:$0x1]  ;;  %v1244_v49 = vld [vmem:[#allocation2 + $0x48] sm:$0xf] }
 0x171   : > { %v1708_v55 = vor.u32 %v1707_v16, %v1704_v19  ;;  %v2204_v22 = vrot.slane %v2203_v5, 4  ;;  %2448 = vst [vmem:[%s3035_s10 + $0x58] sm:$0xf] %v2412_v1  ;;  %v561_v29 = vmul.f32 0.2, %v2726_v42  ;;  %v3373_v57 = vrot.slane %v1484_v24, 4 }
 0x172   : > { %v1452_v43 = vrot.slane %v1450_v15, 4  ;;  %v1455_v53 = vrot.slane %v1453_v41, 5  ;;  %v885_v45 = vshrl.u32 %v2638_v9, 16  ;;  %v543_v12 = vmul.f32 0.2, %v442_v10 }
 0x173   : > { %v3375_v35 = vrot.slane %v1708_v55, 4  ;;  %v2209_v4 = vsel %vm2986_vm13, %v2204_v22, %v2208_v38  ;;  %v888_v27 = vshll.u32 %v2638_v9, 16  ;;  %v3379_v13 = vmax.f32 %v2726_v42, %v561_v29 }
 0x174   : > { %v559_v47 = vmul.f32 0.2, %v506_v3  ;;  %v2413_v31 = vsel %vm3028_vm14, %v3314_v44, %v2209_v4  ;;  %v1456_v60 = vor.u32 %v1455_v53, %v1452_v43  ;;  %v887_v25 = vrot.slane %v885_v45, 7  ;;  %v1212_v53 = vld [vmem:[#allocation2 + $0xb0] sm:$0x1] }
 0x175   : > { %v575_v0 = vmax.f32 %v442_v10, %v543_v12  ;;  %2449 = vst [vmem:[%s3035_s10 + $0x5c] sm:$0xf] %v2413_v31  ;;  %v2654_v62 = vpack.c.bf16 %v3379_v13, %v3379_v13  ;;  %v548_v24 = vmul.f32 0.2, %v2713_v50  ;;  %v564_v38 = vmul.f32 0.2, %v2729_v21  ;;  %v455_v12 = vpop.f32.mrf.mxu0 }
 0x176   : > { %v3387_v19 = vmax.f32 %v506_v3, %v559_v47  ;;  %v1300_v16 = vld [vmem:[#allocation2 + $0x9c] sm:$0xe]  ;;  %v890_v42 = vor.u32 %v888_v27, %v887_v25  ;;  %v892_v6 = vrot.slane %v887_v25, 4  ;;  %v3403_v4 = vrot.slane %v1456_v60, 4  ;;  %v1149_v31 = vld [vmem:[#allocation2 + $0x44] sm:$0x1] }
 0x177   : > { %v606_v7 = vadd.f32 %v3308_v63, %v575_v0  ;;  %v2636_v61 = vpack.c.bf16 %v575_v0, %v575_v0  ;;  %v1674_v5 = vshrl.u32 %v1300_v16, 16  ;;  %v1677_v44 = vshll.u32 %v1300_v16, 16 }
 0x178   : > { %v1021_v15 = vshrl.u32 %v2654_v62, 16  ;;  %v1024_v41 = vshll.u32 %v2654_v62, 16  ;;  %v891_v10 = vsel %vm2921_vm6, %v883_v51, %v890_v42  ;;  %v1157_v3 = vsel %vm2930_vm7, %v892_v6, %v1156_v52  ;;  %v1205_v6 = vld [vmem:[#allocation2 + $0xa4] sm:$0x1] }
 0x179   : > { %v607_v1 = vadd.f32 %v606_v7, %v3180_v2  ;;  %v868_v55 = vshrl.u32 %v2636_v61, 16  ;;  %v1676_v9 = vrot.slane %v1674_v5, 4  ;;  %v1679_v22 = vrot.slane %v1677_v44, 5  ;;  %1155 = vst [vmem:[#allocation2 + $0x4c] sm:$0xf] %v891_v10 }
 0x17a   : > { %1158 = vst [vmem:[#allocation2 + $0x50] sm:$0x1] %v1157_v3  ;;  %v1023_v63 = vrot.slane %v1021_v15, 7  ;;  %v871_v43 = vshll.u32 %v2636_v61, 16  ;;  %v2652_v30 = vpack.c.bf16 %v3387_v19, %v3387_v19  ;;  %v3399_v45 = vmax.f32 %v2713_v50, %v548_v24 }
 0x17b   : > { %v870_v29 = vrot.slane %v868_v55, 7  ;;  %v3401_v51 = vmax.f32 %v2729_v21, %v564_v38  ;;  %v1680_v2 = vor.u32 %v1679_v22, %v1676_v9  ;;  %v546_v60 = vmul.f32 0.2, %v455_v12 }
 0x17c   : > { %v1026_v27 = vor.u32 %v1024_v41, %v1023_v63  ;;  %v1028_v47 = vrot.slane %v1023_v63, 4  ;;  %v1004_v52 = vshrl.u32 %v2652_v30, 16  ;;  %v1007_v62 = vshll.u32 %v2652_v30, 16 }
 0x17d   : > { %v873_v25 = vor.u32 %v871_v43, %v870_v29  ;;  %v875_v0 = vrot.slane %v870_v29, 4  ;;  %v2641_v21 = vpack.c.bf16 %v3399_v45, %v3399_v45  ;;  %v3423_v42 = vrot.slane %v1680_v2, 4 }
 0x17e   : > { %v1027_v16 = vsel %vm2921_vm6, %v1019_v23, %v1026_v27  ;;  %v1213_v50 = vsel %vm2930_vm7, %v1028_v47, %v1212_v53  ;;  %v1006_v38 = vrot.slane %v1004_v52, 7  ;;  %v3421_v23 = vpack.c.bf16 %v3401_v51, %v3401_v51 }
 0x17f   : > { %1211 = vst [vmem:[#allocation2 + $0xac] sm:$0xf] %v1027_v16  ;;  %1214 = vst [vmem:[#allocation2 + $0xb0] sm:$0x1] %v1213_v50  ;;  %v874_v24 = vsel %vm2921_vm6, %v866_v20, %v873_v25  ;;  %v1150_v26 = vsel %vm2930_vm7, %v875_v0, %v1149_v31  ;;  %v911_v7 = vshrl.u32 %v2641_v21, 16  ;;  %v914_v61 = vshll.u32 %v2641_v21, 16 }
 0x180   : > { %1148 = vst [vmem:[#allocation2 + $0x40] sm:$0xf] %v874_v24  ;;  %1151 = vst [vmem:[#allocation2 + $0x44] sm:$0x1] %v1150_v26  ;;  %v3426_v56 = vadd.f32 %v607_v1, %v3362_v8  ;;  %v3428_v5 = vld [vmem:[#allocation2 + $0x4c] sm:$0xf]  ;;  %v1009_v44 = vor.u32 %v1007_v62, %v1006_v38  ;;  %v3441_v63 = vmax.f32 %v455_v12, %v546_v60 }
 0x181   : > { %v1275_v20 = vld [vmem:[#allocation2 + $0x50] sm:$0x1]  ;;  %v1011_v15 = vrot.slane %v1006_v38, 4  ;;  %v1047_v41 = vshrl.u32 %v3421_v23, 16  ;;  %v1487_v10 = vshll.u32 %v3428_v5, 16  ;;  %v1491_v3 = vshrl.u32 %v3428_v5, 16 }
 0x182   : > { %v1497_v55 = vshll.u32 %v1275_v20, 16  ;;  %v1501_v9 = vshrl.u32 %v1275_v20, 16  ;;  %v1010_v22 = vsel %vm2921_vm6, %v1002_v33, %v1009_v44  ;;  %v3439_v1 = vrot.slane %v911_v7, 7  ;;  %v1260_v7 = vld [vmem:[#allocation2 + $0xa8] sm:$0xf] }
 0x183   : > { %v1206_v8 = vsel %vm2930_vm7, %v1011_v15, %v1205_v6  ;;  %v1489_v43 = vrot.slane %v1487_v10, 5  ;;  %v1493_v53 = vrot.slane %v1491_v3, 4  ;;  %1204 = vst [vmem:[#allocation2 + $0xa0] sm:$0xf] %v1010_v22  ;;  %v3445_v30 = vrot.slane %v1047_v41, 7 }
 0x184   : > { %v1887_v29 = vsel %vm2975_vm11, %v1275_v20, %v1501_v9  ;;  %1207 = vst [vmem:[#allocation2 + $0xa4] sm:$0x1] %v1206_v8  ;;  %v1499_v2 = vrot.slane %v1497_v55, 5  ;;  %v3448_v33 = vor.u32 %v914_v61, %v3439_v1  ;;  %v917_v47 = vrot.slane %v3439_v1, 4 }
 0x185   : > { %v2086_v27 = vshll.u32 %v1887_v29, 16  ;;  %v1490_v12 = vsel %vm2986_vm13, %v3373_v57, %v1489_v43  ;;  %v1494_v31 = vor.u32 %v1493_v53, %v1489_v43  ;;  %v1050_v52 = vshll.u32 %v3421_v23, 16 }
 0x186   : > { %v3454_v25 = vld [vmem:[#allocation2 + $0xac] sm:$0xf]  ;;  %v1283_v0 = vld [vmem:[#allocation2 + $0xb0] sm:$0x1]  ;;  %v1053_v62 = vrot.slane %v3445_v30, 4  ;;  %v1885_v16 = vsel %vm2975_vm11, %v1244_v49, %v1490_v12 }
 0x187   : > { %v3460_v50 = vrot.slane %v2086_v27, 5  ;;  %v1711_v21 = vshll.u32 %v3454_v25, 16  ;;  %v1715_v60 = vshrl.u32 %v3454_v25, 16  ;;  %v3464_v24 = vld [vmem:[#allocation2 + $0x40] sm:$0xf]  ;;  %v1495_v57 = vrot.slane %v1494_v31, 4 }
 0x188   : > { %v2067_v26 = vshrl.u32 %v1885_v16, 16  ;;  %v2070_v38 = vshll.u32 %v1885_v16, 16  ;;  %v1721_v6 = vshll.u32 %v1283_v0, 16  ;;  %v1725_v44 = vshrl.u32 %v1283_v0, 16 }
 0x189   : > { %v1713_v61 = vrot.slane %v1711_v21, 5  ;;  %v1717_v20 = vrot.slane %v1715_v60, 4  ;;  %v1459_v15 = vshll.u32 %v3464_v24, 16  ;;  %v1500_v41 = vsel %vm2986_vm13, %v1495_v57, %v1499_v2 }
 0x18a   : > { %v2069_v10 = vrot.slane %v2067_v26, 4  ;;  %v2072_v3 = vrot.slane %v2070_v38, 5  ;;  %v1723_v55 = vrot.slane %v1721_v6, 5  ;;  %v1886_v9 = vsel %vm2975_vm11, %v3428_v5, %v1500_v41 }
 0x18b   : > { %v1714_v22 = vsel %vm2986_vm13, %v3375_v35, %v1713_v61  ;;  %v1718_v8 = vor.u32 %v1717_v20, %v1713_v61  ;;  %v1911_v43 = vsel %vm2975_vm11, %v1283_v0, %v1725_v44  ;;  %v2076_v29 = vshll.u32 %v1886_v9, 16  ;;  %v1274_v20 = vld [vmem:[#allocation2 + $0x44] sm:$0x1] }
 0x18c   : > { %v2073_v53 = vor.u32 %v2072_v3, %v2069_v10  ;;  %v2080_v27 = vshrl.u32 %v1886_v9, 16  ;;  %v1909_v2 = vsel %vm2975_vm11, %v1260_v7, %v1714_v22  ;;  %v2278_v21 = vshll.u32 %v1911_v43, 16 }
 0x18d   : > { %v1719_v12 = vrot.slane %v1718_v8, 4  ;;  %v2259_v31 = vshrl.u32 %v1909_v2, 16  ;;  %v2262_v16 = vshll.u32 %v1909_v2, 16  ;;  %v2078_v57 = vrot.slane %v2076_v29, 5  ;;  %v3491_v8 = vld [vmem:[#allocation2 + $0x3c] sm:$0xf] }
 0x18e   : > { %v2074_v60 = vrot.slane %v2073_v53, 4  ;;  %v2082_v26 = vrot.slane %v2080_v27, 4  ;;  %v1461_v38 = vrot.slane %v1459_v15, 5  ;;  %v2280_v61 = vrot.slane %v2278_v21, 5 }
 0x18f   : > { %v1724_v35 = vsel %vm2986_vm13, %v1719_v12, %v1723_v55  ;;  %v2261_v6 = vrot.slane %v2259_v31, 4  ;;  %v2264_v0 = vrot.slane %v2262_v16, 5  ;;  %v1463_v53 = vshrl.u32 %v3464_v24, 16 }
 0x190   : > { %v2079_v44 = vsel %vm2986_vm13, %v2074_v60, %v2078_v57  ;;  %v2083_v41 = vor.u32 %v2082_v26, %v2078_v57  ;;  %v1910_v10 = vsel %vm2975_vm11, %v3454_v25, %v1724_v35  ;;  %v1462_v15 = vsel %vm2986_vm13, %v3403_v4, %v1461_v38  ;;  %v3503_v57 = vld [vmem:[#allocation2 + $0xa0] sm:$0xf] }
 0x191   : > { %v2402_v3 = vsel %vm3028_vm14, %v1244_v49, %v2079_v44  ;;  %v2265_v55 = vor.u32 %v2264_v0, %v2261_v6  ;;  %v2268_v9 = vshll.u32 %v1910_v10, 16  ;;  %v2272_v22 = vshrl.u32 %v1910_v10, 16  ;;  %v1282_v44 = vld [vmem:[#allocation2 + $0xa4] sm:$0x1] }
 0x192   : > { %v2084_v43 = vrot.slane %v2083_v41, 4  ;;  %2438 = vst [vmem:[%s3035_s10 + $0x30] sm:$0xf] %v2402_v3  ;;  %v1469_v29 = vshll.u32 %v1274_v20, 16  ;;  %v1473_v27 = vshrl.u32 %v1274_v20, 16  ;;  %v1882_v4 = vsel %vm2975_vm11, %v3491_v8, %v1462_v15 }
 0x193   : > { %v2266_v2 = vrot.slane %v2265_v55, 4  ;;  %v2270_v12 = vrot.slane %v2268_v9, 5  ;;  %v2274_v31 = vrot.slane %v2272_v22, 4  ;;  %v1465_v16 = vrot.slane %v1463_v53, 4 }
 0x194   : > { %v2089_v49 = vsel %vm2986_vm13, %v2084_v43, %v3460_v50  ;;  %v1471_v21 = vrot.slane %v1469_v29, 5  ;;  %v1884_v60 = vsel %vm2975_vm11, %v1274_v20, %v1473_v27  ;;  %v2043_v0 = vshrl.u32 %v1882_v4, 16  ;;  %v3516_v29 = vld [vmem:[#allocation2 + $0x9c] sm:$0xf] }
 0x195   : > { %v2403_v26 = vsel %vm3028_vm14, %v3428_v5, %v2089_v49  ;;  %v2271_v35 = vsel %vm2986_vm13, %v2266_v2, %v2270_v12  ;;  %v2275_v6 = vor.u32 %v2274_v31, %v2270_v12  ;;  %v1466_v41 = vor.u32 %v1465_v16, %v1461_v38 }
 0x196   : > { %2439 = vst [vmem:[%s3035_s10 + $0x34] sm:$0xf] %v2403_v26  ;;  %v2418_v50 = vsel %vm3028_vm14, %v1260_v7, %v2271_v35  ;;  %v2046_v10 = vshll.u32 %v1882_v4, 16  ;;  %v2062_v15 = vshll.u32 %v1884_v60, 16  ;;  %v2045_v3 = vrot.slane %v2043_v0, 4 }
 0x197   : > { %v2276_v20 = vrot.slane %v2275_v6, 4  ;;  %2454 = vst [vmem:[%s3035_s10 + $0x70] sm:$0xf] %v2418_v50  ;;  %v1683_v55 = vshll.u32 %v3503_v57, 16  ;;  %v1687_v5 = vshrl.u32 %v3503_v57, 16  ;;  %v1467_v9 = vrot.slane %v1466_v41, 4  ;;  %v519_v50 = vpop.f32.mrf.mxu1 }
 0x198   : > { %v2048_v22 = vrot.slane %v2046_v10, 5  ;;  %v2064_v43 = vrot.slane %v2062_v15, 5  ;;  %v1693_v53 = vshll.u32 %v1282_v44, 16  ;;  %v1697_v2 = vshrl.u32 %v1282_v44, 16  ;;  %v1166_v35 = vld [vmem:[#allocation2 + $0x60] sm:$0xf] }
 0x199   : > { %v2281_v7 = vsel %vm2986_vm13, %v2276_v20, %v2280_v61  ;;  %v1685_v38 = vrot.slane %v1683_v55, 5  ;;  %v1689_v27 = vrot.slane %v1687_v5, 4  ;;  %v1472_v31 = vsel %vm2986_vm13, %v1467_v9, %v1471_v21 }
 0x19a   : > { %v2419_v12 = vsel %vm3028_vm14, %v3454_v25, %v2281_v7  ;;  %v2049_v4 = vor.u32 %v2048_v22, %v2045_v3  ;;  %v1695_v49 = vrot.slane %v1693_v53, 5  ;;  %v1883_v16 = vsel %vm2975_vm11, %v3464_v24, %v1472_v31  ;;  %v1222_v3 = vld [vmem:[#allocation2 + $0xc0] sm:$0xf] }
 0x19b   : > { %2455 = vst [vmem:[%s3035_s10 + $0x74] sm:$0xf] %v2419_v12  ;;  %v1686_v61 = vsel %vm2986_vm13, %v3423_v42, %v1685_v38  ;;  %v1690_v60 = vor.u32 %v1689_v27, %v1685_v38  ;;  %v1908_v26 = vsel %vm2975_vm11, %v1282_v44, %v1697_v2  ;;  %v2052_v6 = vshll.u32 %v1883_v16, 16  ;;  %v2714_v38 = vpop.f32.mrf.mxu0 }
 0x19c   : > { %v2050_v25 = vrot.slane %v2049_v4, 4  ;;  %v2056_v0 = vshrl.u32 %v1883_v16, 16  ;;  %v1906_v21 = vsel %vm2975_vm11, %v3516_v29, %v1686_v61  ;;  %v2254_v20 = vshll.u32 %v1908_v26, 16 }
 0x19d   : > { %v1691_v41 = vrot.slane %v1690_v60, 4  ;;  %v2235_v10 = vshrl.u32 %v1906_v21, 16  ;;  %v2238_v15 = vshll.u32 %v1906_v21, 16  ;;  %v2054_v55 = vrot.slane %v2052_v6, 5 }
 0x19e   : > { %v2058_v42 = vrot.slane %v2056_v0, 4  ;;  %v1167_v44 = vsel %vm2888_vm5, %v3448_v33, %v1166_v35  ;;  %v1052_v5 = vor.u32 %v1050_v52, %v3445_v30  ;;  %v2256_v7 = vrot.slane %v2254_v20, 5  ;;  %v2730_v52 = vpop.f32.mrf.mxu1 }
 0x19f   : > { %v1696_v9 = vsel %vm2986_vm13, %v1691_v41, %v1695_v49  ;;  %v2237_v22 = vrot.slane %v2235_v10, 4  ;;  %v2240_v53 = vrot.slane %v2238_v15, 5  ;;  %1168 = vst [vmem:[#allocation2 + $0x60] sm:$0xf] %v1167_v44  ;;  %v2055_v27 = vsel %vm2986_vm13, %v2050_v25, %v2054_v55 }
 0x1a0   : > { %v2059_v2 = vor.u32 %v2058_v42, %v2054_v55  ;;  %v1907_v33 = vsel %vm2975_vm11, %v3503_v57, %v1696_v9  ;;  %v1223_v23 = vsel %vm2888_vm5, %v1052_v5, %v1222_v3  ;;  %v2400_v12 = vsel %vm3028_vm14, %v3491_v8, %v2055_v27 }
 0x1a1   : > { %v2241_v31 = vor.u32 %v2240_v53, %v2237_v22  ;;  %v2244_v4 = vshll.u32 %v1907_v33, 16  ;;  %v2248_v49 = vshrl.u32 %v1907_v33, 16  ;;  %1224 = vst [vmem:[#allocation2 + $0xc0] sm:$0xf] %v1223_v23  ;;  %2436 = vst [vmem:[%s3035_s10 + $0x28] sm:$0xf] %v2400_v12  ;;  %v2639_v61 = vpack.c.bf16 %v3441_v63, %v3441_v63 }
 0x1a2   : > { %v2060_v16 = vrot.slane %v2059_v2, 4  ;;  %v562_v60 = vmul.f32 0.2, %v519_v50  ;;  %v549_v26 = vmul.f32 0.2, %v2714_v38 }
 0x1a3   : > { %v2242_v35 = vrot.slane %v2241_v31, 4  ;;  %v2246_v25 = vrot.slane %v2244_v4, 5  ;;  %v2250_v6 = vrot.slane %v2248_v49, 4  ;;  %v565_v0 = vmul.f32 0.2, %v2730_v52 }
 0x1a4   : > { %v2065_v8 = vsel %vm2986_vm13, %v2060_v16, %v2064_v43  ;;  %v894_v21 = vshrl.u32 %v2639_v61, 16  ;;  %v897_v41 = vshll.u32 %v2639_v61, 16  ;;  %v3560_v10 = vmax.f32 %v519_v50, %v562_v60  ;;  %v1159_v53 = vld [vmem:[#allocation2 + $0x54] sm:$0xf] }
 0x1a5   : > { %v2401_v15 = vsel %vm3028_vm14, %v3464_v24, %v2065_v8  ;;  %v2247_v20 = vsel %vm2986_vm13, %v2242_v35, %v2246_v25  ;;  %v2251_v3 = vor.u32 %v2250_v6, %v2246_v25  ;;  %v3567_v55 = vmax.f32 %v2714_v38, %v549_v26  ;;  %v1215_v35 = vld [vmem:[#allocation2 + $0xb4] sm:$0xf]  ;;  %v458_v25 = vpop.f32.mrf.mxu0  ;;  %v522_v6 = vpop.f32.mrf.mxu1 }
 0x1a6   : > { %2437 = vst [vmem:[%s3035_s10 + $0x2c] sm:$0xf] %v2401_v15  ;;  %v2416_v42 = vsel %vm3028_vm14, %v3516_v29, %v2247_v20  ;;  %v1295_v43 = vld [vmem:[#allocation2 + $0x60] sm:$0xe]  ;;  %v3573_v44 = vrot.slane %v894_v21, 7  ;;  %v2655_v50 = vpack.c.bf16 %v3560_v10, %v3560_v10  ;;  %v3577_v5 = vmax.f32 %v2730_v52, %v565_v0 }
 0x1a7   : > { %v2252_v24 = vrot.slane %v2251_v3, 4  ;;  %2452 = vst [vmem:[%s3035_s10 + $0x68] sm:$0xf] %v2416_v42  ;;  %v1534_v9 = vshrl.u32 %v1295_v43, 16  ;;  %v1537_v22 = vshll.u32 %v1295_v43, 16  ;;  %v2642_v38 = vpack.c.bf16 %v3567_v55, %v3567_v55 }
 0x1a8   : > { %v1303_v27 = vld [vmem:[#allocation2 + $0xc0] sm:$0xe]  ;;  %v609_v29 = vadd.f32 %v3426_v56, %v3441_v63  ;;  %v899_v2 = vor.u32 %v897_v41, %v3573_v44  ;;  %v1030_v33 = vshrl.u32 %v2655_v50, 16  ;;  %v2658_v23 = vpack.c.bf16 %v3577_v5, %v3577_v5  ;;  %v1170_v21 = vld [vmem:[#allocation2 + $0x68] sm:$0x1] }
 0x1a9   : > { %v2257_v52 = vsel %vm2986_vm13, %v2252_v24, %v2256_v7  ;;  %v1536_v12 = vrot.slane %v1534_v9, 4  ;;  %v1539_v31 = vrot.slane %v1537_v22, 5  ;;  %v1758_v4 = vshrl.u32 %v1303_v27, 16  ;;  %v1287_v43 = vld [vmem:[#allocation2] sm:$0xe] }
 0x1aa   : > { %v2417_v49 = vsel %vm3028_vm14, %v3503_v57, %v2257_v52  ;;  %v1761_v16 = vshll.u32 %v1303_v27, 16  ;;  %v1160_v56 = vsel %vm2888_vm5, %v899_v2, %v1159_v53  ;;  %v3594_v63 = vrot.slane %v1030_v33, 7  ;;  %v1226_v52 = vld [vmem:[#allocation2 + $0xc8] sm:$0x1] }
 0x1ab   : > { %2453 = vst [vmem:[%s3035_s10 + $0x6c] sm:$0xf] %v2417_v49  ;;  %v1540_v61 = vor.u32 %v1539_v31, %v1536_v12  ;;  %v1760_v60 = vrot.slane %v1758_v4, 4  ;;  %1161 = vst [vmem:[#allocation2 + $0x54] sm:$0xf] %v1160_v56  ;;  %v1033_v26 = vshll.u32 %v2655_v50, 16 }
 0x1ac   : > { %v919_v7 = vshrl.u32 %v2642_v38, 16  ;;  %v1763_v0 = vrot.slane %v1761_v16, 5  ;;  %v900_v8 = vrot.slane %v3573_v44, 4  ;;  %v1036_v57 = vrot.slane %v3594_v63, 4  ;;  %v3614_v56 = vld [vmem:[#allocation2 + $0x4] sm:$0xf] }
 0x1ad   : > { %v1055_v41 = vshrl.u32 %v2658_v23, 16  ;;  %v1035_v15 = vor.u32 %v1033_v26, %v3594_v63  ;;  %v922_v3 = vshll.u32 %v2642_v38, 16  ;;  %v1058_v42 = vshll.u32 %v2658_v23, 16 }
 0x1ae   : > { %v921_v20 = vrot.slane %v919_v7, 7  ;;  %v1764_v24 = vor.u32 %v1763_v0, %v1760_v60  ;;  %v547_v50 = vmul.f32 0.2, %v458_v25  ;;  %v563_v22 = vmul.f32 0.2, %v522_v6 }
 0x1af   : > { %v1057_v9 = vrot.slane %v1055_v41, 7  ;;  %v3600_v53 = vrot.slane %v1540_v61, 4  ;;  %v1216_v27 = vsel %vm2888_vm5, %v1035_v15, %v1215_v35  ;;  %v1310_v49 = vshrl.u32 %v1287_v43, 16 }
 0x1b0   : > { %v924_v2 = vor.u32 %v922_v3, %v921_v20  ;;  %v926_v33 = vrot.slane %v921_v20, 4  ;;  %1217 = vst [vmem:[#allocation2 + $0xb4] sm:$0xf] %v1216_v27  ;;  %v579_v4 = vmax.f32 %v458_v25, %v547_v50  ;;  %v3604_v38 = vrot.slane %v1764_v24, 4 }
 0x1b1   : > { %v1060_v12 = vor.u32 %v1058_v42, %v1057_v9  ;;  %v1062_v31 = vrot.slane %v1057_v9, 4  ;;  %v3612_v59 = vmax.f32 %v522_v6, %v563_v22  ;;  %v1313_v6 = vshll.u32 %v1287_v43, 16 }
 0x1b2   : > { %v925_v23 = vsel %vm2921_vm6, %v917_v47, %v924_v2  ;;  %v1171_v16 = vsel %vm2930_vm7, %v926_v33, %v1170_v21  ;;  %v1294_v61 = vld [vmem:[#allocation2 + $0x54] sm:$0xe]  ;;  %v610_v26 = vadd.f32 %v609_v29, %v579_v4  ;;  %v2640_v47 = vpack.c.bf16 %v579_v4, %v579_v4 }
 0x1b3   : > { %1169 = vst [vmem:[#allocation2 + $0x64] sm:$0xf] %v925_v23  ;;  %1172 = vst [vmem:[#allocation2 + $0x68] sm:$0x1] %v1171_v16  ;;  %v1061_v60 = vsel %vm2921_vm6, %v1053_v62, %v1060_v12  ;;  %v1227_v1 = vsel %vm2930_vm7, %v1062_v31, %v1226_v52  ;;  %v1506_v35 = vshrl.u32 %v1294_v61, 16  ;;  %v1509_v7 = vshll.u32 %v1294_v61, 16 }
 0x1b4   : > { %1225 = vst [vmem:[#allocation2 + $0xc4] sm:$0xf] %v1061_v60  ;;  %1228 = vst [vmem:[#allocation2 + $0xc8] sm:$0x1] %v1227_v1  ;;  %v2656_v25 = vpack.c.bf16 %v3612_v59, %v3612_v59  ;;  %v611_v0 = vadd.f32 %v610_v26, %v3399_v45  ;;  %v902_v21 = vshrl.u32 %v2640_v47, 16  ;;  %v3625_v30 = vrot.slane %v1310_v49, 4 }
 0x1b5   : > { %v1319_v62 = vshll.u32 %v3614_v56, 16  ;;  %v1508_v41 = vrot.slane %v1506_v35, 4  ;;  %v1511_v15 = vrot.slane %v1509_v7, 5  ;;  %v905_v24 = vshll.u32 %v2640_v47, 16 }
 0x1b6   : > { %v1038_v20 = vshrl.u32 %v2656_v25, 16  ;;  %v1041_v29 = vshll.u32 %v2656_v25, 16  ;;  %v612_v3 = vadd.f32 %v611_v0, %v3567_v55  ;;  %v3629_v42 = vrot.slane %v902_v21, 7 }
 0x1b7   : > { %v3631_v9 = vrot.slane %v1313_v6, 5  ;;  %v1512_v50 = vor.u32 %v1511_v15, %v1508_v41  ;;  %v1302_v43 = vld [vmem:[#allocation2 + $0xb4] sm:$0xe]  ;;  %v3635_v45 = vrot.slane %v1319_v62, 5 }
 0x1b8   : > { %v3633_v22 = vrot.slane %v1038_v20, 7  ;;  %v1730_v2 = vshrl.u32 %v1302_v43, 16  ;;  %v1733_v33 = vshll.u32 %v1302_v43, 16  ;;  %v613_v52 = vadd.f32 %v612_v3, %v2874_v40 }
 0x1b9   : > { %v3640_v12 = vor.u32 %v905_v24, %v3629_v42  ;;  %v3642_v55 = vrot.slane %v1512_v50, 4  ;;  %v909_v49 = vrot.slane %v3629_v42, 4  ;;  %v1248_v24 = vld [vmem:[#allocation2 + $0x60] sm:$0xf]  ;;  %v3713_v42 = vld [vmem:[#allocation2 + $0x8] sm:$0x1]  ;;  %v3917_v63 = vor.u32 %v3631_v9, %v3625_v30 }
 0x1ba   : > { %v3644_v31 = vld [vmem:[#allocation2 + $0x64] sm:$0xf]  ;;  %v1277_v4 = vld [vmem:[#allocation2 + $0x68] sm:$0x1]  ;;  %v3648_v23 = vor.u32 %v1041_v29, %v3633_v22  ;;  %v1732_v61 = vrot.slane %v1730_v2, 4  ;;  %v1735_v60 = vrot.slane %v1733_v33, 5 }
 0x1bb   : > { %v1543_v40 = vshll.u32 %v3644_v31, 16  ;;  %v1547_v1 = vshrl.u32 %v3644_v31, 16  ;;  %v3654_v26 = vld [vmem:[#allocation2 + $0xc4] sm:$0xf]  ;;  %v1553_v47 = vshll.u32 %v1277_v4, 16  ;;  %v1557_v35 = vshrl.u32 %v1277_v4, 16 }
 0x1bc   : > { %v1285_v7 = vld [vmem:[#allocation2 + $0xc8] sm:$0x1]  ;;  %v1767_v25 = vshll.u32 %v3654_v26, 16  ;;  %v1771_v6 = vshrl.u32 %v3654_v26, 16  ;;  %v1736_v0 = vor.u32 %v1735_v60, %v1732_v61  ;;  %v3660_v50 = vld [vmem:[#allocation2 + $0xc0] sm:$0xf]  ;;  %v1044_v44 = vsel %vm2921_vm6, %v1036_v57, %v3648_v23 }
 0x1bd   : > { %v1545_v21 = vrot.slane %v1543_v40, 5  ;;  %v1549_v62 = vrot.slane %v1547_v1, 4  ;;  %v1777_v41 = vshll.u32 %v1285_v7, 16  ;;  %v1555_v15 = vrot.slane %v1553_v47, 5  ;;  %1218 = vst [vmem:[#allocation2 + $0xb8] sm:$0xf] %v1044_v44 }
 0x1be   : > { %v1893_v20 = vsel %vm2975_vm11, %v1277_v4, %v1557_v35  ;;  %v1769_v29 = vrot.slane %v1767_v25, 5  ;;  %v1773_v3 = vrot.slane %v1771_v6, 4  ;;  %v3662_v43 = vrot.slane %v1736_v0, 4  ;;  %v1304_v23 = vld [vmem:[#allocation2 + $0xcc] sm:$0xe] }
 0x1bf   : > { %v1546_v2 = vsel %vm2986_vm13, %v3600_v53, %v1545_v21  ;;  %v1550_v33 = vor.u32 %v1549_v62, %v1545_v21  ;;  %v2134_v61 = vshll.u32 %v1893_v20, 16  ;;  %v1779_v1 = vrot.slane %v1777_v41, 5 }
 0x1c0   : > { %v1891_v60 = vsel %vm2975_vm11, %v1248_v24, %v1546_v2  ;;  %v1770_v4 = vsel %vm2986_vm13, %v3604_v38, %v1769_v29  ;;  %v1774_v40 = vor.u32 %v1773_v3, %v1769_v29  ;;  %v1781_v27 = vshrl.u32 %v1285_v7, 16 }
 0x1c1   : > { %v1551_v47 = vrot.slane %v1550_v33, 4  ;;  %v2115_v35 = vshrl.u32 %v1891_v60, 16  ;;  %v2118_v25 = vshll.u32 %v1891_v60, 16  ;;  %v2136_v6 = vrot.slane %v2134_v61, 5 }
 0x1c2   : > { %v1775_v0 = vrot.slane %v1774_v40, 4  ;;  %v1915_v53 = vsel %vm2975_vm11, %v3660_v50, %v1770_v4  ;;  %v614_v21 = vadd.f32 %v613_v52, %v2909_v14  ;;  %v1917_v3 = vsel %vm2975_vm11, %v1285_v7, %v1781_v27 }
 0x1c3   : > { %v1556_v62 = vsel %vm2986_vm13, %v1551_v47, %v1555_v15  ;;  %v2117_v20 = vrot.slane %v2115_v35, 4  ;;  %v2120_v2 = vrot.slane %v2118_v25, 5  ;;  %v2307_v38 = vshrl.u32 %v1915_v53, 16 }
 0x1c4   : > { %v1892_v41 = vsel %vm2975_vm11, %v3644_v31, %v1556_v62  ;;  %v1780_v29 = vsel %vm2986_vm13, %v1775_v0, %v1779_v1  ;;  %v2310_v33 = vshll.u32 %v1915_v53, 16  ;;  %v2326_v16 = vshll.u32 %v1917_v3, 16  ;;  %v1163_v53 = vld [vmem:[#allocation2 + $0x5c] sm:$0x1] }
 0x1c5   : > { %v2121_v61 = vor.u32 %v2120_v2, %v2117_v20  ;;  %v2124_v60 = vshll.u32 %v1892_v41, 16  ;;  %v2128_v14 = vshrl.u32 %v1892_v41, 16  ;;  %v1916_v52 = vsel %vm2975_vm11, %v3654_v26, %v1780_v29 }
 0x1c6   : > { %v2309_v15 = vrot.slane %v2307_v38, 4  ;;  %v2312_v4 = vrot.slane %v2310_v33, 5  ;;  %v2316_v40 = vshll.u32 %v1916_v52, 16  ;;  %v2320_v47 = vshrl.u32 %v1916_v52, 16 }
 0x1c7   : > { %v2122_v35 = vrot.slane %v2121_v61, 4  ;;  %v2126_v25 = vrot.slane %v2124_v60, 5  ;;  %v2130_v62 = vrot.slane %v2128_v14, 4  ;;  %v615_v7 = vadd.f32 %v614_v21, %v2868_v32  ;;  %v1219_v32 = vld [vmem:[#allocation2 + $0xbc] sm:$0x1] }
 0x1c8   : > { %v2313_v1 = vor.u32 %v2312_v4, %v2309_v15  ;;  %v2318_v0 = vrot.slane %v2316_v40, 5  ;;  %v2322_v27 = vrot.slane %v2320_v47, 4  ;;  %v2328_v41 = vrot.slane %v2326_v16, 5  ;;  %v3750_v40 = vld [vmem:[#allocation2] sm:$0xf] }
 0x1c9   : > { %v2127_v20 = vsel %vm2986_vm13, %v2122_v35, %v2126_v25  ;;  %v2131_v2 = vor.u32 %v2130_v62, %v2126_v25  ;;  %v908_v38 = vsel %vm2921_vm6, %v900_v8, %v3640_v12  ;;  %v616_v61 = vadd.f32 %v615_v7, %v2880_v54 }
 0x1ca   : > { %v2406_v29 = vsel %vm3028_vm14, %v1248_v24, %v2127_v20  ;;  %v2314_v3 = vrot.slane %v2313_v1, 4  ;;  %v2323_v33 = vor.u32 %v2322_v27, %v2318_v0  ;;  %1162 = vst [vmem:[#allocation2 + $0x58] sm:$0xf] %v908_v38  ;;  %v1164_v16 = vsel %vm2930_vm7, %v909_v49, %v1163_v53 }
 0x1cb   : > { %v2132_v21 = vrot.slane %v2131_v2, 4  ;;  %2442 = vst [vmem:[%s3035_s10 + $0x40] sm:$0xf] %v2406_v29  ;;  %v1045_v8 = vrot.slane %v3633_v22, 4  ;;  %v617_v24 = vadd.f32 %v616_v61, %v3130_v39  ;;  %1165 = vst [vmem:[#allocation2 + $0x5c] sm:$0x1] %v1164_v16 }
 0x1cc   : > { %v2319_v54 = vsel %vm2986_vm13, %v2314_v3, %v2318_v0  ;;  %v2324_v12 = vrot.slane %v2323_v33, 4  ;;  %v1317_v49 = vrot.slane %v3917_v63, 4  ;;  %v3725_v39 = vld [vmem:[#allocation2 + $0xd0] sm:$0xf]  ;;  %v3918_v60 = vshrl.u32 %v3614_v56, 16 }
 0x1cd   : > { %v2137_v28 = vsel %vm2986_vm13, %v2132_v21, %v2136_v6  ;;  %v2422_v57 = vsel %vm3028_vm14, %v3660_v50, %v2319_v54  ;;  %v1220_v22 = vsel %vm2930_vm7, %v1045_v8, %v1219_v32  ;;  %v618_v50 = vadd.f32 %v617_v24, %v3160_v11  ;;  %v3764_v2 = vld [vmem:[#allocation2 + $0xb8] sm:$0xf]  ;;  %v1246_v54 = vld [vmem:[#allocation2 + $0x54] sm:$0xf] }
 0x1ce   : > { %v1325_v14 = vrot.slane %v3918_v60, 4  ;;  %v2407_v30 = vsel %vm3028_vm14, %v3644_v31, %v2137_v28  ;;  %v2329_v9 = vsel %vm2986_vm13, %v2324_v12, %v2328_v41  ;;  %2458 = vst [vmem:[%s3035_s10 + $0x80] sm:$0xf] %v2422_v57  ;;  %1221 = vst [vmem:[#allocation2 + $0xbc] sm:$0x1] %v1220_v22  ;;  %v1322_v6 = vsel %vm2986_vm13, %v1317_v49, %v3635_v45 }
 0x1cf   : > { %2443 = vst [vmem:[%s3035_s10 + $0x44] sm:$0xf] %v2407_v30  ;;  %v2423_v52 = vsel %vm3028_vm14, %v3654_v26, %v2329_v9  ;;  %v1329_v15 = vshll.u32 %v3713_v42, 16  ;;  %v1333_v4 = vshrl.u32 %v3713_v42, 16  ;;  %v619_v11 = vadd.f32 %v618_v50, %v3081_v46 }
 0x1d0   : > { %v1326_v31 = vor.u32 %v1325_v14, %v3635_v45  ;;  %2459 = vst [vmem:[%s3035_s10 + $0x84] sm:$0xf] %v2423_v52  ;;  %v1786_v47 = vshrl.u32 %v1304_v23, 16  ;;  %v1789_v35 = vshll.u32 %v1304_v23, 16  ;;  %v1795_v25 = vshll.u32 %v3725_v39, 16 }
 0x1d1   : > { %v3753_v62 = vld [vmem:[#allocation2 + $0x58] sm:$0xf]  ;;  %v3757_v26 = vrot.slane %v1329_v15, 5  ;;  %v1799_v45 = vshrl.u32 %v3725_v39, 16  ;;  %v1805_v0 = vshll.u32 %v3736_v37, 16  ;;  %v620_v7 = vadd.f32 %v619_v11, %v3136_v17 }
 0x1d2   : > { %v3755_v1 = vrot.slane %v1326_v31, 4  ;;  %v1515_v27 = vshll.u32 %v3753_v62, 16  ;;  %v1519_v46 = vshrl.u32 %v3753_v62, 16  ;;  %v1788_v53 = vrot.slane %v1786_v47, 4  ;;  %v1276_v20 = vld [vmem:[#allocation2 + $0x5c] sm:$0x1] }
 0x1d3   : > { %v1791_v38 = vrot.slane %v1789_v35, 5  ;;  %v3770_v29 = vrot.slane %v1795_v25, 5  ;;  %v3775_v3 = vsel %vm2975_vm11, %v3750_v40, %v1322_v6  ;;  %v1525_v17 = vshll.u32 %v1276_v20, 16  ;;  %v1262_v31 = vld [vmem:[#allocation2 + $0xb4] sm:$0xf] }
 0x1d4   : > { %v1332_v41 = vsel %vm2986_vm13, %v3755_v1, %v3757_v26  ;;  %v1517_v33 = vrot.slane %v1515_v27, 5  ;;  %v1521_v61 = vrot.slane %v1519_v46, 4  ;;  %v1529_v32 = vshrl.u32 %v1276_v20, 16 }
 0x1d5   : > { %v621_v21 = vadd.f32 %v620_v7, %v3312_v34  ;;  %v1739_v16 = vshll.u32 %v3764_v2, 16  ;;  %v1743_v44 = vshrl.u32 %v3764_v2, 16  ;;  %v1792_v8 = vor.u32 %v1791_v38, %v1788_v53  ;;  %v1284_v28 = vld [vmem:[#allocation2 + $0xbc] sm:$0x1] }
 0x1d6   : > { %v1518_v12 = vsel %vm2986_vm13, %v3642_v55, %v1517_v33  ;;  %v1522_v24 = vor.u32 %v1521_v61, %v1517_v33  ;;  %v1527_v63 = vrot.slane %v1525_v17, 5  ;;  %v1890_v49 = vsel %vm2975_vm11, %v1276_v20, %v1529_v32 }
 0x1d7   : > { %v1888_v57 = vsel %vm2975_vm11, %v1246_v54, %v1518_v12  ;;  %v2110_v34 = vshll.u32 %v1890_v49, 16  ;;  %v622_v22 = vadd.f32 %v621_v21, %v3387_v19  ;;  %v1741_v23 = vrot.slane %v1739_v16, 5 }
 0x1d8   : > { %v1523_v60 = vrot.slane %v1522_v24, 4  ;;  %v2091_v14 = vshrl.u32 %v1888_v57, 16  ;;  %v2094_v30 = vshll.u32 %v1888_v57, 16  ;;  %v1745_v9 = vrot.slane %v1743_v44, 4 }
 0x1d9   : > { %v2112_v50 = vrot.slane %v2110_v34, 5  ;;  %v623_v55 = vadd.f32 %v622_v22, %v3202_v18  ;;  %v1742_v6 = vsel %vm2986_vm13, %v3662_v43, %v1741_v23  ;;  %v1749_v52 = vshll.u32 %v1284_v28, 16 }
 0x1da   : > { %v1528_v15 = vsel %vm2986_vm13, %v1523_v60, %v1527_v63  ;;  %v2093_v11 = vrot.slane %v2091_v14, 4  ;;  %v2096_v47 = vrot.slane %v2094_v30, 5  ;;  %v1746_v19 = vor.u32 %v1745_v9, %v1741_v23 }
 0x1db   : > { %v1889_v35 = vsel %vm2975_vm11, %v3753_v62, %v1528_v15  ;;  %v624_v25 = vadd.f32 %v623_v55, %v3379_v13  ;;  %v1751_v27 = vrot.slane %v1749_v52, 5  ;;  %v1753_v18 = vshrl.u32 %v1284_v28, 16  ;;  %v3823_v15 = vld [vmem:[#allocation2 + $0xcc] sm:$0xf] }
 0x1dc   : > { %v2097_v46 = vor.u32 %v2096_v47, %v2093_v11  ;;  %v2100_v7 = vshll.u32 %v1889_v35, 16  ;;  %v2104_v53 = vshrl.u32 %v1889_v35, 16  ;;  %v1747_v43 = vrot.slane %v1746_v19, 4 }
 0x1dd   : > { %v625_v20 = vadd.f32 %v624_v25, %v3560_v10  ;;  %v1912_v38 = vsel %vm2975_vm11, %v1262_v31, %v1742_v6  ;;  %v1914_v33 = vsel %vm2975_vm11, %v1284_v28, %v1753_v18  ;;  %v1793_v61 = vrot.slane %v1792_v8, 4 }
 0x1de   : > { %v2098_v17 = vrot.slane %v2097_v46, 4  ;;  %v2102_v32 = vrot.slane %v2100_v7, 5  ;;  %v2106_v21 = vrot.slane %v2104_v53, 4  ;;  %v1752_v13 = vsel %vm2986_vm13, %v1747_v43, %v1751_v27 }
 0x1df   : > { %v626_v16 = vadd.f32 %v625_v20, %v3612_v59  ;;  %v1913_v10 = vsel %vm2975_vm11, %v3764_v2, %v1752_v13  ;;  %v2283_v44 = vshrl.u32 %v1912_v38, 16  ;;  %v2286_v12 = vshll.u32 %v1912_v38, 16 }
 0x1e0   : > { %v2103_v24 = vsel %vm2986_vm13, %v2098_v17, %v2102_v32  ;;  %v2107_v63 = vor.u32 %v2106_v21, %v2102_v32  ;;  %v2292_v8 = vshll.u32 %v1913_v10, 16  ;;  %v2296_v49 = vshrl.u32 %v1913_v10, 16 }
 0x1e1   : > { %v2404_v28 = vsel %vm3028_vm14, %v1246_v54, %v2103_v24  ;;  %v627_v57 = vadd.f32 %v626_v16, %v3401_v51  ;;  %v2285_v34 = vrot.slane %v2283_v44, 4  ;;  %v2288_v22 = vrot.slane %v2286_v12, 5 }
 0x1e2   : > { %v2108_v59 = vrot.slane %v2107_v63, 4  ;;  %2440 = vst [vmem:[%s3035_s10 + $0x38] sm:$0xf] %v2404_v28  ;;  %v2294_v23 = vrot.slane %v2292_v8, 5  ;;  %v2298_v60 = vrot.slane %v2296_v49, 4  ;;  %v2302_v14 = vshll.u32 %v1914_v33, 16 }
 0x1e3   : > { %v628_v30 = vadd.f32 %v627_v57, %v3577_v5  ;;  %v2289_v9 = vor.u32 %v2288_v22, %v2285_v34  ;;  %v1798_v55 = vsel %vm2986_vm13, %v1793_v61, %v3770_v29  ;;  %v1801_v54 = vrot.slane %v1799_v45, 4 }
 0x1e4   : > { %v2113_v51 = vsel %vm2986_vm13, %v2108_v59, %v2112_v50  ;;  %v2299_v6 = vor.u32 %v2298_v60, %v2294_v23  ;;  %v2304_v52 = vrot.slane %v2302_v14, 5  ;;  %v1807_v11 = vrot.slane %v1805_v0, 5 }
 0x1e5   : > { %v2405_v5 = vsel %vm3028_vm14, %v3753_v62, %v2113_v51  ;;  %v629_v47 = vrot.slane %v628_v30, 4  ;;  %v2290_v19 = vrot.slane %v2289_v9, 4  ;;  %v1802_v35 = vor.u32 %v1801_v54, %v3770_v29 }
 0x1e6   : > { %2441 = vst [vmem:[%s3035_s10 + $0x3c] sm:$0xf] %v2405_v5  ;;  %v2300_v45 = vrot.slane %v2299_v6, 4  ;;  %v1809_v50 = vshrl.u32 %v3736_v37, 16  ;;  %v1868_v0 = vsel %vm2975_vm11, %v3614_v56, %v1332_v41  ;;  %v1869_v62 = vsel %vm2975_vm11, %v3713_v42, %v1333_v4 }
 0x1e7   : > { %v630_v29 = vadd.f32 %v629_v47, %v628_v30  ;;  %v2295_v25 = vsel %vm2986_vm13, %v2290_v19, %v2294_v23  ;;  %v1803_v27 = vrot.slane %v1802_v35, 4  ;;  %v1918_v1 = vsel %vm2975_vm11, %v3823_v15, %v1798_v55 }
 0x1e8   : > { %v2305_v26 = vsel %vm2986_vm13, %v2300_v45, %v2304_v52  ;;  %v2420_v41 = vsel %vm3028_vm14, %v1262_v31, %v2295_v25  ;;  %v1920_v18 = vsel %vm2975_vm11, %v3736_v37, %v1809_v50  ;;  %v1923_v42 = vshrl.u32 %v3775_v3, 16 }
 0x1e9   : > { %v631_v4 = vrot.slane %v630_v29, 2  ;;  %v2421_v46 = vsel %vm3028_vm14, %v3764_v2, %v2305_v26  ;;  %2456 = vst [vmem:[%s3035_s10 + $0x78] sm:$0xf] %v2420_v41  ;;  %v1808_v7 = vsel %vm2986_vm13, %v1803_v27, %v1807_v11  ;;  %v1926_v53 = vshll.u32 %v3775_v3, 16 }
 0x1ea   : > { %2457 = vst [vmem:[%s3035_s10 + $0x7c] sm:$0xf] %v2421_v46  ;;  %v1919_v31 = vsel %vm2975_vm11, %v3725_v39, %v1808_v7  ;;  %v1925_v43 = vrot.slane %v1923_v42, 4  ;;  %v1932_v37 = vshll.u32 %v1868_v0, 16  ;;  %v1936_v20 = vshrl.u32 %v1868_v0, 16 }
 0x1eb   : > { %v632_v38 = vadd.f32 %v631_v4, %v630_v29  ;;  %v1928_v33 = vrot.slane %v1926_v53, 5  ;;  %v1942_v61 = vshll.u32 %v1869_v62, 16  ;;  %v2331_v17 = vshrl.u32 %v1918_v1, 16 }
 0x1ec   : > { %v1934_v2 = vrot.slane %v1932_v37, 5  ;;  %v1938_v32 = vrot.slane %v1936_v20, 4  ;;  %v2334_v21 = vshll.u32 %v1918_v1, 16  ;;  %v2340_v13 = vshll.u32 %v1919_v31, 16 }
 0x1ed   : > { %v633_v16 = vrot.slane %v632_v38, 1  ;;  %v1929_v10 = vor.u32 %v1928_v33, %v1925_v43  ;;  %v1944_v3 = vrot.slane %v1942_v61, 5  ;;  %v2333_v44 = vrot.slane %v2331_v17, 4 }
 0x1ee   : > { %v1939_v12 = vor.u32 %v1938_v32, %v1934_v2  ;;  %v2336_v24 = vrot.slane %v2334_v21, 5  ;;  %v2342_v36 = vrot.slane %v2340_v13, 5  ;;  %v2344_v63 = vshrl.u32 %v1919_v31, 16 }
 0x1ef   : > { %v634_v8 = vadd.f32 %v633_v16, %v632_v38  ;;  %v1930_v49 = vrot.slane %v1929_v10, 4  ;;  %v2350_v28 = vshll.u32 %v1920_v18, 16 }
 0x1f0   : > { %v1940_v57 = vrot.slane %v1939_v12, 4  ;;  %v2337_v34 = vor.u32 %v2336_v24, %v2333_v44  ;;  %v2346_v22 = vrot.slane %v2344_v63, 4 }
 0x1f1   : > { %v636_v59 = vmul.f32 0.00390625, %v634_v8  ;;  %v1935_v23 = vsel %vm2986_vm13, %v1930_v49, %v1934_v2  ;;  %v2352_v60 = vrot.slane %v2350_v28, 5 }
 0x1f2   : > { %v1945_v14 = vsel %vm2986_vm13, %v1940_v57, %v1944_v3  ;;  %v2338_v30 = vrot.slane %v2337_v34, 4  ;;  %v2347_v9 = vor.u32 %v2346_v22, %v2342_v36  ;;  %v2390_v55 = vsel %vm3028_vm14, %v3750_v40, %v1935_v23 }
 0x1f3   : > { %637 = vst [vmem:[%s179_s15] sm:$0x1] %v636_v59  ;;  %v2391_v54 = vsel %vm3028_vm14, %v3614_v56, %v1945_v14  ;;  %2426 = vst [vmem:[%s3035_s10] sm:$0xf] %v2390_v55 }
 0x1f4   : > { %v2343_v51 = vsel %vm2986_vm13, %v2338_v30, %v2342_v36  ;;  %v2348_v6 = vrot.slane %v2347_v9, 4  ;;  %2427 = vst [vmem:[%s3035_s10 + $0x4] sm:$0xf] %v2391_v54 }
 0x1f5   : > { %v2424_v52 = vsel %vm3028_vm14, %v3823_v15, %v2343_v51 }
 0x1f6   : > { %v2353_v11 = vsel %vm2986_vm13, %v2348_v6, %v2352_v60  ;;  %2460 = vst [vmem:[%s3035_s10 + $0x88] sm:$0xf] %v2424_v52 }
 0x1f7   : > { %v2425_v40 = vsel %vm3028_vm14, %v3725_v39, %v2353_v11 }
 0x1f8   : > { %2461 = vst [vmem:[%s3035_s10 + $0x8c] sm:$0xf] %v2425_v40 }
 0x1f9 PF: > { %s14_s12 = sadd.s32 1, %s2787_s12  }
 0x1fa   : > { %p11_p4 = scmp.ge.s32.totalorder %s14_s12, 4  }
 0x1fc   :  { %13 = sbr.rel (!%p11_p4) target bundleno = 1 (0x1), region = 71 }

// kernel: aab_module_forward.5
= control target key start
LH: loop header
LB: loop body
LE: loop exit
PB: predicated region body
PF: predicated region fallthrough
CT: control target
= control target key end

     0   :  { %15 = vsyncpa [#allocation4], 0  ;;  %s9466_s13 = smov 0   ;;  %s11709_s0 = inlined_call_operand.vmem [shape: f32[2,2], index: 0, kind: input, shape index: {}]   ;;  %s11710_s1 = inlined_call_operand.vmem [shape: bf16[2,18,16,128], index: 1, kind: input, shape index: {}]   ;;  %s11711_s2 = inlined_call_operand.vmem [shape: bf16[2,16,16,128], index: 2, kind: input, shape index: {}]   ;;  %s11712_s3 = inlined_call_operand.vmem [shape: bf16[3,128,128], index: 3, kind: input, shape index: {}]   ;;  %s11713_s4 = inlined_call_operand.vmem [shape: bf16[128,128], index: 4, kind: input, shape index: {}]   ;;  %s11714_s5 = inlined_call_operand.vmem [shape: f32[1,128], index: 5, kind: input, shape index: {}]   ;;  %s11715_s6 = inlined_call_operand.vmem [shape: bf16[3,128,128], index: 6, kind: input, shape index: {}]   ;;  %s11716_s7 = inlined_call_operand.vmem [shape: bf16[3,128,128], index: 7, kind: input, shape index: {}]   ;;  %s11717_s8 = inlined_call_operand.vmem [shape: bf16[3,128,128], index: 8, kind: input, shape index: {}]   ;;  %s11718_s9 = inlined_call_operand.vmem [shape: bf16[128,128], index: 9, kind: input, shape index: {}]   ;;  %s11719_s10 = inlined_call_operand.vmem [shape: bf16[2,16,16,128], index: 10, kind: output, shape index: {}]  }
   0x1 LB: > { %s9472_s14 = sadd.s32 4294967295, %s9407_s13   ;;  %p7145_p0 = scmp.ge.s32.totalorder %s9407_s13, 1  ;;  %s9407_s13 = sphi %s9466_s13, %s21_s13  }
   0x2   : > { %p272_p1 = scmp.lt.s32.totalorder %s9407_s13, 3  ;;  %s285_s17 = sshll.u32 %s11709_s0, 4  ;;  %s286_s17 = int_to_ptr.vmem [resolvable:$true] %s285_s17 }
   0x3   : > { %p9012_p3 = scmp.eq.s32.totalorder %s9472_s14, 0  ;;  %s9382_s19 = scalar_lea.vmem %s286_s17, 32 }
   0x4   : > { %p9479_p2 = pnand %p7145_p0, %p272_p1  ;;  %p9383_p6 = scmp.ne.s32.totalorder %s286_s17, %s9382_s19 }
   0x5   : > { %p9390_p10 = scmp.lt.s32.totalorder %s286_s17, %s286_s17  ;;  %p9391_p11 = scmp.lt.s32.totalorder %s9382_s19, %s9382_s19 }
   0x6   : > { %p9008_p4 = pneg %p9479_p2 }
   0x7   : > { %p9392_p12 = por %p9391_p11, %p9390_p10 }
   0x8   : > { %p9009_p5 = pnand %p9012_p3, %p9008_p4 }
   0xa   : > { %p9384_p7 = pneg %p9009_p5 }
   0xc   : > { %p9385_p8 = pnand %p9384_p7, %p9383_p6 }
   0xe   : > { %p9386_p9 = pneg %p9385_p8 }
  0x10   : > { %p9393_p13 = pnand %p9392_p12, %p9386_p9 }
  0x12   : > { %9396 = shalt.err (!%p9393_p13)
}
  0x13   : > { %s9409_s20 = smov [#allocation3]   ;;  %335 = sbr.rel (%p9479_p2) target bundleno = 1394 (0x572), region = 60 }
  0x14   : > { %9011 = dma.vmem_to_smem (!%p9009_p5), %s286_s17, 32, %s9409_s20, [#allocation4]  }
  0x18   : > { %9402 = dma.done.wait (%p9012_p3), [#allocation4], 32  }
  0x19   : > { %9404 = vsyncadd (%p9012_p3), [#allocation4], 4294967264 }
  0x1a   : > { %341 = sfence }
  0x1b   : > { %v9024_v0 = vld [vmem:[%s11712_s3 + $0x78] sm:$0xff]   ;;  %p379_p0 = scmp.lt.s32.totalorder %s9472_s14, 1  ;;  %v9026_v2 = vld [vmem:[%s11712_s3 + $0x70] sm:$0xff]   ;;  %v9028_v4 = vld [vmem:[%s11712_s3 + $0x68] sm:$0xff]   ;;  %vm3407_vm0 = vsmask.f32 3328 }
  0x1c   : > { %v9025_v1 = vld [vmem:[%s11712_s3 + $0x38] sm:$0xff]   ;;  %8331 = vmatprep.subr.bf16.mxu0 %v9024_v0  ;;  %v9027_v3 = vld [vmem:[%s11712_s3 + $0x30] sm:$0xff]   ;;  %v9029_v5 = vld [vmem:[%s11712_s3 + $0x28] sm:$0xff]   ;;  %vm3408_vm1 = vsmask.f32 7440  ;;  %vm3213_vm7 = vcmask 1043456  }
  0x1d   : > { %8379 = vmatprep.subr.bf16.mxu1 %v9025_v1  ;;  %8332 = vmatpush3.bf16.msra.mxu0 %v9024_v0  ;;  %s9514_s15 = scalar_select %p379_p0, %s9472_s14, 1  ;;  %v9030_v6 = vld [vmem:[%s11712_s3 + $0x60] sm:$0xff]   ;;  %v9032_v8 = vld [vmem:[%s11712_s3 + $0x58] sm:$0xff]   ;;  %v9034_v10 = vld [vmem:[%s11712_s3 + $0x50] sm:$0xff]   ;;  %vm3214_vm8 = vsmask.f32 7938 }
  0x1e   : > { %8380 = vmatpush3.bf16.msra.mxu1 %v9025_v1  ;;  %8333 = vmatprep.subr.bf16.mxu0 %v9026_v2  ;;  %v9031_v7 = vld [vmem:[%s11712_s3 + $0x20] sm:$0xff]   ;;  %v9033_v9 = vld [vmem:[%s11712_s3 + $0x18] sm:$0xff]   ;;  %v9035_v11 = vld [vmem:[%s11712_s3 + $0x10] sm:$0xff]   ;;  %vm2889_vm9 = vsmask.f32 256  ;;  %vm3220_vm11 = vcmask 1040384  }
  0x1f   : > { %8381 = vmatprep.subr.bf16.mxu1 %v9027_v3  ;;  %s9003_s20 = smul.u32 144, %s9514_s15  ;;  %v9036_v14 = vld [vmem:[%s11712_s3 + $0x48] sm:$0xff]   ;;  %v9038_v16 = vld [vmem:[%s11712_s3 + $0x40] sm:$0xff]   ;;  %v9044_v18 = vld [vmem:[%s11712_s3 + $0xb8] sm:$0xff]   ;;  %vm2890_vm10 = vsmask.f32 4368 }
  0x20   : > { %v9037_v15 = vld [vmem:[%s11712_s3 + $0x8] sm:$0xff]   ;;  %v9039_v17 = vld [vmem:[%s11712_s3] sm:$0xff]   ;;  %v9049_v23 = vld [vmem:[%s11712_s3 + $0xb0] sm:$0xff]   ;;  %s7155_s11 = sshll.u32 %s9472_s14, 7  ;;  %s7755_s14 = sshll.u32 %s9514_s15, 7 }
  0x21   : > { %8334 = vmatpush3.bf16.msra.mxu0 %v9026_v2  ;;  %s9532_s27 = scalar_lea.vmem %s11710_s1, %s9003_s20  ;;  %v9054_v24 = vld [vmem:[%s11712_s3 + $0xa8] sm:$0xff]   ;;  %v9059_v29 = vld [vmem:[%s11712_s3 + $0xa0] sm:$0xff]   ;;  %v9064_v31 = vld [vmem:[%s11712_s3 + $0x98] sm:$0xff]   ;;  %s397_s12 = sadd.s32 1, %s7155_s11 }
  0x22   : > { %8382 = vmatpush3.bf16.msra.mxu1 %v9027_v3  ;;  %8335 = vmatprep.subr.bf16.mxu0 %v9028_v4  ;;  %v9040_v12 = vld [vmem:[%s9532_s27 + $0x8] sm:$0xff]   ;;  %v9041_v13 = vld [vmem:[%s9532_s27] sm:$0xff]   ;;  %v9042_v19 = vld [vmem:[%s9532_s27 + $0x10] sm:$0xff]   ;;  %s396_s16 = sld [smem:[#allocation3 + %s7155_s11]]  ;;  %s11667_s20 = scalar_lea.vmem %s11711_s2, %s7755_s14 }
  0x23   : > { %8383 = vmatprep.subr.bf16.mxu1 %v9029_v5  ;;  %8347 = vmatprep.mubr.bf16.mxu0 %v9040_v12  ;;  %v9043_v20 = vld [vmem:[%s9532_s27 + $0x8] sm:$0xff]   ;;  %v9045_v21 = vld [vmem:[%s9532_s27 + $0x18] sm:$0xff]   ;;  %v9046_v22 = vld [vmem:[%s9532_s27 + $0x10] sm:$0xff]   ;;  %s398_s17 = sld [smem:[#allocation3 + %s397_s12]]  ;;  %s11674_s22 = scalar_lea.vmem %s11719_s10, %s7755_s14 }
  0x24   : > { %8395 = vmatprep.mubr.bf16.mxu1 %v9041_v13  ;;  %v9568_v25 = vld [vmem:[%s9532_s27 + $0x20] sm:$0xff]   ;;  %v9048_v26 = vld [vmem:[%s9532_s27 + $0x18] sm:$0xff]   ;;  %v9572_v27 = vld [vmem:[%s9532_s27 + $0x28] sm:$0xff]  }
  0x25   : > { %8336 = vmatpush3.bf16.msra.mxu0 %v9028_v4  ;;  %v9051_v28 = vld [vmem:[%s9532_s27 + $0x20] sm:$0xff]   ;;  %v9581_v30 = vld [vmem:[%s9532_s27 + $0x30] sm:$0xff]   ;;  %v9053_v32 = vld [vmem:[%s9532_s27 + $0x28] sm:$0xff]  }
  0x26   : > { %8384 = vmatpush3.bf16.msra.mxu1 %v9029_v5  ;;  %8337 = vmatprep.subr.bf16.mxu0 %v9030_v6  ;;  %v9588_v33 = vld [vmem:[%s9532_s27 + $0x38] sm:$0xff]   ;;  %v9056_v34 = vld [vmem:[%s9532_s27 + $0x30] sm:$0xff]   ;;  %v9597_v36 = vld [vmem:[%s9532_s27 + $0x40] sm:$0xff]  }
  0x27   : > { %8385 = vmatprep.subr.bf16.mxu1 %v9031_v7  ;;  %v9069_v35 = vld [vmem:[%s11712_s3 + $0x90] sm:$0xff]   ;;  %v9074_v37 = vld [vmem:[%s11712_s3 + $0x88] sm:$0xff]   ;;  %v9058_v38 = vld [vmem:[%s9532_s27 + $0x38] sm:$0xff]  }
  0x28   : > { %v9604_v39 = vld [vmem:[%s9532_s27 + $0x48] sm:$0xff]   ;;  %v9061_v40 = vld [vmem:[%s9532_s27 + $0x40] sm:$0xff]   ;;  %v9613_v42 = vld [vmem:[%s9532_s27 + $0x50] sm:$0xff]  }
  0x29   : > { %8338 = vmatpush3.bf16.msra.mxu0 %v9030_v6  ;;  %v9079_v41 = vld [vmem:[%s11712_s3 + $0x80] sm:$0xff]   ;;  %v9063_v43 = vld [vmem:[%s9532_s27 + $0x48] sm:$0xff]   ;;  %v9617_v44 = vld [vmem:[%s9532_s27 + $0x58] sm:$0xff]  }
  0x2a   : > { %8386 = vmatpush3.bf16.msra.mxu1 %v9031_v7  ;;  %8339 = vmatprep.subr.bf16.mxu0 %v9032_v8  ;;  %v9066_v45 = vld [vmem:[%s9532_s27 + $0x50] sm:$0xff]   ;;  %v9623_v46 = vld [vmem:[%s9532_s27 + $0x60] sm:$0xff]   ;;  %v9068_v47 = vld [vmem:[%s9532_s27 + $0x58] sm:$0xff]  }
  0x2b   : > { %8387 = vmatprep.subr.bf16.mxu1 %v9033_v9  ;;  %v9627_v48 = vld [vmem:[%s9532_s27 + $0x68] sm:$0xff]   ;;  %v9071_v49 = vld [vmem:[%s9532_s27 + $0x60] sm:$0xff]   ;;  %v9633_v50 = vld [vmem:[%s9532_s27 + $0x70] sm:$0xff]  }
  0x2c   : > { %v9073_v51 = vld [vmem:[%s9532_s27 + $0x68] sm:$0xff]   ;;  %v9637_v52 = vld [vmem:[%s9532_s27 + $0x78] sm:$0xff]   ;;  %v9076_v53 = vld [vmem:[%s9532_s27 + $0x70] sm:$0xff]  }
  0x2d   : > { %8340 = vmatpush3.bf16.msra.mxu0 %v9032_v8  ;;  %v9643_v54 = vld [vmem:[%s9532_s27 + $0x80] sm:$0xff]   ;;  %v9078_v55 = vld [vmem:[%s9532_s27 + $0x78] sm:$0xff]   ;;  %v9647_v56 = vld [vmem:[%s9532_s27 + $0x10] sm:$0xff]  }
  0x2e   : > { %8388 = vmatpush3.bf16.msra.mxu1 %v9033_v9  ;;  %8341 = vmatprep.subr.bf16.mxu0 %v9034_v10  ;;  %v9652_v57 = vld [vmem:[%s9532_s27 + $0x18] sm:$0xff]   ;;  %v9655_v58 = vld [vmem:[%s9532_s27 + $0x20] sm:$0xff]   ;;  %v9660_v59 = vld [vmem:[%s9532_s27 + $0x28] sm:$0xff]  }
  0x2f   : > { %8389 = vmatprep.subr.bf16.mxu1 %v9035_v11  ;;  %v9663_v60 = vld [vmem:[%s9532_s27 + $0x30] sm:$0xff]   ;;  %v9668_v61 = vld [vmem:[%s9532_s27 + $0x38] sm:$0xff]   ;;  %v9671_v62 = vld [vmem:[%s9532_s27 + $0x40] sm:$0xff]  }
  0x30   : > { %v9676_v63 = vld [vmem:[%s9532_s27 + $0x48] sm:$0xff]   ;;  %v9096_v0 = vld [vmem:[%s11713_s4 + $0x38] sm:$0xff]   ;;  %v9682_v1 = vld [vmem:[%s9532_s27 + $0x50] sm:$0xff]  }
  0x31   : > { %8342 = vmatpush3.bf16.msra.mxu0 %v9034_v10  ;;  %v9097_v2 = vld [vmem:[%s11715_s6 + $0x78] sm:$0xff]   ;;  %v9098_v4 = vld [vmem:[%s11713_s4 + $0x30] sm:$0xff]   ;;  %v9696_v5 = vld [vmem:[%s9532_s27 + $0x60] sm:$0xff]  }
  0x32   : > { %8390 = vmatpush3.bf16.msra.mxu1 %v9035_v11  ;;  %8343 = vmatprep.subr.bf16.mxu0 %v9036_v14  ;;  %v9690_v3 = vld [vmem:[%s9532_s27 + $0x58] sm:$0xff]   ;;  %v9099_v6 = vld [vmem:[%s11715_s6 + $0x70] sm:$0xff]   ;;  %v9704_v7 = vld [vmem:[%s9532_s27 + $0x68] sm:$0xff]  }
  0x33   : > { %8391 = vmatprep.subr.bf16.mxu1 %v9037_v15  ;;  %v9100_v8 = vld [vmem:[%s11713_s4 + $0x28] sm:$0xff]   ;;  %v9710_v9 = vld [vmem:[%s9532_s27 + $0x70] sm:$0xff]   ;;  %v9718_v11 = vld [vmem:[%s9532_s27 + $0x78] sm:$0xff]  }
  0x34   : > { %v9101_v10 = vld [vmem:[%s11715_s6 + $0x68] sm:$0xff]   ;;  %v9102_v12 = vld [vmem:[%s11713_s4 + $0x20] sm:$0xff]   ;;  %vm10123_vm3 = vmor %vm3407_vm0, %vm3408_vm1 }
  0x35   : > { %8344 = vmatpush3.bf16.msra.mxu0 %v9036_v14  ;;  %v9724_v13 = vld [vmem:[%s9532_s27 + $0x80] sm:$0xff]   ;;  %vm10306_vm12 = vmand %vm3213_vm7, %vm3214_vm8 }
  0x36   : > { %8392 = vmatpush3.bf16.msra.mxu1 %v9037_v15  ;;  %8345 = vmatprep.subr.bf16.mxu0 %v9038_v16  ;;  %v9103_v14 = vld [vmem:[%s11715_s6 + $0x60] sm:$0xff]   ;;  %v9732_v15 = vld [vmem:[%s9532_s27 + $0x88] sm:$0xff]   ;;  %vm10320_vm13 = vmor %vm2889_vm9, %vm2890_vm10 }
  0x37   : > { %8393 = vmatprep.subr.bf16.mxu1 %v9039_v17  ;;  %vm10328_vm14 = vmand %vm3220_vm11, %vm2889_vm9 }
  0x39   : > { %8346 = vmatpush3.bf16.msra.mxu0 %v9038_v16  ;;  %v9104_v16 = vld [vmem:[%s11713_s4 + $0x18] sm:$0xff]  }
  0x3a   : > { %8394 = vmatpush3.bf16.msra.mxu1 %v9039_v17  ;;  %8427 = vmatprep.subr.bf16.mxu0 %v9044_v18  ;;  %v9105_v17 = vld [vmem:[%s11715_s6 + $0x58] sm:$0xff]  }
  0x3b   : > { %8475 = vmatprep.subr.bf16.mxu1 %v9096_v0 }
  0x3c   : > { %8348 = vmatmul.mubr.bf16.vlgmr.msra.gmra.mxu0 %v9042_v19  ;;  %v9106_v19 = vld [vmem:[%s11713_s4 + $0x10] sm:$0xff]  }
  0x3d   : > { %8396 = vmatmul.mubr.bf16.vlgmr.msra.gmra.mxu1 %v9043_v20  ;;  %8428 = vmatpush3.bf16.msra.mxu0 %v9044_v18  ;;  %v9360_v18 = vld [vmem:[%s9532_s27 + $0x8] sm:$0xff]   ;;  %v9107_v20 = vld [vmem:[%s11715_s6 + $0x50] sm:$0xff]  }
  0x3e   : > { %8351 = vmatprep.mubr.bf16.mxu0 %v9045_v21  ;;  %8399 = vmatprep.mubr.bf16.mxu1 %v9046_v22  ;;  %v9109_v21 = vld [vmem:[%s11715_s6 + $0x48] sm:$0xff]  }
  0x3f   : > { %8429 = vmatprep.subr.bf16.mxu0 %v9049_v23  ;;  %8476 = vmatpush3.bf16.msra.mxu1 %v9096_v0  ;;  %v9108_v22 = vld [vmem:[%s11713_s4 + $0x8] sm:$0xff]  }
  0x40   : > { %8477 = vmatprep.subr.bf16.mxu1 %v9098_v4 }
  0x41   : > { %8430 = vmatpush3.bf16.msra.mxu0 %v9049_v23  ;;  %v9111_v23 = vld [vmem:[%s11715_s6 + $0x40] sm:$0xff]  }
  0x42   : > { %8431 = vmatprep.subr.bf16.mxu0 %v9054_v24 }
  0x43   : > { %8478 = vmatpush3.bf16.msra.mxu1 %v9098_v4 }
  0x44   : > { %8352 = vmatmul.mubr.bf16.gmra.mxu0 %v9568_v25  ;;  %8479 = vmatprep.subr.bf16.mxu1 %v9100_v8 }
  0x45   : > { %8400 = vmatmul.mubr.bf16.gmra.mxu1 %v9048_v26  ;;  %8355 = vmatprep.mubr.bf16.mxu0 %v9572_v27  ;;  %v9361_v26 = vld [vmem:[%s9532_s27 + $0x10] sm:$0xff]  }
  0x46   : > { %8403 = vmatprep.mubr.bf16.mxu1 %v9051_v28  ;;  %8432 = vmatpush3.bf16.msra.mxu0 %v9054_v24  ;;  %v9110_v24 = vld [vmem:[%s11713_s4] sm:$0xff]   ;;  %v9362_v28 = vld [vmem:[%s9532_s27 + $0x18] sm:$0xff]  }
  0x47   : > { %8433 = vmatprep.subr.bf16.mxu0 %v9059_v29  ;;  %8480 = vmatpush3.bf16.msra.mxu1 %v9100_v8 }
  0x48   : > { %8481 = vmatprep.subr.bf16.mxu1 %v9102_v12 }
  0x4a   : > { %8434 = vmatpush3.bf16.msra.mxu0 %v9059_v29  ;;  %v9765_v29 = vld [vmem:[%s11715_s6 + $0x38] sm:$0xff]  }
  0x4b   : > { %8435 = vmatprep.subr.bf16.mxu0 %v9064_v31  ;;  %8482 = vmatpush3.bf16.msra.mxu1 %v9102_v12 }
  0x4c   : > { %8356 = vmatmul.mubr.bf16.gmra.mxu0 %v9581_v30  ;;  %8483 = vmatprep.subr.bf16.mxu1 %v9104_v16 }
  0x4d   : > { %8404 = vmatmul.mubr.bf16.gmra.mxu1 %v9053_v32  ;;  %8359 = vmatprep.mubr.bf16.mxu0 %v9588_v33  ;;  %v9115_v32 = vld [vmem:[%s11715_s6 + $0xb0] sm:$0xff]  }
  0x4e   : > { %8407 = vmatprep.mubr.bf16.mxu1 %v9056_v34  ;;  %8436 = vmatpush3.bf16.msra.mxu0 %v9064_v31  ;;  %v9113_v31 = vld [vmem:[%s11715_s6 + $0xb8] sm:$0xff]  }
  0x4f   : > { %8437 = vmatprep.subr.bf16.mxu0 %v9069_v35  ;;  %8484 = vmatpush3.bf16.msra.mxu1 %v9104_v16 }
  0x50   : > { %8485 = vmatprep.subr.bf16.mxu1 %v9106_v19 }
  0x52   : > { %8438 = vmatpush3.bf16.msra.mxu0 %v9069_v35 }
  0x53   : > { %8439 = vmatprep.subr.bf16.mxu0 %v9074_v37  ;;  %8486 = vmatpush3.bf16.msra.mxu1 %v9106_v19 }
  0x54   : > { %8360 = vmatmul.mubr.bf16.gmra.mxu0 %v9597_v36  ;;  %8487 = vmatprep.subr.bf16.mxu1 %v9108_v22 }
  0x55   : > { %8408 = vmatmul.mubr.bf16.gmra.mxu1 %v9058_v38  ;;  %8363 = vmatprep.mubr.bf16.mxu0 %v9604_v39  ;;  %v9125_v38 = vld [vmem:[%s11715_s6 + $0x88] sm:$0xff]  }
  0x56   : > { %8411 = vmatprep.mubr.bf16.mxu1 %v9061_v40  ;;  %8440 = vmatpush3.bf16.msra.mxu0 %v9074_v37 }
  0x57   : > { %8441 = vmatprep.subr.bf16.mxu0 %v9079_v41  ;;  %8488 = vmatpush3.bf16.msra.mxu1 %v9108_v22 }
  0x58   : > { %8489 = vmatprep.subr.bf16.mxu1 %v9110_v24 }
  0x5a   : > { %8442 = vmatpush3.bf16.msra.mxu0 %v9079_v41 }
  0x5b   : > { %8523 = vmatprep.subr.bf16.mxu0 %v9097_v2  ;;  %8490 = vmatpush3.bf16.msra.mxu1 %v9110_v24 }
  0x5c   : > { %8364 = vmatmul.mubr.bf16.gmra.mxu0 %v9613_v42  ;;  %8571 = vmatprep.subr.bf16.mxu1 %v9765_v29 }
  0x5d   : > { %8412 = vmatmul.mubr.bf16.gmra.mxu1 %v9063_v43  ;;  %8367 = vmatprep.mubr.bf16.mxu0 %v9617_v44 }
  0x5e   : > { %8415 = vmatprep.mubr.bf16.mxu1 %v9066_v45 }
  0x64   : > { %8368 = vmatmul.mubr.bf16.gmra.mxu0 %v9623_v46 }
  0x65   : > { %8416 = vmatmul.mubr.bf16.gmra.mxu1 %v9068_v47  ;;  %8371 = vmatprep.mubr.bf16.mxu0 %v9627_v48 }
  0x66   : > { %8419 = vmatprep.mubr.bf16.mxu1 %v9071_v49 }
  0x6c   : > { %8372 = vmatmul.mubr.bf16.gmra.mxu0 %v9633_v50 }
  0x6d   : > { %8420 = vmatmul.mubr.bf16.gmra.mxu1 %v9073_v51  ;;  %8375 = vmatprep.mubr.bf16.mxu0 %v9637_v52 }
  0x6e   : > { %8423 = vmatprep.mubr.bf16.mxu1 %v9076_v53 }
  0x74   : > { %8376 = vmatmul.mubr.bf16.gmra.mxu0 %v9643_v54 }
  0x75   : > { %8424 = vmatmul.mubr.bf16.gmra.mxu1 %v9078_v55  ;;  %8443 = vmatprep.mubr.bf16.mxu0 %v9647_v56 }
  0x7c   : > { %8444 = vmatmul.mubr.bf16.vlgmr.msra.gmra.mxu0 %v9652_v57 }
  0x7d   : > { %8447 = vmatprep.mubr.bf16.mxu0 %v9655_v58  ;;  %8524 = vmatpush3.bf16.msra.mxu0 %v9097_v2 }
  0x7e   : > { %8525 = vmatprep.subr.bf16.mxu0 %v9099_v6 }
  0x81   : > { %8526 = vmatpush3.bf16.msra.mxu0 %v9099_v6 }
  0x82   : > { %8527 = vmatprep.subr.bf16.mxu0 %v9101_v10 }
  0x84   : > { %8448 = vmatmul.mubr.bf16.gmra.mxu0 %v9660_v59 }
  0x85   : > { %8451 = vmatprep.mubr.bf16.mxu0 %v9663_v60  ;;  %8528 = vmatpush3.bf16.msra.mxu0 %v9101_v10 }
  0x86   : > { %8529 = vmatprep.subr.bf16.mxu0 %v9103_v14 }
  0x89   : > { %8530 = vmatpush3.bf16.msra.mxu0 %v9103_v14 }
  0x8a   : > { %8531 = vmatprep.subr.bf16.mxu0 %v9105_v17 }
  0x8c   : > { %8452 = vmatmul.mubr.bf16.gmra.mxu0 %v9668_v61 }
  0x8d   : > { %8455 = vmatprep.mubr.bf16.mxu0 %v9671_v62  ;;  %8532 = vmatpush3.bf16.msra.mxu0 %v9105_v17 }
  0x8e   : > { %8533 = vmatprep.subr.bf16.mxu0 %v9107_v20 }
  0x91   : > { %8534 = vmatpush3.bf16.msra.mxu0 %v9107_v20 }
  0x92   : > { %8535 = vmatprep.subr.bf16.mxu0 %v9109_v21 }
  0x94   : > { %8456 = vmatmul.mubr.bf16.gmra.mxu0 %v9676_v63 }
  0x95   : > { %8459 = vmatprep.mubr.bf16.mxu0 %v9682_v1  ;;  %8536 = vmatpush3.bf16.msra.mxu0 %v9109_v21 }
  0x96   : > { %8537 = vmatprep.subr.bf16.mxu0 %v9111_v23 }
  0x99   : > { %8538 = vmatpush3.bf16.msra.mxu0 %v9111_v23 }
  0x9a   : > { %8619 = vmatprep.subr.bf16.mxu0 %v9113_v31 }
  0x9c   : > { %8460 = vmatmul.mubr.bf16.gmra.mxu0 %v9690_v3 }
  0x9d   : > { %8463 = vmatprep.mubr.bf16.mxu0 %v9696_v5 }
  0xa4   : > { %8464 = vmatmul.mubr.bf16.gmra.mxu0 %v9704_v7 }
  0xa5   : > { %8467 = vmatprep.mubr.bf16.mxu0 %v9710_v9 }
  0xac   : > { %8468 = vmatmul.mubr.bf16.gmra.mxu0 %v9718_v11 }
  0xad   : > { %8471 = vmatprep.mubr.bf16.mxu0 %v9724_v13 }
  0xb4   : > { %8472 = vmatmul.mubr.bf16.gmra.mxu0 %v9732_v15 }
  0xb5   : > { %8539 = vmatprep.mubr.bf16.mxu0 %v9360_v18 }
  0xbc   : > { %8540 = vmatmul.mubr.bf16.vlgmr.msra.gmra.mxu0 %v9361_v26 }
  0xbd   : > { %8543 = vmatprep.mubr.bf16.mxu0 %v9362_v28  ;;  %8620 = vmatpush3.bf16.msra.mxu0 %v9113_v31 }
  0xbe   : > { %8621 = vmatprep.subr.bf16.mxu0 %v9115_v32 }
  0xc1   : > { %8622 = vmatpush3.bf16.msra.mxu0 %v9115_v32 }
  0xc4   : > { %8544 = vmatmul.mubr.bf16.gmra.mxu0 %v9568_v25  ;;  %v9117_v25 = vld [vmem:[%s11715_s6 + $0xa8] sm:$0xff]  }
  0xc5   : > { %8547 = vmatprep.mubr.bf16.mxu0 %v9572_v27  ;;  %8623 = vmatprep.subr.bf16.mxu0 %v9117_v25  ;;  %v9119_v27 = vld [vmem:[%s11715_s6 + $0xa0] sm:$0xff]  }
  0xc6   : > { %8624 = vmatpush3.bf16.msra.mxu0 %v9117_v25 }
  0xc7   : > { %8625 = vmatprep.subr.bf16.mxu0 %v9119_v27 }
  0xca   : > { %8626 = vmatpush3.bf16.msra.mxu0 %v9119_v27 }
  0xcc   : > { %8548 = vmatmul.mubr.bf16.gmra.mxu0 %v9581_v30  ;;  %v9121_v30 = vld [vmem:[%s11715_s6 + $0x98] sm:$0xff]  }
  0xcd   : > { %8551 = vmatprep.mubr.bf16.mxu0 %v9588_v33  ;;  %8627 = vmatprep.subr.bf16.mxu0 %v9121_v30  ;;  %v9123_v33 = vld [vmem:[%s11715_s6 + $0x90] sm:$0xff]  }
  0xce   : > { %8628 = vmatpush3.bf16.msra.mxu0 %v9121_v30 }
  0xcf   : > { %8629 = vmatprep.subr.bf16.mxu0 %v9123_v33 }
  0xd2   : > { %8630 = vmatpush3.bf16.msra.mxu0 %v9123_v33 }
  0xd3   : > { %8631 = vmatprep.subr.bf16.mxu0 %v9125_v38 }
  0xd4   : > { %8552 = vmatmul.mubr.bf16.gmra.mxu0 %v9597_v36 }
  0xd5   : > { %8555 = vmatprep.mubr.bf16.mxu0 %v9604_v39 }
  0xd6   : > { %8632 = vmatpush3.bf16.msra.mxu0 %v9125_v38 }
  0xdc   : > { %8556 = vmatmul.mubr.bf16.gmra.mxu0 %v9613_v42  ;;  %v9127_v42 = vld [vmem:[%s11715_s6 + $0x80] sm:$0xff]  }
  0xdd   : > { %8559 = vmatprep.mubr.bf16.mxu0 %v9617_v44  ;;  %8633 = vmatprep.subr.bf16.mxu0 %v9127_v42 }
  0xde   : > { %8634 = vmatpush3.bf16.msra.mxu0 %v9127_v42 }
  0xe4   : > { %8560 = vmatmul.mubr.bf16.gmra.mxu0 %v9623_v46 }
  0xe5   : > { %8563 = vmatprep.mubr.bf16.mxu0 %v9627_v48 }
  0xec   : > { %8564 = vmatmul.mubr.bf16.gmra.mxu0 %v9633_v50 }
  0xed   : > { %8567 = vmatprep.mubr.bf16.mxu0 %v9637_v52 }
  0xf4   : > { %8568 = vmatmul.mubr.bf16.gmra.mxu0 %v9643_v54 }
  0xf5   : > { %8635 = vmatprep.mubr.bf16.mxu0 %v9647_v56 }
  0xfc   : > { %v9798_v34 = vpop.f32.mrf.mxu0  ;;  %8636 = vmatmul.mubr.bf16.vlgmr.msra.gmra.mxu0 %v9652_v57 }
  0xfd   : > { %v9800_v35 = vpop.f32.mrf.mxu1  ;;  %8639 = vmatprep.mubr.bf16.mxu0 %v9655_v58 }
  0xfe   : > { %v9802_v36 = vpop.f32.mrf.mxu0 }
  0xff   : > { %v9804_v37 = vpop.f32.mrf.mxu1 }
 0x100   : > { %v9809_v39 = vpop.f32.mrf.mxu0  ;;  %v981_v28 = vadd.f32 %v9804_v37, %v9802_v36 }
 0x101   : > { %v9812_v40 = vpop.f32.mrf.mxu1 }
 0x102   : > { %v9814_v41 = vpop.f32.mrf.mxu0 }
 0x103   : > { %v9822_v44 = vpop.f32.mrf.mxu1 }
 0x104   : > { %v9820_v43 = vpop.f32.mrf.mxu0  ;;  %8640 = vmatmul.mubr.bf16.gmra.mxu0 %v9660_v59  ;;  %v984_v33 = vadd.f32 %v9822_v44, %v9814_v41 }
 0x105   : > { %v9829_v47 = vpop.f32.mrf.mxu1  ;;  %8643 = vmatprep.mubr.bf16.mxu0 %v9663_v60 }
 0x106   : > { %v9824_v45 = vpop.f32.mrf.mxu0  ;;  %v1005_v36 = vadd.f32 %v9829_v47, %v9820_v43 }
 0x107   : > { %v9836_v50 = vpop.f32.mrf.mxu1 }
 0x108   : > { %v9826_v46 = vpop.f32.mrf.mxu0 }
 0x109   : > { %v9843_v53 = vpop.f32.mrf.mxu1 }
 0x10a   : > { %v9831_v48 = vpop.f32.mrf.mxu0 }
 0x10b   : > { %v9850_v56 = vpop.f32.mrf.mxu1 }
 0x10c   : > { %v9834_v49 = vpop.f32.mrf.mxu0  ;;  %8644 = vmatmul.mubr.bf16.gmra.mxu0 %v9668_v61 }
 0x10d   : > { %v9857_v0 = vpop.f32.mrf.mxu1  ;;  %8647 = vmatprep.mubr.bf16.mxu0 %v9671_v62 }
 0x10e   : > { %v9838_v51 = vpop.f32.mrf.mxu0 }
 0x10f   : > { %v9864_v4 = vpop.f32.mrf.mxu1 }
 0x110   : > { %v9840_v52 = vpop.f32.mrf.mxu0 }
 0x111   : > { %v9871_v8 = vpop.f32.mrf.mxu1 }
 0x112   : > { %v9845_v54 = vpop.f32.mrf.mxu0 }
 0x113   : > { %v9878_v12 = vpop.f32.mrf.mxu1 }
 0x114   : > { %v9848_v55 = vpop.f32.mrf.mxu0  ;;  %8648 = vmatmul.mubr.bf16.gmra.mxu0 %v9676_v63 }
 0x115   : > { %8651 = vmatprep.mubr.bf16.mxu0 %v9682_v1  ;;  %v9885_v16 = vpop.f32.mrf.mxu1 }
 0x116   : > { %v9852_v57 = vpop.f32.mrf.mxu0 }
 0x117   : > { %v9892_v18 = vpop.f32.mrf.mxu1 }
 0x118   : > { %v9854_v58 = vpop.f32.mrf.mxu0 }
 0x119   : > { %v9899_v20 = vpop.f32.mrf.mxu1 }
 0x11a   : > { %v9859_v2 = vpop.f32.mrf.mxu0 }
 0x11b   : > { %v9906_v22 = vpop.f32.mrf.mxu1 }
 0x11c   : > { %v9862_v59 = vpop.f32.mrf.mxu0  ;;  %8652 = vmatmul.mubr.bf16.gmra.mxu0 %v9690_v3 }
 0x11d   : > { %8655 = vmatprep.mubr.bf16.mxu0 %v9696_v5  ;;  %v9913_v24 = vpop.f32.mrf.mxu1 }
 0x11e   : > { %v9866_v60 = vpop.f32.mrf.mxu0 }
 0x11f   : > { %v9922_v32 = vpop.f32.mrf.mxu1 }
 0x120   : > { %v9868_v6 = vpop.f32.mrf.mxu0 }
 0x122   : > { %v9873_v10 = vpop.f32.mrf.mxu0 }
 0x124   : > { %v9876_v61 = vpop.f32.mrf.mxu0  ;;  %8656 = vmatmul.mubr.bf16.gmra.mxu0 %v9704_v7  ;;  %v989_v7 = vadd.f32 %v9800_v35, %v9798_v34  ;;  %v9929_v34 = vpop.f32.mrf.mxu1 }
 0x125   : > { %8659 = vmatprep.mubr.bf16.mxu0 %v9710_v9 }
 0x126   : > { %v9880_v62 = vpop.f32.mrf.mxu0 }
 0x128   : > { %v9882_v14 = vpop.f32.mrf.mxu0 }
 0x12a   : > { %v9887_v17 = vpop.f32.mrf.mxu0 }
 0x12c   : > { %v9890_v63 = vpop.f32.mrf.mxu0  ;;  %8660 = vmatmul.mubr.bf16.gmra.mxu0 %v9718_v11  ;;  %v992_v11 = vadd.f32 %v9812_v40, %v9809_v39  ;;  %v997_v39 = vadd.f32 %v9836_v50, %v9824_v45 }
 0x12d   : > { %8663 = vmatprep.mubr.bf16.mxu0 %v9724_v13 }
 0x12e   : > { %v9894_v1 = vpop.f32.mrf.mxu0 }
 0x130   : > { %v9896_v19 = vpop.f32.mrf.mxu0 }
 0x132   : > { %v9901_v21 = vpop.f32.mrf.mxu0 }
 0x134   : > { %v9904_v3 = vpop.f32.mrf.mxu0  ;;  %8664 = vmatmul.mubr.bf16.gmra.mxu0 %v9732_v15  ;;  %v1008_v15 = vadd.f32 %v9843_v53, %v9826_v46  ;;  %v9114_v46 = vld [vmem:[%s11715_s6 + $0x30] sm:$0xff]   ;;  %v1021_v53 = vadd.f32 %v9857_v0, %v9834_v49  ;;  %v9116_v0 = vld [vmem:[%s11715_s6 + $0x28] sm:$0xff]  }
 0x136   : > { %v9908_v5 = vpop.f32.mrf.mxu0 }
 0x138   : > { %v9910_v23 = vpop.f32.mrf.mxu0 }
 0x139   : > { %11727 = vst [vmem:[#allocation6_spill] sm:$0xff] %v9910_v23 }
 0x13a   : > { %v9915_v26 = vpop.f32.mrf.mxu0 }
 0x13b   : > { %11728 = vst [vmem:[#allocation7_spill] sm:$0xff] %v9915_v26 }
 0x13c   : > { %v8445_v9 = vpop.f32.mrf.mxu0 }
 0x13d   : > { %v1464_v31 = vadd.f32 %v8445_v9, %v989_v7 }
 0x13e   : > { %v1335_v25 = vpop.f32.mrf.mxu0 }
 0x13f   : > { %v1462_v27 = vadd.f32 %v1335_v25, %v981_v28  ;;  %v1496_v13 = vmul.f32 0.2, %v1464_v31  ;;  %v9937_v25 = vpop.f32.mrf.mxu1 }
 0x140   : > { %v8446_v30 = vpop.f32.mrf.mxu0 }
 0x141   : > { %v1465_v38 = vadd.f32 %v8446_v30, %v992_v11  ;;  %v1494_v37 = vmul.f32 0.2, %v1462_v27  ;;  %v1528_v9 = vmax.f32 %v1464_v31, %v1496_v13  ;;  %v9941_v13 = vpop.f32.mrf.mxu1 }
 0x142   : > { %v1338_v35 = vpop.f32.mrf.mxu0 }
 0x143   : > { %v1497_v42 = vmul.f32 0.2, %v1465_v38  ;;  %v1463_v7 = vadd.f32 %v1338_v35, %v984_v33  ;;  %v1526_v30 = vmax.f32 %v1462_v27, %v1494_v37  ;;  %v1000_v33 = vadd.f32 %v9850_v56, %v9831_v48 }
 0x144   : > { %v8449_v40 = vpop.f32.mrf.mxu0  ;;  %v1013_v48 = vadd.f32 %v9864_v4, %v9838_v51 }
 0x145   : > { %v1529_v28 = vmax.f32 %v1465_v38, %v1497_v42  ;;  %v1495_v41 = vmul.f32 0.2, %v1463_v7  ;;  %v1468_v44 = vadd.f32 %v8449_v40, %v1005_v36  ;;  %v9953_v40 = vpop.f32.mrf.mxu1 }
 0x146   : > { %v1351_v11 = vpop.f32.mrf.mxu0 }
 0x147   : > { %v1559_v26 = vpack.c.bf16 %v1529_v28, %v1528_v9  ;;  %v1527_v43 = vmax.f32 %v1463_v7, %v1495_v41  ;;  %v1466_v47 = vadd.f32 %v1351_v11, %v997_v39  ;;  %v1500_v45 = vmul.f32 0.2, %v1468_v44  ;;  %v9118_v11 = vld [vmem:[%s11715_s6 + $0x20] sm:$0xff]  }
 0x148   : > { %v8450_v23 = vpop.f32.mrf.mxu0  ;;  %v1024_v39 = vadd.f32 %v9871_v8, %v9840_v52  ;;  %v1016_v41 = vadd.f32 %v9878_v12, %v9845_v54  ;;  %v9960_v52 = vpop.f32.mrf.mxu1  ;;  %v1029_v54 = vadd.f32 %v9892_v18, %v9852_v57 }
 0x149   : > { %v1469_v50 = vadd.f32 %v8450_v23, %v1008_v15  ;;  %v1558_v31 = vpack.c.bf16 %v1527_v43, %v1526_v30  ;;  %v1498_v27 = vmul.f32 0.2, %v1466_v47  ;;  %v1532_v23 = vmax.f32 %v1468_v44, %v1500_v45 }
 0x14a   : > { %v1354_v38 = vpop.f32.mrf.mxu0  ;;  %v1037_v30 = vadd.f32 %v9885_v16, %v9848_v55  ;;  %v9120_v16 = vld [vmem:[%s11715_s6 + $0x18] sm:$0xff]  }
 0x14b   : > { %v1501_v35 = vmul.f32 0.2, %v1469_v50  ;;  %v1467_v36 = vadd.f32 %v1354_v38, %v1000_v33  ;;  %8491 = vmatprep.mubr.bf16.mxu1 %v1558_v31  ;;  %v1530_v51 = vmax.f32 %v1466_v47, %v1498_v27 }
 0x14c   : > { %v8453_v56 = vpop.f32.mrf.mxu0  ;;  %8492 = vmatmul.mubr.bf16.vlgmr.msra.gmra.mxu1 %v1559_v26 }
 0x14d   : > { %v1533_v37 = vmax.f32 %v1469_v50, %v1501_v35  ;;  %v1499_v42 = vmul.f32 0.2, %v1467_v36  ;;  %v1472_v7 = vadd.f32 %v8453_v56, %v1021_v53  ;;  %8572 = vmatpush3.bf16.msra.mxu1 %v9765_v29  ;;  %v9971_v53 = vpop.f32.mrf.mxu1 }
 0x14e   : > { %v1367_v49 = vpop.f32.mrf.mxu0  ;;  %8573 = vmatprep.subr.bf16.mxu1 %v9114_v46 }
 0x14f   : > { %v1531_v4 = vmax.f32 %v1467_v36, %v1499_v42  ;;  %v1470_v26 = vadd.f32 %v1367_v49, %v1013_v48  ;;  %v1561_v9 = vpack.c.bf16 %v1533_v37, %v1532_v23  ;;  %v1504_v29 = vmul.f32 0.2, %v1472_v7  ;;  %v9122_v42 = vld [vmem:[%s11715_s6 + $0x10] sm:$0xff]  }
 0x150   : > { %v8454_v28 = vpop.f32.mrf.mxu0  ;;  %v1032_v48 = vadd.f32 %v9906_v22, %v9859_v2  ;;  %v1045_v2 = vadd.f32 %v9922_v32, %v9866_v60 }
 0x151   : > { %v1473_v44 = vadd.f32 %v8454_v28, %v1024_v39  ;;  %v1560_v15 = vpack.c.bf16 %v1531_v4, %v1530_v51  ;;  %8574 = vmatpush3.bf16.msra.mxu1 %v9114_v46  ;;  %v1502_v43 = vmul.f32 0.2, %v1470_v26  ;;  %v1536_v45 = vmax.f32 %v1472_v7, %v1504_v29 }
 0x152   : > { %v1370_v8 = vpop.f32.mrf.mxu0  ;;  %8575 = vmatprep.subr.bf16.mxu1 %v9116_v0  ;;  %v1040_v46 = vadd.f32 %v9899_v20, %v9854_v58  ;;  %v9978_v58 = vpop.f32.mrf.mxu1  ;;  %v1053_v7 = vadd.f32 %v9913_v24, %v9862_v59  ;;  %v1056_v28 = vadd.f32 %v9929_v34, %v9868_v6  ;;  %v9124_v59 = vld [vmem:[%s11715_s6 + $0x8] sm:$0xff]  }
 0x153   : > { %v1505_v47 = vmul.f32 0.2, %v1473_v44  ;;  %v1471_v33 = vadd.f32 %v1370_v8, %v1016_v41  ;;  %8495 = vmatprep.mubr.bf16.mxu1 %v1560_v15  ;;  %v1534_v27 = vmax.f32 %v1470_v26, %v1502_v43  ;;  %v1048_v8 = vadd.f32 %v9937_v25, %v9873_v10 }
 0x154   : > { %v8457_v12 = vpop.f32.mrf.mxu0  ;;  %8496 = vmatmul.mubr.bf16.gmra.mxu1 %v1561_v9  ;;  %v1076_v41 = vpop.f32.mrf.mxu1  ;;  %v1061_v10 = vadd.f32 %v9953_v40, %v9880_v62  ;;  %v1064_v62 = vadd.f32 %v9971_v53, %v9887_v17 }
 0x155   : > { %v1537_v50 = vmax.f32 %v1473_v44, %v1505_v47  ;;  %v1503_v31 = vmul.f32 0.2, %v1471_v33  ;;  %v1476_v38 = vadd.f32 %v8457_v12, %v1037_v30  ;;  %8576 = vmatpush3.bf16.msra.mxu1 %v9116_v0  ;;  %v9126_v47 = vld [vmem:[%s11715_s6] sm:$0xff]  }
 0x156   : > { %v1383_v55 = vpop.f32.mrf.mxu0  ;;  %8577 = vmatprep.subr.bf16.mxu1 %v9118_v11  ;;  %v8422_v6 = vpop.f32.mrf.mxu1 }
 0x157   : > { %v1535_v57 = vmax.f32 %v1471_v33, %v1503_v31  ;;  %v1474_v18 = vadd.f32 %v1383_v55, %v1029_v54  ;;  %v1563_v35 = vpack.c.bf16 %v1537_v50, %v1536_v45  ;;  %v1508_v56 = vmul.f32 0.2, %v1476_v38 }
 0x158   : > { %v8458_v36 = vpop.f32.mrf.mxu0  ;;  %v1069_v33 = vadd.f32 %v9941_v13, %v9876_v61  ;;  %v1072_v55 = vadd.f32 %v9960_v52, %v9882_v14  ;;  %v1085_v14 = vadd.f32 %v9978_v58, %v9890_v63 }
 0x159   : > { %v1477_v23 = vadd.f32 %v8458_v36, %v1040_v46  ;;  %v1562_v37 = vpack.c.bf16 %v1535_v57, %v1534_v27  ;;  %8578 = vmatpush3.bf16.msra.mxu1 %v9118_v11  ;;  %v1506_v39 = vmul.f32 0.2, %v1474_v18  ;;  %v1540_v51 = vmax.f32 %v1476_v38, %v1508_v56 }
 0x15a   : > { %v1386_v20 = vpop.f32.mrf.mxu0  ;;  %8579 = vmatprep.subr.bf16.mxu1 %v9120_v16 }
 0x15b   : > { %v1509_v49 = vmul.f32 0.2, %v1477_v23  ;;  %v1475_v0 = vadd.f32 %v1386_v20, %v1032_v48  ;;  %8499 = vmatprep.mubr.bf16.mxu1 %v1562_v37  ;;  %v1538_v24 = vmax.f32 %v1474_v18, %v1506_v39 }
 0x15c   : > { %v8461_v22 = vpop.f32.mrf.mxu0  ;;  %8500 = vmatmul.mubr.bf16.gmra.mxu1 %v1563_v35 }
 0x15d   : > { %v1541_v4 = vmax.f32 %v1477_v23, %v1509_v49  ;;  %v1507_v26 = vmul.f32 0.2, %v1475_v0  ;;  %v1480_v9 = vadd.f32 %v8461_v22, %v1053_v7  ;;  %8580 = vmatpush3.bf16.msra.mxu1 %v9120_v16  ;;  %v1079_v16 = vpop.f32.mrf.mxu1 }
 0x15e   : > { %v1399_v29 = vpop.f32.mrf.mxu0  ;;  %8581 = vmatprep.subr.bf16.mxu1 %v9122_v42 }
 0x15f   : > { %v1539_v44 = vmax.f32 %v1475_v0, %v1507_v26  ;;  %v1478_v60 = vadd.f32 %v1399_v29, %v1045_v2  ;;  %v1565_v32 = vpack.c.bf16 %v1541_v4, %v1540_v51  ;;  %v1512_v11 = vmul.f32 0.2, %v1480_v9  ;;  %v8425_v56 = vpop.f32.mrf.mxu1 }
 0x160   : > { %v8462_v15 = vpop.f32.mrf.mxu0  ;;  %v1088_v0 = vadd.f32 %v8422_v6, %v9896_v19 }
 0x161   : > { %v1481_v30 = vadd.f32 %v8462_v15, %v1056_v28  ;;  %v1564_v43 = vpack.c.bf16 %v1539_v44, %v1538_v24  ;;  %8582 = vmatpush3.bf16.msra.mxu1 %v9122_v42  ;;  %v1510_v54 = vmul.f32 0.2, %v1478_v60  ;;  %v1544_v50 = vmax.f32 %v1480_v9, %v1512_v11  ;;  %v1092_v2 = vpop.f32.mrf.mxu1 }
 0x162   : > { %v1402_v34 = vpop.f32.mrf.mxu0  ;;  %8583 = vmatprep.subr.bf16.mxu1 %v9124_v59  ;;  %v1077_v42 = vadd.f32 %v1076_v41, %v9894_v1  ;;  %v1080_v9 = vadd.f32 %v1079_v16, %v9901_v21  ;;  %v1101_v24 = vadd.f32 %v8425_v56, %v9904_v3  ;;  %v1093_v19 = vadd.f32 %v1092_v2, %v9908_v5  ;;  %v11729_v21 = vld [vmem:[#allocation6_spill] sm:$0xff]  ;;  %v9366_v56 = vld [vmem:[%s9532_s27 + $0x18] sm:$0xff]  }
 0x163   : > { %v1513_v12 = vmul.f32 0.2, %v1481_v30  ;;  %v1479_v45 = vadd.f32 %v1402_v34, %v1048_v8  ;;  %8503 = vmatprep.mubr.bf16.mxu1 %v1564_v43  ;;  %v1542_v61 = vmax.f32 %v1478_v60, %v1510_v54  ;;  %v8426_v41 = vpop.f32.mrf.mxu1 }
 0x164   : > { %v8465_v25 = vpop.f32.mrf.mxu0  ;;  %8504 = vmatmul.mubr.bf16.gmra.mxu1 %v1565_v32  ;;  %v1104_v6 = vadd.f32 %v8426_v41, %v11729_v21  ;;  %v9410_v41 = vmov 0  }
 0x165   : > { %v1545_v31 = vmax.f32 %v1481_v30, %v1513_v12  ;;  %v1511_v38 = vmul.f32 0.2, %v1479_v45  ;;  %v1484_v46 = vadd.f32 %v8465_v25, %v1069_v33  ;;  %8584 = vmatpush3.bf16.msra.mxu1 %v9124_v59  ;;  %v1095_v34 = vpop.f32.mrf.mxu1  ;;  %2761 = vst [vmem:[#allocation2 + $0x18] sm:$0xf] %v9410_v41  ;;  %2755 = vst [vmem:[#allocation2] sm:$0xf] %v9410_v41 }
 0x166   : > { %v1415_v27 = vpop.f32.mrf.mxu0  ;;  %8585 = vmatprep.subr.bf16.mxu1 %v9126_v47  ;;  %2756 = vst [vmem:[#allocation2 + $0x4] sm:$0xf] %v9410_v41  ;;  %2757 = vst [vmem:[#allocation2 + $0x8] sm:$0x1] %v9410_v41 }
 0x167   : > { %v1543_v13 = vmax.f32 %v1479_v45, %v1511_v38  ;;  %v1482_v57 = vadd.f32 %v1415_v27, %v1061_v10  ;;  %v1567_v18 = vpack.c.bf16 %v1545_v31, %v1544_v50  ;;  %v1516_v40 = vmul.f32 0.2, %v1484_v46  ;;  %v11730_v10 = vld [vmem:[#allocation7_spill] sm:$0xff]  ;;  %2758 = vst [vmem:[#allocation2 + $0xc] sm:$0xf] %v9410_v41 }
 0x168   : > { %v8466_v35 = vpop.f32.mrf.mxu0  ;;  %v1096_v25 = vadd.f32 %v1095_v34, %v11730_v10  ;;  %2759 = vst [vmem:[#allocation2 + $0x10] sm:$0xf] %v9410_v41  ;;  %2760 = vst [vmem:[#allocation2 + $0x14] sm:$0x1] %v9410_v41  ;;  %v9134_v34 = vld [vmem:[%s11716_s7 + $0x60] sm:$0xff]   ;;  %v3330_v10 = vlaneseq }
 0x169   : > { %v1485_v36 = vadd.f32 %v8466_v35, %v1072_v55  ;;  %v1566_v48 = vpack.c.bf16 %v1543_v13, %v1542_v61  ;;  %8586 = vmatpush3.bf16.msra.mxu1 %v9126_v47  ;;  %v1514_v52 = vmul.f32 0.2, %v1482_v57  ;;  %v1548_v39 = vmax.f32 %v1484_v46, %v1516_v40  ;;  %v9363_v40 = vld [vmem:[%s9532_s27] sm:$0xff]   ;;  %2762 = vst [vmem:[#allocation2 + $0x1c] sm:$0xf] %v9410_v41 }
 0x16a   : > { %v1418_v23 = vpop.f32.mrf.mxu0  ;;  %2763 = vst [vmem:[#allocation2 + $0x20] sm:$0x1] %v9410_v41  ;;  %2764 = vst [vmem:[#allocation2 + $0x24] sm:$0xf] %v9410_v41 }
 0x16b   : > { %v1517_v37 = vmul.f32 0.2, %v1485_v36  ;;  %v1483_v20 = vadd.f32 %v1418_v23, %v1064_v62  ;;  %8507 = vmatprep.mubr.bf16.mxu1 %v1566_v48  ;;  %v1546_v51 = vmax.f32 %v1482_v57, %v1514_v52  ;;  %v9365_v48 = vld [vmem:[%s9532_s27 + $0x10] sm:$0xff]   ;;  %v9367_v23 = vld [vmem:[%s9532_s27 + $0x20] sm:$0xff]   ;;  %2765 = vst [vmem:[#allocation2 + $0x28] sm:$0xf] %v9410_v41 }
 0x16c   : > { %v8469_v7 = vpop.f32.mrf.mxu0  ;;  %8508 = vmatmul.mubr.bf16.gmra.mxu1 %v1567_v18  ;;  %v9369_v52 = vld [vmem:[%s9532_s27 + $0x30] sm:$0xff]   ;;  %2766 = vst [vmem:[#allocation2 + $0x2c] sm:$0x1] %v9410_v41  ;;  %2767 = vst [vmem:[#allocation2 + $0x30] sm:$0xf] %v9410_v41 }
 0x16d   : > { %v1549_v49 = vmax.f32 %v1485_v36, %v1517_v37  ;;  %v1515_v17 = vmul.f32 0.2, %v1483_v20  ;;  %v1488_v53 = vadd.f32 %v8469_v7, %v1085_v14  ;;  %v9364_v36 = vld [vmem:[%s9532_s27 + $0x8] sm:$0xff]   ;;  %v9370_v37 = vld [vmem:[%s9532_s27 + $0x38] sm:$0xff]   ;;  %2768 = vst [vmem:[#allocation2 + $0x34] sm:$0xf] %v9410_v41 }
 0x16e   : > { %v1431_v22 = vpop.f32.mrf.mxu0  ;;  %v9368_v14 = vld [vmem:[%s9532_s27 + $0x28] sm:$0xff]   ;;  %2769 = vst [vmem:[#allocation2 + $0x38] sm:$0x1] %v9410_v41  ;;  %2770 = vst [vmem:[#allocation2 + $0x3c] sm:$0xf] %v9410_v41 }
 0x16f   : > { %v1547_v4 = vmax.f32 %v1483_v20, %v1515_v17  ;;  %v1486_v26 = vadd.f32 %v1431_v22, %v1077_v42  ;;  %v1569_v63 = vpack.c.bf16 %v1549_v49, %v1548_v39  ;;  %v1520_v28 = vmul.f32 0.2, %v1488_v53  ;;  %v9371_v20 = vld [vmem:[%s9532_s27 + $0x40] sm:$0xff]   ;;  %v9372_v7 = vld [vmem:[%s9532_s27 + $0x48] sm:$0xff]   ;;  %v9373_v39 = vld [vmem:[%s9532_s27 + $0x50] sm:$0xff]  }
 0x170   : > { %v8470_v58 = vpop.f32.mrf.mxu0  ;;  %2771 = vst [vmem:[#allocation2 + $0x40] sm:$0xf] %v9410_v41  ;;  %2772 = vst [vmem:[#allocation2 + $0x44] sm:$0x1] %v9410_v41 }
 0x171   : > { %v1489_v29 = vadd.f32 %v8470_v58, %v1088_v0  ;;  %v1568_v1 = vpack.c.bf16 %v1547_v4, %v1546_v51  ;;  %v1518_v44 = vmul.f32 0.2, %v1486_v26  ;;  %v1552_v8 = vmax.f32 %v1488_v53, %v1520_v28  ;;  %v9374_v53 = vld [vmem:[%s9532_s27 + $0x58] sm:$0xff]   ;;  %v9375_v0 = vld [vmem:[%s9532_s27 + $0x60] sm:$0xff]   ;;  %v9376_v51 = vld [vmem:[%s9532_s27 + $0x68] sm:$0xff]  }
 0x172   : > { %v1434_v59 = vpop.f32.mrf.mxu0  ;;  %v9377_v4 = vld [vmem:[%s9532_s27 + $0x70] sm:$0xff]   ;;  %v9378_v58 = vld [vmem:[%s9532_s27 + $0x78] sm:$0xff]   ;;  %2773 = vst [vmem:[#allocation2 + $0x48] sm:$0xf] %v9410_v41  ;;  %2774 = vst [vmem:[#allocation2 + $0x4c] sm:$0xf] %v9410_v41 }
 0x173   : > { %v1521_v60 = vmul.f32 0.2, %v1489_v29  ;;  %v1487_v32 = vadd.f32 %v1434_v59, %v1080_v9  ;;  %8511 = vmatprep.mubr.bf16.mxu1 %v1568_v1  ;;  %v1550_v33 = vmax.f32 %v1486_v26, %v1518_v44  ;;  %2775 = vst [vmem:[#allocation2 + $0x50] sm:$0x1] %v9410_v41  ;;  %2776 = vst [vmem:[#allocation2 + $0x54] sm:$0xf] %v9410_v41 }
 0x174   : > { %v8473_v15 = vpop.f32.mrf.mxu0  ;;  %8512 = vmatmul.mubr.bf16.gmra.mxu1 %v1569_v63  ;;  %2777 = vst [vmem:[#allocation2 + $0x58] sm:$0xf] %v9410_v41  ;;  %2778 = vst [vmem:[#allocation2 + $0x5c] sm:$0x1] %v9410_v41  ;;  %v9129_v44 = vld [vmem:[%s11716_s7 + $0x38] sm:$0xff]  }
 0x175   : > { %v1553_v11 = vmax.f32 %v1489_v29, %v1521_v60  ;;  %v1519_v30 = vmul.f32 0.2, %v1487_v32  ;;  %v1492_v43 = vadd.f32 %v8473_v15, %v1101_v24  ;;  %2779 = vst [vmem:[#allocation2 + $0x60] sm:$0xf] %v9410_v41  ;;  %2780 = vst [vmem:[#allocation2 + $0x64] sm:$0xf] %v9410_v41  ;;  %8715 = vmatprep.subr.bf16.mxu0 %v9129_v44 }
 0x176   : > { %v1447_v47 = vpop.f32.mrf.mxu0  ;;  %2781 = vst [vmem:[#allocation2 + $0x68] sm:$0x1] %v9410_v41  ;;  %2782 = vst [vmem:[#allocation2 + $0x6c] sm:$0xf] %v9410_v41  ;;  %v9128_v24 = vld [vmem:[%s11716_s7 + $0x78] sm:$0xff]   ;;  %8716 = vmatpush3.bf16.msra.mxu0 %v9129_v44  ;;  %v9131_v15 = vld [vmem:[%s11716_s7 + $0x30] sm:$0xff]  }
 0x177   : > { %v1551_v54 = vmax.f32 %v1487_v32, %v1519_v30  ;;  %v1490_v12 = vadd.f32 %v1447_v47, %v1093_v19  ;;  %v1571_v3 = vpack.c.bf16 %v1553_v11, %v1552_v8  ;;  %v1524_v50 = vmul.f32 0.2, %v1492_v43  ;;  %2783 = vst [vmem:[#allocation2 + $0x70] sm:$0xf] %v9410_v41  ;;  %2784 = vst [vmem:[#allocation2 + $0x74] sm:$0x1] %v9410_v41 }
 0x178   : > { %v8474_v45 = vpop.f32.mrf.mxu0  ;;  %2785 = vst [vmem:[#allocation2 + $0x78] sm:$0xf] %v9410_v41  ;;  %2786 = vst [vmem:[#allocation2 + $0x7c] sm:$0xf] %v9410_v41  ;;  %8667 = vmatprep.subr.bf16.mxu1 %v9128_v24  ;;  %v9130_v19 = vld [vmem:[%s11716_s7 + $0x70] sm:$0xff]   ;;  %v9132_v8 = vld [vmem:[%s11716_s7 + $0x68] sm:$0xff]   ;;  %8717 = vmatprep.subr.bf16.mxu0 %v9131_v15 }
 0x179   : > { %v1493_v31 = vadd.f32 %v8474_v45, %v1104_v6  ;;  %v1570_v5 = vpack.c.bf16 %v1551_v54, %v1550_v33  ;;  %v1522_v46 = vmul.f32 0.2, %v1490_v12  ;;  %v1556_v27 = vmax.f32 %v1492_v43, %v1524_v50  ;;  %2787 = vst [vmem:[#allocation2 + $0x80] sm:$0x1] %v9410_v41  ;;  %2788 = vst [vmem:[#allocation2 + $0x84] sm:$0xf] %v9410_v41 }
 0x17a   : > { %v1450_v38 = vpop.f32.mrf.mxu0  ;;  %2789 = vst [vmem:[#allocation2 + $0x88] sm:$0xf] %v9410_v41  ;;  %2790 = vst [vmem:[#allocation2 + $0x8c] sm:$0x1] %v9410_v41  ;;  %8718 = vmatpush3.bf16.msra.mxu0 %v9131_v15  ;;  %v9133_v30 = vld [vmem:[%s11716_s7 + $0x28] sm:$0xff]   ;;  %v9135_v47 = vld [vmem:[%s11716_s7 + $0x20] sm:$0xff]  }
 0x17b   : > { %v1525_v55 = vmul.f32 0.2, %v1493_v31  ;;  %v1491_v16 = vadd.f32 %v1450_v38, %v1096_v25  ;;  %8515 = vmatprep.mubr.bf16.mxu1 %v1570_v5  ;;  %v1554_v57 = vmax.f32 %v1490_v12, %v1522_v46  ;;  %2791 = vst [vmem:[#allocation2 + $0x90] sm:$0xf] %v9410_v41  ;;  %2792 = vst [vmem:[#allocation2 + $0x94] sm:$0xf] %v9410_v41  ;;  %8719 = vmatprep.subr.bf16.mxu0 %v9133_v30 }
 0x17c   : > { %8516 = vmatmul.mubr.bf16.gmra.mxu1 %v1571_v3  ;;  %v10023_v42 = vpop.f32.mrf.mxu0  ;;  %2793 = vst [vmem:[#allocation2 + $0x98] sm:$0x1] %v9410_v41  ;;  %2794 = vst [vmem:[#allocation2 + $0x9c] sm:$0xf] %v9410_v41  ;;  %v9137_v12 = vld [vmem:[%s11716_s7 + $0x18] sm:$0xff]   ;;  %v9139_v46 = vld [vmem:[%s11716_s7 + $0x10] sm:$0xff]  }
 0x17d   : > { %v1557_v61 = vmax.f32 %v1493_v31, %v1525_v55  ;;  %v1523_v13 = vmul.f32 0.2, %v1491_v16  ;;  %2795 = vst [vmem:[#allocation2 + $0xa0] sm:$0xf] %v9410_v41  ;;  %2796 = vst [vmem:[#allocation2 + $0xa4] sm:$0x1] %v9410_v41 }
 0x17e   : > { %v10027_v49 = vpop.f32.mrf.mxu0  ;;  %2797 = vst [vmem:[#allocation2 + $0xa8] sm:$0xf] %v9410_v41  ;;  %2798 = vst [vmem:[#allocation2 + $0xac] sm:$0xf] %v9410_v41  ;;  %8720 = vmatpush3.bf16.msra.mxu0 %v9133_v30  ;;  %v9136_v3 = vld [vmem:[%s11716_s7 + $0x58] sm:$0xff]   ;;  %v10111_v55 = vand.u32 127, %v3330_v10 }
 0x17f   : > { %v1555_v18 = vmax.f32 %v1491_v16, %v1523_v13  ;;  %v1573_v35 = vpack.c.bf16 %v1557_v61, %v1556_v27  ;;  %2799 = vst [vmem:[#allocation2 + $0xb0] sm:$0x1] %v9410_v41  ;;  %2800 = vst [vmem:[#allocation2 + $0xb4] sm:$0xf] %v9410_v41  ;;  %8721 = vmatprep.subr.bf16.mxu0 %v9135_v47  ;;  %v10102_v25 = vld [vmem:[#allocation2 + $0x4] sm:$0xf] }
 0x180   : > { %v10029_v17 = vpop.f32.mrf.mxu0  ;;  %2801 = vst [vmem:[#allocation2 + $0xb8] sm:$0xf] %v9410_v41  ;;  %2802 = vst [vmem:[#allocation2 + $0xbc] sm:$0x1] %v9410_v41  ;;  %v3388_v50 = vld [vmem:[#allocation2] sm:$0xe] }
 0x181   : > { %v1572_v62 = vpack.c.bf16 %v1555_v18, %v1554_v57  ;;  %2803 = vst [vmem:[#allocation2 + $0xc0] sm:$0xf] %v9410_v41  ;;  %2804 = vst [vmem:[#allocation2 + $0xc4] sm:$0xf] %v9410_v41  ;;  %v3420_v31 = vshll.u32 %v10102_v25, 16  ;;  %v3424_v5 = vshrl.u32 %v10102_v25, 16 }
 0x182   : > { %v10033_v2 = vpop.f32.mrf.mxu0  ;;  %2805 = vst [vmem:[#allocation2 + $0xc8] sm:$0x1] %v9410_v41  ;;  %2806 = vst [vmem:[#allocation2 + $0xcc] sm:$0xf] %v9410_v41  ;;  %8722 = vmatpush3.bf16.msra.mxu0 %v9135_v47  ;;  %v3411_v16 = vshrl.u32 %v3388_v50, 16  ;;  %v9138_v27 = vld [vmem:[%s11716_s7 + $0x50] sm:$0xff]  }
 0x183   : > { %8519 = vmatprep.mubr.bf16.mxu1 %v1572_v62  ;;  %2807 = vst [vmem:[#allocation2 + $0xd0] sm:$0xf] %v9410_v41  ;;  %2808 = vst [vmem:[#allocation2 + $0xd4] sm:$0x1] %v9410_v41  ;;  %8723 = vmatprep.subr.bf16.mxu0 %v9137_v12  ;;  %v3414_v61 = vshll.u32 %v3388_v50, 16  ;;  %v3422_v13 = vrot.slane %v3420_v31, 5 }
 0x184   : > { %8520 = vmatmul.mubr.bf16.gmra.mxu1 %v1573_v35  ;;  %v10035_v22 = vpop.f32.mrf.mxu0  ;;  %v3426_v57 = vrot.slane %v3424_v5, 4  ;;  %v3370_v18 = vld [vmem:[#allocation2 + $0x8] sm:$0x1]  ;;  %v3413_v35 = vrot.slane %v3411_v16, 4  ;;  %vm3369_vm2 = vcmp.lt.s32.totalorder %v10111_v55, 64  ;;  %v9143_v15 = vld [vmem:[%s11716_s7] sm:$0xff]  }
 0x185   : > { %8587 = vmatprep.mubr.bf16.mxu1 %v9363_v40  ;;  %v3416_v62 = vrot.slane %v3414_v61, 5  ;;  %vm10130_vm4 = vmpackc.low %vm3369_vm2, %vm3369_vm2  ;;  %v3434_v44 = vshrl.u32 %v3370_v18, 16  ;;  %v10151_v47 = vld [vmem:[%s11714_s5] ss:$0 sm:$0xff]  ;;  %vm3332_vm5 = vcmp.lt.s32.totalorder %v10111_v55, 32 }
 0x186   : > { %v10039_v26 = vpop.f32.mrf.mxu0  ;;  %8724 = vmatpush3.bf16.msra.mxu0 %v9137_v12  ;;  %v3427_v40 = vor.u32 %v3426_v57, %v3422_v13  ;;  %vm10168_vm6 = vmpackc.low %vm3332_vm5, %vm3332_vm5 }
 0x187   : > { %8725 = vmatprep.subr.bf16.mxu0 %v9139_v46  ;;  %v3970_v10 = vsel %vm10130_vm4, %v3370_v18, %v3434_v44 }
 0x188   : > { %v10041_v63 = vpop.f32.mrf.mxu0 }
 0x18a   : > { %v10044_v9 = vpop.f32.mrf.mxu0  ;;  %8726 = vmatpush3.bf16.msra.mxu0 %v9139_v46  ;;  %v4043_v46 = vshll.u32 %v3970_v10, 16 }
 0x18c   : > { %8588 = vmatmul.mubr.bf16.vlgmr.msra.gmra.mxu1 %v9364_v36  ;;  %v10046_v28 = vpop.f32.mrf.mxu0  ;;  %v3430_v36 = vshll.u32 %v3370_v18, 16  ;;  %v4045_v57 = vrot.slane %v4043_v46, 5 }
 0x18d   : > { %8591 = vmatprep.mubr.bf16.mxu1 %v9365_v48  ;;  %8668 = vmatpush3.bf16.msra.mxu1 %v9128_v24 }
 0x18e   : > { %v10048_v29 = vpop.f32.mrf.mxu0  ;;  %8669 = vmatprep.subr.bf16.mxu1 %v9130_v19 }
 0x190   : > { %v10050_v1 = vpop.f32.mrf.mxu0 }
 0x191   : > { %8670 = vmatpush3.bf16.msra.mxu1 %v9130_v19 }
 0x192   : > { %v10052_v59 = vpop.f32.mrf.mxu0  ;;  %8671 = vmatprep.subr.bf16.mxu1 %v9132_v8 }
 0x194   : > { %8592 = vmatmul.mubr.bf16.gmra.mxu1 %v9366_v56  ;;  %v10060_v60 = vpop.f32.mrf.mxu0  ;;  %v3417_v56 = vor.u32 %v3416_v62, %v3413_v35 }
 0x195   : > { %8595 = vmatprep.mubr.bf16.mxu1 %v9367_v23  ;;  %8672 = vmatpush3.bf16.msra.mxu1 %v9132_v8  ;;  %v3428_v23 = vrot.slane %v3427_v40, 4 }
 0x196   : > { %v10062_v32 = vpop.f32.mrf.mxu0  ;;  %8673 = vmatprep.subr.bf16.mxu1 %v9134_v34 }
 0x198   : > { %v10073_v11 = vpop.f32.mrf.mxu0 }
 0x199   : > { %8674 = vmatpush3.bf16.msra.mxu1 %v9134_v34 }
 0x19a   : > { %v10078_v43 = vpop.f32.mrf.mxu0  ;;  %8675 = vmatprep.subr.bf16.mxu1 %v9136_v3 }
 0x19c   : > { %8596 = vmatmul.mubr.bf16.gmra.mxu1 %v9368_v14  ;;  %v10080_v21 = vpop.f32.mrf.mxu0  ;;  %v3432_v14 = vrot.slane %v3430_v36, 5 }
 0x19d   : > { %8599 = vmatprep.mubr.bf16.mxu1 %v9369_v52  ;;  %8676 = vmatpush3.bf16.msra.mxu1 %v9136_v3  ;;  %v9141_v52 = vld [vmem:[%s11716_s7 + $0x8] sm:$0xff]   ;;  %v9142_v3 = vld [vmem:[%s11716_s7 + $0x40] sm:$0xff]  }
 0x19e   : > { %v10082_v6 = vpop.f32.mrf.mxu0  ;;  %8677 = vmatprep.subr.bf16.mxu1 %v9138_v27  ;;  %8727 = vmatprep.subr.bf16.mxu0 %v9141_v52 }
 0x19f   : > { %8728 = vmatpush3.bf16.msra.mxu0 %v9141_v52 }
 0x1a0   : > { %v10090_v33 = vpop.f32.mrf.mxu0  ;;  %8729 = vmatprep.subr.bf16.mxu0 %v9143_v15 }
 0x1a1   : > { %8678 = vmatpush3.bf16.msra.mxu1 %v9138_v27 }
 0x1a2   : > { %v10092_v54 = vpop.f32.mrf.mxu0 }
 0x1a3   : > { %11731 = vst [vmem:[#allocation6_spill] sm:$0xff] %v10092_v54  ;;  %8730 = vmatpush3.bf16.msra.mxu0 %v9143_v15 }
 0x1a4   : > { %8600 = vmatmul.mubr.bf16.gmra.mxu1 %v9370_v37  ;;  %v10100_v45 = vpop.f32.mrf.mxu0  ;;  %v11735_v37 = vmov 0 }
 0x1a5   : > { %8603 = vmatprep.mubr.bf16.mxu1 %v9371_v20  ;;  %11732 = vst [vmem:[#allocation7_spill] sm:$0xff] %v10100_v45  ;;  %v11736_v37 = vsel %vm10123_vm3, 4294967295, %v11735_v37  ;;  %v9140_v20 = vld [vmem:[%s11716_s7 + $0x48] sm:$0xff]  }
 0x1a6   : > { %v10106_v38 = vpop.f32.mrf.mxu0  ;;  %11737 = vst [vmem:[#allocation10_spill] sm:$0xff] %v11736_v37  ;;  %8679 = vmatprep.subr.bf16.mxu1 %v9140_v20 }
 0x1a7   : > { %11733 = vst [vmem:[#allocation8_spill] sm:$0xff] %v10106_v38  ;;  %8680 = vmatpush3.bf16.msra.mxu1 %v9140_v20 }
 0x1a8   : > { %v10116_v48 = vpop.f32.mrf.mxu0  ;;  %8681 = vmatprep.subr.bf16.mxu1 %v9142_v3 }
 0x1a9   : > { %11734 = vst [vmem:[#allocation9_spill] sm:$0xff] %v10116_v48 }
 0x1ab   : > { %8682 = vmatpush3.bf16.msra.mxu1 %v9142_v3 }
 0x1ac   : > { %8604 = vmatmul.mubr.bf16.gmra.mxu1 %v9372_v7  ;;  %v3333_v7 = vld [vmem:[#allocation2] sm:$0xf] }
 0x1ad   : > { %8607 = vmatprep.mubr.bf16.mxu1 %v9373_v39  ;;  %v11738_v39 = vmov 0 }
 0x1ae   : > { %v11739_v39 = vsel %vm10130_vm4, 4294967295, %v11738_v39 }
 0x1af   : > { %11740 = vst [vmem:[#allocation11_spill] sm:$0xff] %v11739_v39 }
 0x1b4   : > { %8608 = vmatmul.mubr.bf16.gmra.mxu1 %v9374_v53  ;;  %v3418_v53 = vrot.slane %v3417_v56, 4 }
 0x1b5   : > { %8611 = vmatprep.mubr.bf16.mxu1 %v9375_v0  ;;  %v3433_v0 = vsel %vm10123_vm3, %v3428_v23, %v3432_v14 }
 0x1bc   : > { %8612 = vmatmul.mubr.bf16.gmra.mxu1 %v9376_v51  ;;  %v10136_v51 = vpop.f32.mrf.mxu0 }
 0x1bd   : > { %8615 = vmatprep.mubr.bf16.mxu1 %v9377_v4  ;;  %11741 = vst [vmem:[#allocation12_spill] sm:$0xff] %v10136_v51  ;;  %v3969_v4 = vsel %vm10130_vm4, %v10102_v25, %v3433_v0 }
 0x1be   : > { %v4033_v41 = vshll.u32 %v3969_v4, 16  ;;  %v4037_v24 = vshrl.u32 %v3969_v4, 16  ;;  %v10153_v12 = vpop.f32.mrf.mxu0 }
 0x1bf   : > { %11742 = vst [vmem:[#allocation13_spill] sm:$0xff] %v10153_v12 }
 0x1c0   : > { %v4035_v34 = vrot.slane %v4033_v41, 5  ;;  %v4039_v50 = vrot.slane %v4037_v24, 4  ;;  %v10161_v62 = vpop.f32.mrf.mxu0 }
 0x1c1   : > { %11743 = vst [vmem:[#allocation14_spill] sm:$0xff] %v10161_v62 }
 0x1c2   : > { %v4040_v27 = vor.u32 %v4039_v50, %v4035_v34  ;;  %v10174_v4 = vpop.f32.mrf.mxu0 }
 0x1c3   : > { %11747 = vst [vmem:[#allocation16_spill] sm:$0xff] %v10174_v4 }
 0x1c4   : > { %8616 = vmatmul.mubr.bf16.gmra.mxu1 %v9378_v58  ;;  %v3423_v58 = vsel %vm10123_vm3, %v3418_v53, %v3422_v13  ;;  %v4041_v18 = vrot.slane %v4040_v27, 4  ;;  %v11744_v53 = vmov 0  ;;  %v10183_v3 = vpop.f32.mrf.mxu0 }
 0x1c5   : > { %v3968_v19 = vsel %vm10130_vm4, %v3333_v7, %v3423_v58  ;;  %v11745_v53 = vsel %vm10168_vm6, 4294967295, %v11744_v53  ;;  %11748 = vst [vmem:[#allocation17_spill] sm:$0xff] %v10183_v3 }
 0x1c6   : > { %v4024_v8 = vshrl.u32 %v3968_v19, 16  ;;  %v4027_v30 = vshll.u32 %v3968_v19, 16  ;;  %v4046_v14 = vsel %vm10123_vm3, %v4041_v18, %v4045_v57  ;;  %11746 = vst [vmem:[#allocation15_spill] sm:$0xff] %v11745_v53  ;;  %v10187_v46 = vpop.f32.mrf.mxu0 }
 0x1c7   : > { %v4492_v41 = vsel %vm10168_vm6, %v10102_v25, %v4046_v14  ;;  %11749 = vst [vmem:[#allocation18_spill] sm:$0xff] %v10187_v46 }
 0x1c8   : > { %v4026_v31 = vrot.slane %v4024_v8, 4  ;;  %v4029_v5 = vrot.slane %v4027_v30, 5 }
 0x1ca   : > { %v4030_v13 = vor.u32 %v4029_v5, %v4026_v31 }
 0x1cc   : > { %v4031_v56 = vrot.slane %v4030_v13, 4 }
 0x1ce   : > { %v4036_v55 = vsel %vm10123_vm3, %v4031_v56, %v4035_v34 }
 0x1cf   : > { %v4491_v58 = vsel %vm10168_vm6, %v3333_v7, %v4036_v55 }
 0x1d0   : > { %v7511_v19 = vcombine.low %v4491_v58, %v4492_v41 }
 0x1d2   : > { %8731 = vmatprep.mubr.bf16.mxu0 %v7511_v19 }
 0x20c   : > { %v8493_v16 = vpop.f32.mrf.mxu1 }
 0x20d   : > { %v1688_v61 = vadd.f32 %v8493_v16, %v10151_v47 }
 0x20e   : > { %v1679_v35 = vpop.f32.mrf.mxu1 }
 0x20f   : > { %v7335_v40 = vmul.f32 -1.442695, %v1688_v61  ;;  %v1680_v36 = vadd.f32 %v10151_v47, %v1679_v35 }
 0x210   : > { %v8494_v23 = vpop.f32.mrf.mxu1 }
 0x211   : > { %9232 = vpow2.f32 %v7335_v40  ;;  %v7333_v52 = vmul.f32 -1.442695, %v1680_v36  ;;  %v1691_v20 = vadd.f32 %v8494_v23, %v10151_v47  ;;  %v10191_v40 = vpop.f32.mrf.mxu0 }
 0x212   : > { %v1682_v0 = vpop.f32.mrf.mxu1  ;;  %11750 = vst [vmem:[#allocation19_spill] sm:$0xff] %v10191_v40 }
 0x213   : > { %9234 = vpow2.f32 %v7333_v52  ;;  %v7336_v24 = vmul.f32 -1.442695, %v1691_v20  ;;  %v1683_v44 = vadd.f32 %v10151_v47, %v1682_v0 }
 0x214   : > { %v8497_v15 = vpop.f32.mrf.mxu1 }
 0x215   : > { %9236 = vpow2.f32 %v7336_v24  ;;  %v7334_v8 = vmul.f32 -1.442695, %v1683_v44  ;;  %v1704_v30 = vadd.f32 %v8497_v15, %v10151_v47  ;;  %v10195_v24 = vpop.f32.mrf.mxu0 }
 0x216   : > { %v1695_v34 = vpop.f32.mrf.mxu1  ;;  %11751 = vst [vmem:[#allocation20_spill] sm:$0xff] %v10195_v24 }
 0x217   : > { %9238 = vpow2.f32 %v7334_v8  ;;  %v7339_v7 = vmul.f32 -1.442695, %v1704_v30  ;;  %v1696_v10 = vadd.f32 %v10151_v47, %v1695_v34 }
 0x218   : > { %v8498_v50 = vpop.f32.mrf.mxu1 }
 0x219   : > { %9240 = vpow2.f32 %v7339_v7  ;;  %v7337_v25 = vmul.f32 -1.442695, %v1696_v10  ;;  %v1707_v31 = vadd.f32 %v8498_v50, %v10151_v47 }
 0x21a   : > { %v1698_v5 = vpop.f32.mrf.mxu1 }
 0x21b   : > { %9242 = vpow2.f32 %v7337_v25  ;;  %v7340_v16 = vmul.f32 -1.442695, %v1707_v31  ;;  %v1699_v27 = vadd.f32 %v10151_v47, %v1698_v5  ;;  %v10199_v31 = vpop.f32.mrf.mxu0 }
 0x21c   : > { %v8501_v61 = vpop.f32.mrf.mxu1  ;;  %11752 = vst [vmem:[#allocation21_spill] sm:$0xff] %v10199_v31 }
 0x21d   : > { %9244 = vpow2.f32 %v7340_v16  ;;  %v7338_v13 = vmul.f32 -1.442695, %v1699_v27  ;;  %v1720_v57 = vadd.f32 %v8501_v61, %v10151_v47 }
 0x21e   : > { %v9233_v35 = vpop.eup %9232  ;;  %v1711_v18 = vpop.f32.mrf.mxu1 }
 0x21f   : > { %v1904_v36 = vadd.f32 1.0, %v9233_v35  ;;  %9246 = vpow2.f32 %v7338_v13  ;;  %v7343_v56 = vmul.f32 -1.442695, %v1720_v57  ;;  %v1712_v23 = vadd.f32 %v10151_v47, %v1711_v18 }
 0x220   : > { %v9235_v14 = vpop.eup %9234  ;;  %v8502_v52 = vpop.f32.mrf.mxu1 }
 0x221   : > { %v1902_v20 = vadd.f32 1.0, %v9235_v14  ;;  %v7341_v55 = vmul.f32 -1.442695, %v1712_v23  ;;  %v1723_v0 = vadd.f32 %v8502_v52, %v10151_v47  ;;  %9248 = vpow2.f32 %v7343_v56  ;;  %v10203_v23 = vpop.f32.mrf.mxu0 }
 0x222   : > { %v9237_v58 = vpop.eup %9236  ;;  %v1714_v41 = vpop.f32.mrf.mxu1  ;;  %9250 = vrcp.f32 %v1904_v36 }
 0x223   : > { %v1905_v44 = vadd.f32 1.0, %v9237_v58  ;;  %v7344_v19 = vmul.f32 -1.442695, %v1723_v0  ;;  %v1715_v15 = vadd.f32 %v10151_v47, %v1714_v41  ;;  %9252 = vpow2.f32 %v7341_v55 }
 0x224   : > { %v9239_v8 = vpop.eup %9238  ;;  %v8505_v30 = vpop.f32.mrf.mxu1  ;;  %9254 = vrcp.f32 %v1902_v20 }
 0x225   : > { %v1903_v34 = vadd.f32 1.0, %v9239_v8  ;;  %v7342_v7 = vmul.f32 -1.442695, %v1715_v15  ;;  %v1736_v10 = vadd.f32 %v8505_v30, %v10151_v47  ;;  %9256 = vpow2.f32 %v7344_v19  ;;  %v10207_v15 = vpop.f32.mrf.mxu0 }
 0x226   : > { %v9241_v50 = vpop.eup %9240  ;;  %v1727_v25 = vpop.f32.mrf.mxu1  ;;  %9258 = vrcp.f32 %v1905_v44 }
 0x227   : > { %v1908_v5 = vadd.f32 1.0, %v9241_v50  ;;  %v7347_v16 = vmul.f32 -1.442695, %v1736_v10  ;;  %v1728_v27 = vadd.f32 %v10151_v47, %v1727_v25  ;;  %9260 = vpow2.f32 %v7342_v7 }
 0x228   : > { %v9243_v61 = vpop.eup %9242  ;;  %v8506_v13 = vpop.f32.mrf.mxu1  ;;  %9262 = vrcp.f32 %v1903_v34 }
 0x229   : > { %v1906_v57 = vadd.f32 1.0, %v9243_v61  ;;  %v7345_v35 = vmul.f32 -1.442695, %v1728_v27  ;;  %v1739_v18 = vadd.f32 %v8506_v13, %v10151_v47  ;;  %9264 = vpow2.f32 %v7347_v16 }
 0x22a   : > { %v9245_v36 = vpop.eup %9244  ;;  %v1730_v56 = vpop.f32.mrf.mxu1  ;;  %9266 = vrcp.f32 %v1908_v5 }
 0x22b   : > { %v1909_v14 = vadd.f32 1.0, %v9245_v36  ;;  %v7348_v52 = vmul.f32 -1.442695, %v1739_v18  ;;  %v1731_v20 = vadd.f32 %v10151_v47, %v1730_v56  ;;  %9268 = vpow2.f32 %v7345_v35 }
 0x22c   : > { %v9247_v55 = vpop.eup %9246  ;;  %v8509_v0 = vpop.f32.mrf.mxu1  ;;  %9270 = vrcp.f32 %v1906_v57 }
 0x22d   : > { %v7346_v58 = vmul.f32 -1.442695, %v1731_v20  ;;  %v1752_v41 = vadd.f32 %v8509_v0, %v10151_v47  ;;  %v1907_v44 = vadd.f32 1.0, %v9247_v55  ;;  %9272 = vpow2.f32 %v7348_v52  ;;  %v10215_v57 = vpop.f32.mrf.mxu0 }
 0x22e   : > { %v1743_v19 = vpop.f32.mrf.mxu1  ;;  %v9249_v8 = vpop.eup %9248  ;;  %9274 = vrcp.f32 %v1909_v14 }
 0x22f   : > { %v7351_v30 = vmul.f32 -1.442695, %v1752_v41  ;;  %v1744_v34 = vadd.f32 %v10151_v47, %v1743_v19  ;;  %v10210_v7 = vpop.eup %9250  ;;  %v1912_v10 = vadd.f32 1.0, %v9249_v8  ;;  %9276 = vpow2.f32 %v7346_v58  ;;  %v10223_v19 = vpop.f32.mrf.mxu0 }
 0x230   : > { %v8510_v50 = vpop.f32.mrf.mxu1  ;;  %v9253_v25 = vpop.eup %9252 }
 0x231   : > { %9278 = vpow2.f32 %v7351_v30  ;;  %v7349_v5 = vmul.f32 -1.442695, %v1744_v34  ;;  %v1755_v16 = vadd.f32 %v8510_v50, %v10151_v47  ;;  %v10213_v27 = vpop.eup %9254  ;;  %v1910_v61 = vadd.f32 1.0, %v9253_v25 }
 0x232   : > { %9280 = vrcp.f32 %v1907_v44  ;;  %v1746_v13 = vpop.f32.mrf.mxu1  ;;  %v9257_v35 = vpop.eup %9256 }
 0x233   : > { %9282 = vpow2.f32 %v7349_v5  ;;  %v7352_v18 = vmul.f32 -1.442695, %v1755_v16  ;;  %v1747_v36 = vadd.f32 %v10151_v47, %v1746_v13  ;;  %v10218_v56 = vpop.eup %9258  ;;  %v1913_v14 = vadd.f32 1.0, %v9257_v35 }
 0x234   : > { %9284 = vrcp.f32 %v1912_v10  ;;  %v8513_v52 = vpop.f32.mrf.mxu1  ;;  %v9261_v20 = vpop.eup %9260 }
 0x235   : > { %9286 = vpow2.f32 %v7352_v18  ;;  %v7350_v55 = vmul.f32 -1.442695, %v1747_v36  ;;  %v1768_v0 = vadd.f32 %v8513_v52, %v10151_v47  ;;  %v10221_v58 = vpop.eup %9262  ;;  %v1911_v41 = vadd.f32 1.0, %v9261_v20  ;;  %v10231_v36 = vpop.f32.mrf.mxu0  ;;  %v9144_v52 = vld [vmem:[%s11716_s7 + $0xb8] sm:$0xff]  }
 0x236   : > { %9288 = vrcp.f32 %v1910_v61  ;;  %v1759_v44 = vpop.f32.mrf.mxu1  ;;  %v9265_v8 = vpop.eup %9264  ;;  %8763 = vmatprep.subr.bf16.mxu1 %v9144_v52 }
 0x237   : > { %9290 = vpow2.f32 %v7350_v55  ;;  %v7355_v30 = vmul.f32 -1.442695, %v1768_v0  ;;  %v1760_v34 = vadd.f32 %v10151_v47, %v1759_v44  ;;  %v10226_v10 = vpop.eup %9266  ;;  %v1916_v50 = vadd.f32 1.0, %v9265_v8  ;;  %v9145_v0 = vld [vmem:[%s11717_s8 + $0x78] sm:$0xff]  }
 0x238   : > { %9292 = vrcp.f32 %v1913_v14  ;;  %v8514_v25 = vpop.f32.mrf.mxu1  ;;  %v9269_v5 = vpop.eup %9268  ;;  %8811 = vmatprep.subr.bf16.mxu0 %v9145_v0 }
 0x239   : > { %9294 = vpow2.f32 %v7355_v30  ;;  %v7353_v16 = vmul.f32 -1.442695, %v1760_v34  ;;  %v1771_v13 = vadd.f32 %v8514_v25, %v10151_v47  ;;  %v10229_v61 = vpop.eup %9270  ;;  %v1914_v35 = vadd.f32 1.0, %v9269_v5 }
 0x23a   : > { %9296 = vrcp.f32 %v1911_v41  ;;  %v1762_v18 = vpop.f32.mrf.mxu1  ;;  %v9273_v20 = vpop.eup %9272 }
 0x23b   : > { %9298 = vpow2.f32 %v7353_v16  ;;  %v7356_v14 = vmul.f32 -1.442695, %v1771_v13  ;;  %v1763_v55 = vadd.f32 %v10151_v47, %v1762_v18  ;;  %v10240_v44 = vpop.eup %9274  ;;  %v1917_v41 = vadd.f32 1.0, %v9273_v20  ;;  %v10243_v18 = vpop.f32.mrf.mxu0 }
 0x23c   : > { %9300 = vrcp.f32 %v1916_v50  ;;  %v8517_v8 = vpop.f32.mrf.mxu1  ;;  %v9277_v30 = vpop.eup %9276 }
 0x23d   : > { %9302 = vpow2.f32 %v7356_v14  ;;  %v7354_v34 = vmul.f32 -1.442695, %v1763_v55  ;;  %v1784_v25 = vadd.f32 %v8517_v8, %v10151_v47  ;;  %v1915_v16 = vadd.f32 1.0, %v9277_v30  ;;  %v10251_v40 = vpop.f32.mrf.mxu0 }
 0x23e   : > { %v9279_v5 = vpop.eup %9278  ;;  %9304 = vrcp.f32 %v1914_v35  ;;  %v1775_v13 = vpop.f32.mrf.mxu1 }
 0x23f   : > { %v10245_v31 = vpop.eup %9280  ;;  %v1920_v24 = vadd.f32 1.0, %v9279_v5  ;;  %9306 = vpow2.f32 %v7354_v34  ;;  %v7359_v50 = vmul.f32 -1.442695, %v1784_v25  ;;  %v1776_v20 = vadd.f32 %v10151_v47, %v1775_v13  ;;  %v10259_v39 = vpop.f32.mrf.mxu0 }
 0x240   : > { %v9283_v52 = vpop.eup %9282  ;;  %9308 = vrcp.f32 %v1917_v41  ;;  %v8518_v14 = vpop.f32.mrf.mxu1 }
 0x241   : > { %v10248_v55 = vpop.eup %9284  ;;  %9310 = vrcp.f32 %v1915_v16  ;;  %v1918_v0 = vadd.f32 1.0, %v9283_v52  ;;  %v7357_v8 = vmul.f32 -1.442695, %v1776_v20  ;;  %v1787_v35 = vadd.f32 %v8518_v14, %v10151_v47  ;;  %v10267_v62 = vpop.f32.mrf.mxu0 }
 0x242   : > { %v9287_v30 = vpop.eup %9286  ;;  %9312 = vpow2.f32 %v7359_v50  ;;  %v1778_v53 = vpop.f32.mrf.mxu1 }
 0x243   : > { %v10253_v5 = vpop.eup %9288  ;;  %9314 = vrcp.f32 %v1920_v24  ;;  %v1921_v34 = vadd.f32 1.0, %v9287_v30  ;;  %v7360_v25 = vmul.f32 -1.442695, %v1787_v35  ;;  %v1779_v41 = vadd.f32 %v10151_v47, %v1778_v53  ;;  %v10277_v48 = vpop.f32.mrf.mxu0 }
 0x244   : > { %v9291_v13 = vpop.eup %9290  ;;  %9316 = vpow2.f32 %v7357_v8  ;;  %v8521_v46 = vpop.f32.mrf.mxu1 }
 0x245   : > { %v10256_v16 = vpop.eup %9292  ;;  %9318 = vrcp.f32 %v1918_v0  ;;  %v1919_v20 = vadd.f32 1.0, %v9291_v13  ;;  %v7358_v52 = vmul.f32 -1.442695, %v1779_v41  ;;  %v1800_v50 = vadd.f32 %v8521_v46, %v10151_v47 }
 0x246   : > { %v9295_v14 = vpop.eup %9294  ;;  %9320 = vpow2.f32 %v7360_v25  ;;  %v1791_v3 = vpop.f32.mrf.mxu1 }
 0x247   : > { %v10261_v24 = vpop.eup %9296  ;;  %9322 = vrcp.f32 %v1921_v34  ;;  %v1924_v35 = vadd.f32 1.0, %v9295_v14  ;;  %v7363_v53 = vmul.f32 -1.442695, %v1800_v50  ;;  %v1792_v8 = vadd.f32 %v10151_v47, %v1791_v3 }
 0x248   : > { %v9299_v30 = vpop.eup %9298  ;;  %9324 = vpow2.f32 %v7358_v52  ;;  %v8522_v37 = vpop.f32.mrf.mxu1 }
 0x249   : > { %v10264_v0 = vpop.eup %9300  ;;  %9326 = vrcp.f32 %v1919_v20  ;;  %v1922_v41 = vadd.f32 1.0, %v9299_v30  ;;  %v7361_v46 = vmul.f32 -1.442695, %v1792_v8  ;;  %v1803_v25 = vadd.f32 %v8522_v37, %v10151_v47 }
 0x24a   : > { %v9303_v13 = vpop.eup %9302  ;;  %9328 = vpow2.f32 %v7363_v53  ;;  %v1794_v4 = vpop.f32.mrf.mxu1 }
 0x24b   : > { %v10269_v34 = vpop.eup %9304  ;;  %9330 = vrcp.f32 %v1924_v35  ;;  %v1925_v50 = vadd.f32 1.0, %v9303_v13  ;;  %v7364_v3 = vmul.f32 -1.442695, %v1803_v25  ;;  %v1795_v52 = vadd.f32 %v10151_v47, %v1794_v4 }
 0x24c   : > { %v9307_v14 = vpop.eup %9306  ;;  %9332 = vpow2.f32 %v7361_v46  ;;  %v8589_v12 = vpop.f32.mrf.mxu1 }
 0x24d   : > { %v10272_v20 = vpop.eup %9308  ;;  %9334 = vrcp.f32 %v1922_v41  ;;  %v1923_v8 = vadd.f32 1.0, %v9307_v14  ;;  %v7362_v37 = vmul.f32 -1.442695, %v1795_v52  ;;  %v2331_v53 = vadd.f32 %v8589_v12, %v10023_v42 }
 0x24e   : > { %v10275_v30 = vpop.eup %9310  ;;  %9336 = vpow2.f32 %v7364_v3  ;;  %v2322_v51 = vpop.f32.mrf.mxu1 }
 0x24f   : > { %v9313_v35 = vpop.eup %9312  ;;  %9338 = vrcp.f32 %v1925_v50  ;;  %v2677_v47 = vadd.f32 %v10203_v23, %v2331_v53  ;;  %v2323_v4 = vadd.f32 %v2322_v51, %v10027_v49  ;;  %v10288_v51 = vpop.f32.mrf.mxu0 }
 0x250   : > { %v10281_v46 = vpop.eup %9314  ;;  %v1928_v25 = vadd.f32 1.0, %v9313_v35  ;;  %9340 = vpow2.f32 %v7362_v37  ;;  %v8590_v41 = vpop.f32.mrf.mxu1 }
 0x251   : > { %11753 = vst [vmem:[#allocation22_spill] sm:$0xff] %v10281_v46  ;;  %v9317_v13 = vpop.eup %9316  ;;  %9342 = vrcp.f32 %v1923_v8  ;;  %v2709_v42 = vmul.f32 %v10210_v7, %v2677_v47  ;;  %v2675_v12 = vadd.f32 %v10207_v15, %v2323_v4  ;;  %v2334_v3 = vadd.f32 %v8590_v41, %v10029_v17 }
 0x252   : > { %v10286_v52 = vpop.eup %9318  ;;  %9344 = vrcp.f32 %v1928_v25  ;;  %v1926_v23 = vadd.f32 1.0, %v9317_v13  ;;  %v2325_v49 = vpop.f32.mrf.mxu1 }
 0x253   : > { %11754 = vst [vmem:[#allocation23_spill] sm:$0xff] %v10286_v52  ;;  %v9321_v50 = vpop.eup %9320  ;;  %v7759_v14 = vpack.c.bf16 %v2709_v42, %v2709_v42  ;;  %v2707_v37 = vmul.f32 %v10213_v27, %v2675_v12  ;;  %v2678_v8 = vadd.f32 %v10215_v57, %v2334_v3  ;;  %v2326_v7 = vadd.f32 %v2325_v49, %v10033_v2  ;;  %v10300_v12 = vpop.f32.mrf.mxu0 }
 0x254   : > { %v10293_v15 = vpop.eup %9322  ;;  %9346 = vrcp.f32 %v1926_v23  ;;  %v1929_v17 = vadd.f32 1.0, %v9321_v50  ;;  %v8593_v53 = vpop.f32.mrf.mxu1 }
 0x255   : > { %11755 = vst [vmem:[#allocation24_spill] sm:$0xff] %v10293_v15  ;;  %v9325_v35 = vpop.eup %9324  ;;  %v2910_v47 = vshrl.u32 %v7759_v14, 16  ;;  %v2913_v4 = vshll.u32 %v7759_v14, 16  ;;  %v7757_v25 = vpack.c.bf16 %v2707_v37, %v2707_v37  ;;  %v2710_v41 = vmul.f32 %v10218_v56, %v2678_v8  ;;  %v10314_v45 = vpop.f32.mrf.mxu0 }
 0x256   : > { %v10296_v13 = vpop.eup %9326  ;;  %9348 = vrcp.f32 %v1929_v17  ;;  %v1927_v27 = vadd.f32 1.0, %v9325_v35  ;;  %v2676_v57 = vadd.f32 %v10223_v19, %v2326_v7  ;;  %v2347_v2 = vadd.f32 %v8593_v53, %v10035_v22  ;;  %v2338_v42 = vpop.f32.mrf.mxu1  ;;  %v3225_v19 = vld [vmem:[#allocation2 + $0x18] sm:$0xf] }
 0x257   : > { %11756 = vst [vmem:[#allocation25_spill] sm:$0xff] %v10296_v13  ;;  %v9329_v3 = vpop.eup %9328  ;;  %v2912_v23 = vrot.slane %v2910_v47, 7  ;;  %v2893_v49 = vshrl.u32 %v7757_v25, 16  ;;  %v2896_v50 = vshll.u32 %v7757_v25, 16  ;;  %v7760_v38 = vpack.c.bf16 %v2710_v41, %v2710_v41  ;;  %v10338_v54 = vpop.f32.mrf.mxu0 }
 0x258   : > { %v10302_v14 = vpop.eup %9330  ;;  %9350 = vrcp.f32 %v1927_v27  ;;  %v1932_v56 = vadd.f32 1.0, %v9329_v3  ;;  %v2708_v22 = vmul.f32 %v10221_v58, %v2676_v57  ;;  %v2681_v8 = vadd.f32 %v10231_v36, %v2347_v2  ;;  %v8594_v7 = vpop.f32.mrf.mxu1  ;;  %v3216_v3 = vld [vmem:[#allocation2 + $0xc] sm:$0xf] }
 0x259   : > { %11757 = vst [vmem:[#allocation26_spill] sm:$0xff] %v10302_v14  ;;  %v9333_v17 = vpop.eup %9332  ;;  %v2915_v53 = vor.u32 %v2913_v4, %v2912_v23  ;;  %v2916_v35 = vrot.slane %v2912_v23, 4  ;;  %v2895_v47 = vrot.slane %v2893_v49, 7  ;;  %v2918_v25 = vshrl.u32 %v7760_v38, 16 }
 0x25a   : > { %v10312_v41 = vpop.eup %9334  ;;  %9352 = vrcp.f32 %v1932_v56  ;;  %v1930_v27 = vadd.f32 1.0, %v9333_v17  ;;  %v2921_v14 = vshll.u32 %v7760_v38, 16  ;;  %v7758_v13 = vpack.c.bf16 %v2708_v22, %v2708_v22  ;;  %v2341_v15 = vpop.f32.mrf.mxu1 }
 0x25b   : > { %11760 = vst [vmem:[#allocation27_spill] sm:$0xff] %v10312_v41  ;;  %v9337_v52 = vpop.eup %9336  ;;  %v3226_v58 = vsel %vm10306_vm12, %v2915_v53, %v3225_v19  ;;  %v2898_v36 = vor.u32 %v2896_v50, %v2895_v47  ;;  %v2899_v57 = vrot.slane %v2895_v47, 4  ;;  %v2920_v2 = vrot.slane %v2918_v25, 7  ;;  %v3229_v50 = vld [vmem:[#allocation2 + $0x20] sm:$0x1] }
 0x25c   : > { %v10324_v23 = vpop.eup %9338  ;;  %9354 = vrcp.f32 %v1930_v27  ;;  %v1933_v38 = vadd.f32 1.0, %v9337_v52  ;;  %3227 = vst [vmem:[#allocation2 + $0x18] sm:$0xf] %v3226_v58  ;;  %v2901_v56 = vshrl.u32 %v7758_v13, 16  ;;  %v2904_v19 = vshll.u32 %v7758_v13, 16  ;;  %v8597_v22 = vpop.f32.mrf.mxu1 }
 0x25d   : > { %11763 = vst [vmem:[#allocation28_spill] sm:$0xff] %v10324_v23  ;;  %v9341_v17 = vpop.eup %9340  ;;  %v3217_v53 = vsel %vm10306_vm12, %v2898_v36, %v3216_v3  ;;  %v2923_v47 = vor.u32 %v2921_v14, %v2920_v2  ;;  %v2925_v25 = vrot.slane %v2920_v2, 4  ;;  %v2713_v27 = vmul.f32 %v10226_v10, %v2681_v8  ;;  %v3222_v10 = vld [vmem:[#allocation2 + $0x14] sm:$0x1] }
 0x25e   : > { %v10335_v52 = vpop.eup %9342  ;;  %9356 = vrcp.f32 %v1933_v38  ;;  %v1931_v58 = vadd.f32 1.0, %v9341_v17  ;;  %3218 = vst [vmem:[#allocation2 + $0xc] sm:$0xf] %v3217_v53  ;;  %v2903_v23 = vrot.slane %v2901_v56, 7  ;;  %v2339_v41 = vadd.f32 %v2338_v42, %v10039_v26  ;;  %v2354_v46 = vpop.f32.mrf.mxu1 }
 0x25f   : > { %v10340_v13 = vpop.eup %9344  ;;  %v2924_v3 = vsel %vm10320_vm13, %v2916_v35, %v2923_v47  ;;  %v3230_v14 = vsel %vm10328_vm14, %v2925_v25, %v3229_v50  ;;  %v7763_v8 = vpack.c.bf16 %v2713_v27, %v2713_v27  ;;  %v2350_v36 = vadd.f32 %v8594_v7, %v10041_v63  ;;  %v3239_v25 = vld [vmem:[#allocation2 + $0x30] sm:$0xf] }
 0x260   : > { %9358 = vrcp.f32 %v1931_v58  ;;  %3228 = vst [vmem:[#allocation2 + $0x1c] sm:$0xf] %v2924_v3  ;;  %3231 = vst [vmem:[#allocation2 + $0x20] sm:$0x1] %v3230_v14  ;;  %v2906_v2 = vor.u32 %v2904_v19, %v2903_v23  ;;  %v2908_v26 = vrot.slane %v2903_v23, 4  ;;  %v2679_v42 = vadd.f32 %v10243_v18, %v2339_v41  ;;  %v8598_v38 = vpop.f32.mrf.mxu1  ;;  %v10358_v41 = vpop.f32.mrf.mxu0 }
 0x261   : > { %v10348_v56 = vpop.eup %9346  ;;  %v2944_v17 = vshrl.u32 %v7763_v8, 16  ;;  %v2947_v53 = vshll.u32 %v7763_v8, 16  ;;  %v2682_v35 = vadd.f32 %v10251_v40, %v2350_v36  ;;  %v2342_v50 = vadd.f32 %v2341_v15, %v10044_v9 }
 0x262   : > { %v2907_v47 = vsel %vm10320_vm13, %v2899_v57, %v2906_v2  ;;  %v3223_v63 = vsel %vm10328_vm14, %v2908_v26, %v3222_v10  ;;  %v2711_v7 = vmul.f32 %v10229_v61, %v2679_v42  ;;  %v2363_v23 = vadd.f32 %v8597_v22, %v10046_v28  ;;  %v2357_v18 = vpop.f32.mrf.mxu1  ;;  %v10375_v2 = vpop.f32.mrf.mxu0 }
 0x263   : > { %v10360_v19 = vpop.eup %9348  ;;  %3219 = vst [vmem:[#allocation2 + $0x10] sm:$0xf] %v2907_v47  ;;  %3224 = vst [vmem:[#allocation2 + $0x14] sm:$0x1] %v3223_v63  ;;  %v2946_v40 = vrot.slane %v2944_v17, 7  ;;  %v2714_v9 = vmul.f32 %v10240_v44, %v2682_v35  ;;  %v2680_v15 = vadd.f32 %v10259_v39, %v2342_v50  ;;  %v2355_v57 = vadd.f32 %v2354_v46, %v10048_v29 }
 0x264   : > { %v7761_v27 = vpack.c.bf16 %v2711_v7, %v2711_v7  ;;  %v2685_v61 = vadd.f32 %v10267_v62, %v2363_v23  ;;  %v2366_v28 = vadd.f32 %v8598_v38, %v10050_v1  ;;  %v2358_v22 = vadd.f32 %v2357_v18, %v10052_v59  ;;  %v10368_v58 = vpop.f32.mrf.mxu1  ;;  %v3232_v50 = vld [vmem:[#allocation2 + $0x24] sm:$0xf] }
 0x265   : > { %v10370_v3 = vpop.eup %9350  ;;  %v2949_v14 = vor.u32 %v2947_v53, %v2946_v40  ;;  %v2950_v10 = vrot.slane %v2946_v40, 4  ;;  %v7764_v8 = vpack.c.bf16 %v2714_v9, %v2714_v9  ;;  %v2712_v44 = vmul.f32 %v10245_v31, %v2680_v15  ;;  %v3243_v9 = vld [vmem:[#allocation2 + $0x38] sm:$0x1] }
 0x266   : > { %v2927_v39 = vshrl.u32 %v7761_v27, 16  ;;  %v2930_v36 = vshll.u32 %v7761_v27, 16  ;;  %v2717_v29 = vmul.f32 %v10248_v55, %v2685_v61  ;;  %v2683_v46 = vadd.f32 %v10277_v48, %v2355_v57  ;;  %v2370_v62 = vpop.f32.mrf.mxu1 }
 0x267   : > { %v10377_v1 = vpop.eup %9352  ;;  %v3240_v59 = vsel %vm10306_vm12, %v2949_v14, %v3239_v25  ;;  %v2952_v26 = vshrl.u32 %v7764_v8, 16  ;;  %v2955_v42 = vshll.u32 %v7764_v8, 16  ;;  %v7762_v38 = vpack.c.bf16 %v2712_v44, %v2712_v44  ;;  %v10388_v25 = vpop.f32.mrf.mxu0  ;;  %v3236_v44 = vld [vmem:[#allocation2 + $0x2c] sm:$0x1] }
 0x268   : > { %3241 = vst [vmem:[#allocation2 + $0x30] sm:$0xf] %v3240_v59  ;;  %v2929_v17 = vrot.slane %v2927_v39, 7  ;;  %v7767_v31 = vpack.c.bf16 %v2717_v29, %v2717_v29  ;;  %v2715_v53 = vmul.f32 %v10253_v5, %v2683_v46  ;;  %v2686_v55 = vadd.f32 %v10288_v51, %v2366_v28  ;;  %v10383_v35 = vpop.f32.mrf.mxu1 }
 0x269   : > { %v10385_v48 = vpop.eup %9354  ;;  %v2954_v47 = vrot.slane %v2952_v26, 7  ;;  %v2935_v63 = vshrl.u32 %v7762_v38, 16  ;;  %v2938_v7 = vshll.u32 %v7762_v38, 16  ;;  %v2684_v23 = vadd.f32 %v10300_v12, %v2358_v22  ;;  %v3253_v38 = vld [vmem:[#allocation2 + $0x48] sm:$0xf] }
 0x26a   : > { %v2932_v18 = vor.u32 %v2930_v36, %v2929_v17  ;;  %v2933_v40 = vrot.slane %v2929_v17, 4  ;;  %v2978_v15 = vshrl.u32 %v7767_v31, 16  ;;  %v2981_v57 = vshll.u32 %v7767_v31, 16  ;;  %v2373_v5 = vpop.f32.mrf.mxu1 }
 0x26b   : > { %v10390_v27 = vpop.eup %9356  ;;  %v2957_v51 = vor.u32 %v2955_v42, %v2954_v47  ;;  %v2959_v61 = vrot.slane %v2954_v47, 4  ;;  %v2937_v28 = vrot.slane %v2935_v63, 7  ;;  %v7765_v14 = vpack.c.bf16 %v2715_v53, %v2715_v53  ;;  %v10406_v53 = vpop.f32.mrf.mxu0 }
 0x26c   : > { %v3233_v8 = vsel %vm10306_vm12, %v2932_v18, %v3232_v50  ;;  %v10394_v39 = vrot.slane %v2978_v15, 7  ;;  %v2718_v12 = vmul.f32 %v10256_v16, %v2686_v55  ;;  %v2716_v22 = vmul.f32 %v10261_v24, %v2684_v23  ;;  %v8605_v36 = vpop.f32.mrf.mxu1 }
 0x26d   : > { %v10398_v29 = vpop.eup %9358  ;;  %3234 = vst [vmem:[#allocation2 + $0x24] sm:$0xf] %v3233_v8  ;;  %v2958_v46 = vsel %vm10320_vm13, %v2950_v10, %v2957_v51  ;;  %v3244_v59 = vsel %vm10328_vm14, %v2959_v61, %v3243_v9  ;;  %v2940_v26 = vor.u32 %v2938_v7, %v2937_v28  ;;  %v2942_v42 = vrot.slane %v2937_v28, 4 }
 0x26e   : > { %3242 = vst [vmem:[#allocation2 + $0x34] sm:$0xf] %v2958_v46  ;;  %3245 = vst [vmem:[#allocation2 + $0x38] sm:$0x1] %v3244_v59  ;;  %v2983_v17 = vor.u32 %v2981_v57, %v10394_v39  ;;  %v2984_v16 = vrot.slane %v10394_v39, 4  ;;  %v2961_v24 = vshrl.u32 %v7765_v14, 16  ;;  %v2386_v55 = vpop.f32.mrf.mxu1  ;;  %v7768_v47 = vpack.c.bf16 %v2718_v12, %v2718_v12  ;;  %v10419_v12 = vpop.f32.mrf.mxu0 }
 0x26f   : > { %v2964_v31 = vshll.u32 %v7765_v14, 16  ;;  %v2941_v10 = vsel %vm10320_vm13, %v2933_v40, %v2940_v26  ;;  %v3237_v50 = vsel %vm10328_vm14, %v2942_v42, %v3236_v44  ;;  %v7766_v63 = vpack.c.bf16 %v2716_v22, %v2716_v22  ;;  %v3246_v57 = vld [vmem:[#allocation2 + $0x3c] sm:$0xf]  ;;  %v3257_v59 = vld [vmem:[#allocation2 + $0x50] sm:$0x1] }
 0x270   : > { %3235 = vst [vmem:[#allocation2 + $0x28] sm:$0xf] %v2941_v10  ;;  %3238 = vst [vmem:[#allocation2 + $0x2c] sm:$0x1] %v3237_v50  ;;  %v3254_v7 = vsel %vm10306_vm12, %v2983_v17, %v3253_v38  ;;  %v2963_v23 = vrot.slane %v2961_v24, 7  ;;  %v2379_v18 = vadd.f32 %v10368_v58, %v10060_v60  ;;  %v2371_v9 = vadd.f32 %v2370_v62, %v10062_v32  ;;  %v8606_v15 = vpop.f32.mrf.mxu1 }
 0x271   : > { %3255 = vst [vmem:[#allocation2 + $0x48] sm:$0xf] %v3254_v7  ;;  %v2986_v40 = vshrl.u32 %v7768_v47, 16  ;;  %v2989_v51 = vshll.u32 %v7768_v47, 16  ;;  %v2969_v61 = vshrl.u32 %v7766_v63, 16  ;;  %v2972_v28 = vshll.u32 %v7766_v63, 16 }
 0x272   : > { %v2966_v14 = vor.u32 %v2964_v31, %v2963_v23  ;;  %v2967_v8 = vrot.slane %v2963_v23, 4  ;;  %v2689_v44 = vadd.f32 %v10314_v45, %v2379_v18  ;;  %v2687_v39 = vadd.f32 %v10338_v54, %v2371_v9  ;;  %v2389_v22 = vpop.f32.mrf.mxu1  ;;  %v3250_v26 = vld [vmem:[#allocation2 + $0x44] sm:$0x1] }
 0x273   : > { %v2988_v46 = vrot.slane %v2986_v40, 7  ;;  %v2971_v60 = vrot.slane %v2969_v61, 7  ;;  %v2382_v32 = vadd.f32 %v10383_v35, %v10073_v11  ;;  %v2374_v58 = vadd.f32 %v2373_v5, %v10078_v43  ;;  %v2615_v5 = vpop.f32.mrf.mxu0  ;;  %v11766_v61 = vld [vmem:[#allocation6_spill] sm:$0xff] }
 0x274   : > { %v3247_v62 = vsel %vm10306_vm12, %v2966_v14, %v3246_v57  ;;  %v2721_v42 = vmul.f32 %v10264_v0, %v2689_v44  ;;  %v2719_v45 = vmul.f32 %v10269_v34, %v2687_v39  ;;  %v2395_v54 = vadd.f32 %v8605_v36, %v10080_v21  ;;  %v8609_v50 = vpop.f32.mrf.mxu1  ;;  %v3260_v44 = vld [vmem:[#allocation2 + $0x54] sm:$0xf] }
 0x275   : > { %3248 = vst [vmem:[#allocation2 + $0x3c] sm:$0xf] %v3247_v62  ;;  %v2991_v38 = vor.u32 %v2989_v51, %v2988_v46  ;;  %v2993_v17 = vrot.slane %v2988_v46, 4  ;;  %v2974_v24 = vor.u32 %v2972_v28, %v2971_v60  ;;  %v2976_v31 = vrot.slane %v2971_v60, 4  ;;  %v8657_v51 = vpop.f32.mrf.mxu0  ;;  %v11767_v60 = vld [vmem:[#allocation22_spill] sm:$0xff] }
 0x276   : > { %v7771_v10 = vpack.c.bf16 %v2721_v42, %v2721_v42  ;;  %v7769_v11 = vpack.c.bf16 %v2719_v45, %v2719_v45  ;;  %v2690_v43 = vadd.f32 %v10358_v41, %v2382_v32  ;;  %v2688_v35 = vadd.f32 %v10375_v2, %v2374_v58  ;;  %v2402_v14 = vpop.f32.mrf.mxu1  ;;  %v11768_v42 = vld [vmem:[#allocation23_spill] sm:$0xff] }
 0x277   : > { %v2992_v0 = vsel %vm10320_vm13, %v2984_v16, %v2991_v38  ;;  %v3258_v34 = vsel %vm10328_vm14, %v2993_v17, %v3257_v59  ;;  %v2975_v21 = vsel %vm10320_vm13, %v2967_v8, %v2974_v24  ;;  %v3251_v36 = vsel %vm10328_vm14, %v2976_v31, %v3250_v26  ;;  %v3267_v8 = vld [vmem:[#allocation2 + $0x60] sm:$0xf] }
 0x278   : > { %3256 = vst [vmem:[#allocation2 + $0x4c] sm:$0xf] %v2992_v0  ;;  %3259 = vst [vmem:[#allocation2 + $0x50] sm:$0x1] %v3258_v34  ;;  %v3012_v41 = vshrl.u32 %v7771_v10, 16  ;;  %v3015_v2 = vshll.u32 %v7771_v10, 16  ;;  %v2722_v7 = vmul.f32 %v10272_v20, %v2690_v43  ;;  %v2720_v16 = vmul.f32 %v10275_v30, %v2688_v35  ;;  %v8610_v38 = vpop.f32.mrf.mxu1 }
 0x279   : > { %3249 = vst [vmem:[#allocation2 + $0x40] sm:$0xf] %v2975_v21  ;;  %3252 = vst [vmem:[#allocation2 + $0x44] sm:$0x1] %v3251_v36  ;;  %v2995_v47 = vshrl.u32 %v7769_v11, 16  ;;  %v2998_v63 = vshll.u32 %v7769_v11, 16  ;;  %v2693_v23 = vadd.f32 %v10388_v25, %v2395_v54  ;;  %v2387_v18 = vadd.f32 %v2386_v55, %v10082_v6  ;;  %v2628_v54 = vpop.f32.mrf.mxu0 }
 0x27a   : > { %v3014_v9 = vrot.slane %v3012_v41, 7  ;;  %v2398_v40 = vadd.f32 %v8606_v15, %v10090_v33  ;;  %v2390_v28 = vadd.f32 %v2389_v22, %v11766_v61  ;;  %v7772_v39 = vpack.c.bf16 %v2722_v7, %v2722_v7  ;;  %v3271_v10 = vld [vmem:[#allocation2 + $0x68] sm:$0x1]  ;;  %v3264_v11 = vld [vmem:[#allocation2 + $0x5c] sm:$0x1]  ;;  %v11769_v34 = vld [vmem:[#allocation7_spill] sm:$0xff] }
 0x27b   : > { %v2997_v57 = vrot.slane %v2995_v47, 7  ;;  %v7770_v46 = vpack.c.bf16 %v2720_v16, %v2720_v16  ;;  %v2725_v20 = vmul.f32 %v11767_v60, %v2693_v23  ;;  %v2691_v30 = vadd.f32 %v10406_v53, %v2387_v18  ;;  %v11770_v23 = vld [vmem:[#allocation24_spill] sm:$0xff]  ;;  %v3281_v61 = vld [vmem:[#allocation2 + $0x78] sm:$0xf]  ;;  %v11771_v60 = vld [vmem:[#allocation25_spill] sm:$0xff] }
 0x27c   : > { %v3017_v32 = vor.u32 %v3015_v2, %v3014_v9  ;;  %v3018_v25 = vrot.slane %v3014_v9, 4  ;;  %v3020_v55 = vshrl.u32 %v7772_v39, 16  ;;  %v3023_v62 = vshll.u32 %v7772_v39, 16  ;;  %v8658_v9 = vpop.f32.mrf.mxu0 }
 0x27d   : > { %v3000_v58 = vor.u32 %v2998_v63, %v2997_v57  ;;  %v3001_v6 = vrot.slane %v2997_v57, 4  ;;  %v3003_v59 = vshrl.u32 %v7770_v46, 16  ;;  %v3006_v33 = vshll.u32 %v7770_v46, 16  ;;  %v2405_v57 = vpop.f32.mrf.mxu1  ;;  %v3274_v46 = vld [vmem:[#allocation2 + $0x6c] sm:$0xf] }
 0x27e   : > { %v3268_v15 = vsel %vm10306_vm12, %v3017_v32, %v3267_v8  ;;  %v7775_v26 = vpack.c.bf16 %v2725_v20, %v2725_v20  ;;  %v2723_v45 = vmul.f32 %v11768_v42, %v2691_v30  ;;  %v3022_v53 = vrot.slane %v3020_v55, 7  ;;  %v11772_v32 = vld [vmem:[#allocation8_spill] sm:$0xff] }
 0x27f   : > { %v3261_v22 = vsel %vm10306_vm12, %v3000_v58, %v3260_v44  ;;  %3269 = vst [vmem:[#allocation2 + $0x60] sm:$0xf] %v3268_v15  ;;  %v3005_v17 = vrot.slane %v3003_v59, 7  ;;  %v2694_v24 = vadd.f32 %v10419_v12, %v2398_v40  ;;  %v2692_v31 = vadd.f32 %v2615_v5, %v2390_v28  ;;  %v11773_v58 = vld [vmem:[#allocation9_spill] sm:$0xff]  ;;  %v2631_v15 = vpop.f32.mrf.mxu0 }
 0x280   : > { %3262 = vst [vmem:[#allocation2 + $0x54] sm:$0xf] %v3261_v22  ;;  %v3046_v43 = vshrl.u32 %v7775_v26, 16  ;;  %v3049_v35 = vshll.u32 %v7775_v26, 16  ;;  %v7773_v0 = vpack.c.bf16 %v2723_v45, %v2723_v45  ;;  %v2411_v21 = vadd.f32 %v8609_v50, %v11769_v34  ;;  %v8613_v22 = vpop.f32.mrf.mxu1  ;;  %v11774_v45 = vld [vmem:[#allocation26_spill] sm:$0xff] }
 0x281   : > { %v3025_v36 = vor.u32 %v3023_v62, %v3022_v53  ;;  %v3027_v41 = vrot.slane %v3022_v53, 4  ;;  %v3008_v2 = vor.u32 %v3006_v33, %v3005_v17  ;;  %v3010_v47 = vrot.slane %v3005_v17, 4  ;;  %v3376_v4 = vld [vmem:[#allocation2 + $0x50] sm:$0x1] }
 0x282   : > { %v3048_v63 = vrot.slane %v3046_v43, 7  ;;  %v3029_v7 = vshrl.u32 %v7773_v0, 16  ;;  %v3032_v16 = vshll.u32 %v7773_v0, 16  ;;  %v2726_v18 = vmul.f32 %v11770_v23, %v2694_v24  ;;  %v11776_v0 = vld [vmem:[#allocation27_spill] sm:$0xff] }
 0x283   : > { %v3026_v12 = vsel %vm10320_vm13, %v3018_v25, %v3025_v36  ;;  %v3272_v5 = vsel %vm10328_vm14, %v3027_v41, %v3271_v10  ;;  %v3009_v50 = vsel %vm10320_vm13, %v3001_v6, %v3008_v2  ;;  %v3265_v40 = vsel %vm10328_vm14, %v3010_v47, %v3264_v11  ;;  %v3285_v10 = vld [vmem:[#allocation2 + $0x80] sm:$0x1]  ;;  %v11777_v41 = vld [vmem:[#allocation28_spill] sm:$0xff]  ;;  %v8661_v47 = vpop.f32.mrf.mxu0 }
 0x284   : > { %3270 = vst [vmem:[#allocation2 + $0x64] sm:$0xf] %v3026_v12  ;;  %3273 = vst [vmem:[#allocation2 + $0x68] sm:$0x1] %v3272_v5  ;;  %v3051_v28 = vor.u32 %v3049_v35, %v3048_v63  ;;  %v3052_v8 = vrot.slane %v3048_v63, 4  ;;  %v3031_v44 = vrot.slane %v3029_v7, 7  ;;  %v7776_v39 = vpack.c.bf16 %v2726_v18, %v2726_v18  ;;  %v2418_v63 = vpop.f32.mrf.mxu1 }
 0x285   : > { %3263 = vst [vmem:[#allocation2 + $0x58] sm:$0xf] %v3009_v50  ;;  %3266 = vst [vmem:[#allocation2 + $0x5c] sm:$0x1] %v3265_v40  ;;  %v2724_v20 = vmul.f32 %v11771_v60, %v2692_v31  ;;  %v2697_v30 = vadd.f32 %v8657_v51, %v2411_v21  ;;  %v2403_v25 = vadd.f32 %v2402_v14, %v11772_v32  ;;  %v3278_v12 = vld [vmem:[#allocation2 + $0x74] sm:$0x1]  ;;  %v2644_v32 = vpop.f32.mrf.mxu0 }
 0x286   : > { %v2414_v6 = vadd.f32 %v8610_v38, %v11773_v58  ;;  %v3282_v55 = vsel %vm10306_vm12, %v3051_v28, %v3281_v61  ;;  %v3034_v62 = vor.u32 %v3032_v16, %v3031_v44  ;;  %v3035_v59 = vrot.slane %v3031_v44, 4  ;;  %v11775_v38 = vld [vmem:[#allocation12_spill] sm:$0xff] }
 0x287   : > { %v3054_v33 = vshrl.u32 %v7776_v39, 16  ;;  %3283 = vst [vmem:[#allocation2 + $0x78] sm:$0xf] %v3282_v55  ;;  %v3057_v26 = vshll.u32 %v7776_v39, 16  ;;  %v7774_v42 = vpack.c.bf16 %v2724_v20, %v2724_v20  ;;  %v2729_v53 = vmul.f32 %v11774_v45, %v2697_v30  ;;  %v3295_v39 = vld [vmem:[#allocation2 + $0x90] sm:$0xf] }
 0x288   : > { %v2695_v17 = vadd.f32 %v2628_v54, %v2403_v25  ;;  %v3275_v51 = vsel %vm10306_vm12, %v3034_v62, %v3274_v46  ;;  %v2698_v24 = vadd.f32 %v8658_v9, %v2414_v6  ;;  %v2406_v31 = vadd.f32 %v2405_v57, %v11775_v38  ;;  %v3299_v45 = vld [vmem:[#allocation2 + $0x98] sm:$0x1]  ;;  %v3389_v38 = vld [vmem:[#allocation2 + $0xc] sm:$0xe] }
 0x289   : > { %v3056_v14 = vrot.slane %v3054_v33, 7  ;;  %3276 = vst [vmem:[#allocation2 + $0x6c] sm:$0xf] %v3275_v51  ;;  %v3037_v11 = vshrl.u32 %v7774_v42, 16  ;;  %v3040_v43 = vshll.u32 %v7774_v42, 16  ;;  %v7779_v35 = vpack.c.bf16 %v2729_v53, %v2729_v53  ;;  %v11778_v53 = vld [vmem:[#allocation13_spill] sm:$0xff] }
 0x28a   : > { %v2727_v34 = vmul.f32 %v11776_v0, %v2695_v17  ;;  %v2730_v2 = vmul.f32 %v11777_v41, %v2698_v24  ;;  %v2696_v54 = vadd.f32 %v2631_v15, %v2406_v31  ;;  %v3288_v42 = vld [vmem:[#allocation2 + $0x84] sm:$0xf]  ;;  %v2427_v17 = vadd.f32 %v8613_v22, %v11778_v53  ;;  %v11779_v51 = vld [vmem:[#allocation14_spill] sm:$0xff]  ;;  %v10488_v41 = vld [vmem:[#allocation2 + $0x10] sm:$0xf] }
 0x28b   : > { %v3059_v21 = vor.u32 %v3057_v26, %v3056_v14  ;;  %v3061_v36 = vrot.slane %v3056_v14, 4  ;;  %v3039_v7 = vrot.slane %v3037_v11, 7  ;;  %v3080_v16 = vshrl.u32 %v7779_v35, 16  ;;  %v11780_v14 = vld [vmem:[#allocation16_spill] sm:$0xff] }
 0x28c   : > { %v3083_v23 = vshll.u32 %v7779_v35, 16  ;;  %v7777_v18 = vpack.c.bf16 %v2727_v34, %v2727_v34  ;;  %v7780_v5 = vpack.c.bf16 %v2730_v2, %v2730_v2  ;;  %v2728_v50 = vmul.f32 %v10335_v52, %v2696_v54  ;;  %v8662_v35 = vpop.f32.mrf.mxu0 }
 0x28d   : > { %v3060_v9 = vsel %vm10320_vm13, %v3052_v8, %v3059_v21  ;;  %v3286_v57 = vsel %vm10328_vm14, %v3061_v36, %v3285_v10  ;;  %v3042_v40 = vor.u32 %v3040_v43, %v3039_v7  ;;  %v3044_v61 = vrot.slane %v3039_v7, 4  ;;  %v8614_v8 = vpop.f32.mrf.mxu1 }
 0x28e   : > { %3284 = vst [vmem:[#allocation2 + $0x7c] sm:$0xf] %v3060_v9  ;;  %3287 = vst [vmem:[#allocation2 + $0x80] sm:$0x1] %v3286_v57  ;;  %v3082_v28 = vrot.slane %v3080_v16, 7  ;;  %v3063_v44 = vshrl.u32 %v7777_v18, 16  ;;  %v7778_v30 = vpack.c.bf16 %v2728_v50, %v2728_v50  ;;  %v2430_v24 = vadd.f32 %v8614_v8, %v11780_v14 }
 0x28f   : > { %v3066_v46 = vshll.u32 %v7777_v18, 16  ;;  %v3088_v60 = vshrl.u32 %v7780_v5, 16  ;;  %v3091_v20 = vshll.u32 %v7780_v5, 16  ;;  %v3043_v25 = vsel %vm10320_vm13, %v3035_v59, %v3042_v40 }
 0x290   : > { %v3279_v58 = vsel %vm10328_vm14, %v3044_v61, %v3278_v12  ;;  %v3085_v52 = vor.u32 %v3083_v23, %v3082_v28  ;;  %v3086_v6 = vrot.slane %v3082_v28, 4  ;;  %3277 = vst [vmem:[#allocation2 + $0x70] sm:$0xf] %v3043_v25  ;;  %v3065_v55 = vrot.slane %v3063_v44, 7 }
 0x291   : > { %3280 = vst [vmem:[#allocation2 + $0x74] sm:$0x1] %v3279_v58  ;;  %v3090_v62 = vrot.slane %v3088_v60, 7  ;;  %v3071_v33 = vshrl.u32 %v7778_v30, 16  ;;  %v3074_v15 = vshll.u32 %v7778_v30, 16  ;;  %v2419_v59 = vadd.f32 %v2418_v63, %v11779_v51 }
 0x292   : > { %v3296_v26 = vsel %vm10306_vm12, %v3085_v52, %v3295_v39  ;;  %v3068_v31 = vor.u32 %v3066_v46, %v3065_v55  ;;  %v3069_v10 = vrot.slane %v3065_v55, 4  ;;  %v2701_v34 = vadd.f32 %v8661_v47, %v2427_v17  ;;  %v3292_v63 = vld [vmem:[#allocation2 + $0x8c] sm:$0x1]  ;;  %v3309_v55 = vld [vmem:[#allocation2 + $0xa8] sm:$0xf] }
 0x293   : > { %3297 = vst [vmem:[#allocation2 + $0x90] sm:$0xf] %v3296_v26  ;;  %v3093_v11 = vor.u32 %v3091_v20, %v3090_v62  ;;  %v3095_v43 = vrot.slane %v3090_v62, 4  ;;  %v3073_v0 = vrot.slane %v3071_v33, 7  ;;  %v2699_v21 = vadd.f32 %v2644_v32, %v2419_v59  ;;  %v3390_v32 = vld [vmem:[#allocation2 + $0x18] sm:$0xe] }
 0x294   : > { %v2702_v36 = vadd.f32 %v8662_v35, %v2430_v24  ;;  %v3289_v22 = vsel %vm10306_vm12, %v3068_v31, %v3288_v42  ;;  %v3439_v7 = vshrl.u32 %v3389_v38, 16  ;;  %v2733_v23 = vmul.f32 %v10340_v13, %v2701_v34  ;;  %v3371_v13 = vld [vmem:[#allocation2 + $0x14] sm:$0x1]  ;;  %v3302_v26 = vld [vmem:[#allocation2 + $0x9c] sm:$0xf]  ;;  %v2421_v34 = vpop.f32.mrf.mxu1 }
 0x295   : > { %v3094_v2 = vsel %vm10320_vm13, %v3086_v6, %v3093_v11  ;;  %v3300_v54 = vsel %vm10328_vm14, %v3095_v43, %v3299_v45  ;;  %3290 = vst [vmem:[#allocation2 + $0x84] sm:$0xf] %v3289_v22  ;;  %v3076_v16 = vor.u32 %v3074_v15, %v3073_v0  ;;  %v3078_v47 = vrot.slane %v3073_v0, 4  ;;  %v3335_v11 = vld [vmem:[#allocation2 + $0xc] sm:$0xf] }
 0x296   : > { %3298 = vst [vmem:[#allocation2 + $0x94] sm:$0xf] %v3094_v2  ;;  %3301 = vst [vmem:[#allocation2 + $0x98] sm:$0x1] %v3300_v54  ;;  %v2731_v18 = vmul.f32 %v10348_v56, %v2699_v21  ;;  %v2734_v9 = vmul.f32 %v10360_v19, %v2702_v36  ;;  %v3441_v57 = vrot.slane %v3439_v7, 4  ;;  %v3442_v12 = vshll.u32 %v3389_v38, 16 }
 0x297   : > { %v3448_v5 = vshll.u32 %v10488_v41, 16  ;;  %v3077_v50 = vsel %vm10320_vm13, %v3069_v10, %v3076_v16  ;;  %v3293_v40 = vsel %vm10328_vm14, %v3078_v47, %v3292_v63  ;;  %v7783_v61 = vpack.c.bf16 %v2733_v23, %v2733_v23  ;;  %v3313_v38 = vld [vmem:[#allocation2 + $0xb0] sm:$0x1]  ;;  %v10517_v63 = vld [vmem:[#allocation2 + $0x1c] sm:$0xf] }
 0x298   : > { %v7781_v28 = vpack.c.bf16 %v2731_v18, %v2731_v18  ;;  %3291 = vst [vmem:[#allocation2 + $0x88] sm:$0xf] %v3077_v50  ;;  %3294 = vst [vmem:[#allocation2 + $0x8c] sm:$0x1] %v3293_v40  ;;  %v7784_v44 = vpack.c.bf16 %v2734_v9, %v2734_v9  ;;  %v3444_v39 = vrot.slane %v3442_v12, 5  ;;  %v3452_v19 = vshrl.u32 %v10488_v41, 16 }
 0x299   : > { %v3450_v56 = vrot.slane %v3448_v5, 5  ;;  %v3114_v46 = vshrl.u32 %v7783_v61, 16  ;;  %v3117_v60 = vshll.u32 %v7783_v61, 16  ;;  %v3458_v33 = vshll.u32 %v3371_v13, 16  ;;  %v3372_v12 = vld [vmem:[#allocation2 + $0x20] sm:$0x1] }
 0x29a   : > { %v3097_v20 = vshrl.u32 %v7781_v28, 16  ;;  %v3100_v30 = vshll.u32 %v7781_v28, 16  ;;  %v3122_v8 = vshrl.u32 %v7784_v44, 16  ;;  %v3125_v25 = vshll.u32 %v7784_v44, 16  ;;  %v8617_v44 = vpop.f32.mrf.mxu1 }
 0x29b   : > { %v3445_v58 = vor.u32 %v3444_v39, %v3441_v57  ;;  %v3454_v52 = vrot.slane %v3452_v19, 4  ;;  %v3116_v6 = vrot.slane %v3114_v46, 7  ;;  %v3462_v15 = vshrl.u32 %v3371_v13, 16  ;;  %v2647_v46 = vpop.f32.mrf.mxu0 }
 0x29c   : > { %v10505_v62 = vrot.slane %v3097_v20, 7  ;;  %v3124_v42 = vrot.slane %v3122_v8, 7  ;;  %v3467_v17 = vshrl.u32 %v3390_v32, 16  ;;  %v3460_v22 = vrot.slane %v3458_v33, 5 }
 0x29d   : > { %v3446_v45 = vrot.slane %v3445_v58, 4  ;;  %v3455_v53 = vor.u32 %v3454_v52, %v3450_v56  ;;  %v3119_v51 = vor.u32 %v3117_v60, %v3116_v6  ;;  %v3120_v59 = vrot.slane %v3116_v6, 4 }
 0x29e   : > { %v3102_v14 = vor.u32 %v3100_v30, %v10505_v62  ;;  %v3103_v24 = vrot.slane %v10505_v62, 4  ;;  %v3127_v31 = vor.u32 %v3125_v25, %v3124_v42  ;;  %v3129_v10 = vrot.slane %v3124_v42, 4  ;;  %v2434_v42 = vpop.f32.mrf.mxu1 }
 0x29f   : > { %v3451_v35 = vsel %vm10123_vm3, %v3446_v45, %v3450_v56  ;;  %v3456_v0 = vrot.slane %v3455_v53, 4  ;;  %v3310_v21 = vsel %vm10306_vm12, %v3119_v51, %v3309_v55  ;;  %v3973_v47 = vsel %vm10130_vm4, %v3371_v13, %v3462_v15  ;;  %v11783_v15 = vld [vmem:[#allocation17_spill] sm:$0xff]  ;;  %v11784_v51 = vld [vmem:[#allocation18_spill] sm:$0xff] }
 0x2a0   : > { %v3303_v36 = vsel %vm10306_vm12, %v3102_v14, %v3302_v26  ;;  %v3971_v54 = vsel %vm10130_vm4, %v3335_v11, %v3451_v35  ;;  %3311 = vst [vmem:[#allocation2 + $0xa8] sm:$0xf] %v3310_v21  ;;  %v3128_v7 = vsel %vm10320_vm13, %v3120_v59, %v3127_v31  ;;  %v3314_v16 = vsel %vm10328_vm14, %v3129_v10, %v3313_v38  ;;  %v8665_v14 = vpop.f32.mrf.mxu0 }
 0x2a1   : > { %3304 = vst [vmem:[#allocation2 + $0x9c] sm:$0xf] %v3303_v36  ;;  %v4048_v23 = vshrl.u32 %v3971_v54, 16  ;;  %3312 = vst [vmem:[#allocation2 + $0xac] sm:$0xf] %v3128_v7  ;;  %v3461_v18 = vsel %vm10123_vm3, %v3456_v0, %v3460_v22  ;;  %v4051_v9 = vshll.u32 %v3971_v54, 16  ;;  %v2422_v26 = vadd.f32 %v2421_v34, %v11783_v15 }
 0x2a2   : > { %3315 = vst [vmem:[#allocation2 + $0xb0] sm:$0x1] %v3314_v16  ;;  %v4067_v57 = vshll.u32 %v3973_v47, 16  ;;  %v3469_v5 = vrot.slane %v3467_v17, 4  ;;  %v3972_v50 = vsel %vm10130_vm4, %v10488_v41, %v3461_v18  ;;  %v3470_v61 = vshll.u32 %v3390_v32, 16  ;;  %v11785_v22 = vld [vmem:[#allocation19_spill] sm:$0xff] }
 0x2a3   : > { %v4050_v40 = vrot.slane %v4048_v23, 4  ;;  %v3476_v28 = vshll.u32 %v10517_v63, 16  ;;  %v4053_v13 = vrot.slane %v4051_v9, 5  ;;  %v4057_v39 = vshll.u32 %v3972_v50, 16  ;;  %v3337_v16 = vld [vmem:[#allocation2 + $0x18] sm:$0xf] }
 0x2a4   : > { %v4061_v56 = vshrl.u32 %v3972_v50, 16  ;;  %v4069_v19 = vrot.slane %v4067_v57, 5  ;;  %v3472_v60 = vrot.slane %v3470_v61, 5  ;;  %v3480_v30 = vshrl.u32 %v10517_v63, 16 }
 0x2a5   : > { %v3478_v20 = vrot.slane %v3476_v28, 5  ;;  %v3486_v8 = vshll.u32 %v3372_v12, 16  ;;  %v4054_v25 = vor.u32 %v4053_v13, %v4050_v40  ;;  %v4059_v58 = vrot.slane %v4057_v39, 5 }
 0x2a6   : > { %v4063_v52 = vrot.slane %v4061_v56, 4  ;;  %v3490_v6 = vshrl.u32 %v3372_v12, 16  ;;  %v3473_v55 = vor.u32 %v3472_v60, %v3469_v5  ;;  %v3482_v33 = vrot.slane %v3480_v30, 4  ;;  %v3391_v60 = vld [vmem:[#allocation2 + $0x24] sm:$0xe] }
 0x2a7   : > { %v3488_v32 = vrot.slane %v3486_v8, 5  ;;  %v4055_v45 = vrot.slane %v4054_v25, 4  ;;  %v2443_v59 = vadd.f32 %v8617_v44, %v11784_v51  ;;  %v2700_v35 = vadd.f32 %v2647_v46, %v2422_v26  ;;  %v8618_v46 = vpop.f32.mrf.mxu1  ;;  %v2660_v8 = vpop.f32.mrf.mxu0 }
 0x2a8   : > { %v4064_v53 = vor.u32 %v4063_v52, %v4059_v58  ;;  %v3976_v17 = vsel %vm10130_vm4, %v3372_v12, %v3490_v6  ;;  %v3474_v38 = vrot.slane %v3473_v55, 4  ;;  %v3483_v31 = vor.u32 %v3482_v33, %v3478_v20  ;;  %v9379_v33 = vld [vmem:[%s11717_s8 + $0x78] sm:$0xff]  }
 0x2a9   : > { %v4091_v10 = vshll.u32 %v3976_v17, 16  ;;  %v4060_v0 = vsel %vm10123_vm3, %v4055_v45, %v4059_v58  ;;  %v2705_v36 = vadd.f32 %v8665_v14, %v2443_v59  ;;  %v2435_v34 = vadd.f32 %v2434_v42, %v11785_v22  ;;  %v11787_v42 = vld [vmem:[#allocation20_spill] sm:$0xff]  ;;  %v9149_v17 = vld [vmem:[%s11717_s8 + $0x68] sm:$0xff]   ;;  %v8666_v22 = vpop.f32.mrf.mxu0 }
 0x2aa   : > { %v4065_v21 = vrot.slane %v4064_v53, 4  ;;  %v4493_v7 = vsel %vm10168_vm6, %v3335_v11, %v4060_v0  ;;  %v3479_v47 = vsel %vm10123_vm3, %v3474_v38, %v3478_v20  ;;  %v3484_v23 = vrot.slane %v3483_v31, 4  ;;  %v3306_v14 = vld [vmem:[#allocation2 + $0xa4] sm:$0x1]  ;;  %v3323_v38 = vld [vmem:[#allocation2 + $0xc0] sm:$0xf] }
 0x2ab   : > { %v10543_v18 = vrot.slane %v4091_v10, 5  ;;  %v3974_v57 = vsel %vm10130_vm4, %v3337_v16, %v3479_v47  ;;  %v2732_v12 = vmul.f32 %v10370_v3, %v2700_v35  ;;  %v2737_v5 = vmul.f32 %v10377_v1, %v2705_v36  ;;  %v9147_v3 = vld [vmem:[%s11717_s8 + $0x70] sm:$0xff]  }
 0x2ac   : > { %v4070_v9 = vsel %vm10123_vm3, %v4065_v21, %v4069_v19  ;;  %v3489_v50 = vsel %vm10123_vm3, %v3484_v23, %v3488_v32  ;;  %v4072_v40 = vshrl.u32 %v3974_v57, 16  ;;  %v4075_v61 = vshll.u32 %v3974_v57, 16 }
 0x2ad   : > { %v4494_v11 = vsel %vm10168_vm6, %v10488_v41, %v4070_v9  ;;  %v3975_v44 = vsel %vm10130_vm4, %v10517_v63, %v3489_v50  ;;  %v7782_v13 = vpack.c.bf16 %v2732_v12, %v2732_v12  ;;  %v7787_v39 = vpack.c.bf16 %v2737_v5, %v2737_v5  ;;  %v10576_v9 = vld [vmem:[#allocation2 + $0x28] sm:$0xf] }
 0x2ae   : > { %v7487_v28 = vcombine.low %v4493_v7, %v4494_v11  ;;  %v4074_v1 = vrot.slane %v4072_v40, 4  ;;  %v4077_v56 = vrot.slane %v4075_v61, 5  ;;  %v4081_v19 = vshll.u32 %v3975_v44, 16  ;;  %v9151_v11 = vld [vmem:[%s11717_s8 + $0x60] sm:$0xff]   ;;  %v3373_v40 = vld [vmem:[#allocation2 + $0x2c] sm:$0x1] }
 0x2af   : > { %v4085_v41 = vshrl.u32 %v3975_v44, 16  ;;  %v3105_v20 = vshrl.u32 %v7782_v13, 16  ;;  %v3108_v30 = vshll.u32 %v7782_v13, 16  ;;  %v3148_v25 = vshrl.u32 %v7787_v39, 16 }
 0x2b0   : > { %8683 = vmatprep.mubr.bf16.mxu1 %v7487_v28  ;;  %8732 = vmatmul.mubr.bf16.vlgmr.msra.gmra.mxu0 %v7487_v28  ;;  %v3151_v58 = vshll.u32 %v7787_v39, 16  ;;  %v4078_v52 = vor.u32 %v4077_v56, %v4074_v1  ;;  %v4083_v6 = vrot.slane %v4081_v19, 5  ;;  %v2703_v32 = vadd.f32 %v2660_v8, %v2435_v34 }
 0x2b1   : > { %v4087_v55 = vrot.slane %v4085_v41, 4  ;;  %8812 = vmatpush3.bf16.msra.mxu0 %v9379_v33  ;;  %v3107_v15 = vrot.slane %v3105_v20, 7  ;;  %v10565_v26 = vrot.slane %v3148_v25, 7  ;;  %v2446_v45 = vadd.f32 %v8618_v46, %v11787_v42  ;;  %v9153_v20 = vld [vmem:[%s11717_s8 + $0x58] sm:$0xff]  }
 0x2b2   : > { %v3495_v53 = vshrl.u32 %v3391_v60, 16  ;;  %8813 = vmatprep.subr.bf16.mxu0 %v9147_v3  ;;  %v4079_v51 = vrot.slane %v4078_v52, 4  ;;  %v2735_v31 = vmul.f32 %v10385_v48, %v2703_v32  ;;  %v3498_v10 = vshll.u32 %v3391_v60, 16  ;;  %v3392_v60 = vld [vmem:[#allocation2 + $0x30] sm:$0xe] }
 0x2b3   : > { %v4088_v59 = vor.u32 %v4087_v55, %v4083_v6  ;;  %v3110_v35 = vor.u32 %v3108_v30, %v3107_v15  ;;  %v3112_v0 = vrot.slane %v3107_v15, 4  ;;  %v3153_v21 = vor.u32 %v3151_v58, %v10565_v26  ;;  %v10614_v52 = vld [vmem:[#allocation2 + $0x34] sm:$0xf] }
 0x2b4   : > { %v3154_v36 = vrot.slane %v10565_v26, 4  ;;  %v4084_v34 = vsel %vm10123_vm3, %v4079_v51, %v4083_v6  ;;  %v7785_v47 = vpack.c.bf16 %v2735_v31, %v2735_v31  ;;  %v2706_v23 = vadd.f32 %v8666_v22, %v2446_v45  ;;  %v9380_v6 = vld [vmem:[%s11716_s7 + $0xb8] sm:$0xff]  }
 0x2b5   : > { %v4089_v7 = vrot.slane %v4088_v59, 4  ;;  %8814 = vmatpush3.bf16.msra.mxu0 %v9147_v3  ;;  %v4495_v48 = vsel %vm10168_vm6, %v3337_v16, %v4084_v34  ;;  %v3111_v57 = vsel %vm10320_vm13, %v3103_v24, %v3110_v35  ;;  %v3307_v12 = vsel %vm10328_vm14, %v3112_v0, %v3306_v14  ;;  %v9148_v59 = vld [vmem:[%s11716_s7 + $0xa8] sm:$0xff]   ;;  %v9155_v35 = vld [vmem:[%s11717_s8 + $0x50] sm:$0xff]  }
 0x2b6   : > { %v3324_v5 = vsel %vm10306_vm12, %v3153_v21, %v3323_v38  ;;  %8815 = vmatprep.subr.bf16.mxu0 %v9149_v17  ;;  %3305 = vst [vmem:[#allocation2 + $0xa0] sm:$0xf] %v3111_v57  ;;  %3308 = vst [vmem:[#allocation2 + $0xa4] sm:$0x1] %v3307_v12  ;;  %v3131_v62 = vshrl.u32 %v7785_v47, 16  ;;  %v3134_v24 = vshll.u32 %v7785_v47, 16  ;;  %v2738_v50 = vmul.f32 %v10390_v27, %v2706_v23 }
 0x2b7   : > { %v4094_v16 = vsel %vm10123_vm3, %v4089_v7, %v10543_v18  ;;  %3325 = vst [vmem:[#allocation2 + $0xc0] sm:$0xf] %v3324_v5  ;;  %v3497_v28 = vrot.slane %v3495_v53, 4  ;;  %v3500_v44 = vrot.slane %v3498_v10, 5  ;;  %v3504_v13 = vshll.u32 %v10576_v9, 16  ;;  %v9146_v27 = vld [vmem:[%s11716_s7 + $0xb0] sm:$0xff]  }
 0x2b8   : > { %v4496_v61 = vsel %vm10168_vm6, %v10517_v63, %v4094_v16  ;;  %v10601_v3 = vrot.slane %v3131_v62, 7  ;;  %v3316_v18 = vld [vmem:[#allocation2 + $0xb4] sm:$0xf]  ;;  %v7788_v1 = vpack.c.bf16 %v2738_v50, %v2738_v50  ;;  %v3508_v56 = vshrl.u32 %v10576_v9, 16  ;;  %v3327_v53 = vld [vmem:[#allocation2 + $0xc8] sm:$0x1] }
 0x2b9   : > { %v10599_v39 = vcombine.low %v4495_v48, %v4496_v61  ;;  %8816 = vmatpush3.bf16.msra.mxu0 %v9149_v17  ;;  %v3501_v19 = vor.u32 %v3500_v44, %v3497_v28  ;;  %v3506_v41 = vrot.slane %v3504_v13, 5  ;;  %v3514_v63 = vshll.u32 %v3373_v40, 16  ;;  %v10626_v14 = vld [vmem:[#allocation2 + $0x24] sm:$0xf]  ;;  %v3374_v48 = vld [vmem:[#allocation2 + $0x38] sm:$0x1] }
 0x2ba   : > { %v3518_v46 = vshrl.u32 %v3373_v40, 16  ;;  %8817 = vmatprep.subr.bf16.mxu0 %v9151_v11  ;;  %v3136_v30 = vor.u32 %v3134_v24, %v10601_v3  ;;  %v3137_v8 = vrot.slane %v10601_v3, 4  ;;  %v3156_v25 = vshrl.u32 %v7788_v1, 16  ;;  %v9150_v62 = vld [vmem:[%s11716_s7 + $0xa0] sm:$0xff]   ;;  %v9157_v61 = vld [vmem:[%s11717_s8 + $0x48] sm:$0xff]  }
 0x2bb   : > { %8684 = vmatmul.mubr.bf16.vlgmr.msra.gmra.mxu1 %v10599_v39  ;;  %8735 = vmatprep.mubr.bf16.mxu0 %v10599_v39  ;;  %v3159_v58 = vshll.u32 %v7788_v1, 16  ;;  %v3502_v55 = vrot.slane %v3501_v19, 4  ;;  %v3510_v33 = vrot.slane %v3508_v56, 4  ;;  %v3516_v32 = vrot.slane %v3514_v63, 5 }
 0x2bc   : > { %8764 = vmatpush3.bf16.msra.mxu1 %v9380_v6  ;;  %v3979_v15 = vsel %vm10130_vm4, %v3373_v40, %v3518_v46  ;;  %v3317_v42 = vsel %vm10306_vm12, %v3136_v30, %v3316_v18  ;;  %v3158_v45 = vrot.slane %v3156_v25, 7  ;;  %v3523_v51 = vshrl.u32 %v3392_v60, 16  ;;  %v2437_v40 = vpop.f32.mrf.mxu1  ;;  %v9152_v25 = vld [vmem:[%s11716_s7 + $0x98] sm:$0xff]  }
 0x2bd   : > { %v4115_v17 = vshll.u32 %v3979_v15, 16  ;;  %8765 = vmatprep.subr.bf16.mxu1 %v9146_v27  ;;  %8818 = vmatpush3.bf16.msra.mxu0 %v9151_v11  ;;  %3318 = vst [vmem:[#allocation2 + $0xb4] sm:$0xf] %v3317_v42  ;;  %v3507_v38 = vsel %vm10123_vm3, %v3502_v55, %v3506_v41  ;;  %v3511_v31 = vor.u32 %v3510_v33, %v3506_v41  ;;  %v3526_v10 = vshll.u32 %v3392_v60, 16  ;;  %v3393_v41 = vld [vmem:[#allocation2 + $0x3c] sm:$0xe] }
 0x2be   : > { %v3532_v37 = vshll.u32 %v10614_v52, 16  ;;  %8819 = vmatprep.subr.bf16.mxu0 %v9153_v20  ;;  %v3161_v0 = vor.u32 %v3159_v58, %v3158_v45  ;;  %v3163_v21 = vrot.slane %v3158_v45, 4  ;;  %v3977_v22 = vsel %vm10130_vm4, %v10626_v14, %v3507_v38  ;;  %v2663_v58 = vpop.f32.mrf.mxu0  ;;  %v3341_v15 = vld [vmem:[#allocation2 + $0x30] sm:$0xf] }
 0x2bf   : > { %v10637_v34 = vrot.slane %v4115_v17, 5  ;;  %v3512_v7 = vrot.slane %v3511_v31, 4  ;;  %v4096_v47 = vshrl.u32 %v3977_v22, 16  ;;  %v4099_v23 = vshll.u32 %v3977_v22, 16 }
 0x2c0   : > { %v3525_v57 = vrot.slane %v3523_v51, 4  ;;  %8766 = vmatpush3.bf16.msra.mxu1 %v9146_v27  ;;  %v3162_v12 = vsel %vm10320_vm13, %v3154_v36, %v3161_v0  ;;  %v3328_v5 = vsel %vm10328_vm14, %v3163_v21, %v3327_v53  ;;  %v3528_v11 = vrot.slane %v3526_v10, 5  ;;  %v9154_v21 = vld [vmem:[%s11716_s7 + $0x90] sm:$0xff]  }
 0x2c1   : > { %v3534_v16 = vrot.slane %v3532_v37, 5  ;;  %8767 = vmatprep.subr.bf16.mxu1 %v9148_v59  ;;  %8820 = vmatpush3.bf16.msra.mxu0 %v9153_v20  ;;  %3326 = vst [vmem:[#allocation2 + $0xc4] sm:$0xf] %v3162_v12  ;;  %3329 = vst [vmem:[#allocation2 + $0xc8] sm:$0x1] %v3328_v5  ;;  %v3517_v24 = vsel %vm10123_vm3, %v3512_v7, %v3516_v32  ;;  %v4098_v26 = vrot.slane %v4096_v47, 4 }
 0x2c2   : > { %v4101_v50 = vrot.slane %v4099_v23, 5  ;;  %v3536_v36 = vshrl.u32 %v10614_v52, 16  ;;  %8821 = vmatprep.subr.bf16.mxu0 %v9155_v35  ;;  %v3978_v28 = vsel %vm10130_vm4, %v10576_v9, %v3517_v24  ;;  %v3529_v44 = vor.u32 %v3528_v11, %v3525_v57  ;;  %v11788_v20 = vld [vmem:[#allocation21_spill] sm:$0xff]  ;;  %v10680_v23 = vld [vmem:[#allocation2 + $0x40] sm:$0xf] }
 0x2c3   : > { %v3542_v13 = vshll.u32 %v3374_v48, 16  ;;  %v3546_v18 = vshrl.u32 %v3374_v48, 16  ;;  %v4105_v56 = vshll.u32 %v3978_v28, 16  ;;  %v4109_v27 = vshrl.u32 %v3978_v28, 16 }
 0x2c4   : > { %v4102_v1 = vor.u32 %v4101_v50, %v4098_v26  ;;  %v3538_v19 = vrot.slane %v3536_v36, 4  ;;  %8768 = vmatpush3.bf16.msra.mxu1 %v9148_v59  ;;  %v3530_v63 = vrot.slane %v3529_v44, 4  ;;  %v2438_v30 = vadd.f32 %v2437_v40, %v11788_v20  ;;  %v3375_v50 = vld [vmem:[#allocation2 + $0x44] sm:$0x1]  ;;  %v3320_v20 = vld [vmem:[#allocation2 + $0xbc] sm:$0x1] }
 0x2c5   : > { %v3544_v46 = vrot.slane %v3542_v13, 5  ;;  %v3982_v60 = vsel %vm10130_vm4, %v3374_v48, %v3546_v18  ;;  %8769 = vmatprep.subr.bf16.mxu1 %v9150_v62  ;;  %8822 = vmatpush3.bf16.msra.mxu0 %v9155_v35  ;;  %v4107_v55 = vrot.slane %v4105_v56, 5  ;;  %v4111_v33 = vrot.slane %v4109_v27, 4  ;;  %v9156_v18 = vld [vmem:[%s11716_s7 + $0x88] sm:$0xff]  }
 0x2c6   : > { %v4103_v6 = vrot.slane %v4102_v1, 4  ;;  %v3539_v32 = vor.u32 %v3538_v19, %v3534_v16  ;;  %8823 = vmatprep.subr.bf16.mxu0 %v9157_v61  ;;  %v3535_v42 = vsel %vm10123_vm3, %v3530_v63, %v3534_v16  ;;  %v4139_v45 = vshll.u32 %v3982_v60, 16 }
 0x2c7   : > { %v2704_v53 = vadd.f32 %v2663_v58, %v2438_v30  ;;  %v3551_v17 = vshrl.u32 %v3393_v41, 16  ;;  %v4112_v59 = vor.u32 %v4111_v33, %v4107_v55  ;;  %v3980_v31 = vsel %vm10130_vm4, %v3341_v15, %v3535_v42  ;;  %v9158_v42 = vld [vmem:[%s11716_s7 + $0x80] sm:$0xff]  }
 0x2c8   : > { %v4108_v51 = vsel %vm10123_vm3, %v4103_v6, %v4107_v55  ;;  %v3540_v38 = vrot.slane %v3539_v32, 4  ;;  %8770 = vmatpush3.bf16.msra.mxu1 %v9150_v62  ;;  %v4120_v37 = vshrl.u32 %v3980_v31, 16  ;;  %v4123_v35 = vshll.u32 %v3980_v31, 16 }
 0x2c9   : > { %v4497_v10 = vsel %vm10168_vm6, %v10626_v14, %v4108_v51  ;;  %v10672_v0 = vrot.slane %v4139_v45, 5  ;;  %8771 = vmatprep.subr.bf16.mxu1 %v9152_v25  ;;  %8824 = vmatpush3.bf16.msra.mxu0 %v9157_v61  ;;  %v4113_v22 = vrot.slane %v4112_v59, 4  ;;  %v2736_v47 = vmul.f32 %v10398_v29, %v2704_v53  ;;  %v10707_v45 = vld [vmem:[#allocation2 + $0x3c] sm:$0xf] }
 0x2ca   : > { %v3545_v7 = vsel %vm10123_vm3, %v3540_v38, %v3544_v46  ;;  %v3553_v48 = vrot.slane %v3551_v17, 4  ;;  %v4122_v57 = vrot.slane %v4120_v37, 4  ;;  %v4125_v12 = vrot.slane %v4123_v35, 5  ;;  %v10728_v35 = vld [vmem:[#allocation2 + $0x4c] sm:$0xf] }
 0x2cb   : > { %v3981_v14 = vsel %vm10130_vm4, %v10614_v52, %v3545_v7  ;;  %v3554_v5 = vshll.u32 %v3393_v41, 16  ;;  %v4118_v11 = vsel %vm10123_vm3, %v4113_v22, %v10637_v34  ;;  %v7786_v24 = vpack.c.bf16 %v2736_v47, %v2736_v47  ;;  %v3394_v34 = vld [vmem:[#allocation2 + $0x48] sm:$0xe] }
 0x2cc   : > { %v4129_v16 = vshll.u32 %v3981_v14, 16  ;;  %v4133_v62 = vshrl.u32 %v3981_v14, 16  ;;  %8772 = vmatpush3.bf16.msra.mxu1 %v9152_v25  ;;  %v4498_v29 = vsel %vm10168_vm6, %v10576_v9, %v4118_v11  ;;  %v4126_v26 = vor.u32 %v4125_v12, %v4122_v57 }
 0x2cd   : > { %v3556_v36 = vrot.slane %v3554_v5, 5  ;;  %v3560_v40 = vshll.u32 %v10680_v23, 16  ;;  %8773 = vmatprep.subr.bf16.mxu1 %v9154_v21  ;;  %v10692_v61 = vcombine.low %v4497_v10, %v4498_v29  ;;  %v3139_v13 = vshrl.u32 %v7786_v24, 16 }
 0x2ce   : > { %v4131_v28 = vrot.slane %v4129_v16, 5  ;;  %v4135_v44 = vrot.slane %v4133_v62, 4  ;;  %v4127_v1 = vrot.slane %v4126_v26, 4  ;;  %v3142_v56 = vshll.u32 %v7786_v24, 16  ;;  %v3395_v26 = vld [vmem:[#allocation2 + $0x54] sm:$0xe] }
 0x2cf   : > { %v3557_v27 = vor.u32 %v3556_v36, %v3553_v48  ;;  %v3562_v9 = vrot.slane %v3560_v40, 5  ;;  %8687 = vmatprep.mubr.bf16.mxu1 %v10692_v61  ;;  %8736 = vmatmul.mubr.bf16.gmra.mxu0 %v10692_v61  ;;  %v3141_v41 = vrot.slane %v3139_v13, 7  ;;  %v3564_v63 = vshrl.u32 %v10680_v23, 16  ;;  %v9162_v13 = vld [vmem:[%s11717_s8 + $0x38] sm:$0xff]  }
 0x2d0   : > { %v4136_v19 = vor.u32 %v4135_v44, %v4131_v28  ;;  %v3570_v46 = vshll.u32 %v3375_v50, 16  ;;  %v4132_v60 = vsel %vm10123_vm3, %v4127_v1, %v4131_v28  ;;  %v3574_v25 = vshrl.u32 %v3375_v50, 16  ;;  %8774 = vmatpush3.bf16.msra.mxu1 %v9154_v21  ;;  %v10744_v44 = vld [vmem:[#allocation2 + $0x58] sm:$0xf] }
 0x2d1   : > { %v3558_v30 = vrot.slane %v3557_v27, 4  ;;  %v3579_v58 = vshrl.u32 %v3394_v34, 16  ;;  %v4499_v55 = vsel %vm10168_vm6, %v3341_v15, %v4132_v60  ;;  %v3144_v33 = vor.u32 %v3142_v56, %v3141_v41  ;;  %8775 = vmatprep.subr.bf16.mxu1 %v9156_v18  ;;  %v9159_v15 = vld [vmem:[%s11717_s8 + $0x40] sm:$0xff]   ;;  %v10754_v27 = vld [vmem:[%s11717_s8 + $0xb8] sm:$0xff]  }
 0x2d2   : > { %v4137_v6 = vrot.slane %v4136_v19, 4  ;;  %v3146_v32 = vrot.slane %v3141_v41, 4  ;;  %v3566_v17 = vrot.slane %v3564_v63, 4  ;;  %v3572_v51 = vrot.slane %v3570_v46, 5  ;;  %8825 = vmatprep.subr.bf16.mxu0 %v9159_v15 }
 0x2d3   : > { %v3563_v53 = vsel %vm10123_vm3, %v3558_v30, %v3562_v9  ;;  %v3985_v59 = vsel %vm10130_vm4, %v3375_v50, %v3574_v25  ;;  %v3145_v31 = vsel %vm10320_vm13, %v3137_v8, %v3144_v33  ;;  %v3581_v7 = vrot.slane %v3579_v58, 4  ;;  %8826 = vmatpush3.bf16.msra.mxu0 %v9159_v15  ;;  %v3345_v25 = vld [vmem:[#allocation2 + $0x48] sm:$0xf] }
 0x2d4   : > { %v4142_v38 = vsel %vm10123_vm3, %v4137_v6, %v10672_v0  ;;  %v3321_v10 = vsel %vm10328_vm14, %v3146_v32, %v3320_v20  ;;  %v3983_v37 = vsel %vm10130_vm4, %v10707_v45, %v3563_v53  ;;  %3319 = vst [vmem:[#allocation2 + $0xb8] sm:$0xf] %v3145_v31  ;;  %v3567_v0 = vor.u32 %v3566_v17, %v3562_v9  ;;  %v3377_v31 = vld [vmem:[#allocation2 + $0x5c] sm:$0x1] }
 0x2d5   : > { %v4500_v21 = vsel %vm10168_vm6, %v10614_v52, %v4142_v38  ;;  %3322 = vst [vmem:[#allocation2 + $0xbc] sm:$0x1] %v3321_v10  ;;  %v4144_v3 = vshrl.u32 %v3983_v37, 16  ;;  %v4147_v22 = vshll.u32 %v3983_v37, 16  ;;  %8776 = vmatpush3.bf16.msra.mxu1 %v9156_v18  ;;  %v4163_v8 = vshll.u32 %v3985_v59, 16  ;;  %8907 = vmatprep.subr.bf16.mxu0 %v10754_v27 }
 0x2d6   : > { %v10733_v49 = vcombine.low %v4499_v55, %v4500_v21  ;;  %v3582_v47 = vshll.u32 %v3394_v34, 16  ;;  %8777 = vmatprep.subr.bf16.mxu1 %v9158_v42  ;;  %v3568_v48 = vrot.slane %v3567_v0, 4  ;;  %v3588_v52 = vshll.u32 %v10728_v35, 16 }
 0x2d7   : > { %v4146_v14 = vrot.slane %v4144_v3, 4  ;;  %v4149_v57 = vrot.slane %v4147_v22, 5  ;;  %v3592_v5 = vshrl.u32 %v10728_v35, 16  ;;  %v3598_v11 = vshll.u32 %v3376_v4, 16 }
 0x2d8   : > { %8688 = vmatmul.mubr.bf16.gmra.mxu1 %v10733_v49  ;;  %8739 = vmatprep.mubr.bf16.mxu0 %v10733_v49  ;;  %v3584_v12 = vrot.slane %v3582_v47, 5  ;;  %v3573_v16 = vsel %vm10123_vm3, %v3568_v48, %v3572_v51  ;;  %v3590_v24 = vrot.slane %v3588_v52, 5  ;;  %v3602_v29 = vshrl.u32 %v3376_v4, 16 }
 0x2d9   : > { %v4150_v62 = vor.u32 %v4149_v57, %v4146_v14  ;;  %8778 = vmatpush3.bf16.msra.mxu1 %v9158_v42  ;;  %v3984_v50 = vsel %vm10130_vm4, %v10680_v23, %v3573_v16  ;;  %v4165_v36 = vrot.slane %v4163_v8, 5  ;;  %v3594_v28 = vrot.slane %v3592_v5, 4  ;;  %v3396_v5 = vld [vmem:[#allocation2 + $0x60] sm:$0xe] }
 0x2da   : > { %v3585_v40 = vor.u32 %v3584_v12, %v3581_v7  ;;  %v4153_v18 = vshll.u32 %v3984_v50, 16  ;;  %v4157_v1 = vshrl.u32 %v3984_v50, 16  ;;  %v3988_v56 = vsel %vm10130_vm4, %v3376_v4, %v3602_v29  ;;  %8859 = vmatprep.subr.bf16.mxu1 %v9162_v13 }
 0x2db   : > { %v4151_v34 = vrot.slane %v4150_v62, 4  ;;  %v3595_v19 = vor.u32 %v3594_v28, %v3590_v24  ;;  %v3600_v41 = vrot.slane %v3598_v11, 5  ;;  %v3607_v63 = vshrl.u32 %v3395_v26, 16  ;;  %v10780_v62 = vld [vmem:[#allocation2 + $0x54] sm:$0xf] }
 0x2dc   : > { %v3586_v9 = vrot.slane %v3585_v40, 4  ;;  %v4155_v46 = vrot.slane %v4153_v18, 5  ;;  %v4159_v60 = vrot.slane %v4157_v1, 4  ;;  %v3610_v20 = vshll.u32 %v3395_v26, 16 }
 0x2dd   : > { %v3616_v30 = vshll.u32 %v10744_v44, 16  ;;  %v3596_v6 = vrot.slane %v3595_v19, 4  ;;  %v4187_v55 = vshll.u32 %v3988_v56, 16  ;;  %v3609_v33 = vrot.slane %v3607_v63, 4 }
 0x2de   : > { %v3591_v58 = vsel %vm10123_vm3, %v3586_v9, %v3590_v24  ;;  %v4156_v32 = vsel %vm10123_vm3, %v4151_v34, %v4155_v46  ;;  %v4160_v42 = vor.u32 %v4159_v60, %v4155_v46  ;;  %v3612_v17 = vrot.slane %v3610_v20, 5  ;;  %v10791_v9 = vld [vmem:[#allocation2 + $0x64] sm:$0xf] }
 0x2df   : > { %v3986_v53 = vsel %vm10130_vm4, %v3345_v25, %v3591_v58  ;;  %v4501_v51 = vsel %vm10168_vm6, %v10707_v45, %v4156_v32  ;;  %v3601_v59 = vsel %vm10123_vm3, %v3596_v6, %v3600_v41  ;;  %v3618_v0 = vrot.slane %v3616_v30, 5 }
 0x2e0   : > { %v4168_v15 = vshrl.u32 %v3986_v53, 16  ;;  %v4171_v38 = vshll.u32 %v3986_v53, 16  ;;  %v4161_v10 = vrot.slane %v4160_v42, 4  ;;  %v3987_v37 = vsel %vm10130_vm4, %v10728_v35, %v3601_v59  ;;  %v3378_v42 = vld [vmem:[#allocation2 + $0x68] sm:$0x1] }
 0x2e1   : > { %v3613_v21 = vor.u32 %v3612_v17, %v3609_v33  ;;  %v4177_v4 = vshll.u32 %v3987_v37, 16  ;;  %v4181_v8 = vshrl.u32 %v3987_v37, 16  ;;  %v3620_v47 = vshrl.u32 %v10744_v44, 16 }
 0x2e2   : > { %v4170_v3 = vrot.slane %v4168_v15, 4  ;;  %v4173_v22 = vrot.slane %v4171_v38, 5  ;;  %v4166_v45 = vsel %vm10123_vm3, %v4161_v10, %v4165_v36  ;;  %v3626_v48 = vshll.u32 %v3377_v31, 16  ;;  %v3397_v15 = vld [vmem:[#allocation2 + $0x6c] sm:$0xe] }
 0x2e3   : > { %v3614_v7 = vrot.slane %v3613_v21, 4  ;;  %v4502_v14 = vsel %vm10168_vm6, %v10680_v23, %v4166_v45  ;;  %v4179_v52 = vrot.slane %v4177_v4, 5  ;;  %v4183_v12 = vrot.slane %v4181_v8, 4 }
 0x2e4   : > { %v4174_v57 = vor.u32 %v4173_v22, %v4170_v3  ;;  %v10778_v11 = vcombine.low %v4501_v51, %v4502_v14  ;;  %v4189_v16 = vrot.slane %v4187_v55, 5  ;;  %v3622_v29 = vrot.slane %v3620_v47, 4  ;;  %v10813_v47 = vld [vmem:[#allocation2 + $0x60] sm:$0xf] }
 0x2e5   : > { %v3619_v24 = vsel %vm10123_vm3, %v3614_v7, %v3618_v0  ;;  %v4184_v50 = vor.u32 %v4183_v12, %v4179_v52  ;;  %v3630_v36 = vshrl.u32 %v3377_v31, 16  ;;  %v3635_v34 = vshrl.u32 %v3396_v5, 16 }
 0x2e6   : > { %v4175_v26 = vrot.slane %v4174_v57, 4  ;;  %v3989_v23 = vsel %vm10130_vm4, %v10780_v62, %v3619_v24  ;;  %8691 = vmatprep.mubr.bf16.mxu1 %v10778_v11  ;;  %8740 = vmatmul.mubr.bf16.gmra.mxu0 %v10778_v11  ;;  %v3623_v40 = vor.u32 %v3622_v29, %v3618_v0  ;;  %v3628_v56 = vrot.slane %v3626_v48, 5  ;;  %v10824_v24 = vld [vmem:[#allocation2 + $0x70] sm:$0xf] }
 0x2e7   : > { %v4192_v28 = vshrl.u32 %v3989_v23, 16  ;;  %v4195_v13 = vshll.u32 %v3989_v23, 16  ;;  %v4185_v1 = vrot.slane %v4184_v50, 4  ;;  %v3638_v19 = vshll.u32 %v3396_v5, 16  ;;  %v3379_v23 = vld [vmem:[#allocation2 + $0x74] sm:$0x1] }
 0x2e8   : > { %v4180_v18 = vsel %vm10123_vm3, %v4175_v26, %v4179_v52  ;;  %v3624_v41 = vrot.slane %v3623_v40, 4  ;;  %v3991_v63 = vsel %vm10130_vm4, %v3377_v31, %v3630_v36  ;;  %v3637_v58 = vrot.slane %v3635_v34, 4 }
 0x2e9   : > { %v4194_v46 = vrot.slane %v4192_v28, 4  ;;  %v4197_v60 = vrot.slane %v4195_v13, 5  ;;  %v4190_v20 = vsel %vm10123_vm3, %v4185_v1, %v4189_v16  ;;  %v4503_v30 = vsel %vm10168_vm6, %v3345_v25, %v4180_v18 }
 0x2ea   : > { %v3640_v6 = vrot.slane %v3638_v19, 5  ;;  %v4504_v55 = vsel %vm10168_vm6, %v10728_v35, %v4190_v20  ;;  %v3629_v33 = vsel %vm10123_vm3, %v3624_v41, %v3628_v56  ;;  %v3644_v53 = vshll.u32 %v10791_v9, 16 }
 0x2eb   : > { %v4198_v32 = vor.u32 %v4197_v60, %v4194_v46  ;;  %v10805_v17 = vcombine.low %v4503_v30, %v4504_v55  ;;  %v3990_v51 = vsel %vm10130_vm4, %v10744_v44, %v3629_v33  ;;  %v4211_v25 = vshll.u32 %v3991_v63, 16 }
 0x2ec   : > { %v3641_v59 = vor.u32 %v3640_v6, %v3637_v58  ;;  %v4201_v31 = vshll.u32 %v3990_v51, 16  ;;  %v4205_v10 = vshrl.u32 %v3990_v51, 16  ;;  %v3646_v35 = vrot.slane %v3644_v53, 5  ;;  %v3398_v6 = vld [vmem:[#allocation2 + $0x78] sm:$0xe] }
 0x2ed   : > { %v4199_v38 = vrot.slane %v4198_v32, 4  ;;  %8692 = vmatmul.mubr.bf16.gmra.mxu1 %v10805_v17  ;;  %8743 = vmatprep.mubr.bf16.mxu0 %v10805_v17  ;;  %v3648_v21 = vshrl.u32 %v10791_v9, 16  ;;  %v3654_v0 = vshll.u32 %v3378_v42, 16  ;;  %v3658_v3 = vshrl.u32 %v3378_v42, 16 }
 0x2ee   : > { %v3642_v37 = vrot.slane %v3641_v59, 4  ;;  %v4203_v22 = vrot.slane %v4201_v31, 5  ;;  %v4207_v4 = vrot.slane %v4205_v10, 4  ;;  %v3663_v8 = vshrl.u32 %v3397_v15, 16 }
 0x2ef   : > { %v3666_v45 = vshll.u32 %v3397_v15, 16  ;;  %v4213_v7 = vrot.slane %v4211_v25, 5  ;;  %v3650_v14 = vrot.slane %v3648_v21, 4  ;;  %v3994_v57 = vsel %vm10130_vm4, %v3378_v42, %v3658_v3 }
 0x2f0   : > { %v3647_v48 = vsel %vm10123_vm3, %v3642_v37, %v3646_v35  ;;  %v4204_v52 = vsel %vm10123_vm3, %v4199_v38, %v4203_v22  ;;  %v4208_v12 = vor.u32 %v4207_v4, %v4203_v22  ;;  %v3656_v5 = vrot.slane %v3654_v0, 5 }
 0x2f1   : > { %v3992_v16 = vsel %vm10130_vm4, %v10813_v47, %v3647_v48  ;;  %v3651_v29 = vor.u32 %v3650_v14, %v3646_v35  ;;  %v4235_v36 = vshll.u32 %v3994_v57, 16  ;;  %v4505_v28 = vsel %vm10168_vm6, %v10780_v62, %v4204_v52  ;;  %v10853_v14 = vld [vmem:[#allocation2 + $0x7c] sm:$0xf] }
 0x2f2   : > { %v4216_v26 = vshrl.u32 %v3992_v16, 16  ;;  %v4219_v50 = vshll.u32 %v3992_v16, 16  ;;  %v4209_v40 = vrot.slane %v4208_v12, 4  ;;  %v3665_v13 = vrot.slane %v3663_v8, 4 }
 0x2f3   : > { %v3668_v34 = vrot.slane %v3666_v45, 5  ;;  %v3652_v18 = vrot.slane %v3651_v29, 4  ;;  %v3672_v19 = vshll.u32 %v10824_v24, 16  ;;  %v3676_v46 = vshrl.u32 %v10824_v24, 16  ;;  %v3380_v29 = vld [vmem:[#allocation2 + $0x80] sm:$0x1] }
 0x2f4   : > { %v4218_v1 = vrot.slane %v4216_v26, 4  ;;  %v4221_v56 = vrot.slane %v4219_v50, 5  ;;  %v4214_v41 = vsel %vm10123_vm3, %v4209_v40, %v4213_v7  ;;  %v3682_v60 = vshll.u32 %v3379_v23, 16 }
 0x2f5   : > { %v3669_v63 = vor.u32 %v3668_v34, %v3665_v13  ;;  %v4506_v20 = vsel %vm10168_vm6, %v10744_v44, %v4214_v41  ;;  %v3657_v62 = vsel %vm10123_vm3, %v3652_v18, %v3656_v5  ;;  %v3674_v58 = vrot.slane %v3672_v19, 5  ;;  %v3351_v44 = vld [vmem:[#allocation2 + $0x6c] sm:$0xf] }
 0x2f6   : > { %v4222_v30 = vor.u32 %v4221_v56, %v4218_v1  ;;  %v10838_v55 = vcombine.low %v4505_v28, %v4506_v20  ;;  %v3993_v33 = vsel %vm10130_vm4, %v10791_v9, %v3657_v62  ;;  %v3678_v42 = vrot.slane %v3676_v46, 4 }
 0x2f7   : > { %v3670_v32 = vrot.slane %v3669_v63, 4  ;;  %v4225_v51 = vshll.u32 %v3993_v33, 16  ;;  %v4229_v25 = vshrl.u32 %v3993_v33, 16  ;;  %v3684_v59 = vrot.slane %v3682_v60, 5  ;;  %v3399_v60 = vld [vmem:[#allocation2 + $0x84] sm:$0xe] }
 0x2f8   : > { %v4223_v53 = vrot.slane %v4222_v30, 4  ;;  %8695 = vmatprep.mubr.bf16.mxu1 %v10838_v55  ;;  %8744 = vmatmul.mubr.bf16.gmra.mxu0 %v10838_v55  ;;  %v3679_v38 = vor.u32 %v3678_v42, %v3674_v58  ;;  %v3686_v31 = vshrl.u32 %v3379_v23, 16  ;;  %v3691_v10 = vshrl.u32 %v3398_v6, 16 }
 0x2f9   : > { %v3675_v15 = vsel %vm10123_vm3, %v3670_v32, %v3674_v58  ;;  %v4227_v35 = vrot.slane %v4225_v51, 5  ;;  %v4231_v37 = vrot.slane %v4229_v25, 4  ;;  %v3694_v0 = vshll.u32 %v3398_v6, 16 }
 0x2fa   : > { %v3995_v21 = vsel %vm10130_vm4, %v3351_v44, %v3675_v15  ;;  %v3680_v3 = vrot.slane %v3679_v38, 4  ;;  %v3997_v22 = vsel %vm10130_vm4, %v3379_v23, %v3686_v31  ;;  %v4237_v48 = vrot.slane %v4235_v36, 5 }
 0x2fb   : > { %v4240_v4 = vshrl.u32 %v3995_v21, 16  ;;  %v4243_v8 = vshll.u32 %v3995_v21, 16  ;;  %v4228_v45 = vsel %vm10123_vm3, %v4223_v53, %v4227_v35  ;;  %v4232_v7 = vor.u32 %v4231_v37, %v4227_v35 }
 0x2fc   : > { %v3693_v57 = vrot.slane %v3691_v10, 4  ;;  %v3685_v52 = vsel %vm10123_vm3, %v3680_v3, %v3684_v59  ;;  %v4259_v16 = vshll.u32 %v3997_v22, 16  ;;  %v4507_v50 = vsel %vm10168_vm6, %v10813_v47, %v4228_v45  ;;  %v10878_v59 = vld [vmem:[#allocation2 + $0x88] sm:$0xf] }
 0x2fd   : > { %v4242_v12 = vrot.slane %v4240_v4, 4  ;;  %v4245_v5 = vrot.slane %v4243_v8, 5  ;;  %v4233_v26 = vrot.slane %v4232_v7, 4  ;;  %v3996_v23 = vsel %vm10130_vm4, %v10824_v24, %v3685_v52  ;;  %v3381_v52 = vld [vmem:[#allocation2 + $0x8c] sm:$0x1] }
 0x2fe   : > { %v3696_v36 = vrot.slane %v3694_v0, 5  ;;  %v4249_v28 = vshll.u32 %v3996_v23, 16  ;;  %v4253_v13 = vshrl.u32 %v3996_v23, 16  ;;  %v3700_v34 = vshll.u32 %v10853_v14, 16 }
 0x2ff   : > { %v4246_v40 = vor.u32 %v4245_v5, %v4242_v12  ;;  %v4238_v18 = vsel %vm10123_vm3, %v4233_v26, %v4237_v48  ;;  %v3704_v56 = vshrl.u32 %v10853_v14, 16  ;;  %v3710_v19 = vshll.u32 %v3380_v29, 16  ;;  %v3400_v26 = vld [vmem:[#allocation2 + $0x90] sm:$0xe] }
 0x300   : > { %v3697_v1 = vor.u32 %v3696_v36, %v3693_v57  ;;  %v4508_v47 = vsel %vm10168_vm6, %v10791_v9, %v4238_v18  ;;  %v4251_v63 = vrot.slane %v4249_v28, 5  ;;  %v4255_v46 = vrot.slane %v4253_v13, 4  ;;  %v3353_v9 = vld [vmem:[#allocation2 + $0x78] sm:$0xf] }
 0x301   : > { %v4247_v41 = vrot.slane %v4246_v40, 4  ;;  %v10870_v20 = vcombine.low %v4507_v50, %v4508_v47  ;;  %v3702_v30 = vrot.slane %v3700_v34, 5  ;;  %v3706_v58 = vrot.slane %v3704_v56, 4 }
 0x302   : > { %v3698_v62 = vrot.slane %v3697_v1, 4  ;;  %v4256_v33 = vor.u32 %v4255_v46, %v4251_v63  ;;  %v4261_v32 = vrot.slane %v4259_v16, 5  ;;  %v3714_v42 = vshrl.u32 %v3380_v29, 16 }
 0x303   : > { %v4252_v6 = vsel %vm10123_vm3, %v4247_v41, %v4251_v63  ;;  %8696 = vmatmul.mubr.bf16.gmra.mxu1 %v10870_v20  ;;  %8747 = vmatprep.mubr.bf16.mxu0 %v10870_v20  ;;  %v3707_v51 = vor.u32 %v3706_v58, %v3702_v30  ;;  %v3712_v25 = vrot.slane %v3710_v19, 5  ;;  %v3719_v15 = vshrl.u32 %v3399_v60, 16  ;;  %v10902_v41 = vld [vmem:[#allocation2 + $0x84] sm:$0xf] }
 0x304   : > { %v3703_v53 = vsel %vm10123_vm3, %v3698_v62, %v3702_v30  ;;  %v4257_v38 = vrot.slane %v4256_v33, 4  ;;  %v4509_v31 = vsel %vm10168_vm6, %v3351_v44, %v4252_v6  ;;  %v3722_v35 = vshll.u32 %v3399_v60, 16  ;;  %v10913_v33 = vld [vmem:[#allocation2 + $0x94] sm:$0xf] }
 0x305   : > { %v3998_v10 = vsel %vm10130_vm4, %v3353_v9, %v3703_v53  ;;  %v3708_v37 = vrot.slane %v3707_v51, 4  ;;  %v4000_v21 = vsel %vm10130_vm4, %v3380_v29, %v3714_v42  ;;  %v3721_v4 = vrot.slane %v3719_v15, 4 }
 0x306   : > { %v4264_v0 = vshrl.u32 %v3998_v10, 16  ;;  %v4267_v3 = vshll.u32 %v3998_v10, 16  ;;  %v4262_v22 = vsel %vm10123_vm3, %v4257_v38, %v4261_v32  ;;  %v3724_v8 = vrot.slane %v3722_v35, 5 }
 0x307   : > { %v3728_v45 = vshll.u32 %v10878_v59, 16  ;;  %v4510_v44 = vsel %vm10168_vm6, %v10824_v24, %v4262_v22  ;;  %v3713_v7 = vsel %vm10123_vm3, %v3708_v37, %v3712_v25  ;;  %v4283_v16 = vshll.u32 %v4000_v21, 16  ;;  %v3382_v25 = vld [vmem:[#allocation2 + $0x98] sm:$0x1] }
 0x308   : > { %v4266_v48 = vrot.slane %v4264_v0, 4  ;;  %v4269_v57 = vrot.slane %v4267_v3, 5  ;;  %v10894_v12 = vcombine.low %v4509_v31, %v4510_v44  ;;  %v3999_v5 = vsel %vm10130_vm4, %v10853_v14, %v3713_v7 }
 0x309   : > { %v3725_v29 = vor.u32 %v3724_v8, %v3721_v4  ;;  %v4273_v23 = vshll.u32 %v3999_v5, 16  ;;  %v4277_v36 = vshrl.u32 %v3999_v5, 16  ;;  %v3730_v40 = vrot.slane %v3728_v45, 5 }
 0x30a   : > { %v4270_v50 = vor.u32 %v4269_v57, %v4266_v48  ;;  %8699 = vmatprep.mubr.bf16.mxu1 %v10894_v12  ;;  %8748 = vmatmul.mubr.bf16.gmra.mxu0 %v10894_v12  ;;  %v3732_v28 = vshrl.u32 %v10878_v59, 16  ;;  %v3738_v13 = vshll.u32 %v3381_v52, 16  ;;  %v3742_v34 = vshrl.u32 %v3381_v52, 16  ;;  %v3401_v48 = vld [vmem:[#allocation2 + $0x9c] sm:$0xe] }
 0x30b   : > { %v3726_v24 = vrot.slane %v3725_v29, 4  ;;  %v4275_v1 = vrot.slane %v4273_v23, 5  ;;  %v4279_v56 = vrot.slane %v4277_v36, 4  ;;  %v3747_v19 = vshrl.u32 %v3400_v26, 16  ;;  %v10931_v36 = vld [vmem:[#allocation2 + $0xa0] sm:$0xf] }
 0x30c   : > { %v4271_v18 = vrot.slane %v4270_v50, 4  ;;  %v4285_v47 = vrot.slane %v4283_v16, 5  ;;  %v3734_v46 = vrot.slane %v3732_v28, 4  ;;  %v4003_v60 = vsel %vm10130_vm4, %v3381_v52, %v3742_v34 }
 0x30d   : > { %v3731_v63 = vsel %vm10123_vm3, %v3726_v24, %v3730_v40  ;;  %v4280_v30 = vor.u32 %v4279_v56, %v4275_v1  ;;  %v3740_v58 = vrot.slane %v3738_v13, 5  ;;  %v4307_v51 = vshll.u32 %v4003_v60, 16  ;;  %v3357_v56 = vld [vmem:[#allocation2 + $0x90] sm:$0xf] }
 0x30e   : > { %v4276_v62 = vsel %vm10123_vm3, %v4271_v18, %v4275_v1  ;;  %v4001_v6 = vsel %vm10130_vm4, %v10902_v41, %v3731_v63  ;;  %v3735_v32 = vor.u32 %v3734_v46, %v3730_v40  ;;  %v3749_v31 = vrot.slane %v3747_v19, 4 }
 0x30f   : > { %v4288_v42 = vshrl.u32 %v4001_v6, 16  ;;  %v4291_v53 = vshll.u32 %v4001_v6, 16  ;;  %v4281_v15 = vrot.slane %v4280_v30, 4  ;;  %v4511_v38 = vsel %vm10168_vm6, %v3353_v9, %v4276_v62 }
 0x310   : > { %v3750_v10 = vshll.u32 %v3400_v26, 16  ;;  %v3736_v35 = vrot.slane %v3735_v32, 4  ;;  %v3756_v0 = vshll.u32 %v10913_v33, 16  ;;  %v3760_v4 = vshrl.u32 %v10913_v33, 16 }
 0x311   : > { %v4290_v37 = vrot.slane %v4288_v42, 4  ;;  %v4293_v21 = vrot.slane %v4291_v53, 5  ;;  %v4286_v3 = vsel %vm10123_vm3, %v4281_v15, %v4285_v47  ;;  %v3766_v8 = vshll.u32 %v3382_v25, 16 }
 0x312   : > { %v3752_v22 = vrot.slane %v3750_v10, 5  ;;  %v4512_v45 = vsel %vm10168_vm6, %v10853_v14, %v4286_v3  ;;  %v3741_v9 = vsel %vm10123_vm3, %v3736_v35, %v3740_v58  ;;  %v3758_v7 = vrot.slane %v3756_v0, 5 }
 0x313   : > { %v4294_v44 = vor.u32 %v4293_v21, %v4290_v37  ;;  %v10926_v57 = vcombine.low %v4511_v38, %v4512_v45  ;;  %v4002_v52 = vsel %vm10130_vm4, %v10878_v59, %v3741_v9  ;;  %v3762_v16 = vrot.slane %v3760_v4, 4  ;;  %v3383_v21 = vld [vmem:[#allocation2 + $0xa4] sm:$0x1] }
 0x314   : > { %v3753_v5 = vor.u32 %v3752_v22, %v3749_v31  ;;  %v4297_v26 = vshll.u32 %v4002_v52, 16  ;;  %v4301_v50 = vshrl.u32 %v4002_v52, 16  ;;  %v4309_v23 = vrot.slane %v4307_v51, 5 }
 0x315   : > { %v4295_v29 = vrot.slane %v4294_v44, 4  ;;  %8700 = vmatmul.mubr.bf16.gmra.mxu1 %v10926_v57  ;;  %8751 = vmatprep.mubr.bf16.mxu0 %v10926_v57  ;;  %v3763_v40 = vor.u32 %v3762_v16, %v3758_v7  ;;  %v3770_v24 = vshrl.u32 %v3382_v25, 16  ;;  %v3775_v28 = vshrl.u32 %v3401_v48, 16 }
 0x316   : > { %v3754_v14 = vrot.slane %v3753_v5, 4  ;;  %v4299_v13 = vrot.slane %v4297_v26, 5  ;;  %v4303_v34 = vrot.slane %v4301_v50, 4  ;;  %v3768_v18 = vrot.slane %v3766_v8, 5  ;;  %v3402_v8 = vld [vmem:[#allocation2 + $0xa8] sm:$0xe] }
 0x317   : > { %v3778_v1 = vshll.u32 %v3401_v48, 16  ;;  %v3764_v47 = vrot.slane %v3763_v40, 4  ;;  %v4006_v63 = vsel %vm10130_vm4, %v3382_v25, %v3770_v24  ;;  %v3784_v46 = vshll.u32 %v10931_v36, 16 }
 0x318   : > { %v3759_v19 = vsel %vm10123_vm3, %v3754_v14, %v3758_v7  ;;  %v4300_v60 = vsel %vm10123_vm3, %v4295_v29, %v4299_v13  ;;  %v4304_v62 = vor.u32 %v4303_v34, %v4299_v13  ;;  %v3777_v58 = vrot.slane %v3775_v28, 4  ;;  %v3359_v14 = vld [vmem:[#allocation2 + $0x9c] sm:$0xf] }
 0x319   : > { %v4004_v30 = vsel %vm10130_vm4, %v3357_v56, %v3759_v19  ;;  %v3769_v6 = vsel %vm10123_vm3, %v3764_v47, %v3768_v18  ;;  %v4331_v53 = vshll.u32 %v4006_v63, 16  ;;  %v4513_v25 = vsel %vm10168_vm6, %v10902_v41, %v4300_v60 }
 0x31a   : > { %v4312_v32 = vshrl.u32 %v4004_v30, 16  ;;  %v4315_v42 = vshll.u32 %v4004_v30, 16  ;;  %v4305_v51 = vrot.slane %v4304_v62, 4  ;;  %v4005_v15 = vsel %vm10130_vm4, %v10913_v33, %v3769_v6  ;;  %v10974_v62 = vld [vmem:[#allocation2 + $0xac] sm:$0xf] }
 0x31b   : > { %v3780_v38 = vrot.slane %v3778_v1, 5  ;;  %v4321_v35 = vshll.u32 %v4005_v15, 16  ;;  %v4325_v37 = vshrl.u32 %v4005_v15, 16  ;;  %v3786_v22 = vrot.slane %v3784_v46, 5 }
 0x31c   : > { %v4314_v31 = vrot.slane %v4312_v32, 4  ;;  %v4317_v10 = vrot.slane %v4315_v42, 5  ;;  %v4310_v0 = vsel %vm10123_vm3, %v4305_v51, %v4309_v23  ;;  %v3788_v4 = vshrl.u32 %v10931_v36, 16  ;;  %v3384_v51 = vld [vmem:[#allocation2 + $0xb0] sm:$0x1] }
 0x31d   : > { %v3781_v3 = vor.u32 %v3780_v38, %v3777_v58  ;;  %v4514_v41 = vsel %vm10168_vm6, %v10878_v59, %v4310_v0  ;;  %v4323_v9 = vrot.slane %v4321_v35, 5  ;;  %v4327_v44 = vrot.slane %v4325_v37, 4 }
 0x31e   : > { %v4318_v45 = vor.u32 %v4317_v10, %v4314_v31  ;;  %v10958_v7 = vcombine.low %v4513_v25, %v4514_v41  ;;  %v3790_v52 = vrot.slane %v3788_v4, 4  ;;  %v3794_v5 = vshll.u32 %v3383_v21, 16 }
 0x31f   : > { %v3782_v48 = vrot.slane %v3781_v3, 4  ;;  %v4328_v29 = vor.u32 %v4327_v44, %v4323_v9  ;;  %v3798_v26 = vshrl.u32 %v3383_v21, 16  ;;  %v3803_v50 = vshrl.u32 %v3402_v8, 16 }
 0x320   : > { %v4319_v16 = vrot.slane %v4318_v45, 4  ;;  %8703 = vmatprep.mubr.bf16.mxu1 %v10958_v7  ;;  %8752 = vmatmul.mubr.bf16.gmra.mxu0 %v10958_v7  ;;  %v4333_v23 = vrot.slane %v4331_v53, 5  ;;  %v3791_v40 = vor.u32 %v3790_v52, %v3786_v22  ;;  %v3806_v24 = vshll.u32 %v3402_v8, 16 }
 0x321   : > { %v3787_v59 = vsel %vm10123_vm3, %v3782_v48, %v3786_v22  ;;  %v4329_v13 = vrot.slane %v4328_v29, 4  ;;  %v3796_v34 = vrot.slane %v3794_v5, 5  ;;  %v4009_v19 = vsel %vm10130_vm4, %v3383_v21, %v3798_v26  ;;  %v10994_v29 = vld [vmem:[#allocation2 + $0xa8] sm:$0xf] }
 0x322   : > { %v4324_v28 = vsel %vm10123_vm3, %v4319_v16, %v4323_v9  ;;  %v4007_v18 = vsel %vm10130_vm4, %v3359_v14, %v3787_v59  ;;  %v3792_v1 = vrot.slane %v3791_v40, 4  ;;  %v3805_v30 = vrot.slane %v3803_v50, 4 }
 0x323   : > { %v4336_v47 = vshrl.u32 %v4007_v18, 16  ;;  %v4339_v63 = vshll.u32 %v4007_v18, 16  ;;  %v4334_v46 = vsel %vm10123_vm3, %v4329_v13, %v4333_v23  ;;  %v4515_v60 = vsel %vm10168_vm6, %v3357_v56, %v4324_v28  ;;  %v10998_v23 = vld [vmem:[#allocation2 + $0xb8] sm:$0xf]  ;;  %v3385_v13 = vld [vmem:[#allocation2 + $0xbc] sm:$0x1] }
 0x324   : > { %v3808_v58 = vrot.slane %v3806_v24, 5  ;;  %v4516_v6 = vsel %vm10168_vm6, %v10913_v33, %v4334_v46  ;;  %v3797_v32 = vsel %vm10123_vm3, %v3792_v1, %v3796_v34  ;;  %v4355_v15 = vshll.u32 %v4009_v19, 16  ;;  %v3403_v33 = vld [vmem:[#allocation2 + $0xb4] sm:$0xe] }
 0x325   : > { %v4338_v42 = vrot.slane %v4336_v47, 4  ;;  %v4341_v53 = vrot.slane %v4339_v63, 5  ;;  %v10981_v25 = vcombine.low %v4515_v60, %v4516_v6  ;;  %v4008_v56 = vsel %vm10130_vm4, %v10931_v36, %v3797_v32 }
 0x326   : > { %v3809_v38 = vor.u32 %v3808_v58, %v3805_v30  ;;  %v4345_v10 = vshll.u32 %v4008_v56, 16  ;;  %v4349_v35 = vshrl.u32 %v4008_v56, 16  ;;  %v3812_v37 = vshll.u32 %v10974_v62, 16  ;;  %v3404_v56 = vld [vmem:[#allocation2 + $0xc0] sm:$0xe] }
 0x327   : > { %v4342_v31 = vor.u32 %v4341_v53, %v4338_v42  ;;  %8704 = vmatmul.mubr.bf16.gmra.mxu1 %v10981_v25  ;;  %8755 = vmatprep.mubr.bf16.mxu0 %v10981_v25  ;;  %v3816_v0 = vshrl.u32 %v10974_v62, 16  ;;  %v3822_v3 = vshll.u32 %v3384_v51, 16  ;;  %v3826_v22 = vshrl.u32 %v3384_v51, 16 }
 0x328   : > { %v3810_v21 = vrot.slane %v3809_v38, 4  ;;  %v4347_v8 = vrot.slane %v4345_v10, 5  ;;  %v4351_v41 = vrot.slane %v4349_v35, 4  ;;  %v3814_v45 = vrot.slane %v3812_v37, 5 }
 0x329   : > { %v4343_v4 = vrot.slane %v4342_v31, 4  ;;  %v4357_v9 = vrot.slane %v4355_v15, 5  ;;  %v3818_v44 = vrot.slane %v3816_v0, 4  ;;  %v4012_v48 = vsel %vm10130_vm4, %v3384_v51, %v3826_v22  ;;  %v11021_v22 = vld [vmem:[#allocation2 + $0xc4] sm:$0xf] }
 0x32a   : > { %v3831_v52 = vshrl.u32 %v3403_v33, 16  ;;  %v4352_v16 = vor.u32 %v4351_v41, %v4347_v8  ;;  %v3815_v26 = vsel %vm10123_vm3, %v3810_v21, %v3814_v45  ;;  %v3824_v50 = vrot.slane %v3822_v3, 5 }
 0x32b   : > { %v4348_v5 = vsel %vm10123_vm3, %v4343_v4, %v4347_v8  ;;  %v3819_v40 = vor.u32 %v3818_v44, %v3814_v45  ;;  %v4010_v24 = vsel %vm10130_vm4, %v10994_v29, %v3815_v26  ;;  %v4379_v28 = vshll.u32 %v4012_v48, 16 }
 0x32c   : > { %v4517_v59 = vsel %vm10168_vm6, %v3359_v14, %v4348_v5  ;;  %v4353_v34 = vrot.slane %v4352_v16, 4  ;;  %v4360_v18 = vshrl.u32 %v4010_v24, 16  ;;  %v4363_v1 = vshll.u32 %v4010_v24, 16 }
 0x32d   : > { %v3833_v19 = vrot.slane %v3831_v52, 4  ;;  %v3820_v47 = vrot.slane %v3819_v40, 4  ;;  %v3834_v63 = vshll.u32 %v3403_v33, 16  ;;  %v3840_v46 = vshll.u32 %v10998_v23, 16 }
 0x32e   : > { %v3844_v60 = vshrl.u32 %v10998_v23, 16  ;;  %v4358_v14 = vsel %vm10123_vm3, %v4353_v34, %v4357_v9  ;;  %v4362_v30 = vrot.slane %v4360_v18, 4  ;;  %v4365_v58 = vrot.slane %v4363_v1, 5 }
 0x32f   : > { %v3850_v6 = vshll.u32 %v3385_v13, 16  ;;  %v4518_v32 = vsel %vm10168_vm6, %v10931_v36, %v4358_v14  ;;  %v3825_v42 = vsel %vm10123_vm3, %v3820_v47, %v3824_v50  ;;  %v3836_v53 = vrot.slane %v3834_v63, 5  ;;  %v3363_v50 = vld [vmem:[#allocation2 + $0xb4] sm:$0xf] }
 0x330   : > { %v3842_v51 = vrot.slane %v3840_v46, 5  ;;  %v11014_v15 = vcombine.low %v4517_v59, %v4518_v32  ;;  %v4011_v38 = vsel %vm10130_vm4, %v10974_v62, %v3825_v42  ;;  %v4366_v31 = vor.u32 %v4365_v58, %v4362_v30 }
 0x331   : > { %v3846_v10 = vrot.slane %v3844_v60, 4  ;;  %v4369_v35 = vshll.u32 %v4011_v38, 16  ;;  %v4373_v37 = vshrl.u32 %v4011_v38, 16  ;;  %v4381_v33 = vrot.slane %v4379_v28, 5 }
 0x332   : > { %v3837_v21 = vor.u32 %v3836_v53, %v3833_v19  ;;  %8707 = vmatprep.mubr.bf16.mxu1 %v11014_v15  ;;  %8756 = vmatmul.mubr.bf16.gmra.mxu0 %v11014_v15  ;;  %v4367_v36 = vrot.slane %v4366_v31, 4  ;;  %v3854_v3 = vshrl.u32 %v3385_v13, 16  ;;  %v3859_v4 = vshrl.u32 %v3404_v56, 16 }
 0x333   : > { %v3847_v0 = vor.u32 %v3846_v10, %v3842_v51  ;;  %v4371_v8 = vrot.slane %v4369_v35, 5  ;;  %v4375_v41 = vrot.slane %v4373_v37, 4  ;;  %v3862_v9 = vshll.u32 %v3404_v56, 16  ;;  %v3386_v56 = vld [vmem:[#allocation2 + $0xc8] sm:$0x1] }
 0x334   : > { %v3838_v45 = vrot.slane %v3837_v21, 4  ;;  %v3852_v48 = vrot.slane %v3850_v6, 5  ;;  %v4015_v52 = vsel %vm10130_vm4, %v3385_v13, %v3854_v3  ;;  %v3861_v5 = vrot.slane %v3859_v4, 4  ;;  %v3365_v37 = vld [vmem:[#allocation2 + $0xc0] sm:$0xf] }
 0x335   : > { %v3848_v44 = vrot.slane %v3847_v0, 4  ;;  %v4372_v16 = vsel %vm10123_vm3, %v4367_v36, %v4371_v8  ;;  %v4376_v26 = vor.u32 %v4375_v41, %v4371_v8  ;;  %v3868_v40 = vshll.u32 %v11021_v22, 16 }
 0x336   : > { %v3843_v59 = vsel %vm10123_vm3, %v3838_v45, %v3842_v51  ;;  %v4403_v34 = vshll.u32 %v4015_v52, 16  ;;  %v3864_v18 = vrot.slane %v3862_v9, 5  ;;  %v4519_v63 = vsel %vm10168_vm6, %v10994_v29, %v4372_v16 }
 0x337   : > { %v3853_v24 = vsel %vm10123_vm3, %v3848_v44, %v3852_v48  ;;  %v4013_v28 = vsel %vm10130_vm4, %v3363_v50, %v3843_v59  ;;  %v4377_v13 = vrot.slane %v4376_v26, 4  ;;  %v3870_v32 = vrot.slane %v3868_v40, 5 }
 0x338   : > { %v4014_v1 = vsel %vm10130_vm4, %v10998_v23, %v3853_v24  ;;  %v4384_v19 = vshrl.u32 %v4013_v28, 16  ;;  %v4387_v47 = vshll.u32 %v4013_v28, 16  ;;  %v3865_v14 = vor.u32 %v3864_v18, %v3861_v5  ;;  %v9160_v24 = vld [vmem:[%s9532_s27 + $0x8] sm:$0xff]  }
 0x339   : > { %v4393_v46 = vshll.u32 %v4014_v1, 16  ;;  %v4397_v60 = vshrl.u32 %v4014_v1, 16  ;;  %v4382_v30 = vsel %vm10123_vm3, %v4377_v13, %v4381_v33  ;;  %v3872_v10 = vshrl.u32 %v11021_v22, 16 }
 0x33a   : > { %v4386_v58 = vrot.slane %v4384_v19, 4  ;;  %v4389_v6 = vrot.slane %v4387_v47, 5  ;;  %v4520_v42 = vsel %vm10168_vm6, %v10974_v62, %v4382_v30  ;;  %v3866_v38 = vrot.slane %v3865_v14, 4  ;;  %v9164_v30 = vld [vmem:[%s9532_s27 + $0x18] sm:$0xff]  }
 0x33b   : > { %v4395_v53 = vrot.slane %v4393_v46, 5  ;;  %v4399_v51 = vrot.slane %v4397_v60, 4  ;;  %v11045_v31 = vcombine.low %v4519_v63, %v4520_v42  ;;  %v3874_v62 = vrot.slane %v3872_v10, 4  ;;  %v9161_v60 = vld [vmem:[%s9532_s27 + $0x10] sm:$0xff]   ;;  %v9165_v10 = vld [vmem:[%s9532_s27 + $0x20] sm:$0xff]  }
 0x33c   : > { %v4390_v29 = vor.u32 %v4389_v6, %v4386_v58  ;;  %v3871_v33 = vsel %vm10123_vm3, %v3866_v38, %v3870_v32  ;;  %v3878_v36 = vshll.u32 %v3386_v56, 16  ;;  %v4405_v4 = vrot.slane %v4403_v34, 5  ;;  %v9167_v58 = vld [vmem:[%s11717_s8 + $0xb0] sm:$0xff]   ;;  %v9171_v38 = vld [vmem:[%s11717_s8 + $0xa8] sm:$0xff]  }
 0x33d   : > { %v4400_v35 = vor.u32 %v4399_v51, %v4395_v53  ;;  %8708 = vmatmul.mubr.bf16.gmra.mxu1 %v11045_v31  ;;  %8759 = vmatprep.mubr.bf16.mxu0 %v11045_v31  ;;  %v4016_v0 = vsel %vm10130_vm4, %v3365_v37, %v3871_v33  ;;  %v3875_v9 = vor.u32 %v3874_v62, %v3870_v32  ;;  %v3882_v48 = vshrl.u32 %v3386_v56, 16  ;;  %v9169_v33 = vld [vmem:[%s9532_s27 + $0x30] sm:$0xff]  }
 0x33e   : > { %v4391_v21 = vrot.slane %v4390_v29, 4  ;;  %v4408_v8 = vshrl.u32 %v4016_v0, 16  ;;  %v4411_v41 = vshll.u32 %v4016_v0, 16  ;;  %v3880_v40 = vrot.slane %v3878_v36, 5  ;;  %v9183_v62 = vld [vmem:[%s11717_s8 + $0x90] sm:$0xff]   ;;  %v9170_v36 = vld [vmem:[%s11717_s8 + $0x28] sm:$0xff]  }
 0x33f   : > { %v4401_v3 = vrot.slane %v4400_v35, 4  ;;  %v3876_v59 = vrot.slane %v3875_v9, 4  ;;  %v9166_v35 = vld [vmem:[%s11717_s8 + $0x30] sm:$0xff]   ;;  %v9174_v0 = vld [vmem:[%s11717_s8 + $0x20] sm:$0xff]  }
 0x340   : > { %v4396_v45 = vsel %vm10123_vm3, %v4391_v21, %v4395_v53  ;;  %v4410_v52 = vrot.slane %v4408_v8, 4  ;;  %v4413_v5 = vrot.slane %v4411_v41, 5  ;;  %v9381_v21 = vld [vmem:[%s11717_s8 + $0x38] sm:$0xff]  }
 0x341   : > { %v4406_v44 = vsel %vm10123_vm3, %v4401_v3, %v4405_v4  ;;  %v4521_v16 = vsel %vm10168_vm6, %v3363_v50, %v4396_v45  ;;  %v3881_v34 = vsel %vm10123_vm3, %v3876_v59, %v3880_v40  ;;  %v9187_v3 = vld [vmem:[%s11717_s8 + $0x88] sm:$0xff]   ;;  %v9173_v4 = vld [vmem:[%s9532_s27 + $0x40] sm:$0xff]   ;;  %v9182_v59 = vld [vmem:[%s11717_s8 + $0x10] sm:$0xff]  }
 0x342   : > { %v4522_v26 = vsel %vm10168_vm6, %v10998_v23, %v4406_v44  ;;  %v4414_v18 = vor.u32 %v4413_v5, %v4410_v52  ;;  %v4017_v50 = vsel %vm10130_vm4, %v11021_v22, %v3881_v34  ;;  %v4018_v23 = vsel %vm10130_vm4, %v3386_v56, %v3882_v48  ;;  %v9176_v45 = vld [vmem:[%s9532_s27 + $0x48] sm:$0xff]   ;;  %v9191_v48 = vld [vmem:[%s11717_s8 + $0x80] sm:$0xff]   ;;  %v9178_v52 = vld [vmem:[%s11717_s8 + $0x18] sm:$0xff]  }
 0x343   : > { %v11064_v28 = vcombine.low %v4521_v16, %v4522_v26  ;;  %v4417_v13 = vshll.u32 %v4017_v50, 16  ;;  %v4421_v1 = vshrl.u32 %v4017_v50, 16  ;;  %v4427_v46 = vshll.u32 %v4018_v23, 16  ;;  %v3387_v26 = vld [vmem:[#allocation2 + $0xd4] sm:$0x1]  ;;  %v9177_v40 = vld [vmem:[%s9532_s27 + $0x50] sm:$0xff]  }
 0x344   : > { %v4415_v19 = vrot.slane %v4414_v18, 4  ;;  %v9180_v34 = vld [vmem:[%s9532_s27 + $0x58] sm:$0xff]   ;;  %v3906_v50 = vshll.u32 %v3387_v26, 16  ;;  %v9186_v23 = vld [vmem:[%s11717_s8 + $0x8] sm:$0xff]  }
 0x345   : > { %8711 = vmatprep.mubr.bf16.mxu1 %v11064_v28  ;;  %8760 = vmatmul.mubr.bf16.gmra.mxu0 %v11064_v28  ;;  %v4419_v47 = vrot.slane %v4417_v13, 5  ;;  %v4423_v63 = vrot.slane %v4421_v1, 4  ;;  %v4429_v42 = vrot.slane %v4427_v46, 5  ;;  %v9184_v46 = vld [vmem:[%s9532_s27 + $0x68] sm:$0xff]  }
 0x346   : > { %8827 = vmatprep.mubr.bf16.mxu0 %v9160_v24 }
 0x347   : > { %v4424_v14 = vor.u32 %v4423_v63, %v4419_v47  ;;  %v4420_v6 = vsel %vm10123_vm3, %v4415_v19, %v4419_v47  ;;  %v3908_v19 = vrot.slane %v3906_v50, 5  ;;  %v9181_v47 = vld [vmem:[%s9532_s27 + $0x60] sm:$0xff]  }
 0x348   : > { %v4523_v51 = vsel %vm10168_vm6, %v3365_v37, %v4420_v6  ;;  %v9179_v37 = vld [vmem:[%s11717_s8 + $0x98] sm:$0xff]  }
 0x349   : > { %v4425_v32 = vrot.slane %v4424_v14, 4 }
 0x34b   : > { %v4430_v53 = vsel %vm10123_vm3, %v4425_v32, %v4429_v42 }
 0x34c   : > { %v4524_v56 = vsel %vm10168_vm6, %v11021_v22, %v4430_v53  ;;  %v9175_v22 = vld [vmem:[%s11717_s8 + $0xa0] sm:$0xff]   ;;  %v9185_v53 = vld [vmem:[%s9532_s27 + $0x70] sm:$0xff]  }
 0x34d   : > { %8828 = vmatmul.mubr.bf16.vlgmr.msra.gmra.mxu0 %v9161_v60  ;;  %v11093_v29 = vcombine.low %v4523_v51, %v4524_v56  ;;  %v9188_v56 = vld [vmem:[%s9532_s27 + $0x78] sm:$0xff]  }
 0x34e   : > { %8908 = vmatpush3.bf16.msra.mxu0 %v10754_v27  ;;  %8831 = vmatprep.mubr.bf16.mxu0 %v9164_v30  ;;  %v9168_v27 = vld [vmem:[%s9532_s27 + $0x28] sm:$0xff]  }
 0x34f   : > { %8909 = vmatprep.subr.bf16.mxu0 %v9167_v58  ;;  %8712 = vmatmul.mubr.bf16.gmra.mxu1 %v11093_v29 }
 0x350   : > { %8779 = vmatprep.mubr.bf16.mxu1 %v10599_v39  ;;  %v9172_v39 = vld [vmem:[%s9532_s27 + $0x38] sm:$0xff]  }
 0x352   : > { %8910 = vmatpush3.bf16.msra.mxu0 %v9167_v58 }
 0x353   : > { %8911 = vmatprep.subr.bf16.mxu0 %v9171_v38 }
 0x355   : > { %8832 = vmatmul.mubr.bf16.gmra.mxu0 %v9165_v10 }
 0x356   : > { %8835 = vmatprep.mubr.bf16.mxu0 %v9168_v27  ;;  %8912 = vmatpush3.bf16.msra.mxu0 %v9171_v38 }
 0x357   : > { %8913 = vmatprep.subr.bf16.mxu0 %v9175_v22  ;;  %8780 = vmatmul.mubr.bf16.vlgmr.msra.gmra.mxu1 %v10692_v61  ;;  %v3405_v61 = vld [vmem:[#allocation2 + $0xcc] sm:$0xe] }
 0x358   : > { %8783 = vmatprep.mubr.bf16.mxu1 %v10733_v49  ;;  %8860 = vmatpush3.bf16.msra.mxu1 %v9381_v21  ;;  %v11121_v49 = vld [vmem:[#allocation2 + $0xd0] sm:$0xf]  ;;  %v3887_v8 = vshrl.u32 %v3405_v61, 16  ;;  %v3890_v41 = vshll.u32 %v3405_v61, 16 }
 0x359   : > { %8861 = vmatprep.subr.bf16.mxu1 %v9166_v35  ;;  %v3896_v9 = vshll.u32 %v11121_v49, 16  ;;  %v3900_v44 = vshrl.u32 %v11121_v49, 16 }
 0x35a   : > { %8914 = vmatpush3.bf16.msra.mxu0 %v9175_v22  ;;  %v3892_v5 = vrot.slane %v3890_v41, 5 }
 0x35b   : > { %8915 = vmatprep.subr.bf16.mxu0 %v9179_v37  ;;  %v3898_v16 = vrot.slane %v3896_v9, 5 }
 0x35c   : > { %8862 = vmatpush3.bf16.msra.mxu1 %v9166_v35 }
 0x35d   : > { %8836 = vmatmul.mubr.bf16.gmra.mxu0 %v9169_v33  ;;  %8863 = vmatprep.subr.bf16.mxu1 %v9170_v36 }
 0x35e   : > { %8839 = vmatprep.mubr.bf16.mxu0 %v9172_v39  ;;  %8916 = vmatpush3.bf16.msra.mxu0 %v9179_v37 }
 0x35f   : > { %8917 = vmatprep.subr.bf16.mxu0 %v9183_v62  ;;  %8784 = vmatmul.mubr.bf16.gmra.mxu1 %v10778_v11  ;;  %v3889_v11 = vrot.slane %v3887_v8, 4 }
 0x360   : > { %8787 = vmatprep.mubr.bf16.mxu1 %v10805_v17  ;;  %8864 = vmatpush3.bf16.msra.mxu1 %v9170_v36  ;;  %v3902_v17 = vrot.slane %v3900_v44, 4  ;;  %v9194_v44 = vld [vmem:[%s9532_s27 + $0x18] sm:$0xff]  }
 0x361   : > { %8865 = vmatprep.subr.bf16.mxu1 %v9174_v0  ;;  %v3893_v24 = vor.u32 %v3892_v5, %v3889_v11  ;;  %v9193_v11 = vld [vmem:[%s9532_s27] sm:$0xff]   ;;  %v9200_v5 = vld [vmem:[%s9532_s27 + $0x30] sm:$0xff]  }
 0x362   : > { %8918 = vmatpush3.bf16.msra.mxu0 %v9183_v62  ;;  %v3903_v18 = vor.u32 %v3902_v17, %v3898_v16  ;;  %v9195_v17 = vld [vmem:[%s9532_s27 + $0x8] sm:$0xff]  }
 0x363   : > { %8919 = vmatprep.subr.bf16.mxu0 %v9187_v3  ;;  %v3894_v13 = vrot.slane %v3893_v24, 4  ;;  %v9204_v24 = vld [vmem:[%s9532_s27 + $0x40] sm:$0xff]  }
 0x364   : > { %8866 = vmatpush3.bf16.msra.mxu1 %v9174_v0  ;;  %v3904_v1 = vrot.slane %v3903_v18, 4 }
 0x365   : > { %8840 = vmatmul.mubr.bf16.gmra.mxu0 %v9173_v4  ;;  %8867 = vmatprep.subr.bf16.mxu1 %v9178_v52  ;;  %v3899_v63 = vsel %vm10123_vm3, %v3894_v13, %v3898_v16  ;;  %v9192_v4 = vld [vmem:[%s9532_s27 + $0x10] sm:$0xff]  }
 0x366   : > { %8843 = vmatprep.mubr.bf16.mxu0 %v9176_v45  ;;  %8920 = vmatpush3.bf16.msra.mxu0 %v9187_v3  ;;  %v3909_v60 = vsel %vm10123_vm3, %v3904_v1, %v3908_v19  ;;  %v9189_v3 = vld [vmem:[%s9532_s27 + $0x80] sm:$0xff]   ;;  %v9199_v1 = vld [vmem:[%s9532_s27 + $0x18] sm:$0xff]  }
 0x367   : > { %8921 = vmatprep.subr.bf16.mxu0 %v9191_v48  ;;  %8788 = vmatmul.mubr.bf16.gmra.mxu1 %v10838_v55  ;;  %v9190_v55 = vld [vmem:[%s11717_s8] sm:$0xff]   ;;  %v4020_v30 = vsel %vm10130_vm4, %v11121_v49, %v3909_v60 }
 0x368   : > { %8791 = vmatprep.mubr.bf16.mxu1 %v10870_v20  ;;  %8868 = vmatpush3.bf16.msra.mxu1 %v9178_v52  ;;  %v3367_v20 = vld [vmem:[#allocation2 + $0xcc] sm:$0xf]  ;;  %v4441_v32 = vshll.u32 %v4020_v30, 16  ;;  %v4445_v42 = vshrl.u32 %v4020_v30, 16  ;;  %v9201_v19 = vld [vmem:[%s9532_s27 + $0x20] sm:$0xff]  }
 0x369   : > { %8869 = vmatprep.subr.bf16.mxu1 %v9182_v59  ;;  %v4019_v14 = vsel %vm10130_vm4, %v3367_v20, %v3899_v63  ;;  %v9203_v63 = vld [vmem:[%s9532_s27 + $0x28] sm:$0xff]   ;;  %v9212_v30 = vld [vmem:[%s9532_s27 + $0x60] sm:$0xff]  }
 0x36a   : > { %8922 = vmatpush3.bf16.msra.mxu0 %v9191_v48  ;;  %v4435_v6 = vshll.u32 %v4019_v14, 16  ;;  %v4443_v22 = vrot.slane %v4441_v32, 5  ;;  %v4447_v35 = vrot.slane %v4445_v42, 4  ;;  %v9209_v42 = vld [vmem:[%s9532_s27 + $0x40] sm:$0xff]  }
 0x36c   : > { %8870 = vmatpush3.bf16.msra.mxu1 %v9182_v59  ;;  %v4437_v27 = vrot.slane %v4435_v6, 5  ;;  %v4448_v36 = vor.u32 %v4447_v35, %v4443_v22  ;;  %v9202_v59 = vld [vmem:[%s9532_s27 + $0x38] sm:$0xff]  }
 0x36d   : > { %8844 = vmatmul.mubr.bf16.gmra.mxu0 %v9177_v40  ;;  %8871 = vmatprep.subr.bf16.mxu1 %v9186_v23  ;;  %v9207_v6 = vld [vmem:[%s9532_s27 + $0x38] sm:$0xff]  }
 0x36e   : > { %8847 = vmatprep.mubr.bf16.mxu0 %v9180_v34  ;;  %v4449_v8 = vrot.slane %v4448_v36, 4  ;;  %v9224_v35 = vld [vmem:[%s11718_s9 + $0x38] sm:$0xff]   ;;  %v9225_v36 = vld [vmem:[%s11718_s9 + $0x30] sm:$0xff]  }
 0x36f   : > { %8792 = vmatmul.mubr.bf16.gmra.mxu1 %v10894_v12  ;;  %v4432_v12 = vshrl.u32 %v4019_v14, 16  ;;  %v9210_v14 = vld [vmem:[%s9532_s27 + $0x58] sm:$0xff]  }
 0x370   : > { %8795 = vmatprep.mubr.bf16.mxu1 %v10926_v57  ;;  %8872 = vmatpush3.bf16.msra.mxu1 %v9186_v23  ;;  %v8733_v58 = vpop.f32.mrf.mxu0  ;;  %v3910_v57 = vshrl.u32 %v3387_v26, 16 }
 0x371   : > { %8873 = vmatprep.subr.bf16.mxu1 %v9190_v55  ;;  %v4434_v38 = vrot.slane %v4432_v12, 4 }
 0x372   : > { %v4953_v51 = vpop.f32.mrf.mxu0  ;;  %v4021_v33 = vsel %vm10130_vm4, %v3387_v26, %v3910_v57 }
 0x373   : > { %v4451_v61 = vshll.u32 %v4021_v33, 16  ;;  %v9211_v33 = vld [vmem:[%s9532_s27 + $0x48] sm:$0xff]  }
 0x374   : > { %8874 = vmatpush3.bf16.msra.mxu1 %v9190_v55  ;;  %v8734_v21 = vpop.f32.mrf.mxu0  ;;  %v9206_v55 = vld [vmem:[%s9532_s27 + $0x48] sm:$0xff]  }
 0x375   : > { %8848 = vmatmul.mubr.bf16.gmra.mxu0 %v9181_v47  ;;  %v4453_v41 = vrot.slane %v4451_v61, 5  ;;  %v9208_v47 = vld [vmem:[%s9532_s27 + $0x50] sm:$0xff]   ;;  %8955 = vmatprep.subr.bf16.mxu1 %v9224_v35  ;;  %v9215_v61 = vld [vmem:[%s9532_s27 + $0x58] sm:$0xff]  }
 0x376   : > { %8851 = vmatprep.mubr.bf16.mxu0 %v9184_v46  ;;  %v11196_v43 = vpop.f32.mrf.mxu0  ;;  %v9205_v46 = vld [vmem:[%s9532_s27 + $0x30] sm:$0xff]  }
 0x377   : > { %8796 = vmatmul.mubr.bf16.gmra.mxu1 %v10958_v7  ;;  %v4454_v9 = vsel %vm10123_vm3, %v4449_v8, %v4453_v41  ;;  %v9222_v8 = vld [vmem:[%s9532_s27 + $0x88] sm:$0xff]  }
 0x378   : > { %8799 = vmatprep.mubr.bf16.mxu1 %v10981_v25  ;;  %v4438_v25 = vor.u32 %v4437_v27, %v4434_v38  ;;  %v4526_v48 = vsel %vm10168_vm6, %v11121_v49, %v4454_v9  ;;  %v9197_v49 = vld [vmem:[%s9532_s27 + $0x10] sm:$0xff]  }
 0x37a   : > { %v4439_v2 = vrot.slane %v4438_v25, 4 }
 0x37b   : > { %v8685_v10 = vpop.f32.mrf.mxu1 }
 0x37c   : > { %v11171_v37 = vadd.f32 %v8733_v58, %v8685_v10  ;;  %v4444_v45 = vsel %vm10123_vm3, %v4439_v2, %v4443_v22  ;;  %v9216_v10 = vld [vmem:[%s9532_s27 + $0x70] sm:$0xff]  }
 0x37d   : > { %8852 = vmatmul.mubr.bf16.gmra.mxu0 %v9185_v53  ;;  %v4738_v39 = vpop.f32.mrf.mxu1 }
 0x37e   : > { %8855 = vmatprep.mubr.bf16.mxu0 %v9188_v56  ;;  %v11175_v7 = vadd.f32 %v4953_v51, %v4738_v39  ;;  %v9214_v56 = vld [vmem:[%s9532_s27 + $0x68] sm:$0xff]   ;;  %v9213_v39 = vld [vmem:[%s9532_s27 + $0x50] sm:$0xff]  }
 0x37f   : > { %v8686_v62 = vpop.f32.mrf.mxu1  ;;  %8800 = vmatmul.mubr.bf16.gmra.mxu1 %v11014_v15  ;;  %v9196_v15 = vld [vmem:[%s9532_s27 + $0x20] sm:$0xff]  }
 0x380   : > { %v11177_v0 = vadd.f32 %v8734_v21, %v8686_v62  ;;  %8803 = vmatprep.mubr.bf16.mxu1 %v11045_v31  ;;  %v4525_v31 = vsel %vm10168_vm6, %v3367_v20, %v4444_v45  ;;  %v9218_v21 = vld [vmem:[%s9532_s27 + $0x78] sm:$0xff]   ;;  %v9220_v62 = vld [vmem:[%s9532_s27 + $0x80] sm:$0xff]   ;;  %v9226_v45 = vld [vmem:[%s11718_s9 + $0x28] sm:$0xff]  }
 0x381   : > { %v7536_v52 = vcombine.low %v4525_v31, %v4526_v48  ;;  %v11201_v16 = vpop.f32.mrf.mxu1 }
 0x385   : > { %8856 = vmatmul.mubr.bf16.gmra.mxu0 %v9189_v3 }
 0x386   : > { %8923 = vmatprep.mubr.bf16.mxu0 %v9192_v4  ;;  %v9217_v4 = vld [vmem:[%s9532_s27 + $0x60] sm:$0xff]  }
 0x387   : > { %8804 = vmatmul.mubr.bf16.gmra.mxu1 %v11064_v28  ;;  %v9198_v28 = vld [vmem:[%s9532_s27 + $0x28] sm:$0xff]  }
 0x388   : > { %8807 = vmatprep.mubr.bf16.mxu1 %v11093_v29 }
 0x38d   : > { %8924 = vmatmul.mubr.bf16.vlgmr.msra.gmra.mxu0 %v9194_v44 }
 0x38e   : > { %8927 = vmatprep.mubr.bf16.mxu0 %v9196_v15  ;;  %v9219_v15 = vld [vmem:[%s9532_s27 + $0x68] sm:$0xff]  }
 0x38f   : > { %8808 = vmatmul.mubr.bf16.gmra.mxu1 %v7536_v52  ;;  %v8737_v29 = vpop.f32.mrf.mxu0  ;;  %v9221_v52 = vld [vmem:[%s9532_s27 + $0x70] sm:$0xff]  }
 0x390   : > { %8875 = vmatprep.mubr.bf16.mxu1 %v9193_v11 }
 0x391   : > { %v4969_v54 = vpop.f32.mrf.mxu0 }
 0x393   : > { %v8738_v18 = vpop.f32.mrf.mxu0 }
 0x395   : > { %8928 = vmatmul.mubr.bf16.gmra.mxu0 %v9198_v28  ;;  %v11217_v20 = vpop.f32.mrf.mxu0 }
 0x396   : > { %8931 = vmatprep.mubr.bf16.mxu0 %v9200_v5 }
 0x397   : > { %8876 = vmatmul.mubr.bf16.vlgmr.msra.gmra.mxu1 %v9195_v17  ;;  %v9227_v17 = vld [vmem:[%s11718_s9 + $0x20] sm:$0xff]  }
 0x398   : > { %v8689_v26 = vpop.f32.mrf.mxu1  ;;  %8879 = vmatprep.mubr.bf16.mxu1 %v9197_v49  ;;  %8956 = vmatpush3.bf16.msra.mxu1 %v9224_v35 }
 0x399   : > { %v11206_v40 = vadd.f32 %v8737_v29, %v8689_v26  ;;  %8957 = vmatprep.subr.bf16.mxu1 %v9225_v36 }
 0x39a   : > { %v4754_v34 = vpop.f32.mrf.mxu1 }
 0x39b   : > { %v11209_v50 = vadd.f32 %v4969_v54, %v4754_v34  ;;  %v9223_v54 = vld [vmem:[%s9532_s27 + $0x78] sm:$0xff]  }
 0x39c   : > { %v8690_v23 = vpop.f32.mrf.mxu1  ;;  %8958 = vmatpush3.bf16.msra.mxu1 %v9225_v36 }
 0x39d   : > { %8932 = vmatmul.mubr.bf16.gmra.mxu0 %v9202_v59  ;;  %v11211_v13 = vadd.f32 %v8738_v18, %v8690_v23  ;;  %8959 = vmatprep.subr.bf16.mxu1 %v9226_v45 }
 0x39e   : > { %8935 = vmatprep.mubr.bf16.mxu0 %v9204_v24  ;;  %v11223_v58 = vpop.f32.mrf.mxu1  ;;  %v9228_v24 = vld [vmem:[%s11718_s9 + $0x18] sm:$0xff]  }
 0x39f   : > { %8880 = vmatmul.mubr.bf16.gmra.mxu1 %v9199_v1 }
 0x3a0   : > { %8883 = vmatprep.mubr.bf16.mxu1 %v9201_v19  ;;  %8960 = vmatpush3.bf16.msra.mxu1 %v9226_v45 }
 0x3a1   : > { %8961 = vmatprep.subr.bf16.mxu1 %v9227_v17 }
 0x3a4   : > { %8962 = vmatpush3.bf16.msra.mxu1 %v9227_v17 }
 0x3a5   : > { %8936 = vmatmul.mubr.bf16.gmra.mxu0 %v9206_v55  ;;  %8963 = vmatprep.subr.bf16.mxu1 %v9228_v24 }
 0x3a6   : > { %8939 = vmatprep.mubr.bf16.mxu0 %v9208_v47  ;;  %v8741_v60 = vpop.f32.mrf.mxu0 }
 0x3a7   : > { %8884 = vmatmul.mubr.bf16.gmra.mxu1 %v9203_v63 }
 0x3a8   : > { %8887 = vmatprep.mubr.bf16.mxu1 %v9205_v46  ;;  %v4985_v12 = vpop.f32.mrf.mxu0  ;;  %8964 = vmatpush3.bf16.msra.mxu1 %v9228_v24  ;;  %v9229_v46 = vld [vmem:[%s11718_s9 + $0x10] sm:$0xff]  }
 0x3a9   : > { %8965 = vmatprep.subr.bf16.mxu1 %v9229_v46 }
 0x3aa   : > { %v8742_v51 = vpop.f32.mrf.mxu0 }
 0x3ac   : > { %v11242_v25 = vpop.f32.mrf.mxu0  ;;  %8966 = vmatpush3.bf16.msra.mxu1 %v9229_v46 }
 0x3ad   : > { %8940 = vmatmul.mubr.bf16.gmra.mxu0 %v9210_v14  ;;  %v8693_v32 = vpop.f32.mrf.mxu1 }
 0x3ae   : > { %8943 = vmatprep.mubr.bf16.mxu0 %v9212_v30  ;;  %v11227_v53 = vadd.f32 %v8741_v60, %v8693_v32 }
 0x3af   : > { %v4770_v57 = vpop.f32.mrf.mxu1  ;;  %8888 = vmatmul.mubr.bf16.gmra.mxu1 %v9207_v6 }
 0x3b0   : > { %v11230_v38 = vadd.f32 %v4985_v12, %v4770_v57  ;;  %8891 = vmatprep.mubr.bf16.mxu1 %v9209_v42 }
 0x3b1   : > { %v8694_v27 = vpop.f32.mrf.mxu1 }
 0x3b2   : > { %v11233_v22 = vadd.f32 %v8742_v51, %v8694_v27  ;;  %v9230_v51 = vld [vmem:[%s11718_s9 + $0x8] sm:$0xff]  }
 0x3b3   : > { %v11249_v2 = vpop.f32.mrf.mxu1  ;;  %8967 = vmatprep.subr.bf16.mxu1 %v9230_v51 }
 0x3b4   : > { %8968 = vmatpush3.bf16.msra.mxu1 %v9230_v51 }
 0x3b5   : > { %8944 = vmatmul.mubr.bf16.gmra.mxu0 %v9214_v56 }
 0x3b6   : > { %8947 = vmatprep.mubr.bf16.mxu0 %v9216_v10 }
 0x3b7   : > { %8892 = vmatmul.mubr.bf16.gmra.mxu1 %v9211_v33 }
 0x3b8   : > { %8895 = vmatprep.mubr.bf16.mxu1 %v9213_v39  ;;  %v8745_v3 = vpop.f32.mrf.mxu0  ;;  %v9231_v39 = vld [vmem:[%s11718_s9] sm:$0xff]  }
 0x3b9   : > { %8969 = vmatprep.subr.bf16.mxu1 %v9231_v39 }
 0x3ba   : > { %v5001_v41 = vpop.f32.mrf.mxu0  ;;  %8970 = vmatpush3.bf16.msra.mxu1 %v9231_v39 }
 0x3bc   : > { %v8746_v48 = vpop.f32.mrf.mxu0 }
 0x3bd   : > { %8948 = vmatmul.mubr.bf16.gmra.mxu0 %v9218_v21 }
 0x3be   : > { %8951 = vmatprep.mubr.bf16.mxu0 %v9220_v62  ;;  %v11263_v29 = vpop.f32.mrf.mxu0 }
 0x3bf   : > { %8896 = vmatmul.mubr.bf16.gmra.mxu1 %v9215_v61 }
 0x3c0   : > { %8899 = vmatprep.mubr.bf16.mxu1 %v9217_v4 }
 0x3c3   : > { %v8697_v9 = vpop.f32.mrf.mxu1 }
 0x3c4   : > { %v11255_v44 = vadd.f32 %v8745_v3, %v8697_v9 }
 0x3c5   : > { %8952 = vmatmul.mubr.bf16.gmra.mxu0 %v9222_v8  ;;  %v4786_v31 = vpop.f32.mrf.mxu1 }
 0x3c6   : > { %v11259_v11 = vadd.f32 %v5001_v41, %v4786_v31 }
 0x3c7   : > { %v8698_v28 = vpop.f32.mrf.mxu1  ;;  %8900 = vmatmul.mubr.bf16.gmra.mxu1 %v9219_v15 }
 0x3c8   : > { %v11261_v5 = vadd.f32 %v8746_v48, %v8698_v28  ;;  %8903 = vmatprep.mubr.bf16.mxu1 %v9221_v52 }
 0x3c9   : > { %v11269_v26 = vpop.f32.mrf.mxu1 }
 0x3ca   : > { %v8749_v49 = vpop.f32.mrf.mxu0 }
 0x3cc   : > { %v5017_v59 = vpop.f32.mrf.mxu0 }
 0x3ce   : > { %v8750_v18 = vpop.f32.mrf.mxu0 }
 0x3cf   : > { %8904 = vmatmul.mubr.bf16.gmra.mxu1 %v9223_v54 }
 0x3d0   : > { %v5020_v47 = vpop.f32.mrf.mxu0 }
 0x3d5   : > { %v8701_v34 = vpop.f32.mrf.mxu1 }
 0x3d6   : > { %v11274_v23 = vadd.f32 %v8749_v49, %v8701_v34 }
 0x3d7   : > { %v4802_v1 = vpop.f32.mrf.mxu1 }
 0x3d8   : > { %v11276_v19 = vadd.f32 %v5017_v59, %v4802_v1 }
 0x3d9   : > { %v8702_v55 = vpop.f32.mrf.mxu1 }
 0x3da   : > { %v11278_v63 = vadd.f32 %v8750_v18, %v8702_v55 }
 0x3db   : > { %v4805_v60 = vpop.f32.mrf.mxu1 }
 0x3dc   : > { %v11283_v14 = vadd.f32 %v5020_v47, %v4805_v60 }
 0x3e0   : > { %v8753_v30 = vpop.f32.mrf.mxu0 }
 0x3e2   : > { %v5033_v12 = vpop.f32.mrf.mxu0 }
 0x3e4   : > { %v8754_v32 = vpop.f32.mrf.mxu0 }
 0x3e6   : > { %v5036_v27 = vpop.f32.mrf.mxu0 }
 0x3e7   : > { %v8705_v6 = vpop.f32.mrf.mxu1 }
 0x3e8   : > { %v11285_v42 = vadd.f32 %v8753_v30, %v8705_v6 }
 0x3e9   : > { %v4818_v57 = vpop.f32.mrf.mxu1 }
 0x3ea   : > { %v11290_v56 = vadd.f32 %v5033_v12, %v4818_v57 }
 0x3eb   : > { %v8706_v10 = vpop.f32.mrf.mxu1 }
 0x3ec   : > { %v11292_v35 = vadd.f32 %v8754_v32, %v8706_v10 }
 0x3ed   : > { %v4821_v33 = vpop.f32.mrf.mxu1 }
 0x3ee   : > { %v11297_v21 = vadd.f32 %v5036_v27, %v4821_v33 }
 0x3f2   : > { %v8757_v62 = vpop.f32.mrf.mxu0 }
 0x3f4   : > { %v5049_v36 = vpop.f32.mrf.mxu0 }
 0x3f6   : > { %v8758_v61 = vpop.f32.mrf.mxu0 }
 0x3f8   : > { %v5052_v45 = vpop.f32.mrf.mxu0 }
 0x3fd   : > { %v8709_v3 = vpop.f32.mrf.mxu1 }
 0x3fe   : > { %v11299_v4 = vadd.f32 %v8757_v62, %v8709_v3 }
 0x3ff   : > { %v4834_v8 = vpop.f32.mrf.mxu1 }
 0x400   : > { %v11301_v41 = vadd.f32 %v5049_v36, %v4834_v8 }
 0x401   : > { %v8710_v9 = vpop.f32.mrf.mxu1 }
 0x402   : > { %v11303_v15 = vadd.f32 %v8758_v61, %v8710_v9  ;;  %v4957_v61 = vadd.f32 %v11196_v43, %v11201_v16  ;;  %v4973_v16 = vadd.f32 %v11217_v20, %v11223_v58  ;;  %v4989_v58 = vadd.f32 %v11242_v25, %v11249_v2 }
 0x403   : > { %v4837_v31 = vpop.f32.mrf.mxu1  ;;  %v5005_v2 = vadd.f32 %v11263_v29, %v11269_v26 }
 0x404   : > { %v11305_v48 = vadd.f32 %v5052_v45, %v4837_v31 }
 0x405   : > { %v8761_v52 = vpop.f32.mrf.mxu0 }
 0x407   : > { %v5065_v28 = vpop.f32.mrf.mxu0 }
 0x409   : > { %v8762_v17 = vpop.f32.mrf.mxu0 }
 0x40b   : > { %v5068_v54 = vpop.f32.mrf.mxu0 }
 0x40d   : > { %v11307_v49 = vpop.f32.mrf.mxu0 }
 0x40f   : > { %v11309_v59 = vpop.f32.mrf.mxu0  ;;  %v8713_v34 = vpop.f32.mrf.mxu1 }
 0x410   : > { %v11313_v18 = vadd.f32 %v8761_v52, %v8713_v34 }
 0x411   : > { %v11311_v24 = vpop.f32.mrf.mxu0  ;;  %v4850_v55 = vpop.f32.mrf.mxu1 }
 0x412   : > { %v11317_v47 = vadd.f32 %v5065_v28, %v4850_v55 }
 0x413   : > { %v11315_v1 = vpop.f32.mrf.mxu0  ;;  %v8714_v60 = vpop.f32.mrf.mxu1 }
 0x414   : > { %v11321_v30 = vadd.f32 %v8762_v17, %v8714_v60 }
 0x415   : > { %v11319_v46 = vpop.f32.mrf.mxu0  ;;  %v4853_v6 = vpop.f32.mrf.mxu1 }
 0x416   : > { %v11325_v32 = vadd.f32 %v5068_v54, %v4853_v6 }
 0x417   : > { %v11323_v12 = vpop.f32.mrf.mxu0  ;;  %v8781_v51 = vpop.f32.mrf.mxu1 }
 0x418   : > { %v11330_v10 = vadd.f32 %v8781_v51, %v11171_v37 }
 0x419   : > { %v11327_v57 = vpop.f32.mrf.mxu0  ;;  %v5185_v33 = vpop.f32.mrf.mxu1 }
 0x41a   : > { %v11335_v39 = vadd.f32 %v5185_v33, %v11175_v7 }
 0x41b   : > { %v11332_v27 = vpop.f32.mrf.mxu0  ;;  %v8782_v36 = vpop.f32.mrf.mxu1 }
 0x41c   : > { %v11342_v3 = vadd.f32 %v8782_v36, %v11177_v0 }
 0x41d   : > { %v11337_v62 = vpop.f32.mrf.mxu0  ;;  %v5188_v45 = vpop.f32.mrf.mxu1 }
 0x41e   : > { %v11346_v37 = vadd.f32 %v5188_v45, %v4957_v61 }
 0x41f   : > { %v11344_v8 = vpop.f32.mrf.mxu0  ;;  %v8785_v31 = vpop.f32.mrf.mxu1 }
 0x420   : > { %v11351_v7 = vadd.f32 %v8785_v31, %v11206_v40 }
 0x421   : > { %v11348_v9 = vpop.f32.mrf.mxu0  ;;  %v5201_v28 = vpop.f32.mrf.mxu1 }
 0x422   : > { %v11356_v17 = vadd.f32 %v5201_v28, %v11209_v50 }
 0x423   : > { %v11353_v52 = vpop.f32.mrf.mxu0  ;;  %v8786_v0 = vpop.f32.mrf.mxu1 }
 0x424   : > { %v11363_v54 = vadd.f32 %v8786_v0, %v11211_v13 }
 0x425   : > { %v11358_v43 = vpop.f32.mrf.mxu0  ;;  %v5204_v55 = vpop.f32.mrf.mxu1 }
 0x426   : > { %v11367_v40 = vadd.f32 %v5204_v55, %v4973_v16 }
 0x427   : > { %v11365_v34 = vpop.f32.mrf.mxu0  ;;  %v8789_v6 = vpop.f32.mrf.mxu1 }
 0x428   : > { %v11372_v50 = vadd.f32 %v8789_v6, %v11227_v53 }
 0x429   : > { %v11369_v60 = vpop.f32.mrf.mxu0  ;;  %v5217_v33 = vpop.f32.mrf.mxu1 }
 0x42a   : > { %v11377_v36 = vadd.f32 %v5217_v33, %v11230_v38 }
 0x42b   : > { %v11374_v51 = vpop.f32.mrf.mxu0  ;;  %v8790_v13 = vpop.f32.mrf.mxu1 }
 0x42c   : > { %v11384_v61 = vadd.f32 %v8790_v13, %v11233_v22 }
 0x42d   : > { %v11379_v20 = vpop.f32.mrf.mxu0  ;;  %v5220_v31 = vpop.f32.mrf.mxu1 }
 0x42e   : > { %v11388_v53 = vadd.f32 %v5220_v31, %v4989_v58 }
 0x42f   : > { %v11386_v45 = vpop.f32.mrf.mxu0  ;;  %v8793_v0 = vpop.f32.mrf.mxu1 }
 0x430   : > { %v11393_v38 = vadd.f32 %v8793_v0, %v11255_v44 }
 0x431   : > { %v11390_v28 = vpop.f32.mrf.mxu0  ;;  %v5233_v55 = vpop.f32.mrf.mxu1 }
 0x432   : > { %v11398_v6 = vadd.f32 %v5233_v55, %v11259_v11 }
 0x433   : > { %v11395_v16 = vpop.f32.mrf.mxu0  ;;  %v8794_v22 = vpop.f32.mrf.mxu1 }
 0x434   : > { %11789 = vst [vmem:[#allocation6_spill] sm:$0xff] %v11395_v16  ;;  %v11405_v33 = vadd.f32 %v8794_v22, %v11261_v5 }
 0x435   : > { %v11400_v25 = vpop.f32.mrf.mxu0  ;;  %v5236_v58 = vpop.f32.mrf.mxu1 }
 0x436   : > { %11790 = vst [vmem:[#allocation22_spill] sm:$0xff] %v11400_v25  ;;  %v11409_v44 = vadd.f32 %v5236_v58, %v5005_v2 }
 0x437   : > { %v11407_v13 = vpop.f32.mrf.mxu0  ;;  %v8797_v0 = vpop.f32.mrf.mxu1 }
 0x438   : > { %v11414_v11 = vadd.f32 %v8797_v0, %v11274_v23 }
 0x439   : > { %v11411_v31 = vpop.f32.mrf.mxu0  ;;  %v5249_v25 = vpop.f32.mrf.mxu1 }
 0x43a   : > { %11791 = vst [vmem:[#allocation23_spill] sm:$0xff] %v11411_v31  ;;  %v11419_v16 = vadd.f32 %v5249_v25, %v11276_v19 }
 0x43b   : > { %v11416_v55 = vpop.f32.mrf.mxu0  ;;  %v8798_v5 = vpop.f32.mrf.mxu1 }
 0x43c   : > { %11792 = vst [vmem:[#allocation7_spill] sm:$0xff] %v11416_v55  ;;  %v11424_v26 = vadd.f32 %v8798_v5, %v11278_v63 }
 0x43d   : > { %v11421_v29 = vpop.f32.mrf.mxu0  ;;  %v5252_v2 = vpop.f32.mrf.mxu1 }
 0x43e   : > { %11793 = vst [vmem:[#allocation24_spill] sm:$0xff] %v11421_v29  ;;  %v11429_v58 = vadd.f32 %v5252_v2, %v11283_v14 }
 0x43f   : > { %v11426_v22 = vpop.f32.mrf.mxu0  ;;  %v8801_v0 = vpop.f32.mrf.mxu1 }
 0x440   : > { %11794 = vst [vmem:[#allocation25_spill] sm:$0xff] %v11426_v22  ;;  %v11434_v55 = vadd.f32 %v8801_v0, %v11285_v42 }
 0x441   : > { %v11431_v23 = vpop.f32.mrf.mxu0  ;;  %v5265_v25 = vpop.f32.mrf.mxu1 }
 0x442   : > { %11795 = vst [vmem:[#allocation8_spill] sm:$0xff] %v11431_v23  ;;  %11796 = vst [vmem:[#allocation9_spill] sm:$0xff] %v11434_v55  ;;  %v11439_v29 = vadd.f32 %v5265_v25, %v11290_v56 }
 0x443   : > { %v11436_v19 = vpop.f32.mrf.mxu0  ;;  %v8802_v5 = vpop.f32.mrf.mxu1 }
 0x444   : > { %11797 = vst [vmem:[#allocation26_spill] sm:$0xff] %v11436_v19  ;;  %11798 = vst [vmem:[#allocation12_spill] sm:$0xff] %v11439_v29  ;;  %v11444_v22 = vadd.f32 %v8802_v5, %v11292_v35 }
 0x445   : > { %v11441_v63 = vpop.f32.mrf.mxu0  ;;  %v5268_v2 = vpop.f32.mrf.mxu1 }
 0x446   : > { %11799 = vst [vmem:[#allocation27_spill] sm:$0xff] %v11441_v63  ;;  %11800 = vst [vmem:[#allocation28_spill] sm:$0xff] %v11444_v22  ;;  %v11449_v23 = vadd.f32 %v5268_v2, %v11297_v21 }
 0x447   : > { %v11446_v14 = vpop.f32.mrf.mxu0  ;;  %v8805_v0 = vpop.f32.mrf.mxu1 }
 0x448   : > { %11801 = vst [vmem:[#allocation13_spill] sm:$0xff] %v11446_v14  ;;  %11802 = vst [vmem:[#allocation14_spill] sm:$0xff] %v11449_v23  ;;  %v11454_v19 = vadd.f32 %v8805_v0, %v11299_v4  ;;  %v11483_v23 = vstv %s398_s17 }
 0x449   : > { %v11451_v42 = vpop.f32.mrf.mxu0  ;;  %v5281_v25 = vpop.f32.mrf.mxu1 }
 0x44a   : > { %11803 = vst [vmem:[#allocation16_spill] sm:$0xff] %v11451_v42  ;;  %11804 = vst [vmem:[#allocation10_spill] sm:$0xff] %v11454_v19  ;;  %v11459_v63 = vadd.f32 %v5281_v25, %v11301_v41 }
 0x44b   : > { %v11456_v56 = vpop.f32.mrf.mxu0  ;;  %v8806_v5 = vpop.f32.mrf.mxu1 }
 0x44c   : > { %11805 = vst [vmem:[#allocation11_spill] sm:$0xff] %v11456_v56  ;;  %11806 = vst [vmem:[#allocation17_spill] sm:$0xff] %v11459_v63  ;;  %v11462_v14 = vadd.f32 %v8806_v5, %v11303_v15 }
 0x44d   : > { %v8925_v35 = vpop.f32.mrf.mxu0  ;;  %v5284_v21 = vpop.f32.mrf.mxu1 }
 0x44e   : > { %11807 = vst [vmem:[#allocation18_spill] sm:$0xff] %v11462_v14  ;;  %v11466_v2 = vadd.f32 %v5284_v21, %v11305_v48 }
 0x44f   : > { %v6278_v22 = vpop.f32.mrf.mxu0  ;;  %v8809_v0 = vpop.f32.mrf.mxu1 }
 0x450   : > { %11808 = vst [vmem:[#allocation19_spill] sm:$0xff] %v11466_v2  ;;  %v11469_v56 = vadd.f32 %v8809_v0, %v11313_v18 }
 0x451   : > { %v8926_v4 = vpop.f32.mrf.mxu0  ;;  %v5297_v25 = vpop.f32.mrf.mxu1 }
 0x452   : > { %11809 = vst [vmem:[#allocation15_spill] sm:$0xff] %v11469_v56  ;;  %v11472_v42 = vadd.f32 %v5297_v25, %v11317_v47  ;;  %v11481_v56 = vstv %s396_s16 }
 0x453   : > { %v6281_v41 = vpop.f32.mrf.mxu0  ;;  %v8810_v5 = vpop.f32.mrf.mxu1 }
 0x454   : > { %11810 = vst [vmem:[#allocation20_spill] sm:$0xff] %v11472_v42  ;;  %v11475_v14 = vadd.f32 %v8810_v5, %v11321_v30 }
 0x455   : > { %v8929_v15 = vpop.f32.mrf.mxu0  ;;  %v5300_v21 = vpop.f32.mrf.mxu1 }
 0x456   : > { %11811 = vst [vmem:[#allocation21_spill] sm:$0xff] %v11475_v14  ;;  %v11478_v2 = vadd.f32 %v5300_v21, %v11325_v32  ;;  %v6440_v32 = vmul.f32 %v11481_v56, %v11330_v10 }
 0x457   : > { %v6294_v48 = vpop.f32.mrf.mxu0  ;;  %v8877_v19 = vpop.f32.mrf.mxu1 }
 0x458   : > { %11812 = vst [vmem:[#allocation29_spill] sm:$0xff] %v11478_v2  ;;  %v5933_v18 = vadd.f32 %v8877_v19, %v11307_v49 }
 0x459   : > { %v8930_v63 = vpop.f32.mrf.mxu0  ;;  %v5924_v47 = vpop.f32.mrf.mxu1 }
 0x45a   : > { %v6407_v25 = vadd.f32 %v8925_v35, %v5933_v18  ;;  %v5925_v42 = vadd.f32 %v5924_v47, %v11309_v59  ;;  %v6438_v47 = vmul.f32 %v11481_v56, %v11335_v39 }
 0x45b   : > { %v6297_v0 = vpop.f32.mrf.mxu0  ;;  %v8878_v5 = vpop.f32.mrf.mxu1 }
 0x45c   : > { %v6473_v21 = vmul.f32 %v11483_v23, %v6407_v25  ;;  %v6405_v2 = vadd.f32 %v6278_v22, %v5925_v42  ;;  %v5936_v49 = vadd.f32 %v8878_v5, %v11311_v24  ;;  %v6441_v22 = vmul.f32 %v11481_v56, %v11342_v3 }
 0x45d   : > { %v11486_v30 = vpop.f32.mrf.mxu0  ;;  %v5927_v14 = vpop.f32.mrf.mxu1 }
 0x45e   : > { %v6505_v29 = vadd.f32 %v6473_v21, %v6440_v32  ;;  %v6471_v55 = vmul.f32 %v11483_v23, %v6405_v2  ;;  %v6408_v35 = vadd.f32 %v8926_v4, %v5936_v49  ;;  %v5928_v59 = vadd.f32 %v5927_v14, %v11315_v1 }
 0x45f   : > { %v11492_v19 = vpop.f32.mrf.mxu0  ;;  %v8881_v10 = vpop.f32.mrf.mxu1  ;;  %v6439_v1 = vmul.f32 %v11481_v56, %v11346_v37 }
 0x460   : > { %v6474_v24 = vmul.f32 %v11483_v23, %v6408_v35  ;;  %v6406_v42 = vadd.f32 %v6281_v41, %v5928_v59  ;;  %v6537_v5 = vmul.f32 0.2, %v6505_v29  ;;  %v6503_v32 = vadd.f32 %v6471_v55, %v6438_v47 }
 0x461   : > { %v11496_v18 = vpop.f32.mrf.mxu0  ;;  %v5949_v2 = vadd.f32 %v8881_v10, %v11319_v46  ;;  %v5940_v4 = vpop.f32.mrf.mxu1  ;;  %v6444_v46 = vmul.f32 %v11481_v56, %v11351_v7  ;;  %v6445_v7 = vmul.f32 %v11481_v56, %v11363_v54 }
 0x462   : > { %v6506_v14 = vadd.f32 %v6474_v24, %v6441_v22  ;;  %v6472_v39 = vmul.f32 %v11483_v23, %v6406_v42  ;;  %v5941_v21 = vadd.f32 %v5940_v4, %v11323_v12  ;;  %v6569_v37 = vmax.f32 %v6505_v29, %v6537_v5 }
 0x463   : > { %v11503_v25 = vpop.f32.mrf.mxu0  ;;  %v6411_v3 = vadd.f32 %v8929_v15, %v5949_v2  ;;  %v8882_v35 = vpop.f32.mrf.mxu1  ;;  %v6535_v24 = vmul.f32 0.2, %v6503_v32 }
 0x464   : > { %v6538_v41 = vmul.f32 0.2, %v6506_v14  ;;  %v6504_v59 = vadd.f32 %v6472_v39, %v6439_v1  ;;  %v6409_v31 = vadd.f32 %v6294_v48, %v5941_v21  ;;  %v5952_v55 = vadd.f32 %v8882_v35, %v11327_v57 }
 0x465   : > { %v11510_v49 = vpop.f32.mrf.mxu0  ;;  %v6477_v10 = vmul.f32 %v11483_v23, %v6411_v3  ;;  %v5943_v22 = vpop.f32.mrf.mxu1  ;;  %v6442_v57 = vmul.f32 %v11481_v56, %v11356_v17  ;;  %v6567_v3 = vmax.f32 %v6503_v32, %v6535_v24  ;;  %v6443_v17 = vmul.f32 %v11481_v56, %v11367_v40 }
 0x466   : > { %v6570_v12 = vmax.f32 %v6506_v14, %v6538_v41  ;;  %v6475_v42 = vmul.f32 %v11483_v23, %v6409_v31  ;;  %v6412_v15 = vadd.f32 %v8930_v63, %v5952_v55  ;;  %v5944_v2 = vadd.f32 %v5943_v22, %v11332_v27 }
 0x467   : > { %v11513_v47 = vpop.f32.mrf.mxu0  ;;  %v6509_v48 = vadd.f32 %v6477_v10, %v6444_v46  ;;  %v8885_v1 = vpop.f32.mrf.mxu1  ;;  %v6536_v39 = vmul.f32 0.2, %v6504_v59  ;;  %v6448_v40 = vmul.f32 %v11481_v56, %v11372_v50  ;;  %v6449_v50 = vmul.f32 %v11481_v56, %v11384_v61 }
 0x468   : > { %v6600_v29 = vpack.c.bf16 %v6570_v12, %v6569_v37  ;;  %v6478_v5 = vmul.f32 %v11483_v23, %v6412_v15  ;;  %v6410_v14 = vadd.f32 %v6297_v0, %v5944_v2  ;;  %v6507_v31 = vadd.f32 %v6475_v42, %v6442_v57 }
 0x469   : > { %v11520_v4 = vpop.f32.mrf.mxu0  ;;  %v5965_v27 = vadd.f32 %v8885_v1, %v11337_v62  ;;  %v5956_v63 = vpop.f32.mrf.mxu1  ;;  %v6568_v35 = vmax.f32 %v6504_v59, %v6536_v39  ;;  %v6541_v37 = vmul.f32 0.2, %v6509_v48 }
 0x46a   : > { %v6510_v41 = vadd.f32 %v6478_v5, %v6445_v7  ;;  %v6476_v55 = vmul.f32 %v11483_v23, %v6410_v14  ;;  %v5957_v54 = vadd.f32 %v5956_v63, %v11344_v8  ;;  %v6446_v8 = vmul.f32 %v11481_v56, %v11377_v36 }
 0x46b   : > { %v11527_v21 = vpop.f32.mrf.mxu0  ;;  %v6415_v0 = vadd.f32 %v11486_v30, %v5965_v27  ;;  %v8886_v10 = vpop.f32.mrf.mxu1  ;;  %v6599_v22 = vpack.c.bf16 %v6568_v35, %v6567_v3  ;;  %v6539_v15 = vmul.f32 0.2, %v6507_v31  ;;  %v6573_v39 = vmax.f32 %v6509_v48, %v6541_v37 }
 0x46c   : > { %v6542_v12 = vmul.f32 0.2, %v6510_v41  ;;  %v6508_v62 = vadd.f32 %v6476_v55, %v6443_v17  ;;  %v6413_v32 = vadd.f32 %v11492_v19, %v5957_v54  ;;  %v5968_v59 = vadd.f32 %v8886_v10, %v11348_v9 }
 0x46d   : > { %v11534_v46 = vpop.f32.mrf.mxu0  ;;  %v6481_v42 = vmul.f32 %v11483_v23, %v6415_v0  ;;  %8971 = vmatprep.mubr.bf16.mxu1 %v6599_v22  ;;  %v5959_v30 = vpop.f32.mrf.mxu1  ;;  %v6447_v14 = vmul.f32 %v11481_v56, %v11388_v53  ;;  %v6571_v35 = vmax.f32 %v6507_v31, %v6539_v15 }
 0x46e   : > { %v6574_v2 = vmax.f32 %v6510_v41, %v6542_v12  ;;  %v6479_v57 = vmul.f32 %v11483_v23, %v6413_v32  ;;  %v6416_v19 = vadd.f32 %v11496_v18, %v5968_v59  ;;  %v5960_v9 = vadd.f32 %v5959_v30, %v11353_v52  ;;  %8972 = vmatmul.mubr.bf16.vlgmr.msra.gmra.mxu1 %v6600_v29 }
 0x46f   : > { %v11539_v24 = vpop.f32.mrf.mxu0  ;;  %v6513_v36 = vadd.f32 %v6481_v42, %v6448_v40  ;;  %v8889_v7 = vpop.f32.mrf.mxu1  ;;  %v6540_v5 = vmul.f32 0.2, %v6508_v62  ;;  %v6450_v59 = vmul.f32 %v11481_v56, %v11398_v6 }
 0x470   : > { %v6482_v27 = vmul.f32 %v11483_v23, %v6416_v19  ;;  %v6414_v63 = vadd.f32 %v11503_v25, %v5960_v9  ;;  %v5981_v18 = vadd.f32 %v8889_v7, %v11358_v43  ;;  %v6511_v29 = vadd.f32 %v6479_v57, %v6446_v8 }
 0x471   : > { %v11549_v1 = vpop.f32.mrf.mxu0  ;;  %v5972_v3 = vpop.f32.mrf.mxu1  ;;  %v6572_v17 = vmax.f32 %v6508_v62, %v6540_v5  ;;  %v6602_v61 = vpack.c.bf16 %v6574_v2, %v6573_v39  ;;  %v6545_v37 = vmul.f32 0.2, %v6513_v36  ;;  %v6452_v62 = vmul.f32 %v11481_v56, %v11393_v38 }
 0x472   : > { %v6514_v48 = vadd.f32 %v6482_v27, %v6449_v50  ;;  %v6480_v41 = vmul.f32 %v11483_v23, %v6414_v63  ;;  %v6419_v55 = vadd.f32 %v11510_v49, %v5981_v18  ;;  %v5973_v53 = vadd.f32 %v5972_v3, %v11365_v34 }
 0x473   : > { %v11558_v52 = vpop.f32.mrf.mxu0  ;;  %v8890_v25 = vpop.f32.mrf.mxu1  ;;  %v6601_v0 = vpack.c.bf16 %v6572_v17, %v6571_v35  ;;  %v6543_v32 = vmul.f32 0.2, %v6511_v29  ;;  %v6577_v30 = vmax.f32 %v6513_v36, %v6545_v37  ;;  %v6453_v57 = vmul.f32 %v11481_v56, %v11405_v33  ;;  %v11813_v37 = vld [vmem:[#allocation6_spill] sm:$0xff] }
 0x474   : > { %v6546_v43 = vmul.f32 0.2, %v6514_v48  ;;  %v6512_v10 = vadd.f32 %v6480_v41, %v6447_v14  ;;  %v6485_v22 = vmul.f32 %v11483_v23, %v6419_v55  ;;  %v6417_v31 = vadd.f32 %v11513_v47, %v5973_v53 }
 0x475   : > { %v11563_v54 = vpop.f32.mrf.mxu0  ;;  %v5984_v49 = vadd.f32 %v8890_v25, %v11369_v60  ;;  %8975 = vmatprep.mubr.bf16.mxu1 %v6601_v0  ;;  %v5975_v34 = vpop.f32.mrf.mxu1  ;;  %v6575_v7 = vmax.f32 %v6511_v29, %v6543_v32  ;;  %v6454_v41 = vmul.f32 %v11481_v56, %v11419_v16 }
 0x476   : > { %v6578_v40 = vmax.f32 %v6514_v48, %v6546_v43  ;;  %v6483_v8 = vmul.f32 %v11483_v23, %v6417_v31  ;;  %v5976_v42 = vadd.f32 %v5975_v34, %v11374_v51  ;;  %8976 = vmatmul.mubr.bf16.gmra.mxu1 %v6602_v61  ;;  %v6517_v15 = vadd.f32 %v6485_v22, %v6452_v62  ;;  %v11814_v34 = vld [vmem:[#allocation22_spill] sm:$0xff] }
 0x477   : > { %v11567_v12 = vpop.f32.mrf.mxu0  ;;  %v6420_v38 = vadd.f32 %v11520_v4, %v5984_v49  ;;  %v8893_v2 = vpop.f32.mrf.mxu1  ;;  %v6544_v60 = vmul.f32 0.2, %v6512_v10  ;;  %v6451_v4 = vmul.f32 %v11481_v56, %v11409_v44  ;;  %v6456_v48 = vmul.f32 %v11481_v56, %v11414_v11 }
 0x478   : > { %v6515_v19 = vadd.f32 %v6483_v8, %v6450_v59  ;;  %v6418_v6 = vadd.f32 %v11527_v21, %v5976_v42  ;;  %v5997_v9 = vadd.f32 %v8893_v2, %v11379_v20  ;;  %v6604_v5 = vpack.c.bf16 %v6578_v40, %v6577_v30 }
 0x479   : > { %v11576_v47 = vpop.f32.mrf.mxu0  ;;  %v6486_v51 = vmul.f32 %v11483_v23, %v6420_v38  ;;  %v5988_v39 = vpop.f32.mrf.mxu1  ;;  %v6576_v36 = vmax.f32 %v6512_v10, %v6544_v60  ;;  %v6549_v21 = vmul.f32 0.2, %v6517_v15  ;;  %v6457_v11 = vmul.f32 %v11481_v56, %v11424_v26 }
 0x47a   : > { %v6484_v14 = vmul.f32 %v11483_v23, %v6418_v6  ;;  %v6423_v33 = vadd.f32 %v11534_v46, %v5997_v9  ;;  %v5989_v27 = vadd.f32 %v5988_v39, %v11386_v45  ;;  %v6547_v3 = vmul.f32 0.2, %v6515_v19  ;;  %v11815_v9 = vld [vmem:[#allocation23_spill] sm:$0xff]  ;;  %v11816_v39 = vld [vmem:[#allocation9_spill] sm:$0xff] }
 0x47b   : > { %v11583_v50 = vpop.f32.mrf.mxu0  ;;  %v6518_v63 = vadd.f32 %v6486_v51, %v6453_v57  ;;  %v8894_v20 = vpop.f32.mrf.mxu1  ;;  %v6603_v18 = vpack.c.bf16 %v6576_v36, %v6575_v7  ;;  %v6581_v0 = vmax.f32 %v6517_v15, %v6549_v21  ;;  %v6455_v8 = vmul.f32 %v11481_v56, %v11429_v58  ;;  %v11817_v7 = vld [vmem:[#allocation12_spill] sm:$0xff] }
 0x47c   : > { %v6516_v17 = vadd.f32 %v6484_v14, %v6451_v4  ;;  %v6489_v29 = vmul.f32 %v11483_v23, %v6423_v33  ;;  %v6421_v61 = vadd.f32 %v11539_v24, %v5989_v27  ;;  %v6000_v44 = vadd.f32 %v8894_v20, %v11390_v28  ;;  %v11818_v27 = vld [vmem:[#allocation7_spill] sm:$0xff]  ;;  %v11819_v21 = vld [vmem:[#allocation28_spill] sm:$0xff] }
 0x47d   : > { %v11591_v35 = vpop.f32.mrf.mxu0  ;;  %v6550_v46 = vmul.f32 0.2, %v6518_v63  ;;  %8979 = vmatprep.mubr.bf16.mxu1 %v6603_v18  ;;  %v5991_v45 = vpop.f32.mrf.mxu1  ;;  %v6579_v62 = vmax.f32 %v6515_v19, %v6547_v3  ;;  %v6460_v58 = vmul.f32 %v11481_v56, %v11816_v39  ;;  %v6458_v36 = vmul.f32 %v11481_v56, %v11817_v7  ;;  %v11827_v39 = vld [vmem:[#allocation18_spill] sm:$0xff] }
 0x47e   : > { %v6487_v55 = vmul.f32 %v11483_v23, %v6421_v61  ;;  %v6424_v53 = vadd.f32 %v11549_v1, %v6000_v44  ;;  %v5992_v25 = vadd.f32 %v5991_v45, %v11813_v37  ;;  %8980 = vmatmul.mubr.bf16.gmra.mxu1 %v6604_v5  ;;  %v6521_v43 = vadd.f32 %v6489_v29, %v6456_v48 }
 0x47f   : > { %v6582_v24 = vmax.f32 %v6518_v63, %v6550_v46  ;;  %v8897_v28 = vpop.f32.mrf.mxu1  ;;  %v6548_v10 = vmul.f32 0.2, %v6516_v17  ;;  %v6374_v22 = vpop.f32.mrf.mxu0  ;;  %v6461_v63 = vmul.f32 %v11481_v56, %v11819_v21  ;;  %v11820_v46 = vld [vmem:[#allocation24_spill] sm:$0xff] }
 0x480   : > { %v6490_v31 = vmul.f32 %v11483_v23, %v6424_v53  ;;  %v6422_v16 = vadd.f32 %v11558_v52, %v5992_v25  ;;  %v6519_v49 = vadd.f32 %v6487_v55, %v6454_v41  ;;  %v6013_v1 = vadd.f32 %v8897_v28, %v11814_v34  ;;  %v11821_v41 = vld [vmem:[#allocation14_spill] sm:$0xff]  ;;  %v11822_v28 = vld [vmem:[#allocation25_spill] sm:$0xff] }
 0x481   : > { %v6004_v32 = vpop.f32.mrf.mxu1  ;;  %v6580_v59 = vmax.f32 %v6516_v17, %v6548_v10  ;;  %v6606_v40 = vpack.c.bf16 %v6582_v24, %v6581_v0  ;;  %v6553_v26 = vmul.f32 0.2, %v6521_v43  ;;  %v8950_v60 = vpop.f32.mrf.mxu0 }
 0x482   : > { %v6522_v42 = vadd.f32 %v6490_v31, %v6457_v11  ;;  %v6488_v30 = vmul.f32 %v11483_v23, %v6422_v16  ;;  %v6005_v15 = vadd.f32 %v6004_v32, %v11407_v13  ;;  %v6427_v38 = vadd.f32 %v11563_v54, %v6013_v1 }
 0x483   : > { %v8898_v2 = vpop.f32.mrf.mxu1  ;;  %v6605_v52 = vpack.c.bf16 %v6580_v59, %v6579_v62  ;;  %v6551_v54 = vmul.f32 0.2, %v6519_v49  ;;  %v6585_v20 = vmax.f32 %v6521_v43, %v6553_v26  ;;  %v6377_v17 = vpop.f32.mrf.mxu0 }
 0x484   : > { %v6554_v57 = vmul.f32 0.2, %v6522_v42  ;;  %v6520_v19 = vadd.f32 %v6488_v30, %v6455_v8  ;;  %v6425_v6 = vadd.f32 %v11567_v12, %v6005_v15  ;;  %v6016_v51 = vadd.f32 %v8898_v2, %v11815_v9  ;;  %v11824_v8 = vld [vmem:[#allocation8_spill] sm:$0xff]  ;;  %v11826_v2 = vld [vmem:[#allocation26_spill] sm:$0xff] }
 0x485   : > { %v6493_v13 = vmul.f32 %v11483_v23, %v6427_v38  ;;  %8983 = vmatprep.mubr.bf16.mxu1 %v6605_v52  ;;  %v6007_v5 = vpop.f32.mrf.mxu1  ;;  %v6583_v53 = vmax.f32 %v6519_v49, %v6551_v54  ;;  %v11823_v49 = vld [vmem:[#allocation10_spill] sm:$0xff] }
 0x486   : > { %v6586_v4 = vmax.f32 %v6522_v42, %v6554_v57  ;;  %v6491_v14 = vmul.f32 %v11483_v23, %v6425_v6  ;;  %v6428_v33 = vadd.f32 %v11576_v47, %v6016_v51  ;;  %v6008_v12 = vadd.f32 %v6007_v5, %v11818_v27  ;;  %8984 = vmatmul.mubr.bf16.gmra.mxu1 %v6606_v40 }
 0x487   : > { %v6525_v18 = vadd.f32 %v6493_v13, %v6460_v58  ;;  %v8901_v3 = vpop.f32.mrf.mxu1  ;;  %v6552_v29 = vmul.f32 0.2, %v6520_v19  ;;  %v6459_v47 = vmul.f32 %v11481_v56, %v11821_v41  ;;  %v6464_v40 = vmul.f32 %v11481_v56, %v11823_v49 }
 0x488   : > { %v6523_v61 = vadd.f32 %v6491_v14, %v6458_v36  ;;  %v6494_v44 = vmul.f32 %v11483_v23, %v6428_v33  ;;  %v6426_v48 = vadd.f32 %v11583_v50, %v6008_v12  ;;  %v6029_v45 = vadd.f32 %v8901_v3, %v11820_v46  ;;  %v8953_v50 = vpop.f32.mrf.mxu0  ;;  %v11828_v36 = vld [vmem:[#allocation27_spill] sm:$0xff] }
 0x489   : > { %v6020_v55 = vpop.f32.mrf.mxu1  ;;  %v6584_v37 = vmax.f32 %v6520_v19, %v6552_v29  ;;  %v6608_v25 = vpack.c.bf16 %v6586_v4, %v6585_v20  ;;  %v6557_v11 = vmul.f32 0.2, %v6525_v18  ;;  %v6465_v58 = vmul.f32 %v11481_v56, %v11827_v39  ;;  %v11829_v12 = vld [vmem:[#allocation19_spill] sm:$0xff]  ;;  %v11830_v20 = vld [vmem:[#allocation13_spill] sm:$0xff] }
 0x48a   : > { %v6526_v0 = vadd.f32 %v6494_v44, %v6461_v63  ;;  %v6492_v24 = vmul.f32 %v11483_v23, %v6426_v48  ;;  %v6431_v43 = vadd.f32 %v11591_v35, %v6029_v45  ;;  %v6021_v10 = vadd.f32 %v6020_v55, %v11822_v28  ;;  %v11825_v35 = vld [vmem:[#allocation17_spill] sm:$0xff]  ;;  %v6390_v9 = vpop.f32.mrf.mxu0  ;;  %v11831_v3 = vld [vmem:[#allocation15_spill] sm:$0xff]  ;;  %v11832_v55 = vld [vmem:[#allocation16_spill] sm:$0xff] }
 0x48b   : > { %v8902_v31 = vpop.f32.mrf.mxu1  ;;  %v6607_v16 = vpack.c.bf16 %v6584_v37, %v6583_v53  ;;  %v6555_v62 = vmul.f32 0.2, %v6523_v61  ;;  %v6462_v15 = vmul.f32 %v11481_v56, %v11825_v35  ;;  %v6589_v57 = vmax.f32 %v6525_v18, %v6557_v11  ;;  %v11833_v37 = vld [vmem:[#allocation20_spill] sm:$0xff] }
 0x48c   : > { %v6558_v34 = vmul.f32 0.2, %v6526_v0  ;;  %v6524_v1 = vadd.f32 %v6492_v24, %v6459_v47  ;;  %v6497_v32 = vmul.f32 %v11483_v23, %v6431_v43  ;;  %v6429_v59 = vadd.f32 %v6374_v22, %v6021_v10 }
 0x48d   : > { %v6032_v42 = vadd.f32 %v8902_v31, %v11824_v8  ;;  %8987 = vmatprep.mubr.bf16.mxu1 %v6607_v16  ;;  %v6023_v30 = vpop.f32.mrf.mxu1  ;;  %v6587_v5 = vmax.f32 %v6523_v61, %v6555_v62  ;;  %v6463_v21 = vmul.f32 %v11481_v56, %v11829_v12  ;;  %v8954_v61 = vpop.f32.mrf.mxu0  ;;  %v11834_v31 = vld [vmem:[#allocation11_spill] sm:$0xff] }
 0x48e   : > { %v6590_v26 = vmax.f32 %v6526_v0, %v6558_v34  ;;  %v6495_v38 = vmul.f32 %v11483_v23, %v6429_v59  ;;  %v6024_v52 = vadd.f32 %v6023_v30, %v11826_v2  ;;  %8988 = vmatmul.mubr.bf16.gmra.mxu1 %v6608_v25  ;;  %v6529_v19 = vadd.f32 %v6497_v32, %v6464_v40  ;;  %v11835_v32 = vld [vmem:[#allocation21_spill] sm:$0xff] }
 0x48f   : > { %v6432_v6 = vadd.f32 %v8950_v60, %v6032_v42  ;;  %v8905_v22 = vpop.f32.mrf.mxu1  ;;  %v6556_v51 = vmul.f32 0.2, %v6524_v1  ;;  %v6466_v25 = vmul.f32 %v11481_v56, %v11833_v37  ;;  %v6393_v34 = vpop.f32.mrf.mxu0  ;;  %v6469_v59 = vmul.f32 %v11481_v56, %v11835_v32 }
 0x490   : > { %v6430_v7 = vadd.f32 %v6377_v17, %v6024_v52  ;;  %v6045_v13 = vadd.f32 %v8905_v22, %v11828_v36  ;;  %v6527_v54 = vadd.f32 %v6495_v38, %v6462_v15  ;;  %v6610_v27 = vpack.c.bf16 %v6590_v26, %v6589_v57  ;;  %v11836_v15 = vld [vmem:[#allocation29_spill] sm:$0xff] }
 0x491   : > { %v6498_v4 = vmul.f32 %v11483_v23, %v6432_v6  ;;  %v6036_v14 = vpop.f32.mrf.mxu1  ;;  %v6588_v33 = vmax.f32 %v6524_v1, %v6556_v51  ;;  %v6468_v17 = vmul.f32 %v11481_v56, %v11831_v3  ;;  %v6561_v29 = vmul.f32 0.2, %v6529_v19 }
 0x492   : > { %v6496_v60 = vmul.f32 %v11483_v23, %v6430_v7  ;;  %v6435_v63 = vadd.f32 %v8953_v50, %v6045_v13  ;;  %v6037_v18 = vadd.f32 %v6036_v14, %v11830_v20  ;;  %v6559_v43 = vmul.f32 0.2, %v6527_v54  ;;  %v7967_v20 = vld [vmem:[%s11667_s20 + $0x18] sm:$0xff]  }
 0x493   : > { %v6530_v44 = vadd.f32 %v6498_v4, %v6465_v58  ;;  %v8906_v48 = vpop.f32.mrf.mxu1  ;;  %v6609_v46 = vpack.c.bf16 %v6588_v33, %v6587_v5  ;;  %v6593_v50 = vmax.f32 %v6529_v19, %v6561_v29  ;;  %v6467_v26 = vmul.f32 %v11481_v56, %v11836_v15  ;;  %v7822_v5 = vld [vmem:[%s11667_s20] sm:$0xff]  }
 0x494   : > { %v6528_v45 = vadd.f32 %v6496_v60, %v6463_v21  ;;  %v6501_v41 = vmul.f32 %v11483_v23, %v6435_v63  ;;  %v6433_v47 = vadd.f32 %v6390_v9, %v6037_v18  ;;  %v6048_v53 = vadd.f32 %v8906_v48, %v11832_v55 }
 0x495   : > { %v6562_v0 = vmul.f32 0.2, %v6530_v44  ;;  %8991 = vmatprep.mubr.bf16.mxu1 %v6609_v46  ;;  %v6039_v24 = vpop.f32.mrf.mxu1  ;;  %v6591_v42 = vmax.f32 %v6527_v54, %v6559_v43  ;;  %v7823_v33 = vunpack.c.l.bf16 %v7822_v5  ;;  %v7835_v48 = vunpack.c.l.bf16 %v7967_v20 }
 0x496   : > { %v6533_v28 = vadd.f32 %v6501_v41, %v6468_v17  ;;  %v6499_v10 = vmul.f32 %v11483_v23, %v6433_v47  ;;  %v6436_v11 = vadd.f32 %v8954_v61, %v6048_v53  ;;  %v6040_v16 = vadd.f32 %v6039_v24, %v11834_v31  ;;  %8992 = vmatmul.mubr.bf16.gmra.mxu1 %v6610_v27 }
 0x497   : > { %v6594_v62 = vmax.f32 %v6530_v44, %v6562_v0  ;;  %v6560_v1 = vmul.f32 0.2, %v6528_v45  ;;  %v7824_v27 = vunpack.c.h.bf16 %v7822_v5  ;;  %v7966_v44 = vld [vmem:[%s11667_s20 + $0x10] sm:$0xff]   ;;  %v7836_v46 = vunpack.c.h.bf16 %v7967_v20  ;;  %v7969_v0 = vld [vmem:[%s11667_s20 + $0x28] sm:$0xff]   ;;  %v7975_v20 = vld [vmem:[%s11667_s20 + $0x58] sm:$0xff]  }
 0x498   : > { %v6531_v49 = vadd.f32 %v6499_v10, %v6466_v25  ;;  %v6502_v40 = vmul.f32 %v11483_v23, %v6436_v11  ;;  %v6434_v8 = vadd.f32 %v6393_v34, %v6040_v16  ;;  %v6565_v38 = vmul.f32 0.2, %v6533_v28  ;;  %v7968_v11 = vld [vmem:[%s11667_s20 + $0x20] sm:$0xff]  }
 0x499   : > { %v6592_v30 = vmax.f32 %v6528_v45, %v6560_v1  ;;  %v6612_v35 = vpack.c.bf16 %v6594_v62, %v6593_v50  ;;  %v7831_v41 = vunpack.c.l.bf16 %v7966_v44  ;;  %v7832_v47 = vunpack.c.h.bf16 %v7966_v44  ;;  %v7974_v44 = vld [vmem:[%s11667_s20 + $0x50] sm:$0xff]  }
 0x49a   : > { %v6534_v2 = vadd.f32 %v6502_v40, %v6469_v59  ;;  %v6500_v52 = vmul.f32 %v11483_v23, %v6434_v8  ;;  %v6563_v22 = vmul.f32 0.2, %v6531_v49  ;;  %v6597_v9 = vmax.f32 %v6533_v28, %v6565_v38  ;;  %v7965_v23 = vld [vmem:[%s11667_s20 + $0x8] sm:$0xff]   ;;  %v7971_v8 = vld [vmem:[%s11667_s20 + $0x38] sm:$0xff]  }
 0x49b   : > { %v6611_v57 = vpack.c.bf16 %v6592_v30, %v6591_v42  ;;  %v7827_v54 = vunpack.c.l.bf16 %v7965_v23  ;;  %v7828_v4 = vunpack.c.h.bf16 %v7965_v23  ;;  %v7843_v16 = vunpack.c.l.bf16 %v7969_v0 }
 0x49c   : > { %v6566_v19 = vmul.f32 0.2, %v6534_v2  ;;  %v6532_v6 = vadd.f32 %v6500_v52, %v6467_v26  ;;  %v6595_v58 = vmax.f32 %v6531_v49, %v6563_v22  ;;  %v7844_v50 = vunpack.c.h.bf16 %v7969_v0  ;;  %v7970_v26 = vld [vmem:[%s11667_s20 + $0x30] sm:$0xff]   ;;  %v7977_v0 = vld [vmem:[%s11667_s20 + $0x68] sm:$0xff]  }
 0x49d   : > { %8995 = vmatprep.mubr.bf16.mxu1 %v6611_v57  ;;  %v7839_v34 = vunpack.c.l.bf16 %v7968_v11  ;;  %v7840_v1 = vunpack.c.h.bf16 %v7968_v11  ;;  %v7852_v52 = vunpack.c.h.bf16 %v7971_v8  ;;  %v7976_v11 = vld [vmem:[%s11667_s20 + $0x60] sm:$0xff]  }
 0x49e   : > { %v6598_v51 = vmax.f32 %v6534_v2, %v6566_v19  ;;  %8996 = vmatmul.mubr.bf16.gmra.mxu1 %v6612_v35  ;;  %v6564_v39 = vmul.f32 0.2, %v6532_v6  ;;  %v7851_v2 = vunpack.c.l.bf16 %v7971_v8  ;;  %v7847_v19 = vunpack.c.l.bf16 %v7970_v26  ;;  %v7979_v8 = vld [vmem:[%s11667_s20 + $0x78] sm:$0xff]  }
 0x4a0   : > { %v6596_v7 = vmax.f32 %v6532_v6, %v6564_v39  ;;  %v6614_v36 = vpack.c.bf16 %v6598_v51, %v6597_v9  ;;  %v7848_v6 = vunpack.c.h.bf16 %v7970_v26  ;;  %v7978_v26 = vld [vmem:[%s11667_s20 + $0x70] sm:$0xff]  }
 0x4a2   : > { %v6613_v13 = vpack.c.bf16 %v6596_v7, %v6595_v58  ;;  %v7973_v58 = vld [vmem:[%s11667_s20 + $0x48] sm:$0xff]  }
 0x4a4   : > { %8999 = vmatprep.mubr.bf16.mxu1 %v6613_v13 }
 0x4a6   : > { %9000 = vmatmul.mubr.bf16.gmra.mxu1 %v6614_v36 }
 0x52e   : > { %v8973_v56 = vpop.f32.mrf.mxu1 }
 0x52f   : > { %v6786_v21 = vadd.f32 %v8973_v56, %v7827_v54  ;;  %v7972_v56 = vld [vmem:[%s11667_s20 + $0x40] sm:$0xff]   ;;  %v7859_v54 = vunpack.c.l.bf16 %v7973_v58 }
 0x530   : > { %v6777_v14 = vpop.f32.mrf.mxu1 }
 0x531   : > { %v6778_v18 = vadd.f32 %v7823_v33, %v6777_v14  ;;  %v7855_v33 = vunpack.c.l.bf16 %v7972_v56 }
 0x532   : > { %v8974_v12 = vpop.f32.mrf.mxu1 }
 0x533   : > { %v6789_v60 = vadd.f32 %v8974_v12, %v7828_v4  ;;  %v7860_v4 = vunpack.c.h.bf16 %v7973_v58 }
 0x534   : > { %v6780_v63 = vpop.f32.mrf.mxu1 }
 0x535   : > { %v7893_v3 = vpack.c.bf16 %v6789_v60, %v6786_v21  ;;  %v6781_v17 = vadd.f32 %v7824_v27, %v6780_v63  ;;  %v7856_v27 = vunpack.c.h.bf16 %v7972_v56 }
 0x536   : > { %v8977_v29 = vpop.f32.mrf.mxu1 }
 0x537   : > { %7980 = vst [vmem:[%s11674_s22 + $0x8] sm:$0xff] %v7893_v3   ;;  %v7888_v61 = vpack.c.bf16 %v6781_v17, %v6778_v18  ;;  %v6802_v53 = vadd.f32 %v8977_v29, %v7835_v48  ;;  %v7867_v48 = vunpack.c.l.bf16 %v7975_v20 }
 0x538   : > { %v6793_v45 = vpop.f32.mrf.mxu1 }
 0x539   : > { %7889 = vst [vmem:[%s11674_s22] sm:$0xff] %v7888_v61   ;;  %v6794_v24 = vadd.f32 %v7831_v41, %v6793_v45  ;;  %v7863_v41 = vunpack.c.l.bf16 %v7974_v44 }
 0x53a   : > { %v8978_v55 = vpop.f32.mrf.mxu1 }
 0x53b   : > { %v6805_v37 = vadd.f32 %v8978_v55, %v7836_v46  ;;  %v7868_v46 = vunpack.c.h.bf16 %v7975_v20 }
 0x53c   : > { %v6796_v25 = vpop.f32.mrf.mxu1 }
 0x53d   : > { %v7903_v43 = vpack.c.bf16 %v6805_v37, %v6802_v53  ;;  %v6797_v28 = vadd.f32 %v7832_v47, %v6796_v25  ;;  %v7864_v47 = vunpack.c.h.bf16 %v7974_v44 }
 0x53e   : > { %v8981_v10 = vpop.f32.mrf.mxu1 }
 0x53f   : > { %7982 = vst [vmem:[%s11674_s22 + $0x18] sm:$0xff] %v7903_v43   ;;  %v7898_v31 = vpack.c.bf16 %v6797_v28, %v6794_v24  ;;  %v6818_v59 = vadd.f32 %v8981_v10, %v7843_v16  ;;  %v7875_v16 = vunpack.c.l.bf16 %v7977_v0 }
 0x540   : > { %v6809_v62 = vpop.f32.mrf.mxu1 }
 0x541   : > { %7981 = vst [vmem:[%s11674_s22 + $0x10] sm:$0xff] %v7898_v31   ;;  %v6810_v42 = vadd.f32 %v7839_v34, %v6809_v62  ;;  %v7871_v34 = vunpack.c.l.bf16 %v7976_v11 }
 0x542   : > { %v8982_v32 = vpop.f32.mrf.mxu1 }
 0x543   : > { %v6821_v49 = vadd.f32 %v8982_v32, %v7844_v50  ;;  %v7876_v50 = vunpack.c.h.bf16 %v7977_v0 }
 0x544   : > { %v6812_v40 = vpop.f32.mrf.mxu1 }
 0x545   : > { %v7913_v30 = vpack.c.bf16 %v6821_v49, %v6818_v59  ;;  %v6813_v35 = vadd.f32 %v7840_v1, %v6812_v40  ;;  %v7872_v1 = vunpack.c.h.bf16 %v7976_v11 }
 0x546   : > { %v8985_v15 = vpop.f32.mrf.mxu1 }
 0x547   : > { %7984 = vst [vmem:[%s11674_s22 + $0x28] sm:$0xff] %v7913_v30   ;;  %v7908_v38 = vpack.c.bf16 %v6813_v35, %v6810_v42  ;;  %v6834_v9 = vadd.f32 %v8985_v15, %v7851_v2  ;;  %v7883_v2 = vunpack.c.l.bf16 %v7979_v8 }
 0x548   : > { %v6825_v57 = vpop.f32.mrf.mxu1 }
 0x549   : > { %7983 = vst [vmem:[%s11674_s22 + $0x20] sm:$0xff] %v7908_v38   ;;  %v6826_v7 = vadd.f32 %v7847_v19, %v6825_v57  ;;  %v7879_v19 = vunpack.c.l.bf16 %v7978_v26 }
 0x54a   : > { %v8986_v22 = vpop.f32.mrf.mxu1 }
 0x54b   : > { %v6837_v51 = vadd.f32 %v8986_v22, %v7852_v52  ;;  %v7884_v52 = vunpack.c.h.bf16 %v7979_v8 }
 0x54c   : > { %v6828_v39 = vpop.f32.mrf.mxu1 }
 0x54d   : > { %v7923_v36 = vpack.c.bf16 %v6837_v51, %v6834_v9  ;;  %v6829_v13 = vadd.f32 %v7848_v6, %v6828_v39  ;;  %v7880_v6 = vunpack.c.h.bf16 %v7978_v26 }
 0x54e   : > { %v8989_v23 = vpop.f32.mrf.mxu1 }
 0x54f   : > { %7986 = vst [vmem:[%s11674_s22 + $0x38] sm:$0xff] %v7923_v36   ;;  %v7918_v5 = vpack.c.bf16 %v6829_v13, %v6826_v7  ;;  %v6850_v21 = vadd.f32 %v8989_v23, %v7859_v54 }
 0x550   : > { %v6841_v14 = vpop.f32.mrf.mxu1 }
 0x551   : > { %7985 = vst [vmem:[%s11674_s22 + $0x30] sm:$0xff] %v7918_v5   ;;  %v6842_v18 = vadd.f32 %v7855_v33, %v6841_v14 }
 0x552   : > { %v8990_v12 = vpop.f32.mrf.mxu1 }
 0x553   : > { %v6853_v60 = vadd.f32 %v8990_v12, %v7860_v4 }
 0x554   : > { %v6844_v63 = vpop.f32.mrf.mxu1 }
 0x555   : > { %v7933_v3 = vpack.c.bf16 %v6853_v60, %v6850_v21  ;;  %v6845_v17 = vadd.f32 %v7856_v27, %v6844_v63 }
 0x556   : > { %v8993_v29 = vpop.f32.mrf.mxu1 }
 0x557   : > { %7988 = vst [vmem:[%s11674_s22 + $0x48] sm:$0xff] %v7933_v3   ;;  %v7928_v61 = vpack.c.bf16 %v6845_v17, %v6842_v18  ;;  %v6866_v53 = vadd.f32 %v8993_v29, %v7867_v48 }
 0x558   : > { %v6857_v45 = vpop.f32.mrf.mxu1 }
 0x559   : > { %7987 = vst [vmem:[%s11674_s22 + $0x40] sm:$0xff] %v7928_v61   ;;  %v6858_v24 = vadd.f32 %v7863_v41, %v6857_v45 }
 0x55a   : > { %v8994_v55 = vpop.f32.mrf.mxu1 }
 0x55b   : > { %v6869_v37 = vadd.f32 %v8994_v55, %v7868_v46 }
 0x55c   : > { %v6860_v25 = vpop.f32.mrf.mxu1 }
 0x55d   : > { %v7943_v43 = vpack.c.bf16 %v6869_v37, %v6866_v53  ;;  %v6861_v28 = vadd.f32 %v7864_v47, %v6860_v25 }
 0x55e   : > { %v8997_v10 = vpop.f32.mrf.mxu1 }
 0x55f   : > { %7990 = vst [vmem:[%s11674_s22 + $0x58] sm:$0xff] %v7943_v43   ;;  %v7938_v31 = vpack.c.bf16 %v6861_v28, %v6858_v24  ;;  %v6882_v59 = vadd.f32 %v8997_v10, %v7875_v16 }
 0x560   : > { %v6873_v62 = vpop.f32.mrf.mxu1 }
 0x561   : > { %7989 = vst [vmem:[%s11674_s22 + $0x50] sm:$0xff] %v7938_v31   ;;  %v6874_v42 = vadd.f32 %v7871_v34, %v6873_v62 }
 0x562   : > { %v8998_v32 = vpop.f32.mrf.mxu1 }
 0x563   : > { %v6885_v49 = vadd.f32 %v8998_v32, %v7876_v50 }
 0x564   : > { %v6876_v40 = vpop.f32.mrf.mxu1 }
 0x565   : > { %v7953_v30 = vpack.c.bf16 %v6885_v49, %v6882_v59  ;;  %v6877_v35 = vadd.f32 %v7872_v1, %v6876_v40 }
 0x566   : > { %v9001_v15 = vpop.f32.mrf.mxu1 }
 0x567   : > { %7992 = vst [vmem:[%s11674_s22 + $0x68] sm:$0xff] %v7953_v30   ;;  %v7948_v38 = vpack.c.bf16 %v6877_v35, %v6874_v42  ;;  %v6898_v9 = vadd.f32 %v9001_v15, %v7883_v2 }
 0x568   : > { %v6889_v57 = vpop.f32.mrf.mxu1 }
 0x569   : > { %7991 = vst [vmem:[%s11674_s22 + $0x60] sm:$0xff] %v7948_v38   ;;  %v6890_v58 = vadd.f32 %v7879_v19, %v6889_v57 }
 0x56a   : > { %v9002_v22 = vpop.f32.mrf.mxu1 }
 0x56b   : > { %v6901_v51 = vadd.f32 %v9002_v22, %v7884_v52 }
 0x56c   : > { %v6892_v39 = vpop.f32.mrf.mxu1 }
 0x56d   : > { %v7963_v7 = vpack.c.bf16 %v6901_v51, %v6898_v9  ;;  %v6893_v36 = vadd.f32 %v7880_v6, %v6892_v39 }
 0x56f   : > { %7994 = vst [vmem:[%s11674_s22 + $0x78] sm:$0xff] %v7963_v7   ;;  %v7958_v13 = vpack.c.bf16 %v6893_v36, %v6890_v58 }
 0x571   : > { %7993 = vst [vmem:[%s11674_s22 + $0x70] sm:$0xff] %v7958_v13  }
 0x572 PF: > { %s21_s13 = sadd.s32 1, %s9407_s13  }
 0x573   : > { %p18_p1 = scmp.ge.s32.totalorder %s21_s13, 4  }
 0x575   :  { %20 = sbr.rel (!%p18_p1) target bundleno = 1 (0x1), region = 109 }
 0x57a   :  { %7085 = vsyncpa [#allocation4], 1 }
 0x57b   :  { %7087 = vsyncpa [#allocation4 + $0x1], 1 }

</bundles_post_ra>
